<compile_context>
chip_gen: v7x
topology: tpu7x:2x2x1
jax: 0.10.0
libtpu: 0.0.40
codegen_flags: <defaults>
</compile_context>

<pallas_src>
import math

import jax
import jax.numpy as jnp
from jax import lax
from jax.experimental import pallas as pl
from jax.experimental.pallas import tpu as pltpu


def std_to_pho(std: float) -> float:
    return math.log(math.exp(std) - 1.0)


def _stable_softplus(x):
    # Matches the module's (1 + exp(x)).log() for moderate x; avoids overflow for large x.
    return jnp.where(x > 20.0, x, jnp.log1p(jnp.exp(jnp.minimum(x, 20.0))))


# Contract the last dim of both operands: (tm, tk) x (tn, tk) -> (tm, tn)  (i.e. A @ B^T).
_DN = (((1,), (1,)), ((), ()))


def _bayes_linear_prob_kernel(x_ref, wm_ref, wpho_ref, zeta_ref, o_ref, delta_acc):
    k = pl.program_id(2)

    @pl.when(k == 0)
    def _():
        o_ref[...] = jnp.zeros_like(o_ref)          # gamma accumulates in the output block
        delta_acc[...] = jnp.zeros_like(delta_acc)

    x = x_ref[...]                                  # (tm, tk) bf16
    wm = wm_ref[...]                                # (tn, tk) bf16

    # Fused variance transform (EUP/VPU work, hidden under the MXU), f32 then bf16 for MXU.
    pho = wpho_ref[...].astype(jnp.float32)         # (tn, tk)
    wstd = _stable_softplus(pho)
    wv = (wstd * wstd).astype(jnp.bfloat16)

    xf = x.astype(jnp.float32)
    x2 = (xf * xf).astype(jnp.bfloat16)

    o_ref[...] += lax.dot_general(x, wm, _DN, preferred_element_type=jnp.float32)
    delta_acc[...] += lax.dot_general(x2, wv, _DN, preferred_element_type=jnp.float32)

    @pl.when(k == pl.num_programs(2) - 1)
    def _():
        delta = jnp.maximum(delta_acc[...], 0.0)    # guard sqrt against tiny negatives
        o_ref[...] += jnp.sqrt(delta) * zeta_ref[...]


def _bayes_linear_det_kernel(x_ref, wm_ref, o_ref):
    k = pl.program_id(2)

    @pl.when(k == 0)
    def _():
        o_ref[...] = jnp.zeros_like(o_ref)

    o_ref[...] += lax.dot_general(x_ref[...], wm_ref[...], _DN,
                                  preferred_element_type=jnp.float32)


def _round_up(x, m):
    return ((x + m - 1) // m) * m


def _pick_tile(dim, pref, align):
    """Largest aligned tile <= pref that minimizes padded-extent waste."""
    d = _round_up(dim, align)
    if d <= pref:
        return d
    best_t, best_pad = align, None
    for t in range(pref, align - 1, -align):
        padded = _round_up(d, t)
        if best_pad is None or padded < best_pad:
            best_t, best_pad = t, padded
    return best_t


def _maybe_pad(a, rows, cols, dtype):
    a = a.astype(dtype)
    r, c = a.shape
    if r == rows and c == cols:
        return a
    return jnp.pad(a, ((0, rows - r), (0, cols - c)))


def bayes_linear_forward(x, w_mean, w_pho, zeta=None, *, is_prob=True,
                         tm=None, tn=None, tk=None):
    """Forward of BayesLinearLayer (bias=False).

    x: (N, in_chans) f32; w_mean, w_pho: (out_chans, in_chans); zeta: (N, out_chans).
    Returns (N, out_chans) f32.
    """
    M, K = x.shape
    Nout = w_mean.shape[0]

    # Tile selection: lane-dense on K / out_chans, sublane-aligned on M.
    tm = tm or _pick_tile(M, 256, 8)
    tk = tk or _pick_tile(K, 1024, 128)
    tn = tn or _pick_tile(Nout, 512, 128)

    Mp, Kp, Np = _round_up(M, tm), _round_up(K, tk), _round_up(Nout, tn)

    # bf16 operands into the MXU (zero padding: padded K columns of x are zero, so padded
    # w_pho rows/cols cannot leak into delta; padded output columns are sliced off below).
    xb = _maybe_pad(x, Mp, Kp, jnp.bfloat16)
    wmb = _maybe_pad(w_mean, Np, Kp, jnp.bfloat16)

    grid = (Mp // tm, Np // tn, Kp // tk)
    cp = pltpu.CompilerParams(
        dimension_semantics=("parallel", "parallel", "arbitrary"))

    if not is_prob:
        # Deterministic path: gamma only — no w_pho, no zeta, no second matmul.
        out = pl.pallas_call(
            _bayes_linear_det_kernel,
            out_shape=jax.ShapeDtypeStruct((Mp, Np), jnp.float32),
            grid_spec=pltpu.PrefetchScalarGridSpec(
                num_scalar_prefetch=0,
                grid=grid,
                in_specs=[
                    pl.BlockSpec((tm, tk), lambda i, j, k: (i, k)),
                    pl.BlockSpec((tn, tk), lambda i, j, k: (j, k)),
                ],
                out_specs=pl.BlockSpec((tm, tn), lambda i, j, k: (i, j)),
            ),
            compiler_params=cp,
        )(xb, wmb)
        return out[:M, :Nout]

    wpb = _maybe_pad(w_pho, Np, Kp, jnp.bfloat16)
    zf = _maybe_pad(zeta, Mp, Np, jnp.float32)
    # NOTE: zeta is passed explicitly so the reference check is exact; it could instead be
    # generated in-kernel via pltpu.prng_seed / pltpu.stateful_normal to drop one HBM stream
    # (changes the random stream relative to torch.randn).

    out = pl.pallas_call(
        _bayes_linear_prob_kernel,
        out_shape=jax.ShapeDtypeStruct((Mp, Np), jnp.float32),
        grid_spec=pltpu.PrefetchScalarGridSpec(
            num_scalar_prefetch=0,
            grid=grid,
            in_specs=[
                pl.BlockSpec((tm, tk), lambda i, j, k: (i, k)),   # x
                pl.BlockSpec((tn, tk), lambda i, j, k: (j, k)),   # w_mean (out, in) tile
                pl.BlockSpec((tn, tk), lambda i, j, k: (j, k)),   # w_pho  (out, in) tile
                pl.BlockSpec((tm, tn), lambda i, j, k: (i, j)),   # zeta (fetched once per i,j)
            ],
            out_specs=pl.BlockSpec((tm, tn), lambda i, j, k: (i, j)),
            scratch_shapes=[pltpu.VMEM((tm, tn), jnp.float32)],   # delta accumulator
        ),
        compiler_params=cp,
    )(xb, wmb, wpb, zf)
    return out[:M, :Nout]
    # TODO(synk): bias=True branch (b_mean/b_pho additions in the finalize phase) not
    # implemented; module default is bias=False.


if __name__ == "__main__":
    # Small shapes consistent with the module's forward: x is (N, in_chans).
    # in_chans=1536 exercises a multi-step reduction grid (tk=768 -> 2 K steps, no padding);
    # out_chans=320 exercises lane padding on the output axis.
    M, in_chans, out_chans = 40, 1536, 320
    prior_std = 0.5

    key = jax.random.PRNGKey(0)
    k_x, k_w, k_z = jax.random.split(key, 3)

    x = jax.random.normal(k_x, (M, in_chans), dtype=jnp.float32)
    # Deterministic parameter init mirroring __init__:
    #   w_mean ~ randn, w_pho filled with std_to_pho(prior_std)
    w_mean = jax.random.normal(k_w, (out_chans, in_chans), dtype=jnp.float32)
    w_pho = jnp.full((out_chans, in_chans), std_to_pho(prior_std), dtype=jnp.float32)
    # zeta ~ N(0,1), one draw per output element (same role as torch.randn(gamma.size()))
    zeta = jax.random.normal(k_z, (M, out_chans), dtype=jnp.float32)

    y = bayes_linear_forward(x, w_mean, w_pho, zeta, is_prob=True)
    y = jax.block_until_ready(y)
    y_det = bayes_linear_forward(x, w_mean, w_pho, is_prob=False)
    y_det = jax.block_until_ready(y_det)

    # Pure-JAX reference replicating the kernel's bf16 operand rounding (f32 accumulation).
    xb = x.astype(jnp.bfloat16).astype(jnp.float32)
    wmb = w_mean.astype(jnp.bfloat16).astype(jnp.float32)
    phob = w_pho.astype(jnp.bfloat16).astype(jnp.float32)
    wstd = _stable_softplus(phob)
    wv = (wstd * wstd).astype(jnp.bfloat16).astype(jnp.float32)
    x2 = (xb * xb).astype(jnp.bfloat16).astype(jnp.float32)
    gamma_ref = xb @ wmb.T
    delta_ref = x2 @ wv.T
    y_ref = gamma_ref + jnp.sqrt(delta_ref) * zeta

    assert jnp.allclose(y, y_ref, atol=1e-2, rtol=1e-2), "prob path mismatch vs reference"
    assert jnp.allclose(y_det, gamma_ref, atol=1e-2, rtol=1e-2), "det path mismatch vs reference"

    print("KERNEL_OK")
</pallas_src>

<mosaic_0001>
module attributes {stable_mosaic.version = 11 : i64} {
  func.func @_bayes_linear_prob_kernel(%arg0: i32, %arg1: i32, %arg2: i32, %arg3: memref<40x768xbf16, #tpu.memory_space<vmem>>, %arg4: memref<384x768xbf16, #tpu.memory_space<vmem>>, %arg5: memref<384x768xbf16, #tpu.memory_space<vmem>>, %arg6: memref<40x384xf32, #tpu.memory_space<vmem>>, %arg7: memref<40x384xf32, #tpu.memory_space<vmem>>, %arg8: memref<40x384xf32, #tpu.memory_space<vmem>>) attributes {dimension_semantics = [#tpu.dimension_semantics<parallel>, #tpu.dimension_semantics<parallel>, #tpu.dimension_semantics<arbitrary>], iteration_bounds = array<i64: 1, 1, 2>, scalar_prefetch = 0 : i64, scratch_operands = 1 : i64, tpu.core_type = #tpu.core_type<tc>, window_params = [{transform_indices = @transform_0, window_bounds = array<i64: 40, 768>}, {transform_indices = @transform_1, window_bounds = array<i64: 384, 768>}, {transform_indices = @transform_2, window_bounds = array<i64: 384, 768>}, {transform_indices = @transform_3, window_bounds = array<i64: 40, 384>}, {transform_indices = @transform_4, window_bounds = array<i64: 40, 384>}]} {
    %c0_i32 = arith.constant 0 : i32
    %0 = arith.cmpi eq, %arg2, %c0_i32 : i32
    %1 = arith.extui %0 : i1 to i32
    %c0_i32_0 = arith.constant 0 : i32
    %2 = arith.cmpi ne, %1, %c0_i32_0 : i32
    scf.if %2 {
      %cst_18 = arith.constant 0.000000e+00 : f32
      %30 = vector.broadcast %cst_18 : f32 to vector<40x384xf32>
      %c0_19 = arith.constant 0 : index
      %c0_20 = arith.constant 0 : index
      %31 = vector.load %arg7[%c0_19, %c0_20] : memref<40x384xf32, #tpu.memory_space<vmem>>, vector<40x384xf32>
      tpu.vector_store %arg7[%c0_19, %c0_20], %30 {strides = array<i32>} : memref<40x384xf32, #tpu.memory_space<vmem>>, vector<40x384xf32>,
      %cst_21 = arith.constant 0.000000e+00 : f32
      %32 = vector.broadcast %cst_21 : f32 to vector<40x384xf32>
      %c0_22 = arith.constant 0 : index
      %c0_23 = arith.constant 0 : index
      %33 = vector.load %arg8[%c0_22, %c0_23] : memref<40x384xf32, #tpu.memory_space<vmem>>, vector<40x384xf32>
      tpu.vector_store %arg8[%c0_22, %c0_23], %32 {strides = array<i32>} : memref<40x384xf32, #tpu.memory_space<vmem>>, vector<40x384xf32>,
    } else {
    }
    %c0 = arith.constant 0 : index
    %c0_1 = arith.constant 0 : index
    %3 = vector.load %arg3[%c0, %c0_1] : memref<40x768xbf16, #tpu.memory_space<vmem>>, vector<40x768xbf16>
    %c0_2 = arith.constant 0 : index
    %c0_3 = arith.constant 0 : index
    %4 = vector.load %arg4[%c0_2, %c0_3] : memref<384x768xbf16, #tpu.memory_space<vmem>>, vector<384x768xbf16>
    %c0_4 = arith.constant 0 : index
    %c0_5 = arith.constant 0 : index
    %5 = vector.load %arg5[%c0_4, %c0_5] : memref<384x768xbf16, #tpu.memory_space<vmem>>, vector<384x768xbf16>
    %6 = arith.extf %5 : vector<384x768xbf16> to vector<384x768xf32>
    %cst = arith.constant 2.000000e+01 : f32
    %7 = vector.broadcast %cst : f32 to vector<384x768xf32>
    %8 = arith.cmpf ogt, %6, %7 : vector<384x768xf32>
    %cst_6 = arith.constant 2.000000e+01 : f32
    %9 = vector.broadcast %cst_6 : f32 to vector<384x768xf32>
    %10 = arith.minimumf %6, %9 : vector<384x768xf32>
    %11 = math.exp %10 : vector<384x768xf32>
    %12 = math.log1p %11 : vector<384x768xf32>
    %13 = arith.select %8, %6, %12 : vector<384x768xi1>, vector<384x768xf32>
    %14 = arith.mulf %13, %13 : vector<384x768xf32>
    %15 = arith.truncf %14 : vector<384x768xf32> to vector<384x768xbf16>
    %16 = arith.extf %3 : vector<40x768xbf16> to vector<40x768xf32>
    %17 = arith.mulf %16, %16 : vector<40x768xf32>
    %18 = arith.truncf %17 : vector<40x768xf32> to vector<40x768xbf16>
    %c0_7 = arith.constant 0 : index
    %c0_8 = arith.constant 0 : index
    %19 = vector.load %arg7[%c0_7, %c0_8] : memref<40x384xf32, #tpu.memory_space<vmem>>, vector<40x384xf32>
    %cst_9 = arith.constant dense<0.000000e+00> : vector<40x384xf32>
    %20 = tpu.matmul %3, %4, %cst_9 {dimension_numbers = #tpu.dot_dimension_numbers<[1], [1], [0], [0], [0, 0, 1, 0], [], []>} : vector<40x768xbf16>, vector<384x768xbf16>, vector<40x384xf32> -> vector<40x384xf32>
    %21 = arith.addf %19, %20 : vector<40x384xf32>
    %c0_10 = arith.constant 0 : index
    %c0_11 = arith.constant 0 : index
    %22 = vector.load %arg7[%c0_10, %c0_11] : memref<40x384xf32, #tpu.memory_space<vmem>>, vector<40x384xf32>
    tpu.vector_store %arg7[%c0_10, %c0_11], %21 {strides = array<i32>} : memref<40x384xf32, #tpu.memory_space<vmem>>, vector<40x384xf32>,
    %c0_12 = arith.constant 0 : index
    %c0_13 = arith.constant 0 : index
    %23 = vector.load %arg8[%c0_12, %c0_13] : memref<40x384xf32, #tpu.memory_space<vmem>>, vector<40x384xf32>
    %cst_14 = arith.constant dense<0.000000e+00> : vector<40x384xf32>
    %24 = tpu.matmul %18, %15, %cst_14 {dimension_numbers = #tpu.dot_dimension_numbers<[1], [1], [0], [0], [0, 0, 1, 0], [], []>} : vector<40x768xbf16>, vector<384x768xbf16>, vector<40x384xf32> -> vector<40x384xf32>
    %25 = arith.addf %23, %24 : vector<40x384xf32>
    %c0_15 = arith.constant 0 : index
    %c0_16 = arith.constant 0 : index
    %26 = vector.load %arg8[%c0_15, %c0_16] : memref<40x384xf32, #tpu.memory_space<vmem>>, vector<40x384xf32>
    tpu.vector_store %arg8[%c0_15, %c0_16], %25 {strides = array<i32>} : memref<40x384xf32, #tpu.memory_space<vmem>>, vector<40x384xf32>,
    %c1_i32 = arith.constant 1 : i32
    %27 = arith.cmpi eq, %arg2, %c1_i32 : i32
    %28 = arith.extui %27 : i1 to i32
    %c0_i32_17 = arith.constant 0 : i32
    %29 = arith.cmpi ne, %28, %c0_i32_17 : i32
    scf.if %29 {
      %c0_18 = arith.constant 0 : index
      %c0_19 = arith.constant 0 : index
      %30 = vector.load %arg8[%c0_18, %c0_19] : memref<40x384xf32, #tpu.memory_space<vmem>>, vector<40x384xf32>
      %cst_20 = arith.constant 0.000000e+00 : f32
      %31 = vector.broadcast %cst_20 : f32 to vector<40x384xf32>
      %32 = arith.maximumf %30, %31 : vector<40x384xf32>
      %c0_21 = arith.constant 0 : index
      %c0_22 = arith.constant 0 : index
      %33 = vector.load %arg7[%c0_21, %c0_22] : memref<40x384xf32, #tpu.memory_space<vmem>>, vector<40x384xf32>
      %34 = math.sqrt %32 : vector<40x384xf32>
      %c0_23 = arith.constant 0 : index
      %c0_24 = arith.constant 0 : index
      %35 = vector.load %arg6[%c0_23, %c0_24] : memref<40x384xf32, #tpu.memory_space<vmem>>, vector<40x384xf32>
      %36 = arith.mulf %34, %35 : vector<40x384xf32>
      %37 = arith.addf %33, %36 : vector<40x384xf32>
      %c0_25 = arith.constant 0 : index
      %c0_26 = arith.constant 0 : index
      %38 = vector.load %arg7[%c0_25, %c0_26] : memref<40x384xf32, #tpu.memory_space<vmem>>, vector<40x384xf32>
      tpu.vector_store %arg7[%c0_25, %c0_26], %37 {strides = array<i32>} : memref<40x384xf32, #tpu.memory_space<vmem>>, vector<40x384xf32>,
    } else {
    }
    return
  }
  func.func @transform_0(%arg0: i32, %arg1: i32, %arg2: i32) -> (i32, i32) {
    %c0_i32 = arith.constant 0 : i32
    return %arg0, %arg2 : i32, i32
  }
  func.func @transform_1(%arg0: i32, %arg1: i32, %arg2: i32) -> (i32, i32) {
    %c0_i32 = arith.constant 0 : i32
    return %arg1, %arg2 : i32, i32
  }
  func.func @transform_2(%arg0: i32, %arg1: i32, %arg2: i32) -> (i32, i32) {
    %c0_i32 = arith.constant 0 : i32
    return %arg1, %arg2 : i32, i32
  }
  func.func @transform_3(%arg0: i32, %arg1: i32, %arg2: i32) -> (i32, i32) {
    %c0_i32 = arith.constant 0 : i32
    return %arg0, %arg1 : i32, i32
  }
  func.func @transform_4(%arg0: i32, %arg1: i32, %arg2: i32) -> (i32, i32) {
    %c0_i32 = arith.constant 0 : i32
    return %arg0, %arg1 : i32, i32
  }
}

</mosaic_0001>

<bundles_post_ra>
// kernel: tpu_custom_call.1
= control target key start
LH: loop header
LB: loop body
LE: loop exit
PB: predicated region body
PF: predicated region fallthrough
CT: control target
= control target key end

     0   :  { %s15070_s0 = inlined_call_operand.hbm [shape: bf16[40,1536], index: 0, kind: input, shape index: {}]   ;;  %s15071_s1 = inlined_call_operand.hbm [shape: bf16[384,1536], index: 1, kind: input, shape index: {}]   ;;  %s15072_s2 = inlined_call_operand.hbm [shape: bf16[384,1536], index: 2, kind: input, shape index: {}]   ;;  %s15073_s3 = inlined_call_operand.hbm [shape: f32[40,384], index: 3, kind: input, shape index: {}]   ;;  %s15074_s4 = inlined_call_operand.hbm [shape: f32[40,384], index: 4, kind: output, shape index: {}]  }
   0x1   :  { %15107 = sst [smem:[#allocation32_spill]] %s15070_s0 }
   0x2   :  { %15108 = sst [smem:[#allocation33_spill]] %s15071_s1 }
   0x3   :  { %9 = vsyncpa [#allocation4], 0 }
   0x4   :  { %11 = vsyncpa [#allocation4 + $0x1], 0 }
   0x5   :  { %12 = vsyncpa [#allocation7], 0 }
   0x6   :  { %14 = vsyncpa [#allocation7 + $0x1], 0 }
   0x7   :  { %15 = vsyncpa [#allocation10], 0 }
   0x8   :  { %16 = vsyncpa [#allocation5], 0  ;;  %s9465_s15 = smov 0   ;;  %s9467_s16 = smov 0  }
   0x9   :  { %s9469_s17 = smov 0   ;;  %s9471_s18 = smov 0  }
   0xa   :  { %s9473_s19 = smov 0   ;;  %s9475_s20 = smov 0  }
   0xb LB: > { %15109 = sst [smem:[#allocation16_spill]] %s9423_s19  ;;  %s34_s21 = sadd.s32 1, %s9423_s19  ;;  %s9427_s20 = sphi %s9475_s20, %s22_s20   ;;  %s9423_s19 = sphi %s9473_s19, %s15767_s19   ;;  %s9419_s18 = sphi %s9471_s18, %s15766_s18   ;;  %s9415_s17 = sphi %s9469_s17, %s15770_s17   ;;  %s9411_s16 = sphi %s9467_s16, %s15769_s16   ;;  %s9407_s15 = sphi %s9465_s15, %s15768_s15  }
   0xc   : > { %s50_s22 = sadd.s32 1, %s9415_s17  ;;  %p35_p0 = scmp.ge.s32.totalorder %s34_s21, 2 }
   0xd   : > { %p57_p1 = scmp.ne.s32.totalorder %s9415_s17, %s9411_s16  ;;  %p58_p2 = scmp.eq.s32.totalorder %s9427_s20, 0 }
   0xe   : > { %s15772_s21 = smov (%p35_p0, %s34_s21), 0  ;;  %p7730_p5 = scmp.lt.s32.totalorder %s9427_s20, 2 }
   0xf   : > { %15110 = sst [smem:[#allocation17_spill]] %s15772_s21  ;;  %p59_p3 = por %p58_p2, %p57_p1 }
  0x10   : > { %s46_s23 = ssub.s32 %s9423_s19, %s15772_s21  ;;  %s9506_s24 = sand.u32 1, %s9415_s17  }
  0x11   : > { %p48_p4 = scmp.eq.s32.totalorder %s46_s23, 0  ;;  %s9509_s25 = smul.u32 384, %s9423_s19 }
  0x12   : > { %p9514_p6 = pnand %p7730_p5, %p59_p3  ;;  %s242_s28 = sand.u32 1, %s9427_s20  }
  0x13   : > { %s9512_s26 = scalar_select %p48_p4, %s9415_s17, %s50_s22  }
  0x14   : > { %s15111_s27 = scalar_select %p9514_p6, 1, 0 }
  0x15   : > { %s15075_s29 = smul.u32 1152, %s9506_s24  ;;  %s15112_s1 = sld [smem:[#allocation33_spill]] }
  0x16   : > { %s9530_s9 = scalar_lea.sflag [#allocation7], %s242_s28  ;;  %p9536_p8 = pneg %p9514_p6 }
  0x17   : > { %s246_s7 = scalar_lea.vmem [#allocation6], %s15075_s29 }
  0x18   : > { %s256_s8 = sshll.u32 %s246_s7, 4  ;;  %s9528_s8 = int_to_ptr.vmem [resolvable:$true] %s256_s8 }
  0x19   : > { %s15113_s11 = scalar_select %p9536_p8, 1, 0 }
  0x1b   : > { %s9524_s6 = scalar_lea.hbm %s15112_s1, %s9509_s25  ;;  %s9226_s14 = scalar_lea.hbm %s15112_s1, 36864 }
  0x1c   : > { %s9221_s10 = scalar_lea.hbm %s9524_s6, 18432  ;;  %p9227_p11 = scmp.lt.u32.totalorder %s9524_s6, %s15112_s1 }
  0x1d   : > { %p9222_p7 = scmp.ne.s32.totalorder %s9524_s6, %s9221_s10  ;;  %p9228_p12 = scmp.lt.u32.totalorder %s9226_s14, %s9221_s10 }
  0x1e   : > { %p9230_p0 = scmp.lt.u32.totalorder %s9221_s10, %s9524_s6 }
  0x1f   : > { %p9224_p9 = pnand %p9536_p8, %p9222_p7  ;;  %p9229_p13 = por %p9228_p12, %p9227_p11 }
  0x21   : > { %p9225_p10 = pneg %p9224_p9  ;;  %p9231_p1 = por %p9230_p0, %p9229_p13 }
  0x23   : > { %p9232_p2 = pnand %p9231_p1, %p9225_p10 }
  0x25   : > { %9235 = shalt.err (!%p9232_p2)
}
  0x26   : > { %s9236_s28 = scalar_lea.vmem %s9528_s8, 18432  ;;  %s9429_s30 = smov [#allocation6]  }
  0x27   : > { %p9237_p3 = scmp.ne.s32.totalorder %s9528_s8, %s9236_s28  ;;  %s9241_s5 = sshll.u32 %s9429_s30, 4  ;;  %s9242_s5 = int_to_ptr.vmem [resolvable:$false] %s9241_s5 }
  0x28   : > { %s9243_s7 = scalar_lea.vmem %s9242_s5, 36864  ;;  %p9244_p7 = scmp.lt.s32.totalorder %s9528_s8, %s9242_s5 }
  0x29   : > { %p9239_p4 = pnand %p9237_p3, %p9536_p8  ;;  %p9245_p9 = scmp.lt.s32.totalorder %s9243_s7, %s9236_s28 }
  0x2b   : > { %p9240_p5 = pneg %p9239_p4  ;;  %p9246_p11 = por %p9245_p9, %p9244_p7 }
  0x2d   : > { %p9247_p12 = pnand %p9246_p11, %p9240_p5 }
  0x2f   : > { %9250 = shalt.err (!%p9247_p12)
}
  0x30   : > { %s15076_s10 = smov 768   ;;  %s15078_s12 = smov 384  }
  0x31   : > { %s15080_s13 = smov 24   ;;  %s9564_s14 = sadd.s32 4294967295, %s9427_s20  }
  0x32   : > { %7725 = dma.hbm_to_vmem [thread:$0]  (!%p9514_p6), %s9524_s6, 18432, %s9528_s8, %s9530_s9, %s15076_s10, %s15078_s12, %s15080_s13  }
  0x33   : > { %p63_p10 = scmp.ne.s32.totalorder %s9411_s16, %s9407_s15  ;;  %p15084_p13 = scmp.eq.s32.totalorder %s9564_s14, 0 }
  0x34   : > { %p7485_p0 = scmp.ge.s32.totalorder %s9427_s20, 1  ;;  %p186_p1 = scmp.lt.s32.totalorder %s9427_s20, 3 }
  0x35   : > { %p9573_p2 = por %p15084_p13, %p63_p10  ;;  %s9433_s6 = smov [#allocation9]  }
  0x36   : > { %p9577_p3 = pnand %p7485_p0, %p186_p1  ;;  %s204_s8 = sshll.u32 %s9433_s6, 4  ;;  %s9581_s8 = int_to_ptr.vmem [resolvable:$true] %s204_s8 }
  0x37   : > { %s15114_s22 = scalar_select %p9573_p2, 1, 0 }
  0x38   : > { %s15115_s23 = scalar_select %p9577_p3, 1, 0 }
  0x39   : > { %p7715_p4 = pneg %p9577_p3  ;;  %s7696_s15 = smul.u32 120, %s9506_s24 }
  0x3a   : > { %s15116_s0 = sld [smem:[#allocation32_spill]]  ;;  %s9602_s13 = scalar_lea.hbm %s15072_s2, %s9509_s25 }
  0x3b   : > { %p9594_p5 = pnand %p7715_p4, %p15084_p13  ;;  %s222_s29 = scalar_lea.vmem [#allocation3], %s7696_s15 }
  0x3c   : > { %s232_s10 = sshll.u32 %s222_s29, 4  ;;  %s9251_s28 = scalar_lea.hbm %s15073_s3, 1920  ;;  %s9604_s10 = int_to_ptr.vmem [resolvable:$true] %s232_s10 }
  0x3d   : > { %p9252_p7 = scmp.ne.s32.totalorder %s15073_s3, %s9251_s28  ;;  %p9253_p9 = pneg %p9594_p5 }
  0x3e   : > { %p9258_p10 = scmp.lt.u32.totalorder %s9251_s28, %s15073_s3 }
  0x3f   : > { %p9254_p11 = pnand %p9253_p9, %p9252_p7 }
  0x40   : > { %s9590_s5 = scalar_lea.hbm %s15116_s0, %s9509_s25 }
  0x41   : > { %p9255_p12 = pneg %p9254_p11 }
  0x43   : > { %p9260_p0 = pnand %p9258_p10, %p9255_p12 }
  0x45   : > { %9263 = shalt.err (!%p9260_p0)
}
  0x46   : > { %s9264_s25 = scalar_lea.vmem %s9581_s8, 1920  ;;  %p9272_p2 = scmp.lt.s32.totalorder %s9581_s8, %s9581_s8 }
  0x47   : > { %p9265_p1 = scmp.ne.s32.totalorder %s9581_s8, %s9264_s25  ;;  %p9273_p3 = scmp.lt.s32.totalorder %s9264_s25, %s9264_s25 }
  0x49   : > { %p9267_p4 = pnand %p9265_p1, %p9253_p9  ;;  %p9274_p6 = por %p9273_p3, %p9272_p2 }
  0x4b   : > { %p9268_p13 = pneg %p9267_p4 }
  0x4d   : > { %p9275_p8 = pnand %p9274_p6, %p9268_p13 }
  0x4f   : > { %9278 = shalt.err (!%p9275_p8)
}
  0x50   : > { %s15118_s1 = smov 24   ;;  %s15119_s19 = smov 384  }
  0x51   : > { %7718 = dma.hbm_to_vmem [thread:$0]  (!%p9594_p5), %s15073_s3, 1920, %s9581_s8, [#allocation10], %s15119_s19, %s15119_s19, %s15118_s1  }
  0x52   : > { %s219_s6 = scalar_lea.sflag [#allocation4], %s9506_s24  ;;  %s9279_s28 = scalar_lea.hbm %s9590_s5, 1920 }
  0x53   : > { %p9280_p6 = scmp.ne.s32.totalorder %s9590_s5, %s9279_s28  ;;  %p15120_p8 = scmp.ne.s32.totalorder %s15113_s11, 0 }
  0x54   : > { %s9284_s29 = scalar_lea.hbm %s15116_s0, 3840  ;;  %p9285_p3 = scmp.lt.u32.totalorder %s9590_s5, %s15116_s0 }
  0x55   : > { %p9282_p13 = pnand %p9280_p6, %p15120_p8  ;;  %p9286_p7 = scmp.lt.u32.totalorder %s9284_s29, %s9279_s28 }
  0x56   : > { %p9288_p11 = scmp.lt.u32.totalorder %s9279_s28, %s9590_s5 }
  0x57   : > { %p9283_p2 = pneg %p9282_p13  ;;  %p9287_p9 = por %p9286_p7, %p9285_p3 }
  0x59   : > { %p9289_p12 = por %p9288_p11, %p9287_p9 }
  0x5b   : > { %p9290_p10 = pnand %p9289_p12, %p9283_p2 }
  0x5d   : > { %9293 = shalt.err (!%p9290_p10)
}
  0x5e   : > { %s9294_s8 = scalar_lea.vmem %s9604_s10, 1920  ;;  %s9434_s21 = smov [#allocation3]  }
  0x5f   : > { %p9295_p5 = scmp.ne.s32.totalorder %s9604_s10, %s9294_s8  ;;  %s9299_s12 = sshll.u32 %s9434_s21, 4  ;;  %s9300_s12 = int_to_ptr.vmem [resolvable:$false] %s9299_s12 }
  0x60   : > { %s9301_s7 = scalar_lea.vmem %s9300_s12, 3840  ;;  %p9302_p4 = scmp.lt.s32.totalorder %s9604_s10, %s9300_s12 }
  0x61   : > { %p9297_p0 = pnand %p9295_p5, %p15120_p8  ;;  %p9303_p6 = scmp.lt.s32.totalorder %s9301_s7, %s9294_s8 }
  0x63   : > { %p9298_p1 = pneg %p9297_p0  ;;  %p9304_p13 = por %p9303_p6, %p9302_p4 }
  0x65   : > { %p9305_p3 = pnand %p9304_p13, %p9298_p1 }
  0x67   : > { %9308 = shalt.err (!%p9305_p3)
}
  0x68   : > { %p15121_p2 = scmp.ne.s32.totalorder %s15111_s27, 0  ;;  %s15122_s28 = smov 768  }
  0x69   : > { %s15123_s30 = smul.u32 1152, %s9506_s24  ;;  %s9309_s25 = scalar_lea.hbm %s9602_s13, 18432 }
  0x6a   : > { %7722 = dma.hbm_to_vmem [thread:$0]  (!%p15121_p2), %s9590_s5, 1920, %s9604_s10, %s219_s6, %s15122_s28, %s15119_s19, %s15118_s1  }
  0x6b   : > { %s270_s29 = scalar_lea.vmem [#allocation8], %s15123_s30  ;;  %p9310_p7 = scmp.ne.s32.totalorder %s9602_s13, %s9309_s25 }
  0x6c   : > { %s280_s15 = sshll.u32 %s270_s29, 4  ;;  %s9314_s12 = scalar_lea.hbm %s15072_s2, 36864  ;;  %s9659_s15 = int_to_ptr.vmem [resolvable:$true] %s280_s15 }
  0x6d   : > { %p9312_p9 = pnand %p9310_p7, %p15120_p8  ;;  %p9315_p12 = scmp.lt.u32.totalorder %s9602_s13, %s15072_s2 }
  0x6e   : > { %p9316_p10 = scmp.lt.u32.totalorder %s9314_s12, %s9309_s25  ;;  %p9318_p0 = scmp.lt.u32.totalorder %s9309_s25, %s9602_s13 }
  0x6f   : > { %p9313_p11 = pneg %p9312_p9 }
  0x70   : > { %p9317_p5 = por %p9316_p10, %p9315_p12 }
  0x72   : > { %p9319_p1 = por %p9318_p0, %p9317_p5 }
  0x74   : > { %p9320_p4 = pnand %p9319_p1, %p9313_p11 }
  0x76   : > { %9323 = shalt.err (!%p9320_p4)
}
  0x77   : > { %s9324_s24 = scalar_lea.vmem %s9659_s15, 18432  ;;  %s9435_s10 = smov [#allocation8]  }
  0x78   : > { %p9325_p6 = scmp.ne.s32.totalorder %s9659_s15, %s9324_s24  ;;  %s9329_s5 = sshll.u32 %s9435_s10, 4  ;;  %s9330_s5 = int_to_ptr.vmem [resolvable:$false] %s9329_s5 }
  0x79   : > { %s9331_s0 = scalar_lea.vmem %s9330_s5, 36864  ;;  %p9332_p7 = scmp.lt.s32.totalorder %s9659_s15, %s9330_s5 }
  0x7a   : > { %p9327_p13 = pnand %p9325_p6, %p15120_p8  ;;  %p9333_p9 = scmp.lt.s32.totalorder %s9331_s0, %s9324_s24 }
  0x7c   : > { %p9328_p3 = pneg %p9327_p13  ;;  %p9334_p12 = por %p9333_p9, %p9332_p7 }
  0x7e   : > { %p9335_p10 = pnand %p9334_p12, %p9328_p3 }
  0x80   : > { %9338 = shalt.err (!%p9335_p10)
}
  0x81   : > { %7728 = dma.hbm_to_vmem [thread:$0]  (!%p15121_p2), %s9602_s13, 18432, %s9659_s15, %s9530_s9, %s15122_s28, %s15119_s19, %s15118_s1  }
  0x82   : > { %p15124_p8 = scmp.ne.s32.totalorder %s15115_s23, 0 }
  0x84   : > { %292 = sbr.rel (%p15124_p8) target bundleno = 1767 (0x6e7), region = 36 }
  0x8b   : > { %s294_s11 = sand.u32 1, %s9411_s16   ;;  %p15125_p11 = scmp.ne.s32.totalorder %s15114_s22, 0 }
  0x8c   : > { %s7699_s6 = smul.u32 120, %s294_s11  ;;  %s295_s30 = scalar_lea.sflag [#allocation4], %s294_s11 }
  0x8e   : > { %s9689_s29 = scalar_lea.vmem [#allocation3], %s7699_s6 }
  0x8f   : > { %9390 = dma.done.wait (%p15125_p11), %s295_s30, 1920  }
  0x90   : > { %9392 = vsyncadd (%p15125_p11), %s295_s30, 4294965376  ;;  %s303_s27 = sand.u32 1, %s9564_s14   ;;  %s7700_s25 = smul.u32 1152, %s294_s11 }
  0x91   : > { %s304_s9 = scalar_lea.sflag [#allocation7], %s303_s27 }
  0x92   : > { %s9696_s13 = scalar_lea.vmem [#allocation6], %s7700_s25 }
  0x93   : > { %9394 = dma.done.wait (%p15125_p11), %s304_s9, 36864  }
  0x94   : > { %9396 = vsyncadd (%p15125_p11), %s304_s9, 4294930432  ;;  %s9702_s23 = scalar_lea.vmem [#allocation8], %s7700_s25  ;;  %p15126_p2 = scmp.eq.s32.totalorder %s9564_s14, 0 }
  0x96   : > { %9398 = dma.done.wait (%p15126_p2), [#allocation10], 1920   ;;  %p15127_p5 = pmov %p15126_p2 }
  0x97   : > { %p7493_p0 = scmp.ne.s32.totalorder %s9419_s18, 0 }
  0x98   : > { %9400 = vsyncadd (%p15127_p5), [#allocation10], 4294965376  ;;  %v9436_v0 = vmov (!%p7493_p0), 0.0  }
  0x99   : > { %364 = sbr.rel (%p7493_p0) target bundleno = 168 (0xa8), region = 56  ;;  %365 = vst [vmem:[#allocation11] sm:$0xff] (!%p7493_p0), %v9436_v0  ;;  %366 = vst [vmem:[#allocation11 + $0x8] sm:$0xff] (!%p7493_p0), %v9436_v0 }
  0x9a   : > { %367 = vst [vmem:[#allocation11 + $0x10] sm:$0xff] (!%p7493_p0), %v9436_v0  ;;  %368 = vst [vmem:[#allocation11 + $0x18] sm:$0xff] (!%p7493_p0), %v9436_v0 }
  0x9b   : > { %369 = vst [vmem:[#allocation11 + $0x20] sm:$0xff] (!%p7493_p0), %v9436_v0  ;;  %370 = vst [vmem:[#allocation11 + $0x28] sm:$0xff] (!%p7493_p0), %v9436_v0 }
  0x9c   : > { %371 = vst [vmem:[#allocation11 + $0x30] sm:$0xff] (!%p7493_p0), %v9436_v0  ;;  %372 = vst [vmem:[#allocation11 + $0x38] sm:$0xff] (!%p7493_p0), %v9436_v0 }
  0x9d   : > { %373 = vst [vmem:[#allocation11 + $0x40] sm:$0xff] (!%p7493_p0), %v9436_v0  ;;  %374 = vst [vmem:[#allocation11 + $0x48] sm:$0xff] (!%p7493_p0), %v9436_v0 }
  0x9e   : > { %375 = vst [vmem:[#allocation11 + $0x50] sm:$0xff] (!%p7493_p0), %v9436_v0  ;;  %376 = vst [vmem:[#allocation11 + $0x58] sm:$0xff] (!%p7493_p0), %v9436_v0 }
  0x9f   : > { %377 = vst [vmem:[#allocation11 + $0x60] sm:$0xff] (!%p7493_p0), %v9436_v0  ;;  %378 = vst [vmem:[#allocation11 + $0x68] sm:$0xff] (!%p7493_p0), %v9436_v0 }
  0xa0   : > { %379 = vst [vmem:[#allocation11 + $0x70] sm:$0xff] %v9436_v0  ;;  %380 = vst [vmem:[#allocation2] sm:$0xff] %v9436_v0 }
  0xa1   : > { %381 = vst [vmem:[#allocation2 + $0x8] sm:$0xff] %v9436_v0  ;;  %382 = vst [vmem:[#allocation2 + $0x10] sm:$0xff] %v9436_v0 }
  0xa2   : > { %383 = vst [vmem:[#allocation2 + $0x18] sm:$0xff] %v9436_v0  ;;  %384 = vst [vmem:[#allocation2 + $0x20] sm:$0xff] %v9436_v0 }
  0xa3   : > { %385 = vst [vmem:[#allocation2 + $0x28] sm:$0xff] %v9436_v0  ;;  %386 = vst [vmem:[#allocation2 + $0x30] sm:$0xff] %v9436_v0 }
  0xa4   : > { %387 = vst [vmem:[#allocation2 + $0x38] sm:$0xff] %v9436_v0  ;;  %388 = vst [vmem:[#allocation2 + $0x40] sm:$0xff] %v9436_v0 }
  0xa5   : > { %389 = vst [vmem:[#allocation2 + $0x48] sm:$0xff] %v9436_v0  ;;  %390 = vst [vmem:[#allocation2 + $0x50] sm:$0xff] %v9436_v0 }
  0xa6   : > { %391 = vst [vmem:[#allocation2 + $0x58] sm:$0xff] %v9436_v0  ;;  %392 = vst [vmem:[#allocation2 + $0x60] sm:$0xff] %v9436_v0 }
  0xa7   : > { %393 = vst [vmem:[#allocation2 + $0x68] sm:$0xff] %v9436_v0  ;;  %394 = vst [vmem:[#allocation2 + $0x70] sm:$0xff] %v9436_v0 }
  0xa8 PF: > { %v7790_v1 = vld [vmem:[%s9696_s13 + $0x4] ss:$24 sps:$4 sm:$0xff]   ;;  %v7794_v3 = vld [vmem:[%s9696_s13] ss:$24 sps:$4 sm:$0xff]   ;;  %v7796_v5 = vld [vmem:[%s9696_s13 + $0x34] ss:$24 sps:$4 sm:$0xff]  }
  0xa9   : > { %v7792_v2 = vld [vmem:[%s9696_s13 + $0x304] ss:$24 sps:$4 sm:$0xff]   ;;  %6344 = vmatprep.subr.bf16.mxu0 %v7790_v1  ;;  %v7795_v4 = vld [vmem:[%s9696_s13 + $0x300] ss:$24 sps:$4 sm:$0xff]   ;;  %v7798_v6 = vld [vmem:[%s9696_s13 + $0x334] ss:$24 sps:$4 sm:$0xff]  }
  0xaa   : > { %6527 = vmatprep.subr.bf16.mxu1 %v7792_v2  ;;  %6345 = vmatpush1.bf16.xpose.msra.mxu0 %v7794_v3  ;;  %v7800_v7 = vld [vmem:[%s9696_s13 + $0x30] ss:$24 sps:$4 sm:$0xff]   ;;  %v7802_v9 = vld [vmem:[%s9696_s13 + $0x64] ss:$24 sps:$4 sm:$0xff]   ;;  %v7806_v11 = vld [vmem:[%s9696_s13 + $0x60] ss:$24 sps:$4 sm:$0xff]  }
  0xab   : > { %6528 = vmatpush1.bf16.xpose.msra.mxu1 %v7795_v4  ;;  %6346 = vmatprep.subr.bf16.mxu0 %v7796_v5  ;;  %v7801_v8 = vld [vmem:[%s9696_s13 + $0x330] ss:$24 sps:$4 sm:$0xff]   ;;  %v7804_v10 = vld [vmem:[%s9696_s13 + $0x364] ss:$24 sps:$4 sm:$0xff]   ;;  %v7807_v12 = vld [vmem:[%s9696_s13 + $0x360] ss:$24 sps:$4 sm:$0xff]  }
  0xac   : > { %6529 = vmatprep.subr.bf16.mxu1 %v7798_v6  ;;  %v7808_v13 = vld [vmem:[%s9696_s13 + $0x94] ss:$24 sps:$4 sm:$0xff]   ;;  %v7812_v18 = vld [vmem:[%s9696_s13 + $0x90] ss:$24 sps:$4 sm:$0xff]   ;;  %v7814_v20 = vld [vmem:[%s9696_s13 + $0xc4] ss:$24 sps:$4 sm:$0xff]  }
  0xad   : > { %v7810_v14 = vld [vmem:[%s9696_s13 + $0x394] ss:$24 sps:$4 sm:$0xff]   ;;  %v7813_v19 = vld [vmem:[%s9696_s13 + $0x390] ss:$24 sps:$4 sm:$0xff]   ;;  %v7816_v21 = vld [vmem:[%s9696_s13 + $0x3c4] ss:$24 sps:$4 sm:$0xff]  }
  0xae   : > { %v395_v15 = vld [vmem:[%s9689_s29] sm:$0xff]  ;;  %v398_v16 = vld [vmem:[%s9689_s29 + $0x18] sm:$0xff]  ;;  %v401_v38 = vld [vmem:[%s9689_s29 + $0x30] sm:$0xff]  ;;  %p7656_p1 = scmp.ne.s32.totalorder %s9419_s18, 1 }
  0xaf   : > { %v7495_v17 = vcombine.high %v395_v15, %v398_v16  ;;  %v7818_v22 = vld [vmem:[%s9696_s13 + $0xc0] ss:$24 sps:$4 sm:$0xff]   ;;  %v7820_v24 = vld [vmem:[%s9696_s13 + $0xf4] ss:$24 sps:$4 sm:$0xff]   ;;  %v7824_v26 = vld [vmem:[%s9696_s13 + $0xf0] ss:$24 sps:$4 sm:$0xff]   ;;  %v9746_v39 = vcombine.low %v395_v15, %v398_v16 }
  0xb0   : > { %v7819_v23 = vld [vmem:[%s9696_s13 + $0x3c0] ss:$24 sps:$4 sm:$0xff]   ;;  %v7822_v25 = vld [vmem:[%s9696_s13 + $0x3f4] ss:$24 sps:$4 sm:$0xff]   ;;  %v7825_v27 = vld [vmem:[%s9696_s13 + $0x3f0] ss:$24 sps:$4 sm:$0xff]  }
  0xb1   : > { %6559 = vmatprep.mubr.bf16.mxu1 %v7495_v17  ;;  %6376 = vmatprep.mubr.bf16.mxu0 %v7495_v17  ;;  %v7826_v28 = vld [vmem:[%s9696_s13 + $0x124] ss:$24 sps:$4 sm:$0xff]   ;;  %v7830_v30 = vld [vmem:[%s9696_s13 + $0x120] ss:$24 sps:$4 sm:$0xff]   ;;  %v7832_v32 = vld [vmem:[%s9696_s13 + $0x154] ss:$24 sps:$4 sm:$0xff]  }
  0xb2   : > { %6347 = vmatpush1.bf16.xpose.msra.mxu0 %v7800_v7  ;;  %v7828_v29 = vld [vmem:[%s9696_s13 + $0x424] ss:$24 sps:$4 sm:$0xff]   ;;  %v7831_v31 = vld [vmem:[%s9696_s13 + $0x420] ss:$24 sps:$4 sm:$0xff]   ;;  %v7834_v33 = vld [vmem:[%s9696_s13 + $0x454] ss:$24 sps:$4 sm:$0xff]  }
  0xb3   : > { %6530 = vmatpush1.bf16.xpose.msra.mxu1 %v7801_v8  ;;  %6348 = vmatprep.subr.bf16.mxu0 %v7802_v9  ;;  %v7836_v34 = vld [vmem:[%s9696_s13 + $0x150] ss:$24 sps:$4 sm:$0xff]   ;;  %v7839_v36 = vld [vmem:[%s9696_s13 + $0x184] ss:$24 sps:$4 sm:$0xff]   ;;  %v7845_v42 = vld [vmem:[%s9696_s13 + $0x180] ss:$24 sps:$4 sm:$0xff]  }
  0xb4   : > { %6531 = vmatprep.subr.bf16.mxu1 %v7804_v10  ;;  %v7837_v35 = vld [vmem:[%s9696_s13 + $0x450] ss:$24 sps:$4 sm:$0xff]   ;;  %v7844_v37 = vld [vmem:[%s9696_s13 + $0x30c] ss:$24 sps:$4 sm:$0xff]   ;;  %v7850_v44 = vld [vmem:[%s9696_s13 + $0x33c] ss:$24 sps:$4 sm:$0xff]  }
  0xb5   : > { %v404_v40 = vld [vmem:[%s9689_s29 + $0x48] sm:$0xff]  ;;  %v7842_v41 = vld [vmem:[%s9696_s13 + $0x308] ss:$24 sps:$4 sm:$0xff]   ;;  %v7856_v61 = vld [vmem:[%s9696_s13 + $0x36c] ss:$24 sps:$4 sm:$0xff]  }
  0xb6   : > { %v7846_v43 = vld [vmem:[%s9696_s13 + $0x1b4] ss:$24 sps:$4 sm:$0xff]   ;;  %v9753_v45 = vcombine.high %v401_v38, %v404_v40  ;;  %v554_v46 = vld [vmem:[%s9702_s23] sm:$0xff]  ;;  %v557_v47 = vld [vmem:[%s9702_s23 + $0x18] sm:$0xff]  ;;  %v9765_v52 = vcombine.low %v401_v38, %v404_v40 }
  0xb7   : > { %v7848_v48 = vld [vmem:[%s9696_s13 + $0x338] ss:$24 sps:$4 sm:$0xff]   ;;  %v9760_v49 = vunpack.c.l.bf16 %v554_v46  ;;  %v9762_v50 = vunpack.c.h.bf16 %v554_v46  ;;  %v9768_v54 = vunpack.c.l.bf16 %v557_v47  ;;  %v9770_v55 = vunpack.c.h.bf16 %v557_v47  ;;  %v7852_v56 = vld [vmem:[%s9696_s13 + $0x1e4] ss:$24 sps:$4 sm:$0xff]   ;;  %v563_v60 = vld [vmem:[%s9702_s23 + $0x48] sm:$0xff] }
  0xb8   : > { %v7851_v51 = vld [vmem:[%s9696_s13 + $0x1b0] ss:$24 sps:$4 sm:$0xff]   ;;  %v9785_v5 = vunpack.c.h.bf16 %v563_v60  ;;  %v566_v9 = vld [vmem:[%s9702_s23 + $0x60] sm:$0xff]  ;;  %v9797_v15 = vunpack.c.l.bf16 %v563_v60 }
  0xb9   : > { %v407_v53 = vld [vmem:[%s9689_s29 + $0x60] sm:$0xff]  ;;  %v1274_v57 = vmin.f32 %v9760_v49, 20.0  ;;  %v1275_v58 = vmin.f32 %v9762_v50, 20.0  ;;  %v1280_v62 = vmin.f32 %v9768_v54, 20.0  ;;  %v1281_v63 = vmin.f32 %v9770_v55, 20.0 }
  0xba   : > { %6349 = vmatpush1.bf16.xpose.msra.mxu0 %v7806_v11  ;;  %v560_v59 = vld [vmem:[%s9702_s23 + $0x30] sm:$0xff]  ;;  %v9780_v0 = vcombine.high %v407_v53, %v407_v53  ;;  %v1293_v8 = vmin.f32 %v9785_v5, 20.0  ;;  %v7854_v17 = vld [vmem:[%s9696_s13 + $0x368] ss:$24 sps:$4 sm:$0xff]   ;;  %vm986_vm2 = vcmp.gt.f32.partialorder %v9760_v49, 20.0  ;;  %vm987_vm3 = vcmp.gt.f32.partialorder %v9762_v50, 20.0 }
  0xbb   : > { %6532 = vmatpush1.bf16.xpose.msra.mxu1 %v7807_v12  ;;  %6350 = vmatprep.subr.bf16.mxu0 %v7808_v13  ;;  %v1562_v1 = vmul.f32 1.442695, %v1274_v57  ;;  %v1564_v2 = vmul.f32 1.442695, %v1275_v58  ;;  %v9782_v3 = vunpack.c.h.bf16 %v560_v59  ;;  %v1574_v4 = vmul.f32 1.442695, %v1280_v62 }
  0xbc   : > { %6533 = vmatprep.subr.bf16.mxu1 %v7810_v14  ;;  %15128 = vst [vmem:[#allocation18_spill] sm:$0xff] %v9780_v0  ;;  %v1576_v7 = vmul.f32 1.442695, %v1281_v63  ;;  %v9791_v10 = vunpack.c.l.bf16 %v560_v59  ;;  %v9793_v12 = vcombine.low %v407_v53, %v407_v53  ;;  %v396_v13 = vld [vmem:[%s9689_s29 + $0x8] sm:$0xff]  ;;  %v399_v14 = vld [vmem:[%s9689_s29 + $0x20] sm:$0xff]  ;;  %v405_v53 = vld [vmem:[%s9689_s29 + $0x50] sm:$0xff] }
  0xbd   : > { %8024 = vpow2.f32 %v1562_v1  ;;  %v1287_v6 = vmin.f32 %v9782_v3, 20.0  ;;  %v1600_v16 = vmul.f32 1.442695, %v1293_v8  ;;  %v408_v59 = vld [vmem:[%s9689_s29 + $0x68] sm:$0xff]  ;;  %v9846_v63 = vcombine.low %v396_v13, %v399_v14  ;;  %v397_v1 = vld [vmem:[%s9689_s29 + $0x10] sm:$0xff] }
  0xbe   : > { %8026 = vpow2.f32 %v1564_v2  ;;  %15129 = vst [vmem:[#allocation19_spill] sm:$0xff] %v9793_v12  ;;  %v7869_v62 = vld [vmem:[%s9696_s13 + $0x240] ss:$24 sps:$4 sm:$0xff]   ;;  %vm992_vm5 = vcmp.gt.f32.partialorder %v9768_v54, 20.0  ;;  %vm993_vm6 = vcmp.gt.f32.partialorder %v9770_v55, 20.0  ;;  %vm999_vm9 = vcmp.gt.f32.partialorder %v9782_v3, 20.0 }
  0xbf   : > { %8028 = vpow2.f32 %v1574_v4  ;;  %v1588_v11 = vmul.f32 1.442695, %v1287_v6  ;;  %15131 = vst [vmem:[#allocation21_spill] sm:$0xff] %v9846_v63  ;;  %v7870_v4 = vld [vmem:[%s9696_s13 + $0x274] ss:$24 sps:$4 sm:$0xff]   ;;  %vm1005_vm10 = vcmp.gt.f32.partialorder %v9785_v5, 20.0 }
  0xc0   : > { %8030 = vpow2.f32 %v1576_v7  ;;  %v7874_v6 = vld [vmem:[%s9696_s13 + $0x3fc] ss:$24 sps:$4 sm:$0xff]   ;;  %vm998_vm14 = vcmp.gt.f32.partialorder %v9791_v10, 20.0  ;;  %vm1004_vm15 = vcmp.gt.f32.partialorder %v9797_v15, 20.0 }
  0xc1   : > { %8032 = vpow2.f32 %v1588_v11  ;;  %v572_v11 = vld [vmem:[%s9702_s23 + $0x90] sm:$0xff] }
  0xc2   : > { %6351 = vmatpush1.bf16.xpose.msra.mxu0 %v7812_v18  ;;  %v7857_v18 = vld [vmem:[%s9696_s13 + $0x1e0] ss:$24 sps:$4 sm:$0xff]   ;;  %8034 = vpow2.f32 %v1600_v16  ;;  %v9858_v16 = vcombine.high %v408_v59, %v408_v59 }
  0xc3   : > { %6534 = vmatpush1.bf16.xpose.msra.mxu1 %v7813_v19  ;;  %6352 = vmatprep.subr.bf16.mxu0 %v7814_v20  ;;  %v9801_v19 = vunpack.c.l.bf16 %v566_v9  ;;  %v7858_v20 = vld [vmem:[%s9696_s13 + $0x214] ss:$24 sps:$4 sm:$0xff]  }
  0xc4   : > { %6535 = vmatprep.subr.bf16.mxu1 %v7816_v21  ;;  %v7862_v21 = vld [vmem:[%s9696_s13 + $0x39c] ss:$24 sps:$4 sm:$0xff]   ;;  %15134 = vst [vmem:[#allocation24_spill] sm:$0xff] %v9858_v16 }
  0xca   : > { %6353 = vmatpush1.bf16.xpose.msra.mxu0 %v7818_v22  ;;  %v9805_v22 = vcombine.high %v396_v13, %v399_v14 }
  0xcb   : > { %6536 = vmatpush1.bf16.xpose.msra.mxu1 %v7819_v23  ;;  %6354 = vmatprep.subr.bf16.mxu0 %v7820_v24  ;;  %v1286_v23 = vmin.f32 %v9791_v10, 20.0  ;;  %v569_v24 = vld [vmem:[%s9702_s23 + $0x78] sm:$0xff] }
  0xcc   : > { %6537 = vmatprep.subr.bf16.mxu1 %v7822_v25  ;;  %15130 = vst [vmem:[#allocation20_spill] sm:$0xff] %v9805_v22  ;;  %v1292_v25 = vmin.f32 %v9797_v15, 20.0 }
  0xd2   : > { %6355 = vmatpush1.bf16.xpose.msra.mxu0 %v7824_v26  ;;  %v9811_v26 = vunpack.c.h.bf16 %v566_v9 }
  0xd3   : > { %6538 = vmatpush1.bf16.xpose.msra.mxu1 %v7825_v27  ;;  %6356 = vmatprep.subr.bf16.mxu0 %v7826_v28  ;;  %v1298_v27 = vmin.f32 %v9801_v19, 20.0  ;;  %v9814_v28 = vunpack.c.l.bf16 %v569_v24 }
  0xd4   : > { %6539 = vmatprep.subr.bf16.mxu1 %v7828_v29  ;;  %v9816_v29 = vpop.eup %8024  ;;  %v1299_v38 = vmin.f32 %v9811_v26, 20.0 }
  0xd5   : > { %v1610_v40 = vmul.f32 1.442695, %v1298_v27 }
  0xd6   : > { %v1612_v57 = vmul.f32 1.442695, %v1299_v38  ;;  %v9880_v38 = vld [vmem:[%s9689_s29 + $0x40] sm:$0xff] }
  0xda   : > { %6357 = vmatpush1.bf16.xpose.msra.mxu0 %v7830_v30  ;;  %v7860_v30 = vld [vmem:[%s9696_s13 + $0x398] ss:$24 sps:$4 sm:$0xff]  }
  0xdb   : > { %6540 = vmatpush1.bf16.xpose.msra.mxu1 %v7831_v31  ;;  %6358 = vmatprep.subr.bf16.mxu0 %v7832_v32  ;;  %v7863_v31 = vld [vmem:[%s9696_s13 + $0x210] ss:$24 sps:$4 sm:$0xff]   ;;  %v1586_v32 = vmul.f32 1.442695, %v1286_v23 }
  0xdc   : > { %6541 = vmatprep.subr.bf16.mxu1 %v7834_v33  ;;  %v9821_v33 = vpop.eup %8026 }
  0xdd   : > { %8036 = vpow2.f32 %v1586_v32  ;;  %v2150_v23 = vmul.f32 -0.5, %v9821_v33 }
  0xe2   : > { %6359 = vmatpush1.bf16.xpose.msra.mxu0 %v7836_v34  ;;  %v7864_v34 = vld [vmem:[%s9696_s13 + $0x244] ss:$24 sps:$4 sm:$0xff]  }
  0xe3   : > { %6542 = vmatpush1.bf16.xpose.msra.mxu1 %v7837_v35  ;;  %6360 = vmatprep.subr.bf16.mxu0 %v7839_v36  ;;  %v1598_v35 = vmul.f32 1.442695, %v1292_v25  ;;  %v9824_v36 = vpop.eup %8028  ;;  %v9868_v25 = vunpack.c.l.bf16 %v572_v11 }
  0xe4   : > { %6583 = vmatprep.subr.bf16.mxu1 %v7844_v37  ;;  %v9826_v37 = vunpack.c.h.bf16 %v569_v24  ;;  %v9833_v46 = vpop.eup %8030  ;;  %v2192_v47 = vadd.f32 1.0, %v9824_v36  ;;  %v2153_v24 = vand.u32 2147483647, %v9821_v33 }
  0xe5   : > { %8038 = vpow2.f32 %v1598_v35  ;;  %v2201_v2 = vadd.f32 1.0, %v9833_v46  ;;  %v2207_v35 = vand.u32 2147483647, %v9833_v46 }
  0xe6   : > { %8040 = vpow2.f32 %v1610_v40  ;;  %v9883_v40 = vld [vmem:[%s9689_s29 + $0x58] sm:$0xff]  ;;  %vm9898_vm1 = vcmp.lt.f32.partialorder %v2153_v24, 0.0004427343  ;;  %v9919_v24 = vunpack.c.h.bf16 %v572_v11 }
  0xe7   : > { %vm9913_vm4 = vcmp.lt.f32.partialorder %v2207_v35, 0.0004427343 }
  0xea   : > { %6560 = vmatmul.mubr.bf16.vlgmr.msra.gmra.mrb[0].mxu1 %v9746_v39  ;;  %6361 = vmatpush1.bf16.xpose.msra.mxu0 %v7845_v42  ;;  %v2138_v42 = vadd.f32 1.0, %v9816_v29 }
  0xeb   : > { %6584 = vmatpush1.bf16.xpose.msra.mxu1 %v7842_v41  ;;  %6362 = vmatprep.subr.bf16.mxu0 %v7846_v43  ;;  %v7868_v41 = vld [vmem:[%s9696_s13 + $0x3cc] ss:$24 sps:$4 sm:$0xff]   ;;  %v1304_v43 = vmin.f32 %v9814_v28, 20.0 }
  0xec   : > { %6585 = vmatprep.subr.bf16.mxu1 %v7850_v44  ;;  %6567 = vmatprep.mubr.bf16.mxu1 %v9753_v45  ;;  %v2147_v44 = vadd.f32 1.0, %v9821_v33  ;;  %8042 = vlog2.f32 %v2138_v42 }
  0xed   : > { %v1622_v60 = vmul.f32 1.442695, %v1304_v43 }
  0xee   : > { %8044 = vlog2.f32 %v2147_v44 }
  0xef   : > { %8046 = vlog2.f32 %v2192_v47 }
  0xf0   : > { %8048 = vpow2.f32 %v1612_v57  ;;  %v7875_v57 = vld [vmem:[%s9696_s13 + $0x270] ss:$24 sps:$4 sm:$0xff]  }
  0xf1   : > { %8050 = vpow2.f32 %v1622_v60 }
  0xf2   : > { %6568 = vmatmul.mubr.bf16.gmra.mrb[4].mxu1 %v9765_v52  ;;  %6363 = vmatpush1.bf16.xpose.msra.mxu0 %v7851_v51  ;;  %v402_v51 = vld [vmem:[%s9689_s29 + $0x38] sm:$0xff]  ;;  %8052 = vlog2.f32 %v2201_v2 }
  0xf3   : > { %6586 = vmatpush1.bf16.xpose.msra.mxu1 %v7848_v48  ;;  %6364 = vmatprep.subr.bf16.mxu0 %v7852_v56  ;;  %v9836_v48 = vpop.eup %8032  ;;  %v1305_v56 = vmin.f32 %v9826_v37, 20.0  ;;  %v9852_v7 = vcombine.high %v402_v51, %v405_v53  ;;  %v9854_v8 = vcombine.low %v402_v51, %v405_v53  ;;  %v575_v51 = vld [vmem:[%s9702_s23 + $0xa8] sm:$0xff]  ;;  %v7878_v2 = vld [vmem:[%s9696_s13 + $0x2a4] ss:$24 sps:$4 sm:$0xff]  }
  0xf4   : > { %6587 = vmatprep.subr.bf16.mxu1 %v7856_v61  ;;  %6575 = vmatprep.mubr.bf16.mxu1 %v9780_v0  ;;  %v9841_v58 = vpop.eup %8034  ;;  %v7866_v61 = vld [vmem:[%s9696_s13 + $0x3c8] ss:$24 sps:$4 sm:$0xff]   ;;  %v2255_v9 = vadd.f32 1.0, %v9836_v48 }
  0xf5   : > { %15132 = vst [vmem:[#allocation22_spill] sm:$0xff] %v9852_v7  ;;  %15133 = vst [vmem:[#allocation23_spill] sm:$0xff] %v9854_v8  ;;  %v2309_v13 = vadd.f32 1.0, %v9841_v58  ;;  %v1624_v14 = vmul.f32 1.442695, %v1305_v56  ;;  %v9874_v32 = vpop.eup %8036  ;;  %v2312_v47 = vmul.f32 -0.5, %v9841_v58 }
  0xf6   : > { %8054 = vlog2.f32 %v2255_v9  ;;  %v9886_v42 = vpop.eup %8038  ;;  %v7872_v56 = vld [vmem:[%s9696_s13 + $0x3f8] ss:$24 sps:$4 sm:$0xff]  }
  0xf7   : > { %8056 = vlog2.f32 %v2309_v13  ;;  %v9894_v53 = vpop.eup %8040  ;;  %v2246_v13 = vadd.f32 1.0, %v9874_v32  ;;  %v2300_v11 = vadd.f32 1.0, %v9886_v42 }
  0xf8   : > { %8058 = vpow2.f32 %v1624_v14 }
  0xf9   : > { %8060 = vlog2.f32 %v2246_v13 }
  0xfa   : > { %6576 = vmatmul.mubr.bf16.gmra.mrb[8].mxu1 %v9793_v12  ;;  %6365 = vmatpush1.bf16.xpose.msra.mxu0 %v7857_v18  ;;  %v9862_v18 = vcombine.low %v408_v59, %v408_v59  ;;  %v2151_v59 = vadd.f32 1.0, %v2150_v23  ;;  %v2261_v23 = vand.u32 2147483647, %v9836_v48  ;;  %8062 = vlog2.f32 %v2300_v11 }
  0xfb   : > { %6588 = vmatpush1.bf16.xpose.msra.mxu1 %v7854_v17  ;;  %6366 = vmatprep.subr.bf16.mxu0 %v7858_v20  ;;  %v400_v17 = vld [vmem:[%s9689_s29 + $0x28] sm:$0xff]  ;;  %v2141_v20 = vmul.f32 -0.5, %v9816_v29 }
  0xfc   : > { %6589 = vmatprep.subr.bf16.mxu1 %v7862_v21  ;;  %6615 = vmatprep.mubr.bf16.mxu1 %v9805_v22  ;;  %15135 = vst [vmem:[#allocation25_spill] sm:$0xff] %v9862_v18  ;;  %v2144_v21 = vand.u32 2147483647, %v9816_v29  ;;  %v9870_v27 = vcombine.high %v397_v1, %v400_v17  ;;  %v9925_v22 = vunpack.c.h.bf16 %v575_v51  ;;  %vm9943_vm8 = vcmp.lt.f32.partialorder %v2261_v23, 0.0004427343 }
  0xfd   : > { %v2142_v43 = vadd.f32 1.0, %v2141_v20  ;;  %v2354_v23 = vadd.f32 1.0, %v9894_v53 }
  0xfe   : > { %15136 = vst [vmem:[#allocation26_spill] sm:$0xff] %v9870_v27  ;;  %vm9888_vm0 = vcmp.lt.f32.partialorder %v2144_v21, 0.0004427343  ;;  %v2152_v27 = vmul.f32 %v9821_v33, %v2151_v59  ;;  %v1311_v59 = vmin.f32 %v9919_v24, 20.0 }
 0x102   : > { %6367 = vmatpush1.bf16.xpose.msra.mxu0 %v7863_v31  ;;  %v2195_v31 = vmul.f32 -0.5, %v9824_v36 }
 0x103   : > { %6590 = vmatpush1.bf16.xpose.msra.mxu1 %v7860_v30  ;;  %6368 = vmatprep.subr.bf16.mxu0 %v7864_v34  ;;  %v2204_v30 = vmul.f32 -0.5, %v9833_v46  ;;  %v9876_v34 = vcombine.low %v397_v1, %v400_v17  ;;  %v8043_v1 = vpop.eup %8042  ;;  %v9910_v17 = vcombine.high %v9880_v38, %v9883_v40 }
 0x104   : > { %6591 = vmatprep.subr.bf16.mxu1 %v7868_v41  ;;  %v2258_v41 = vmul.f32 -0.5, %v9836_v48  ;;  %v2196_v9 = vadd.f32 1.0, %v2195_v31  ;;  %v8045_v14 = vpop.eup %8044  ;;  %v2140_v12 = vmul.f32 0.6931472, %v8043_v1 }
 0x105   : > { %15137 = vst [vmem:[#allocation27_spill] sm:$0xff] %v9876_v34  ;;  %15142 = vst [vmem:[#allocation28_spill] sm:$0xff] %v9910_v17  ;;  %v8047_v31 = vpop.eup %8046  ;;  %v2313_v17 = vadd.f32 1.0, %v2312_v47  ;;  %v2315_v34 = vand.u32 2147483647, %v9841_v58 }
 0x106   : > { %v2259_v21 = vadd.f32 1.0, %v2258_v41  ;;  %v9927_v35 = vpop.eup %8048  ;;  %v2249_v41 = vmul.f32 -0.5, %v9874_v32  ;;  %v2149_v0 = vmul.f32 0.6931472, %v8045_v14  ;;  %v2194_v33 = vmul.f32 0.6931472, %v8047_v31 }
 0x107   : > { %v9932_v18 = vpop.eup %8050  ;;  %vm9956_vm11 = vcmp.lt.f32.partialorder %v2315_v34, 0.0004427343  ;;  %v7890_v31 = vld [vmem:[%s9696_s13 + $0x45c] ss:$24 sps:$4 sm:$0xff]   ;;  %v2369_v20 = vand.u32 2147483647, %v9927_v35 }
 0x108   : > { %v8053_v47 = vpop.eup %8052  ;;  %v2250_v13 = vadd.f32 1.0, %v2249_v41  ;;  %v2155_v34 = vsel %vm9898_vm1, %v2152_v27, %v2149_v0  ;;  %v2408_v27 = vadd.f32 1.0, %v9932_v18  ;;  %vm1011_vm1 = vcmp.gt.f32.partialorder %v9811_v26, 20.0 }
 0x109   : > { %v8055_v1 = vpop.eup %8054 }
 0x10a   : > { %6369 = vmatpush1.bf16.xpose.msra.mxu0 %v7869_v62  ;;  %v2143_v62 = vmul.f32 %v9816_v29, %v2142_v43  ;;  %v2257_v60 = vmul.f32 0.6931472, %v8055_v1  ;;  %v9986_v43 = vmul.f32 %v9874_v32, %v2250_v13 }
 0x10b   : > { %6592 = vmatpush1.bf16.xpose.msra.mxu1 %v7866_v61  ;;  %6370 = vmatprep.subr.bf16.mxu0 %v7870_v4  ;;  %v2198_v61 = vand.u32 2147483647, %v9824_v36  ;;  %v7882_v4 = vld [vmem:[%s9696_s13 + $0x42c] ss:$24 sps:$4 sm:$0xff]  }
 0x10c   : > { %6593 = vmatprep.subr.bf16.mxu1 %v7874_v6  ;;  %v2205_v6 = vadd.f32 1.0, %v2204_v30  ;;  %v9921_v30 = vunpack.c.l.bf16 %v575_v51  ;;  %v2197_v51 = vmul.f32 %v9824_v36, %v2196_v9  ;;  %v2146_v9 = vsel %vm9888_vm0, %v2143_v62, %v2140_v12  ;;  %v7899_v36 = vld [vmem:[%s9696_s13 + $0x314] ss:$24 sps:$4 sm:$0xff]  }
 0x10d   : > { %vm9938_vm7 = vcmp.lt.f32.partialorder %v2198_v61, 0.0004427343  ;;  %v2252_v61 = vand.u32 2147483647, %v9874_v32  ;;  %v2306_v62 = vand.u32 2147483647, %v9886_v42  ;;  %v4730_v11 = vsel %vm986_vm2, %v9760_v49, %v2146_v9 }
 0x10e   : > { %v9936_v29 = vmul.f32 %v9833_v46, %v2205_v6  ;;  %v2303_v46 = vmul.f32 -0.5, %v9886_v42  ;;  %v7880_v6 = vld [vmem:[%s9696_s13 + $0x428] ss:$24 sps:$4 sm:$0xff]   ;;  %v2200_v44 = vsel %vm9938_vm7, %v2197_v51, %v2194_v33  ;;  %vm10050_vm0 = vcmp.lt.f32.partialorder %v2369_v20, 0.0004427343 }
 0x10f   : > { %vm9988_vm12 = vcmp.lt.f32.partialorder %v2252_v61, 0.0004427343  ;;  %v4736_v51 = vsel %vm992_vm5, %v9768_v54, %v2200_v44  ;;  %vm10003_vm13 = vcmp.lt.f32.partialorder %v2306_v62, 0.0004427343  ;;  %v2357_v61 = vmul.f32 -0.5, %v9894_v53 }
 0x110   : > { %v2304_v12 = vadd.f32 1.0, %v2303_v46  ;;  %v10024_v13 = vmul.f32 %v4736_v51, %v4736_v51  ;;  %v1636_v44 = vmul.f32 1.442695, %v1311_v59  ;;  %vm1010_vm2 = vcmp.gt.f32.partialorder %v9801_v19, 20.0 }
 0x111   : > { %vm1016_vm7 = vcmp.gt.f32.partialorder %v9814_v28, 20.0 }
 0x112   : > { %6371 = vmatpush1.bf16.xpose.msra.mxu0 %v7875_v57  ;;  %v9954_v57 = vmul.f32 %v9841_v58, %v2313_v17  ;;  %v7886_v58 = vld [vmem:[%s9696_s13 + $0x2d4] ss:$24 sps:$4 sm:$0xff]   ;;  %v2203_v17 = vmul.f32 0.6931472, %v8053_v47  ;;  %v4731_v47 = vsel %vm987_vm3, %v9762_v50, %v2155_v34  ;;  %v9998_v50 = vmul.f32 %v4730_v11, %v4730_v11 }
 0x113   : > { %6594 = vmatpush1.bf16.xpose.msra.mxu1 %v7872_v56  ;;  %6372 = vmatprep.subr.bf16.mxu0 %v7878_v2  ;;  %v9951_v56 = vmul.f32 %v9836_v48, %v2259_v21  ;;  %v8057_v2 = vpop.eup %8056  ;;  %v2363_v48 = vadd.f32 1.0, %v9927_v35  ;;  %v2366_v21 = vmul.f32 -0.5, %v9927_v35  ;;  %v10001_v32 = vmul.f32 %v9886_v42, %v2304_v12  ;;  %v581_v12 = vld [vmem:[%s9702_s23 + $0xd8] sm:$0xff] }
 0x114   : > { %6595 = vmatprep.subr.bf16.mxu1 %v7882_v4  ;;  %v7883_v4 = vld [vmem:[%s9696_s13 + $0x2a0] ss:$24 sps:$4 sm:$0xff]   ;;  %v9966_v14 = vpop.eup %8058  ;;  %v2311_v0 = vmul.f32 0.6931472, %v8057_v2  ;;  %v2209_v49 = vsel %vm9913_vm4, %v9936_v29, %v2203_v17  ;;  %v10022_v9 = vmul.f32 %v4731_v47, %v4731_v47  ;;  %v15155_v34 = vmin.f32 %v9868_v25, 20.0 }
 0x115   : > { %v2417_v41 = vadd.f32 1.0, %v9966_v14  ;;  %8064 = vlog2.f32 %v2363_v48  ;;  %v2367_v46 = vadd.f32 1.0, %v2366_v21  ;;  %v8061_v54 = vpop.eup %8060  ;;  %v2263_v29 = vsel %vm9943_vm8, %v9951_v56, %v2257_v60  ;;  %v7888_v2 = vld [vmem:[%s9696_s13 + $0x458] ss:$24 sps:$4 sm:$0xff]   ;;  %v7895_v56 = vld [vmem:[%s9696_s13 + $0xc] ss:$24 sps:$4 sm:$0xff]  }
 0x116   : > { %8066 = vlog2.f32 %v2354_v23  ;;  %v2317_v42 = vsel %vm9956_vm11, %v9954_v57, %v2311_v0  ;;  %v1316_v48 = vmin.f32 %v9921_v30, 20.0  ;;  %v578_v17 = vld [vmem:[%s9702_s23 + $0xc0] sm:$0xff]  ;;  %v8063_v21 = vpop.eup %8062  ;;  %v10040_v23 = vsel %vm999_vm9, %v9782_v3, %v2263_v29 }
 0x117   : > { %8068 = vlog2.f32 %v2417_v41  ;;  %v10030_v57 = vmul.f32 %v9927_v35, %v2367_v46  ;;  %v2248_v35 = vmul.f32 0.6931472, %v8061_v54  ;;  %v2420_v41 = vmul.f32 -0.5, %v9966_v14 }
 0x118   : > { %8070 = vlog2.f32 %v2408_v27  ;;  %v2358_v3 = vadd.f32 1.0, %v2357_v61  ;;  %v2411_v11 = vmul.f32 -0.5, %v9932_v18  ;;  %v1646_v60 = vmul.f32 1.442695, %v1316_v48  ;;  %v7897_v48 = vld [vmem:[%s9696_s13 + $0x310] ss:$24 sps:$4 sm:$0xff]  }
 0x119   : > { %v10056_v0 = vunpack.c.l.bf16 %v578_v17  ;;  %v10058_v27 = vunpack.c.h.bf16 %v578_v17  ;;  %v2302_v47 = vmul.f32 0.6931472, %v8063_v21  ;;  %v10061_v51 = vunpack.c.l.bf16 %v581_v12  ;;  %v7903_v21 = vld [vmem:[%s9696_s13 + $0x3c] ss:$24 sps:$4 sm:$0xff]  }
 0x11a   : > { %6373 = vmatpush1.bf16.xpose.msra.mxu0 %v7883_v4  ;;  %v10020_v4 = vsel %vm993_vm6, %v9770_v55, %v2209_v49  ;;  %v1634_v55 = vmul.f32 1.442695, %v15155_v34  ;;  %v2360_v49 = vand.u32 2147483647, %v9894_v53  ;;  %v10063_v46 = vunpack.c.h.bf16 %v581_v12 }
 0x11b   : > { %6596 = vmatpush1.bf16.xpose.msra.mxu1 %v7880_v6  ;;  %6374 = vmatprep.subr.bf16.mxu0 %v7886_v58  ;;  %v7891_v6 = vld [vmem:[%s9696_s13 + $0x2d0] ss:$24 sps:$4 sm:$0xff]   ;;  %v1317_v58 = vmin.f32 %v9925_v22, 20.0  ;;  %15158 = vst [vmem:[#allocation29_spill] sm:$0xff] %v10061_v51  ;;  %v2254_v54 = vsel %vm9988_vm12, %v9986_v43, %v2248_v35  ;;  %v2423_v29 = vand.u32 2147483647, %v9966_v14 }
 0x11c   : > { %6597 = vmatprep.subr.bf16.mxu1 %v7890_v31  ;;  %v10045_v31 = vsel %vm1005_vm10, %v9785_v5, %v2317_v42  ;;  %8072 = vpow2.f32 %v1634_v55  ;;  %v1322_v42 = vmin.f32 %v10056_v0, 20.0  ;;  %v1323_v33 = vmin.f32 %v10058_v27, 20.0  ;;  %v7893_v43 = vld [vmem:[%s9696_s13 + $0x8] ss:$24 sps:$4 sm:$0xff]  }
 0x11d   : > { %v1648_v5 = vmul.f32 1.442695, %v1317_v58  ;;  %8074 = vpow2.f32 %v1636_v44  ;;  %v1328_v58 = vmin.f32 %v10061_v51, 20.0  ;;  %v1329_v34 = vmin.f32 %v10063_v46, 20.0 }
 0x11e   : > { %8076 = vpow2.f32 %v1646_v60  ;;  %v1658_v55 = vmul.f32 1.442695, %v1322_v42  ;;  %v2414_v35 = vand.u32 2147483647, %v9932_v18  ;;  %v1660_v44 = vmul.f32 1.442695, %v1323_v33 }
 0x11f   : > { %v8065_v20 = vpop.eup %8064  ;;  %8078 = vpow2.f32 %v1648_v5  ;;  %v7907_v60 = vld [vmem:[%s9696_s13 + $0x344] ss:$24 sps:$4 sm:$0xff]   ;;  %vm10085_vm3 = vcmp.lt.f32.partialorder %v2360_v49, 0.0004427343  ;;  %vm10089_vm4 = vcmp.lt.f32.partialorder %v2423_v29, 0.0004427343 }
 0x120   : > { %v8067_v61 = vpop.eup %8066  ;;  %v2365_v12 = vmul.f32 0.6931472, %v8065_v20  ;;  %8080 = vpow2.f32 %v1658_v55  ;;  %vm10102_vm5 = vcmp.lt.f32.partialorder %v2414_v35, 0.0004427343  ;;  %vm1017_vm6 = vcmp.gt.f32.partialorder %v9826_v37, 20.0 }
 0x121   : > { %v8069_v59 = vpop.eup %8068  ;;  %8082 = vpow2.f32 %v1660_v44  ;;  %v10121_v20 = vmul.f32 %v10040_v23, %v10040_v23  ;;  %v7909_v49 = vld [vmem:[%s9696_s13 + $0x68] ss:$24 sps:$4 sm:$0xff]   ;;  %vm1022_vm10 = vcmp.gt.f32.partialorder %v9868_v25, 20.0 }
 0x122   : > { %6375 = vmatpush1.bf16.xpose.msra.mxu0 %v7891_v6  ;;  %v2421_v6 = vadd.f32 1.0, %v2420_v41  ;;  %v8071_v17 = vpop.eup %8070  ;;  %v2356_v41 = vmul.f32 0.6931472, %v8067_v61  ;;  %v2419_v5 = vmul.f32 0.6931472, %v8069_v59 }
 0x123   : > { %6598 = vmatpush1.bf16.xpose.msra.mxu1 %v7888_v2  ;;  %6405 = vmatprep.subr.bf16.mxu0 %v7895_v56  ;;  %v2412_v2 = vadd.f32 1.0, %v2411_v11  ;;  %v2308_v56 = vsel %vm10003_vm13, %v10001_v32, %v2302_v47  ;;  %v1672_v11 = vmul.f32 1.442695, %v1329_v34  ;;  %vm1023_vm13 = vcmp.gt.f32.partialorder %v9919_v24, 20.0 }
 0x124   : > { %6639 = vmatprep.subr.bf16.mxu1 %v7899_v36  ;;  %v2359_v36 = vmul.f32 %v9894_v53, %v2358_v3  ;;  %v2422_v51 = vmul.f32 %v9966_v14, %v2421_v6  ;;  %v2410_v53 = vmul.f32 0.6931472, %v8071_v17  ;;  %v1670_v3 = vmul.f32 1.442695, %v1328_v58  ;;  %v7911_v58 = vld [vmem:[%s9696_s13 + $0x6c] ss:$24 sps:$4 sm:$0xff]  }
 0x125   : > { %v2413_v1 = vmul.f32 %v9932_v18, %v2412_v2  ;;  %v4742_v14 = vsel %vm998_vm14, %v9791_v10, %v2254_v54  ;;  %v4748_v47 = vsel %vm1004_vm15, %v9797_v15, %v2308_v56  ;;  %8084 = vpow2.f32 %v1672_v11  ;;  %v409_v54 = vld [vmem:[%s9689_s29 + $0x70] sm:$0xff] }
 0x126   : > { %v10106_v18 = vpop.eup %8072  ;;  %v2371_v10 = vsel %vm10050_vm0, %v10030_v57, %v2365_v12  ;;  %v2362_v15 = vsel %vm10085_vm3, %v2359_v36, %v2356_v41  ;;  %v2425_v62 = vsel %vm10089_vm4, %v2422_v51, %v2419_v5  ;;  %v10133_v29 = vmul.f32 %v4742_v14, %v4742_v14  ;;  %v7915_v36 = vld [vmem:[%s9696_s13 + $0x374] ss:$24 sps:$4 sm:$0xff]  }
 0x127   : > { %v10131_v57 = vpop.eup %8074  ;;  %v10135_v61 = vmul.f32 %v4748_v47, %v4748_v47  ;;  %v2416_v23 = vsel %vm10102_vm5, %v2413_v1, %v2410_v53  ;;  %8086 = vpow2.f32 %v1670_v3  ;;  %v10144_v51 = vcombine.low %v9880_v38, %v9883_v40  ;;  %v587_v41 = vld [vmem:[%s9702_s23 + $0x108] sm:$0xff] }
 0x128   : > { %v4755_v6 = vsel %vm1011_vm1, %v9811_v26, %v2371_v10  ;;  %v4754_v2 = vsel %vm1010_vm2, %v9801_v19, %v2362_v15  ;;  %v2462_v33 = vadd.f32 1.0, %v10106_v18  ;;  %v10159_v38 = vcombine.high %v409_v54, %v409_v54  ;;  %v584_v19 = vld [vmem:[%s9702_s23 + $0xf0] sm:$0xff] }
 0x129   : > { %6377 = vmatmul.mubr.bf16.vlgmr.msra.gmra.mrb[0].mxu0 %v9746_v39  ;;  %v10110_v39 = vmul.f32 %v10020_v4, %v10020_v4  ;;  %v10125_v4 = vmul.f32 %v10045_v31, %v10045_v31  ;;  %v10140_v31 = vpop.eup %8076  ;;  %v10161_v40 = vcombine.low %v409_v54, %v409_v54  ;;  %v4761_v26 = vsel %vm1017_vm6, %v9826_v37, %v2425_v62  ;;  %v7913_v10 = vld [vmem:[%s9696_s13 + $0x370] ss:$24 sps:$4 sm:$0xff]  }
 0x12a   : > { %6616 = vmatmul.mubr.bf16.vlgmr.msra.gmra.mrb[12].mxu1 %v9846_v63  ;;  %6406 = vmatpush1.bf16.xpose.msra.mxu0 %v7893_v43  ;;  %v10153_v59 = vpop.eup %8078  ;;  %v7905_v43 = vld [vmem:[%s9696_s13 + $0x340] ss:$24 sps:$4 sm:$0xff]   ;;  %v4760_v17 = vsel %vm1016_vm7, %v9814_v28, %v2416_v23  ;;  %v10181_v35 = vmul.f32 %v4755_v6, %v4755_v6  ;;  %v10183_v44 = vmul.f32 %v4754_v2, %v4754_v2  ;;  %v2516_v12 = vadd.f32 1.0, %v10140_v31  ;;  %v15167_v23 = vld [vmem:[#allocation18_spill] sm:$0xff] }
 0x12b   : > { %6640 = vmatpush1.bf16.xpose.msra.mxu1 %v7897_v48  ;;  %6623 = vmatprep.mubr.bf16.mxu1 %v9852_v7  ;;  %v10176_v56 = vpop.eup %8080  ;;  %v10190_v28 = vmul.f32 %v4761_v26, %v4761_v26  ;;  %8088 = vlog2.f32 %v2462_v33  ;;  %v10193_v5 = vunpack.c.l.bf16 %v584_v19  ;;  %v10196_v42 = vmul.f32 %v4760_v17, %v4760_v17  ;;  %v7918_v6 = vld [vmem:[%s9696_s13 + $0x9c] ss:$24 sps:$4 sm:$0xff]  }
 0x12c   : > { %6407 = vmatprep.subr.bf16.mxu0 %v7903_v21  ;;  %6641 = vmatprep.subr.bf16.mxu1 %v7907_v60  ;;  %v2471_v21 = vadd.f32 1.0, %v10131_v57  ;;  %15165 = vst [vmem:[#allocation30_spill] sm:$0xff] %v10183_v44  ;;  %v10187_v11 = vpop.eup %8082  ;;  %v2525_v60 = vadd.f32 1.0, %v10153_v59  ;;  %v2474_v32 = vmul.f32 -0.5, %v10131_v57  ;;  %v2465_v53 = vmul.f32 -0.5, %v10106_v18 }
 0x12d   : > { %6386 = vmatprep.mubr.bf16.mxu0 %v9753_v45  ;;  %v7901_v45 = vld [vmem:[%s9696_s13 + $0x38] ss:$24 sps:$4 sm:$0xff]   ;;  %15166 = vst [vmem:[#allocation31_spill] sm:$0xff] %v10196_v42  ;;  %v10200_v1 = vunpack.c.h.bf16 %v584_v19  ;;  %v2528_v14 = vmul.f32 -0.5, %v10153_v59  ;;  %v10207_v47 = vunpack.c.l.bf16 %v587_v41  ;;  %v2468_v15 = vand.u32 2147483647, %v10106_v18 }
 0x12e   : > { %8090 = vlog2.f32 %v2471_v21  ;;  %v2579_v54 = vadd.f32 1.0, %v10187_v11  ;;  %v10213_v62 = vunpack.c.h.bf16 %v587_v41  ;;  %v2477_v33 = vand.u32 2147483647, %v10131_v57  ;;  %v7921_v26 = vld [vmem:[%s9696_s13 + $0x3a4] ss:$24 sps:$4 sm:$0xff]   ;;  %v15170_v19 = vld [vmem:[#allocation25_spill] sm:$0xff] }
 0x12f   : > { %v10202_v3 = vpop.eup %8084  ;;  %8092 = vlog2.f32 %v2516_v12  ;;  %v2466_v17 = vadd.f32 1.0, %v2465_v53  ;;  %v2519_v21 = vmul.f32 -0.5, %v10140_v31  ;;  %v2531_v12 = vand.u32 2147483647, %v10153_v59 }
 0x130   : > { %8094 = vlog2.f32 %v2525_v60  ;;  %v2522_v41 = vand.u32 2147483647, %v10140_v31  ;;  %vm10229_vm8 = vcmp.lt.f32.partialorder %v2468_v15, 0.0004427343  ;;  %v1334_v2 = vmin.f32 %v10193_v5, 20.0  ;;  %v15173_v15 = vld [vmem:[#allocation19_spill] sm:$0xff] }
 0x131   : > { %6387 = vmatmul.mubr.bf16.gmra.mrb[4].mxu0 %v9765_v52  ;;  %v2570_v52 = vadd.f32 1.0, %v10176_v56  ;;  %vm10236_vm9 = vcmp.lt.f32.partialorder %v2477_v33, 0.0004427343  ;;  %v10249_v33 = vmul.f32 %v10106_v18, %v2466_v17  ;;  %v1341_v37 = vmin.f32 %v10213_v62, 20.0  ;;  %v15178_v17 = vld [vmem:[#allocation26_spill] sm:$0xff] }
 0x132   : > { %6624 = vmatmul.mubr.bf16.gmra.mrb[16].mxu1 %v9854_v8  ;;  %6408 = vmatpush1.bf16.xpose.msra.mxu0 %v7901_v45  ;;  %v2633_v45 = vadd.f32 1.0, %v10202_v3  ;;  %vm10255_vm11 = vcmp.lt.f32.partialorder %v2531_v12, 0.0004427343  ;;  %vm10259_vm12 = vcmp.lt.f32.partialorder %v2522_v41, 0.0004427343  ;;  %v2582_v18 = vmul.f32 -0.5, %v10187_v11 }
 0x133   : > { %6642 = vmatpush1.bf16.xpose.msra.mxu1 %v7905_v43  ;;  %6631 = vmatprep.mubr.bf16.mxu1 %v9858_v16  ;;  %v10221_v43 = vpop.eup %8086  ;;  %8096 = vlog2.f32 %v2570_v52  ;;  %v1340_v52 = vmin.f32 %v10207_v47, 20.0  ;;  %v7924_v41 = vld [vmem:[%s9696_s13 + $0xcc] ss:$24 sps:$4 sm:$0xff]   ;;  %v2576_v48 = vand.u32 2147483647, %v10176_v56  ;;  %vm1029_vm14 = vcmp.gt.f32.partialorder %v9925_v22, 20.0 }
 0x134   : > { %6409 = vmatprep.subr.bf16.mxu0 %v7911_v58  ;;  %6643 = vmatprep.subr.bf16.mxu1 %v7915_v36  ;;  %v2475_v58 = vadd.f32 1.0, %v2474_v32  ;;  %v2529_v36 = vadd.f32 1.0, %v2528_v14  ;;  %8098 = vlog2.f32 %v2579_v54  ;;  %v2624_v53 = vadd.f32 1.0, %v10221_v43 }
 0x135   : > { %6396 = vmatprep.mubr.bf16.mxu0 %v15167_v23  ;;  %v2573_v23 = vmul.f32 -0.5, %v10176_v56  ;;  %8100 = vlog2.f32 %v2633_v45  ;;  %v1335_v14 = vmin.f32 %v10200_v1, 20.0  ;;  %v2520_v45 = vadd.f32 1.0, %v2519_v21  ;;  %v8089_v55 = vpop.eup %8088 }
 0x136   : > { %v10245_v54 = vmul.f32 %v10131_v57, %v2475_v58  ;;  %v7919_v58 = vld [vmem:[%s9696_s13 + $0x3a0] ss:$24 sps:$4 sm:$0xff]   ;;  %v1682_v21 = vmul.f32 1.442695, %v1334_v2  ;;  %8102 = vlog2.f32 %v2624_v53  ;;  %vm1028_vm15 = vcmp.gt.f32.partialorder %v9921_v30, 20.0 }
 0x137   : > { %v1684_v34 = vmul.f32 1.442695, %v1335_v14  ;;  %v2464_v2 = vmul.f32 0.6931472, %v8089_v55  ;;  %v2583_v7 = vadd.f32 1.0, %v2582_v18  ;;  %v2627_v14 = vmul.f32 -0.5, %v10221_v43 }
 0x138   : > { %v8091_v12 = vpop.eup %8090  ;;  %8104 = vpow2.f32 %v1682_v21  ;;  %v2639_v53 = vand.u32 2147483647, %v10202_v3  ;;  %v593_v55 = vld [vmem:[%s9702_s23 + $0x138] sm:$0xff]  ;;  %vm10290_vm1 = vcmp.lt.f32.partialorder %v2576_v48, 0.0004427343  ;;  %vm1035_vm2 = vcmp.gt.f32.partialorder %v10058_v27, 20.0 }
 0x139   : > { %6397 = vmatmul.mubr.bf16.gmra.mrb[8].mxu0 %v15173_v15  ;;  %v10253_v15 = vmul.f32 %v10153_v59, %v2529_v36  ;;  %v2636_v59 = vmul.f32 -0.5, %v10202_v3  ;;  %v15179_v36 = vld [vmem:[#allocation20_spill] sm:$0xff]  ;;  %v8093_v16 = vpop.eup %8092  ;;  %8106 = vpow2.f32 %v1684_v34  ;;  %v2473_v63 = vmul.f32 0.6931472, %v8091_v12 }
 0x13a   : > { %6632 = vmatmul.mubr.bf16.gmra.mrb[20].mxu1 %v15170_v19  ;;  %6410 = vmatpush1.bf16.xpose.msra.mxu0 %v7909_v49  ;;  %v1694_v19 = vmul.f32 1.442695, %v1340_v52  ;;  %v8095_v8 = vpop.eup %8094  ;;  %v590_v52 = vld [vmem:[%s9702_s23 + $0x120] sm:$0xff]  ;;  %vm1041_vm3 = vcmp.gt.f32.partialorder %v10063_v46, 20.0  ;;  %v10304_v48 = vmul.f32 %v10187_v11, %v2583_v7  ;;  %vm10306_vm4 = vcmp.lt.f32.partialorder %v2639_v53, 0.0004427343 }
 0x13b   : > { %6644 = vmatpush1.bf16.xpose.msra.mxu1 %v7913_v10  ;;  %6411 = vmatprep.subr.bf16.mxu0 %v7918_v6  ;;  %v7916_v10 = vld [vmem:[%s9696_s13 + $0x98] ss:$24 sps:$4 sm:$0xff]   ;;  %v2585_v6 = vand.u32 2147483647, %v10187_v11  ;;  %v2637_v42 = vadd.f32 1.0, %v2636_v59  ;;  %v10297_v59 = vunpack.c.l.bf16 %v590_v52  ;;  %vm1034_vm5 = vcmp.gt.f32.partialorder %v10056_v0, 20.0 }
 0x13c   : > { %6645 = vmatprep.subr.bf16.mxu1 %v7921_v26  ;;  %6671 = vmatprep.mubr.bf16.mxu1 %v15178_v17  ;;  %v2574_v26 = vadd.f32 1.0, %v2573_v23  ;;  %v7927_v17 = vld [vmem:[%s9696_s13 + $0x3d4] ss:$24 sps:$4 sm:$0xff]   ;;  %v10277_v23 = vmul.f32 %v10140_v31, %v2520_v45  ;;  %8108 = vpow2.f32 %v1694_v19  ;;  %v2518_v45 = vmul.f32 0.6931472, %v8093_v16 }
 0x13d   : > { %6437 = vmatprep.mubr.bf16.mxu0 %v15179_v36  ;;  %v1696_v36 = vmul.f32 1.442695, %v1341_v37  ;;  %vm10282_vm0 = vcmp.lt.f32.partialorder %v2585_v6, 0.0004427343  ;;  %v8097_v31 = vpop.eup %8096  ;;  %v2527_v6 = vmul.f32 0.6931472, %v8095_v8  ;;  %v2470_v19 = vsel %vm10229_vm8, %v10249_v33, %v2464_v2 }
 0x13e   : > { %v10288_v37 = vmul.f32 %v10176_v56, %v2574_v26  ;;  %v8099_v34 = vpop.eup %8098  ;;  %v10299_v16 = vunpack.c.h.bf16 %v590_v52  ;;  %v2628_v60 = vadd.f32 1.0, %v2627_v14  ;;  %v10311_v33 = vunpack.c.l.bf16 %v593_v55  ;;  %v7930_v11 = vld [vmem:[%s9696_s13 + $0xfc] ss:$24 sps:$4 sm:$0xff]  }
 0x13f   : > { %8110 = vpow2.f32 %v1696_v36  ;;  %v8101_v56 = vpop.eup %8100  ;;  %v2638_v26 = vmul.f32 %v10202_v3, %v2637_v42  ;;  %v10319_v21 = vunpack.c.h.bf16 %v593_v55  ;;  %v1346_v7 = vmin.f32 %v10297_v59, 20.0  ;;  %v7933_v12 = vld [vmem:[%s9696_s13 + $0x404] ss:$24 sps:$4 sm:$0xff]  }
 0x140   : > { %v4766_v2 = vsel %vm1022_vm10, %v9868_v25, %v2470_v19  ;;  %v2572_v36 = vmul.f32 0.6931472, %v8097_v31  ;;  %v1347_v32 = vmin.f32 %v10299_v16, 20.0  ;;  %v2581_v42 = vmul.f32 0.6931472, %v8099_v34  ;;  %v8103_v53 = vpop.eup %8102 }
 0x141   : > { %v2635_v3 = vmul.f32 0.6931472, %v8101_v56  ;;  %v10335_v14 = vmul.f32 %v10221_v43, %v2628_v60  ;;  %v2630_v57 = vand.u32 2147483647, %v10221_v43  ;;  %v10344_v49 = vmul.f32 %v4766_v2, %v4766_v2 }
 0x142   : > { %6412 = vmatpush1.bf16.xpose.msra.mxu0 %v7916_v10  ;;  %v7922_v10 = vld [vmem:[%s9696_s13 + $0xc8] ss:$24 sps:$4 sm:$0xff]   ;;  %v1708_v52 = vmul.f32 1.442695, %v1347_v32  ;;  %v10339_v25 = vpop.eup %8104  ;;  %v1353_v31 = vmin.f32 %v10319_v21, 20.0  ;;  %v2587_v56 = vsel %vm10282_vm0, %v10304_v48, %v2581_v42  ;;  %vm1046_vm8 = vcmp.gt.f32.partialorder %v10193_v5, 20.0 }
 0x143   : > { %6646 = vmatpush1.bf16.xpose.msra.mxu1 %v7919_v58  ;;  %6413 = vmatprep.subr.bf16.mxu0 %v7924_v41  ;;  %v7925_v58 = vld [vmem:[%s9696_s13 + $0x3d0] ss:$24 sps:$4 sm:$0xff]   ;;  %v2524_v41 = vsel %vm10259_vm12, %v10277_v23, %v2518_v45  ;;  %v1352_v23 = vmin.f32 %v10311_v33, 20.0  ;;  %15186 = vst [vmem:[#allocation18_spill] sm:$0xff] %v10344_v49  ;;  %v10348_v45 = vpop.eup %8106  ;;  %vm10371_vm7 = vcmp.lt.f32.partialorder %v2630_v57, 0.0004427343 }
 0x144   : > { %6647 = vmatprep.subr.bf16.mxu1 %v7927_v17  ;;  %v2479_v17 = vsel %vm10236_vm9, %v10245_v54, %v2473_v63  ;;  %v2533_v63 = vsel %vm10255_vm11, %v10253_v15, %v2527_v6  ;;  %v1706_v54 = vmul.f32 1.442695, %v1346_v7  ;;  %v15187_v15 = vld [vmem:[#allocation29_spill] sm:$0xff]  ;;  %v4772_v34 = vsel %vm1028_vm15, %v9921_v30, %v2524_v41 }
 0x145   : > { %v4767_v55 = vsel %vm1023_vm13, %v9919_v24, %v2479_v17  ;;  %vm1040_vm6 = vcmp.gt.f32.partialorder %v15187_v15, 20.0  ;;  %v4773_v43 = vsel %vm1029_vm14, %v9925_v22, %v2533_v63  ;;  %v2578_v24 = vsel %vm10290_vm1, %v10288_v37, %v2572_v36  ;;  %v7936_v32 = vld [vmem:[%s9696_s13 + $0x12c] ss:$24 sps:$4 sm:$0xff]  }
 0x146   : > { %8112 = vpow2.f32 %v1706_v54  ;;  %v2678_v6 = vadd.f32 1.0, %v10339_v25  ;;  %v10360_v19 = vpop.eup %8108  ;;  %v2641_v22 = vsel %vm10306_vm4, %v2638_v26, %v2635_v3  ;;  %v2687_v30 = vadd.f32 1.0, %v10348_v45  ;;  %v7939_v63 = vld [vmem:[%s9696_s13 + $0x434] ss:$24 sps:$4 sm:$0xff]  }
 0x147   : > { %8114 = vpow2.f32 %v1708_v52  ;;  %v2626_v37 = vmul.f32 0.6931472, %v8103_v53  ;;  %v2732_v18 = vadd.f32 1.0, %v10360_v19  ;;  %v1720_v8 = vmul.f32 1.442695, %v1353_v31 }
 0x148   : > { %8116 = vlog2.f32 %v2678_v6  ;;  %v10377_v17 = vmul.f32 %v4767_v55, %v4767_v55  ;;  %v10379_v26 = vmul.f32 %v4773_v43, %v4773_v43  ;;  %v10381_v7 = vmul.f32 %v4772_v34, %v4772_v34 }
 0x149   : > { %v10368_v60 = vpop.eup %8110  ;;  %8118 = vlog2.f32 %v2687_v30  ;;  %v4779_v41 = vsel %vm1035_vm2, %v10058_v27, %v2587_v56  ;;  %v4785_v2 = vsel %vm1041_vm3, %v10063_v46, %v2641_v22  ;;  %v4778_v36 = vsel %vm1034_vm5, %v10056_v0, %v2578_v24  ;;  %v599_v30 = vld [vmem:[%s9702_s23 + $0x168] sm:$0xff] }
 0x14a   : > { %6414 = vmatpush1.bf16.xpose.msra.mxu0 %v7922_v10  ;;  %v1718_v10 = vmul.f32 1.442695, %v1352_v23  ;;  %v2741_v48 = vadd.f32 1.0, %v10368_v60  ;;  %8120 = vlog2.f32 %v2732_v18  ;;  %v2632_v42 = vsel %vm10371_vm7, %v10335_v14, %v2626_v37  ;;  %v7934_v18 = vld [vmem:[%s9696_s13 + $0x128] ss:$24 sps:$4 sm:$0xff]  }
 0x14b   : > { %6648 = vmatpush1.bf16.xpose.msra.mxu1 %v7925_v58  ;;  %6415 = vmatprep.subr.bf16.mxu0 %v7930_v11  ;;  %v596_v58 = vld [vmem:[%s9702_s23 + $0x150] sm:$0xff]  ;;  %v2681_v3 = vmul.f32 -0.5, %v10339_v25  ;;  %v2690_v27 = vmul.f32 -0.5, %v10348_v45  ;;  %v2735_v46 = vmul.f32 -0.5, %v10360_v19  ;;  %v10408_v57 = vmul.f32 %v4779_v41, %v4779_v41 }
 0x14c   : > { %6649 = vmatprep.subr.bf16.mxu1 %v7933_v12  ;;  %v7928_v11 = vld [vmem:[%s9696_s13 + $0xf8] ss:$24 sps:$4 sm:$0xff]   ;;  %8122 = vlog2.f32 %v2741_v48  ;;  %v10400_v54 = vunpack.c.l.bf16 %v596_v58  ;;  %v10404_v53 = vunpack.c.h.bf16 %v596_v58  ;;  %v10410_v23 = vmul.f32 %v4778_v36, %v4778_v36 }
 0x14d   : > { %v7931_v12 = vld [vmem:[%s9696_s13 + $0x400] ss:$24 sps:$4 sm:$0xff]   ;;  %8124 = vpow2.f32 %v1718_v10  ;;  %v10415_v55 = vmul.f32 %v4785_v2, %v4785_v2  ;;  %v2744_v31 = vmul.f32 -0.5, %v10368_v60  ;;  %v2684_v43 = vand.u32 2147483647, %v10339_v25 }
 0x14e   : > { %8126 = vpow2.f32 %v1720_v8  ;;  %v1358_v14 = vmin.f32 %v10400_v54, 20.0  ;;  %v1359_v34 = vmin.f32 %v10404_v53, 20.0  ;;  %v4784_v24 = vsel %vm1040_vm6, %v15187_v15, %v2632_v42  ;;  %v7937_v2 = vld [vmem:[%s9696_s13 + $0x430] ss:$24 sps:$4 sm:$0xff]  }
 0x14f   : > { %v2693_v6 = vand.u32 2147483647, %v10348_v45  ;;  %v2682_v56 = vadd.f32 1.0, %v2681_v3  ;;  %v2691_v10 = vadd.f32 1.0, %v2690_v27  ;;  %v2736_v44 = vadd.f32 1.0, %v2735_v46 }
 0x150   : > { %v10413_v52 = vpop.eup %8112  ;;  %v1730_v48 = vmul.f32 1.442695, %v1358_v14  ;;  %v1732_v8 = vmul.f32 1.442695, %v1359_v34  ;;  %v2747_v15 = vand.u32 2147483647, %v10368_v60  ;;  %v10434_v36 = vmul.f32 %v4784_v24, %v4784_v24 }
 0x151   : > { %v2786_v22 = vadd.f32 1.0, %v10413_v52  ;;  %v10427_v37 = vpop.eup %8114  ;;  %vm1047_vm9 = vcmp.gt.f32.partialorder %v10200_v1, 20.0  ;;  %vm1053_vm10 = vcmp.gt.f32.partialorder %v10213_v62, 20.0  ;;  %vm10438_vm11 = vcmp.lt.f32.partialorder %v2684_v43, 0.0004427343 }
 0x152   : > { %6416 = vmatpush1.bf16.xpose.msra.mxu0 %v7928_v11  ;;  %v8117_v58 = vpop.eup %8116  ;;  %v2738_v11 = vand.u32 2147483647, %v10360_v19  ;;  %v7942_v3 = vld [vmem:[%s9696_s13 + $0x15c] ss:$24 sps:$4 sm:$0xff]   ;;  %v2683_v14 = vmul.f32 %v10339_v25, %v2682_v56  ;;  %v10445_v34 = vunpack.c.l.bf16 %v599_v30  ;;  %v2737_v0 = vmul.f32 %v10360_v19, %v2736_v44 }
 0x153   : > { %6650 = vmatpush1.bf16.xpose.msra.mxu1 %v7931_v12  ;;  %6417 = vmatprep.subr.bf16.mxu0 %v7936_v32  ;;  %v2795_v12 = vadd.f32 1.0, %v10427_v37  ;;  %8128 = vlog2.f32 %v2786_v22  ;;  %v8119_v41 = vpop.eup %8118  ;;  %v2745_v32 = vadd.f32 1.0, %v2744_v31  ;;  %v7945_v27 = vld [vmem:[%s9696_s13 + $0x464] ss:$24 sps:$4 sm:$0xff]   ;;  %v2680_v46 = vmul.f32 0.6931472, %v8117_v58 }
 0x154   : > { %6651 = vmatprep.subr.bf16.mxu1 %v7939_v63  ;;  %8130 = vpow2.f32 %v1730_v48  ;;  %v8121_v42 = vpop.eup %8120  ;;  %v10448_v49 = vunpack.c.h.bf16 %v599_v30  ;;  %v2692_v43 = vmul.f32 %v10348_v45, %v2691_v10  ;;  %vm10453_vm12 = vcmp.lt.f32.partialorder %v2693_v6, 0.0004427343  ;;  %v7943_v63 = vld [vmem:[%s9696_s13 + $0x460] ss:$24 sps:$4 sm:$0xff]  }
 0x155   : > { %8132 = vlog2.f32 %v2795_v12  ;;  %v2734_v22 = vmul.f32 0.6931472, %v8121_v42  ;;  %vm10457_vm13 = vcmp.lt.f32.partialorder %v2747_v15, 0.0004427343  ;;  %vm10461_vm14 = vcmp.lt.f32.partialorder %v2738_v11, 0.0004427343 }
 0x156   : > { %v8123_v24 = vpop.eup %8122  ;;  %8134 = vpow2.f32 %v1732_v8  ;;  %v2689_v30 = vmul.f32 0.6931472, %v8119_v41  ;;  %v2746_v45 = vmul.f32 %v10368_v60, %v2745_v32  ;;  %v2789_v6 = vmul.f32 -0.5, %v10413_v52  ;;  %v7940_v32 = vld [vmem:[%s9696_s13 + $0x158] ss:$24 sps:$4 sm:$0xff]  }
 0x157   : > { %v10450_v31 = vpop.eup %8124  ;;  %v2743_v44 = vmul.f32 0.6931472, %v8123_v24  ;;  %v2686_v10 = vsel %vm10438_vm11, %v2683_v14, %v2680_v46  ;;  %vm1052_vm15 = vcmp.gt.f32.partialorder %v10207_v47, 20.0  ;;  %v2740_v60 = vsel %vm10461_vm14, %v2737_v0, %v2734_v22  ;;  %v7949_v14 = vld [vmem:[%s9696_s13 + $0x18c] ss:$24 sps:$4 sm:$0xff]  }
 0x158   : > { %v10465_v19 = vpop.eup %8126  ;;  %v2840_v58 = vadd.f32 1.0, %v10450_v31  ;;  %v2798_v15 = vmul.f32 -0.5, %v10427_v37  ;;  %v1365_v11 = vmin.f32 %v10448_v49, 20.0  ;;  %v5325_v12 = vpack.c.bf16 %v10379_v26, %v10377_v17 }
 0x159   : > { %v2849_v8 = vadd.f32 1.0, %v10465_v19  ;;  %v5331_v41 = vpack.c.bf16 %v10415_v55, %v10408_v57  ;;  %v2695_v42 = vsel %vm10453_vm12, %v2692_v43, %v2689_v30  ;;  %v2749_v0 = vsel %vm10457_vm13, %v2746_v45, %v2743_v44 }
 0x15a   : > { %6418 = vmatpush1.bf16.xpose.msra.mxu0 %v7934_v18  ;;  %v1364_v18 = vmin.f32 %v10445_v34, 20.0  ;;  %v4796_v24 = vsel %vm1052_vm15, %v10207_v47, %v2740_v60  ;;  %v2790_v22 = vadd.f32 1.0, %v2789_v6  ;;  %v2799_v43 = vadd.f32 1.0, %v2798_v15 }
 0x15b   : > { %6652 = vmatpush1.bf16.xpose.msra.mxu1 %v7937_v2  ;;  %6419 = vmatprep.subr.bf16.mxu0 %v7942_v3  ;;  %8136 = vlog2.f32 %v2849_v8  ;;  %v4790_v3 = vsel %vm1046_vm8, %v10193_v5, %v2686_v10  ;;  %v2801_v25 = vand.u32 2147483647, %v10427_v37  ;;  %v2852_v30 = vmul.f32 -0.5, %v10465_v19 }
 0x15c   : > { %6653 = vmatprep.subr.bf16.mxu1 %v7945_v27  ;;  %v2792_v27 = vand.u32 2147483647, %v10413_v52  ;;  %8138 = vlog2.f32 %v2840_v58  ;;  %v1742_v56 = vmul.f32 1.442695, %v1364_v18  ;;  %vm1058_vm0 = vcmp.gt.f32.partialorder %v10297_v59, 20.0 }
 0x15d   : > { %v8129_v46 = vpop.eup %8128  ;;  %v1744_v5 = vmul.f32 1.442695, %v1365_v11  ;;  %v4791_v45 = vsel %vm1047_vm9, %v10200_v1, %v2695_v42  ;;  %v4797_v47 = vsel %vm1053_vm10, %v10213_v62, %v2749_v0  ;;  %v10510_v6 = vmul.f32 %v4790_v3, %v4790_v3 }
 0x15e   : > { %v10499_v48 = vpop.eup %8130  ;;  %vm1059_vm1 = vcmp.gt.f32.partialorder %v10299_v16, 20.0  ;;  %8140 = vpow2.f32 %v1742_v56  ;;  %v10515_v8 = vmul.f32 %v4796_v24, %v4796_v24  ;;  %v2855_v58 = vand.u32 2147483647, %v10465_v19  ;;  %v605_v56 = vld [vmem:[%s9702_s23 + $0x198] sm:$0xff] }
 0x15f   : > { %v8133_v44 = vpop.eup %8132  ;;  %8142 = vpow2.f32 %v1744_v5  ;;  %v2894_v1 = vadd.f32 1.0, %v10499_v48  ;;  %v15198_v62 = vpack.c.bf16 %v10110_v39, %v10022_v9  ;;  %v2791_v18 = vmul.f32 %v10413_v52, %v2790_v22  ;;  %v608_v22 = vld [vmem:[%s9702_s23 + $0x1b0] sm:$0xff] }
 0x160   : > { %v10513_v10 = vpop.eup %8134  ;;  %vm10523_vm2 = vcmp.lt.f32.partialorder %v2792_v27, 0.0004427343  ;;  %v2843_v15 = vmul.f32 -0.5, %v10450_v31  ;;  %v10532_v42 = vmul.f32 %v4797_v47, %v4797_v47  ;;  %vm1065_vm3 = vcmp.gt.f32.partialorder %v10319_v21, 20.0 }
 0x161   : > { %v2903_v11 = vadd.f32 1.0, %v10513_v10  ;;  %v2853_v9 = vadd.f32 1.0, %v2852_v30  ;;  %v2788_v39 = vmul.f32 0.6931472, %v8129_v46  ;;  %v2797_v52 = vmul.f32 0.6931472, %v8133_v44 }
 0x162   : > { %6420 = vmatpush1.bf16.xpose.msra.mxu0 %v7940_v32  ;;  %v602_v32 = vld [vmem:[%s9702_s23 + $0x180] sm:$0xff]  ;;  %v2800_v0 = vmul.f32 %v10427_v37, %v2799_v43  ;;  %vm10536_vm4 = vcmp.lt.f32.partialorder %v2801_v25, 0.0004427343  ;;  %v2846_v27 = vand.u32 2147483647, %v10450_v31  ;;  %8144 = vlog2.f32 %v2894_v1 }
 0x163   : > { %6654 = vmatpush1.bf16.xpose.msra.mxu1 %v7943_v63  ;;  %6421 = vmatprep.subr.bf16.mxu0 %v7949_v14  ;;  %v10530_v63 = vmul.f32 %v4791_v45, %v4791_v45  ;;  %v7947_v14 = vld [vmem:[%s9696_s13 + $0x188] ss:$24 sps:$4 sm:$0xff]   ;;  %vm10544_vm5 = vcmp.lt.f32.partialorder %v2855_v58, 0.0004427343  ;;  %v10549_v46 = vunpack.c.l.bf16 %v602_v32  ;;  %v7954_v37 = vld [vmem:[%s9696_s13 + $0x1bc] ss:$24 sps:$4 sm:$0xff]   ;;  %8146 = vlog2.f32 %v2903_v11 }
 0x164   : > { %6740 = vmatprep.subr.bf16.mxu1 %v15198_v62  ;;  %v2844_v43 = vadd.f32 1.0, %v2843_v15  ;;  %v2897_v25 = vmul.f32 -0.5, %v10499_v48  ;;  %v10553_v5 = vunpack.c.h.bf16 %v602_v32  ;;  %v2854_v47 = vmul.f32 %v10465_v19, %v2853_v9  ;;  %v15205_v62 = vld [vmem:[#allocation27_spill] sm:$0xff] }
 0x165   : > { %v8137_v30 = vpop.eup %8136  ;;  %vm1064_vm6 = vcmp.gt.f32.partialorder %v10311_v33, 20.0  ;;  %v2794_v58 = vsel %vm10523_vm2, %v2791_v18, %v2788_v39  ;;  %v2803_v15 = vsel %vm10536_vm4, %v2800_v0, %v2797_v52  ;;  %v10564_v11 = vunpack.c.l.bf16 %v605_v56  ;;  %v15209_v0 = vld [vmem:[#allocation28_spill] sm:$0xff] }
 0x166   : > { %v2851_v45 = vmul.f32 0.6931472, %v8137_v30  ;;  %v8139_v1 = vpop.eup %8138  ;;  %v10566_v32 = vunpack.c.h.bf16 %v605_v56  ;;  %v1370_v30 = vmin.f32 %v10549_v46, 20.0  ;;  %v15206_v19 = vpack.c.bf16 %v10024_v13, %v9998_v50  ;;  %v7952_v56 = vld [vmem:[%s9696_s13 + $0x1b8] ss:$24 sps:$4 sm:$0xff]  }
 0x167   : > { %vm10572_vm7 = vcmp.lt.f32.partialorder %v2846_v27, 0.0004427343  ;;  %v2906_v60 = vmul.f32 -0.5, %v10513_v10  ;;  %v2909_v9 = vand.u32 2147483647, %v10513_v10  ;;  %v1371_v39 = vmin.f32 %v10553_v5, 20.0 }
 0x168   : > { %v10579_v52 = vpop.eup %8140  ;;  %v2845_v3 = vmul.f32 %v10450_v31, %v2844_v43  ;;  %v4802_v50 = vsel %vm1058_vm0, %v10297_v59, %v2794_v58  ;;  %v2898_v13 = vadd.f32 1.0, %v2897_v25  ;;  %v2900_v27 = vand.u32 2147483647, %v10499_v48 }
 0x169   : > { %v4803_v31 = vsel %vm1059_vm1, %v10299_v16, %v2803_v15  ;;  %v2842_v59 = vmul.f32 0.6931472, %v8139_v1  ;;  %v2948_v43 = vadd.f32 1.0, %v10579_v52  ;;  %v1376_v58 = vmin.f32 %v10564_v11, 20.0  ;;  %v7959_v16 = vld [vmem:[%s9696_s13 + $0x1ec] ss:$24 sps:$4 sm:$0xff]  }
 0x16a   : > { %6672 = vmatmul.mubr.bf16.vlgmr.msra.gmra.mrb[24].mxu1 %v15205_v62  ;;  %6422 = vmatpush1.bf16.xpose.msra.mxu0 %v7947_v14  ;;  %v10587_v14 = vpop.eup %8142  ;;  %v1377_v24 = vmin.f32 %v10566_v32, 20.0  ;;  %v1754_v44 = vmul.f32 1.442695, %v1370_v30  ;;  %v2907_v2 = vadd.f32 1.0, %v2906_v60  ;;  %vm10602_vm8 = vcmp.lt.f32.partialorder %v2909_v9, 0.0004427343 }
 0x16b   : > { %6741 = vmatpush1.bf16.xpose.msra.mxu1 %v15206_v19  ;;  %6679 = vmatprep.mubr.bf16.mxu1 %v15209_v0  ;;  %v15210_v19 = vpack.c.bf16 %v10125_v4, %v10121_v20  ;;  %v2957_v25 = vadd.f32 1.0, %v10587_v14  ;;  %8148 = vlog2.f32 %v2948_v43  ;;  %v1756_v4 = vmul.f32 1.442695, %v1371_v39  ;;  %v611_v39 = vld [vmem:[%s9702_s23 + $0x1c8] sm:$0xff]  ;;  %v614_v20 = vld [vmem:[%s9702_s23 + $0x1e0] sm:$0xff] }
 0x16c   : > { %6423 = vmatprep.subr.bf16.mxu0 %v7954_v37  ;;  %v2857_v37 = vsel %vm10544_vm5, %v2854_v47, %v2851_v45  ;;  %v10611_v47 = vmul.f32 %v4803_v31, %v4803_v31  ;;  %v2951_v1 = vmul.f32 -0.5, %v10579_v52  ;;  %v8145_v15 = vpop.eup %8144  ;;  %v2848_v30 = vsel %vm10572_vm7, %v2845_v3, %v2842_v59  ;;  %v7957_v43 = vld [vmem:[%s9696_s13 + $0x1e8] ss:$24 sps:$4 sm:$0xff]  }
 0x16d   : > { %6742 = vmatprep.subr.bf16.mxu1 %v15210_v19  ;;  %v4809_v45 = vsel %vm1065_vm3, %v10319_v21, %v2857_v37  ;;  %8150 = vlog2.f32 %v2957_v25  ;;  %vm1071_vm9 = vcmp.gt.f32.partialorder %v10404_v53, 20.0  ;;  %v2960_v60 = vmul.f32 -0.5, %v10587_v14  ;;  %v8147_v19 = vpop.eup %8146 }
 0x16e   : > { %vm1070_vm10 = vcmp.gt.f32.partialorder %v10400_v54, 20.0  ;;  %v10620_v9 = vmul.f32 %v10499_v48, %v2898_v13  ;;  %vm10622_vm11 = vcmp.lt.f32.partialorder %v2900_v27, 0.0004427343  ;;  %8152 = vpow2.f32 %v1754_v44 }
 0x16f   : > { %v1766_v18 = vmul.f32 1.442695, %v1376_v58  ;;  %v1768_v3 = vmul.f32 1.442695, %v1377_v24  ;;  %v10628_v37 = vunpack.c.l.bf16 %v608_v22  ;;  %v15215_v31 = vpack.c.bf16 %v10135_v61, %v10133_v29 }
 0x170   : > { %v10633_v48 = vmul.f32 %v4809_v45, %v4809_v45  ;;  %v2908_v13 = vmul.f32 %v10513_v10, %v2907_v2  ;;  %8154 = vpow2.f32 %v1756_v4  ;;  %v10636_v27 = vunpack.c.h.bf16 %v608_v22  ;;  %v7963_v4 = vld [vmem:[%s9696_s13 + $0x21c] ss:$24 sps:$4 sm:$0xff]  }
 0x171   : > { %v4808_v24 = vsel %vm1064_vm6, %v10311_v33, %v2848_v30  ;;  %v2952_v44 = vadd.f32 1.0, %v2951_v1  ;;  %v2954_v29 = vand.u32 2147483647, %v10579_v52  ;;  %v10643_v61 = vunpack.c.l.bf16 %v611_v39 }
 0x172   : > { %6680 = vmatmul.mubr.bf16.gmra.mrb[28].mxu1 %v10144_v51  ;;  %6424 = vmatpush1.bf16.xpose.msra.mxu0 %v7952_v56  ;;  %v15216_v56 = vpack.c.bf16 %v10190_v28, %v10181_v35  ;;  %v2905_v2 = vmul.f32 0.6931472, %v8147_v19  ;;  %v2961_v10 = vadd.f32 1.0, %v2960_v60  ;;  %v2896_v59 = vmul.f32 0.6931472, %v8145_v15 }
 0x173   : > { %6743 = vmatpush1.bf16.xpose.msra.mxu1 %v15215_v31  ;;  %6687 = vmatprep.mubr.bf16.mxu1 %v10159_v38  ;;  %8156 = vpow2.f32 %v1768_v3  ;;  %vm1077_vm12 = vcmp.gt.f32.partialorder %v10448_v49, 20.0  ;;  %v1382_v25 = vmin.f32 %v10628_v37, 20.0  ;;  %v1383_v33 = vmin.f32 %v10636_v27, 20.0 }
 0x174   : > { %6425 = vmatprep.subr.bf16.mxu0 %v7959_v16  ;;  %6744 = vmatprep.subr.bf16.mxu1 %v15216_v56  ;;  %8158 = vpow2.f32 %v1766_v18  ;;  %v1388_v58 = vmin.f32 %v10643_v61, 20.0  ;;  %v10654_v22 = vmul.f32 %v4802_v50, %v4802_v50  ;;  %v10656_v16 = vmul.f32 %v4808_v24, %v4808_v24  ;;  %v15220_v56 = vld [vmem:[#allocation30_spill] sm:$0xff] }
 0x175   : > { %v2963_v35 = vand.u32 2147483647, %v10587_v14  ;;  %vm1076_vm13 = vcmp.gt.f32.partialorder %v10445_v34, 20.0  ;;  %v10660_v28 = vunpack.c.h.bf16 %v611_v39  ;;  %v1778_v45 = vmul.f32 1.442695, %v1382_v25  ;;  %v8149_v30 = vpop.eup %8148 }
 0x176   : > { %v1780_v1 = vmul.f32 1.442695, %v1383_v33  ;;  %v1790_v15 = vmul.f32 1.442695, %v1388_v58  ;;  %v2911_v50 = vsel %vm10602_vm8, %v2908_v13, %v2905_v2  ;;  %v2902_v19 = vsel %vm10622_vm11, %v10620_v9, %v2896_v59  ;;  %v15219_v13 = vld [vmem:[#allocation31_spill] sm:$0xff] }
 0x177   : > { %v2953_v18 = vmul.f32 %v10579_v52, %v2952_v44  ;;  %v8151_v3 = vpop.eup %8150  ;;  %v2962_v39 = vmul.f32 %v10587_v14, %v2961_v10  ;;  %v2950_v31 = vmul.f32 0.6931472, %v8149_v30  ;;  %vm10672_vm14 = vcmp.lt.f32.partialorder %v2954_v29, 0.0004427343  ;;  %v617_v59 = vld [vmem:[%s9702_s23 + $0x1f8] sm:$0xff] }
 0x178   : > { %8160 = vpow2.f32 %v1778_v45  ;;  %v15221_v21 = vpack.c.bf16 %v15219_v13, %v15220_v56  ;;  %v2959_v9 = vmul.f32 0.6931472, %v8151_v3  ;;  %vm10682_vm15 = vcmp.lt.f32.partialorder %v2963_v35, 0.0004427343  ;;  %v10686_v14 = vpop.eup %8152  ;;  %v7961_v35 = vld [vmem:[%s9696_s13 + $0x218] ss:$24 sps:$4 sm:$0xff]  }
 0x179   : > { %8162 = vpow2.f32 %v1780_v1  ;;  %v4815_v29 = vsel %vm1071_vm9, %v10404_v53, %v2911_v50  ;;  %v4814_v2 = vsel %vm1070_vm10, %v10400_v54, %v2902_v19  ;;  %v1389_v10 = vmin.f32 %v10660_v28, 20.0  ;;  %v7966_v50 = vld [vmem:[%s9696_s13 + $0x24c] ss:$24 sps:$4 sm:$0xff]  }
 0x17a   : > { %6688 = vmatmul.mubr.bf16.gmra.mrb[32].mxu1 %v10161_v40  ;;  %6426 = vmatpush1.bf16.xpose.msra.mxu0 %v7957_v43  ;;  %8164 = vpow2.f32 %v1790_v15  ;;  %v8155_v43 = vpop.eup %8154  ;;  %v2956_v25 = vsel %vm10672_vm14, %v2953_v18, %v2950_v31  ;;  %v3002_v17 = vadd.f32 1.0, %v10686_v14  ;;  %v10702_v26 = vunpack.c.l.bf16 %v614_v20 }
 0x17b   : > { %6745 = vmatpush1.bf16.xpose.msra.mxu1 %v15221_v21  ;;  %6427 = vmatprep.subr.bf16.mxu0 %v7963_v4  ;;  %v2965_v53 = vsel %vm10682_vm15, %v2962_v39, %v2959_v9  ;;  %v3011_v33 = vadd.f32 1.0, %v8155_v43  ;;  %v3014_v54 = vmul.f32 -0.5, %v8155_v43  ;;  %v3005_v58 = vmul.f32 -0.5, %v10686_v14  ;;  %v15224_v9 = vld [vmem:[#allocation18_spill] sm:$0xff] }
 0x17c   : > { %6746 = vmatprep.subr.bf16.mxu1 %v5325_v12  ;;  %v10704_v12 = vunpack.c.h.bf16 %v614_v20  ;;  %v10712_v45 = vmul.f32 %v4815_v29, %v4815_v29  ;;  %v10714_v1 = vmul.f32 %v4814_v2, %v4814_v2  ;;  %8166 = vlog2.f32 %v3002_v17 }
 0x17d   : > { %v10709_v4 = vpop.eup %8156  ;;  %v10716_v15 = vunpack.c.l.bf16 %v617_v59  ;;  %8168 = vlog2.f32 %v3011_v33  ;;  %v1792_v18 = vmul.f32 1.442695, %v1389_v10  ;;  %v10722_v3 = vunpack.c.h.bf16 %v617_v59 }
 0x17e   : > { %v10718_v30 = vpop.eup %8158  ;;  %v3065_v19 = vadd.f32 1.0, %v10709_v4  ;;  %v4821_v39 = vsel %vm1077_vm12, %v10448_v49, %v2965_v53  ;;  %v4820_v31 = vsel %vm1076_vm13, %v10445_v34, %v2956_v25  ;;  %v1394_v24 = vmin.f32 %v10702_v26, 20.0 }
 0x17f   : > { %v3015_v13 = vadd.f32 1.0, %v3014_v54  ;;  %v3017_v56 = vand.u32 2147483647, %v8155_v43  ;;  %v3006_v21 = vadd.f32 1.0, %v3005_v58  ;;  %v15225_v44 = vpack.c.bf16 %v10381_v7, %v15224_v9 }
 0x180   : > { %8170 = vlog2.f32 %v3065_v19  ;;  %v3068_v29 = vmul.f32 -0.5, %v10709_v4  ;;  %v3071_v49 = vand.u32 2147483647, %v10709_v4  ;;  %v3056_v2 = vadd.f32 1.0, %v10718_v30 }
 0x181   : > { %v1400_v34 = vmin.f32 %v10716_v15, 20.0  ;;  %v10742_v59 = vmul.f32 %v4820_v31, %v4820_v31  ;;  %vm1083_vm0 = vcmp.gt.f32.partialorder %v10553_v5, 20.0  ;;  %v3008_v7 = vand.u32 2147483647, %v10686_v14  ;;  %v7969_v31 = vld [vmem:[%s9696_s13 + $0x27c] ss:$24 sps:$4 sm:$0xff]  }
 0x182   : > { %6428 = vmatpush1.bf16.xpose.msra.mxu0 %v7961_v35  ;;  %v8161_v10 = vpop.eup %8160  ;;  %v3059_v25 = vmul.f32 -0.5, %v10718_v30  ;;  %8172 = vpow2.f32 %v1792_v18  ;;  %v10749_v53 = vmul.f32 %v4821_v39, %v4821_v39  ;;  %vm1089_vm1 = vcmp.gt.f32.partialorder %v10566_v32, 20.0 }
 0x183   : > { %6747 = vmatpush1.bf16.xpose.msra.mxu1 %v15225_v44  ;;  %6429 = vmatprep.subr.bf16.mxu0 %v7966_v50  ;;  %v10747_v17 = vpop.eup %8162  ;;  %8174 = vlog2.f32 %v3056_v2  ;;  %v3062_v57 = vand.u32 2147483647, %v10718_v30  ;;  %v3110_v55 = vadd.f32 1.0, %v8161_v10  ;;  %v3016_v33 = vmul.f32 %v8155_v43, %v3015_v13  ;;  %v7964_v50 = vld [vmem:[%s9696_s13 + $0x248] ss:$24 sps:$4 sm:$0xff]  }
 0x184   : > { %6748 = vmatprep.subr.bf16.mxu1 %v5331_v41  ;;  %v10753_v41 = vpop.eup %8164  ;;  %vm10755_vm2 = vcmp.lt.f32.partialorder %v3017_v56, 0.0004427343  ;;  %vm1082_vm3 = vcmp.gt.f32.partialorder %v10549_v46, 20.0  ;;  %v3007_v58 = vmul.f32 %v10686_v14, %v3006_v21  ;;  %v3119_v35 = vadd.f32 1.0, %v10747_v17 }
 0x185   : > { %v3069_v19 = vadd.f32 1.0, %v3068_v29  ;;  %vm10763_vm4 = vcmp.lt.f32.partialorder %v3071_v49, 0.0004427343  ;;  %8176 = vlog2.f32 %v3110_v55  ;;  %v3113_v39 = vmul.f32 -0.5, %v8161_v10 }
 0x186   : > { %vm1088_vm5 = vcmp.gt.f32.partialorder %v10564_v11, 20.0  ;;  %vm10769_vm6 = vcmp.lt.f32.partialorder %v3008_v7, 0.0004427343  ;;  %v3060_v13 = vadd.f32 1.0, %v3059_v25  ;;  %8178 = vlog2.f32 %v3119_v35  ;;  %v8167_v56 = vpop.eup %8166 }
 0x187   : > { %v3164_v14 = vadd.f32 1.0, %v10753_v41  ;;  %vm10774_vm7 = vcmp.lt.f32.partialorder %v3062_v57, 0.0004427343  ;;  %v3122_v9 = vmul.f32 -0.5, %v10747_v17  ;;  %v3116_v44 = vand.u32 2147483647, %v8161_v10  ;;  %v8169_v49 = vpop.eup %8168 }
 0x188   : > { %v1401_v29 = vmin.f32 %v10722_v3, 20.0  ;;  %v3004_v2 = vmul.f32 0.6931472, %v8167_v56  ;;  %v3114_v7 = vadd.f32 1.0, %v3113_v39  ;;  %v1802_v55 = vmul.f32 1.442695, %v1394_v24 }
 0x189   : > { %8180 = vlog2.f32 %v3164_v14  ;;  %v15234_v25 = vpack.c.bf16 %v10434_v36, %v10410_v23  ;;  %v3013_v35 = vmul.f32 0.6931472, %v8169_v49  ;;  %v3070_v57 = vmul.f32 %v10709_v4, %v3069_v19  ;;  %v7967_v49 = vld [vmem:[%s9696_s13 + $0x278] ss:$24 sps:$4 sm:$0xff]  }
 0x18a   : > { %6430 = vmatpush1.bf16.xpose.msra.mxu0 %v7964_v50  ;;  %v3125_v52 = vand.u32 2147483647, %v10747_v17  ;;  %v3167_v60 = vmul.f32 -0.5, %v10753_v41  ;;  %v8171_v20 = vpop.eup %8170  ;;  %v15235_v56 = vpack.c.bf16 %v10532_v42, %v10530_v63  ;;  %v3061_v24 = vmul.f32 %v10718_v30, %v3060_v13 }
 0x18b   : > { %6749 = vmatpush1.bf16.xpose.msra.mxu1 %v15234_v25  ;;  %6431 = vmatprep.subr.bf16.mxu0 %v7969_v31  ;;  %vm1094_vm8 = vcmp.gt.f32.partialorder %v10628_v37, 20.0  ;;  %8182 = vpow2.f32 %v1802_v55  ;;  %v15236_v23 = vmin.f32 %v10704_v12, 20.0  ;;  %v1814_v4 = vmul.f32 1.442695, %v1400_v34 }
 0x18c   : > { %6750 = vmatprep.subr.bf16.mxu1 %v15235_v56  ;;  %v3019_v50 = vsel %vm10755_vm2, %v3016_v33, %v3013_v35  ;;  %v3067_v19 = vmul.f32 0.6931472, %v8171_v20  ;;  %v3123_v39 = vadd.f32 1.0, %v3122_v9  ;;  %vm10795_vm9 = vcmp.lt.f32.partialorder %v3116_v44, 0.0004427343  ;;  %v8173_v63 = vpop.eup %8172 }
 0x18d   : > { %v1804_v36 = vmul.f32 1.442695, %v15236_v23  ;;  %v3010_v42 = vsel %vm10769_vm6, %v3007_v58, %v3004_v2  ;;  %v3115_v30 = vmul.f32 %v8161_v10, %v3114_v7  ;;  %v1816_v13 = vmul.f32 1.442695, %v1401_v29  ;;  %v8175_v14 = vpop.eup %8174  ;;  %v7972_v9 = vld [vmem:[%s9696_s13 + $0x2ac] ss:$24 sps:$4 sm:$0xff]  }
 0x18e   : > { %v3073_v34 = vsel %vm10763_vm4, %v3070_v57, %v3067_v19  ;;  %v4827_v20 = vsel %vm1083_vm0, %v10553_v5, %v3019_v50  ;;  %vm1095_vm10 = vcmp.gt.f32.partialorder %v10636_v27, 20.0  ;;  %v3173_v33 = vadd.f32 1.0, %v8173_v63  ;;  %v623_v19 = vld [vmem:[%s9702_s23 + $0x228] sm:$0xff] }
 0x18f   : > { %8184 = vpow2.f32 %v1804_v36  ;;  %v3168_v54 = vadd.f32 1.0, %v3167_v60  ;;  %v4833_v10 = vsel %vm1089_vm1, %v10566_v32, %v3073_v34  ;;  %v3058_v58 = vmul.f32 0.6931472, %v8175_v14  ;;  %v8177_v44 = vpop.eup %8176 }
 0x190   : > { %v3176_v43 = vmul.f32 -0.5, %v8173_v63  ;;  %8186 = vpow2.f32 %v1814_v4  ;;  %v4826_v18 = vsel %vm1082_vm3, %v10549_v46, %v3010_v42  ;;  %v3124_v29 = vmul.f32 %v10747_v17, %v3123_v39  ;;  %v8179_v2 = vpop.eup %8178  ;;  %v7970_v39 = vld [vmem:[%s9696_s13 + $0x2a8] ss:$24 sps:$4 sm:$0xff]  }
 0x191   : > { %8188 = vlog2.f32 %v3173_v33  ;;  %v3170_v5 = vand.u32 2147483647, %v10753_v41  ;;  %v3064_v60 = vsel %vm10774_vm7, %v3061_v24, %v3058_v58  ;;  %v3179_v7 = vand.u32 2147483647, %v8173_v63 }
 0x192   : > { %v3112_v55 = vmul.f32 0.6931472, %v8177_v44  ;;  %8190 = vpow2.f32 %v1816_v13  ;;  %6432 = vmatpush1.bf16.xpose.msra.mxu0 %v7967_v49  ;;  %v15239_v32 = vpack.c.bf16 %v10515_v8, %v10510_v6  ;;  %v10822_v25 = vmul.f32 %v4827_v20, %v4827_v20  ;;  %v7975_v13 = vld [vmem:[%s9696_s13 + $0x2dc] ss:$24 sps:$4 sm:$0xff]   ;;  %v7973_v6 = vld [vmem:[%s9696_s13 + $0x2d8] ss:$24 sps:$4 sm:$0xff]  }
 0x193   : > { %v10824_v46 = vmul.f32 %v4833_v10, %v4833_v10  ;;  %v4832_v17 = vsel %vm1088_vm5, %v10564_v11, %v3064_v60  ;;  %v3121_v35 = vmul.f32 0.6931472, %v8179_v2  ;;  %v8181_v21 = vpop.eup %8180  ;;  %6433 = vmatprep.subr.bf16.mxu0 %v7972_v9  ;;  %v15240_v57 = vpack.c.bf16 %v10633_v48, %v10611_v47  ;;  %v620_v48 = vld [vmem:[%s9702_s23 + $0x210] sm:$0xff] }
 0x194   : > { %6751 = vmatpush1.bf16.xpose.msra.mxu1 %v15239_v32  ;;  %vm10832_vm11 = vcmp.lt.f32.partialorder %v3125_v52, 0.0004427343  ;;  %v3177_v8 = vadd.f32 1.0, %v3176_v43  ;;  %v3118_v56 = vsel %vm10795_vm9, %v3115_v30, %v3112_v55  ;;  %v3169_v24 = vmul.f32 %v10753_v41, %v3168_v54 }
 0x195   : > { %6752 = vmatprep.subr.bf16.mxu1 %v15240_v57  ;;  %v5348_v11 = vpack.c.bf16 %v10742_v59, %v10714_v1  ;;  %vm1100_vm12 = vcmp.gt.f32.partialorder %v10643_v61, 20.0  ;;  %v3166_v23 = vmul.f32 0.6931472, %v8181_v21  ;;  %vm10842_vm13 = vcmp.lt.f32.partialorder %v3170_v5, 0.0004427343  ;;  %v8183_v52 = vpop.eup %8182 }
 0x196   : > { %v5349_v36 = vpack.c.bf16 %v10749_v53, %v10712_v45  ;;  %v10849_v4 = vmul.f32 %v4826_v18, %v4826_v18  ;;  %v10851_v50 = vmul.f32 %v4832_v17, %v4832_v17  ;;  %vm10853_vm14 = vcmp.lt.f32.partialorder %v3179_v7, 0.0004427343 }
 0x197   : > { %v5355_v31 = vpack.c.bf16 %v10824_v46, %v10822_v25  ;;  %vm1101_vm15 = vcmp.gt.f32.partialorder %v10660_v28, 20.0  ;;  %v3127_v42 = vsel %vm10832_vm11, %v3124_v29, %v3121_v35  ;;  %v4838_v45 = vsel %vm1094_vm8, %v10628_v37, %v3118_v56  ;;  %v7976_v46 = vld [vmem:[%s9696_s13 + $0x10] ss:$24 sps:$4 sm:$0xff]  }
 0x198   : > { %v3218_v53 = vadd.f32 1.0, %v8183_v52  ;;  %v3178_v14 = vmul.f32 %v8173_v63, %v3177_v8  ;;  %v3172_v49 = vsel %vm10842_vm13, %v3169_v24, %v3166_v23  ;;  %v3221_v34 = vmul.f32 -0.5, %v8183_v52  ;;  %v7978_v23 = vld [vmem:[%s9696_s13 + $0x14] ss:$24 sps:$4 sm:$0xff]  }
 0x199   : > { %v8185_v30 = vpop.eup %8184  ;;  %v10870_v20 = vunpack.c.l.bf16 %v620_v48  ;;  %v10872_v9 = vunpack.c.h.bf16 %v620_v48  ;;  %v10874_v10 = vunpack.c.l.bf16 %v623_v19  ;;  %v5354_v37 = vpack.c.bf16 %v10851_v50, %v10849_v4 }
 0x19a   : > { %v3227_v33 = vadd.f32 1.0, %v8185_v30  ;;  %v3230_v54 = vmul.f32 -0.5, %v8185_v30  ;;  %v10876_v58 = vpop.eup %8186  ;;  %v4839_v63 = vsel %vm1095_vm10, %v10636_v27, %v3127_v42  ;;  %v10883_v43 = vmul.f32 %v4838_v45, %v4838_v45  ;;  %6434 = vmatpush1.bf16.xpose.msra.mxu0 %v7970_v39 }
 0x19b   : > { %8192 = vlog2.f32 %v3218_v53  ;;  %v8189_v44 = vpop.eup %8188  ;;  %v15247_v18 = vpack.c.bf16 %v10656_v16, %v10654_v22  ;;  %v4844_v29 = vsel %vm1100_vm12, %v10643_v61, %v3172_v49  ;;  %v3233_v5 = vand.u32 2147483647, %v8185_v30  ;;  %6435 = vmatprep.subr.bf16.mxu0 %v7975_v13  ;;  %v629_v13 = vld [vmem:[%s9702_s23 + $0x258] sm:$0xff] }
 0x19c   : > { %8194 = vlog2.f32 %v3227_v33  ;;  %v3224_v2 = vand.u32 2147483647, %v8183_v52  ;;  %v10891_v60 = vpop.eup %8190  ;;  %v3175_v27 = vmul.f32 0.6931472, %v8189_v44  ;;  %v3231_v7 = vadd.f32 1.0, %v3230_v54 }
 0x19d   : > { %6753 = vmatpush1.bf16.xpose.msra.mxu1 %v15247_v18  ;;  %v3222_v55 = vadd.f32 1.0, %v3221_v34  ;;  %v3272_v32 = vadd.f32 1.0, %v10876_v58  ;;  %v3281_v22 = vadd.f32 1.0, %v10891_v60  ;;  %v3275_v16 = vmul.f32 -0.5, %v10876_v58 }
 0x19e   : > { %6754 = vmatprep.subr.bf16.mxu1 %v5349_v36  ;;  %v10896_v17 = vunpack.c.h.bf16 %v623_v19  ;;  %v1406_v61 = vmin.f32 %v10870_v20, 20.0  ;;  %v10899_v35 = vmul.f32 %v4839_v63, %v4839_v63  ;;  %v10901_v21 = vmul.f32 %v4844_v29, %v4844_v29  ;;  %v626_v19 = vld [vmem:[%s9702_s23 + $0x240] sm:$0xff] }
 0x19f   : > { %v3284_v57 = vmul.f32 -0.5, %v10891_v60  ;;  %vm1106_vm0 = vcmp.gt.f32.partialorder %v10702_v26, 20.0  ;;  %8196 = vlog2.f32 %v3272_v32  ;;  %v3181_v8 = vsel %vm10853_vm14, %v3178_v14, %v3175_v27 }
 0x1a0   : > { %vm1107_vm1 = vcmp.gt.f32.partialorder %v10704_v12, 20.0  ;;  %vm10909_vm2 = vcmp.lt.f32.partialorder %v3233_v5, 0.0004427343  ;;  %8198 = vlog2.f32 %v3281_v22  ;;  %vm10913_vm3 = vcmp.lt.f32.partialorder %v3224_v2, 0.0004427343 }
 0x1a1   : > { %v3232_v47 = vmul.f32 %v8185_v30, %v3231_v7  ;;  %v3287_v48 = vand.u32 2147483647, %v10891_v60  ;;  %v3223_v36 = vmul.f32 %v8183_v52, %v3222_v55  ;;  %v1407_v41 = vmin.f32 %v10872_v9, 20.0  ;;  %v7981_v22 = vld [vmem:[%s9696_s13 + $0x44] ss:$24 sps:$4 sm:$0xff]  }
 0x1a2   : > { %vm1112_vm4 = vcmp.gt.f32.partialorder %v10716_v15, 20.0  ;;  %v3276_v39 = vadd.f32 1.0, %v3275_v16  ;;  %v1412_v42 = vmin.f32 %v10874_v10, 20.0  ;;  %v1413_v45 = vmin.f32 %v10896_v17, 20.0  ;;  %6436 = vmatpush1.bf16.xpose.msra.mxu0 %v7973_v6 }
 0x1a3   : > { %v1826_v53 = vmul.f32 1.442695, %v1406_v61  ;;  %v4845_v14 = vsel %vm1101_vm15, %v10660_v28, %v3181_v8  ;;  %vm1113_vm5 = vcmp.gt.f32.partialorder %v10722_v3, 20.0  ;;  %v3285_v30 = vadd.f32 1.0, %v3284_v57  ;;  %6466 = vmatprep.subr.bf16.mxu0 %v7978_v23 }
 0x1a4   : > { %v3278_v52 = vand.u32 2147483647, %v10876_v58  ;;  %v1828_v49 = vmul.f32 1.442695, %v1407_v41  ;;  %v1838_v34 = vmul.f32 1.442695, %v1412_v42  ;;  %v10933_v54 = vunpack.c.l.bf16 %v626_v19 }
 0x1a5   : > { %6755 = vmatpush1.bf16.xpose.msra.mxu1 %v5348_v11  ;;  %8200 = vpow2.f32 %v1826_v53  ;;  %v1840_v33 = vmul.f32 1.442695, %v1413_v45  ;;  %v8193_v63 = vpop.eup %8192  ;;  %v10938_v28 = vunpack.c.h.bf16 %v626_v19  ;;  %v10940_v44 = vunpack.c.l.bf16 %v629_v13  ;;  %v632_v41 = vld [vmem:[%s9702_s23 + $0x270] sm:$0xff] }
 0x1a6   : > { %6756 = vmatprep.subr.bf16.mxu1 %v5355_v31  ;;  %8202 = vpow2.f32 %v1828_v49  ;;  %v10942_v18 = vunpack.c.h.bf16 %v629_v13  ;;  %v8195_v1 = vpop.eup %8194  ;;  %v5133_v59 = vmul.f32 %v4845_v14, %v4845_v14  ;;  %v3220_v11 = vmul.f32 0.6931472, %v8193_v63  ;;  %v15257_v19 = vld [vmem:[#allocation22_spill] sm:$0xff]  ;;  %v635_v14 = vld [vmem:[%s9702_s23 + $0x288] sm:$0xff] }
 0x1a7   : > { %8204 = vpow2.f32 %v1838_v34  ;;  %v1418_v29 = vmin.f32 %v10933_v54, 20.0  ;;  %v3229_v5 = vmul.f32 0.6931472, %v8195_v1  ;;  %vm10945_vm6 = vcmp.lt.f32.partialorder %v3287_v48, 0.0004427343 }
 0x1a8   : > { %v3277_v25 = vmul.f32 %v10876_v58, %v3276_v39  ;;  %8206 = vpow2.f32 %v1840_v33  ;;  %v3226_v31 = vsel %vm10913_vm3, %v3223_v36, %v3220_v11  ;;  %v1419_v27 = vmin.f32 %v10938_v28, 20.0  ;;  %v15256_v36 = vld [vmem:[#allocation21_spill] sm:$0xff]  ;;  %v15261_v58 = vld [vmem:[#allocation24_spill] sm:$0xff] }
 0x1a9   : > { %v1424_v7 = vmin.f32 %v10940_v44, 20.0  ;;  %v1425_v55 = vmin.f32 %v10942_v18, 20.0  ;;  %v8197_v32 = vpop.eup %8196  ;;  %v3235_v16 = vsel %vm10909_vm2, %v3232_v47, %v3229_v5  ;;  %v3286_v61 = vmul.f32 %v10891_v60, %v3285_v30  ;;  %6438 = vmatmul.mubr.bf16.vlgmr.msra.gmra.mrb[0].mxu0 %v15256_v36  ;;  %v7984_v1 = vld [vmem:[%s9696_s13 + $0x74] ss:$24 sps:$4 sm:$0xff]  }
 0x1aa   : > { %vm10960_vm7 = vcmp.lt.f32.partialorder %v3278_v52, 0.0004427343  ;;  %v1850_v57 = vmul.f32 1.442695, %v1418_v29  ;;  %v8199_v6 = vpop.eup %8198  ;;  %v5361_v8 = vpack.c.bf16 %v5133_v59, %v10899_v35  ;;  %v3274_v24 = vmul.f32 0.6931472, %v8197_v32  ;;  %6467 = vmatpush1.bf16.xpose.msra.mxu0 %v7976_v46  ;;  %6447 = vmatprep.mubr.bf16.mxu0 %v15257_v19 }
 0x1ab   : > { %v4850_v23 = vsel %vm1106_vm0, %v10702_v26, %v3226_v31  ;;  %v1852_v48 = vmul.f32 1.442695, %v1419_v27  ;;  %v3283_v56 = vmul.f32 0.6931472, %v8199_v6  ;;  %v4851_v60 = vsel %vm1107_vm1, %v10704_v12, %v3235_v16  ;;  %6468 = vmatprep.subr.bf16.mxu0 %v7981_v22  ;;  %v7979_v52 = vld [vmem:[%s9696_s13 + $0x40] ss:$24 sps:$4 sm:$0xff]  }
 0x1ac   : > { %8208 = vpow2.f32 %v1850_v57  ;;  %v1862_v47 = vmul.f32 1.442695, %v1424_v7  ;;  %v3280_v35 = vsel %vm10960_vm7, %v3277_v25, %v3274_v24  ;;  %v1864_v26 = vmul.f32 1.442695, %v1425_v55  ;;  %v15258_v46 = vld [vmem:[#allocation23_spill] sm:$0xff] }
 0x1ad   : > { %6757 = vmatpush1.bf16.xpose.msra.mxu1 %v5354_v37  ;;  %8210 = vpow2.f32 %v1852_v48  ;;  %v5360_v12 = vpack.c.bf16 %v10901_v21, %v10883_v43  ;;  %v3289_v39 = vsel %vm10945_vm6, %v3286_v61, %v3283_v56  ;;  %v4856_v4 = vsel %vm1112_vm4, %v10716_v15, %v3280_v35 }
 0x1ae   : > { %8212 = vpow2.f32 %v1862_v47  ;;  %6758 = vmatprep.subr.bf16.mxu1 %v5361_v8  ;;  %v4857_v37 = vsel %vm1113_vm5, %v10722_v3, %v3289_v39  ;;  %v5139_v42 = vmul.f32 %v4851_v60, %v4851_v60  ;;  %v10989_v45 = vmul.f32 %v4850_v23, %v4850_v23 }
 0x1af   : > { %v8201_v50 = vpop.eup %8200  ;;  %8214 = vpow2.f32 %v1864_v26  ;;  %v5145_v21 = vmul.f32 %v4857_v37, %v4857_v37  ;;  %v10992_v30 = vunpack.c.l.bf16 %v632_v41  ;;  %v10997_v49 = vmul.f32 %v4856_v4, %v4856_v4  ;;  %v7987_v37 = vld [vmem:[%s9696_s13 + $0xa4] ss:$24 sps:$4 sm:$0xff]  }
 0x1b0   : > { %v8203_v43 = vpop.eup %8202  ;;  %v3326_v53 = vadd.f32 1.0, %v8201_v50  ;;  %v3329_v13 = vmul.f32 -0.5, %v8201_v50  ;;  %v3332_v3 = vand.u32 2147483647, %v8201_v50  ;;  %v11000_v29 = vunpack.c.h.bf16 %v632_v41 }
 0x1b1   : > { %v10994_v15 = vpop.eup %8204  ;;  %v3335_v34 = vadd.f32 1.0, %v8203_v43  ;;  %v3338_v33 = vmul.f32 -0.5, %v8203_v43  ;;  %v3341_v59 = vand.u32 2147483647, %v8203_v43  ;;  %v5367_v5 = vpack.c.bf16 %v5145_v21, %v5139_v42  ;;  %6448 = vmatmul.mubr.bf16.gmra.mrb[4].mxu0 %v15258_v46  ;;  %v15273_v46 = vld [vmem:[#allocation26_spill] sm:$0xff] }
 0x1b2   : > { %v8207_v63 = vpop.eup %8206  ;;  %8216 = vlog2.f32 %v3326_v53  ;;  %v3330_v11 = vadd.f32 1.0, %v3329_v13  ;;  %v3380_v7 = vadd.f32 1.0, %v10994_v15  ;;  %v11004_v55 = vunpack.c.l.bf16 %v635_v14  ;;  %6469 = vmatpush1.bf16.xpose.msra.mxu0 %v7979_v52  ;;  %6457 = vmatprep.mubr.bf16.mxu0 %v15261_v58 }
 0x1b3   : > { %8218 = vlog2.f32 %v3335_v34  ;;  %v3339_v2 = vadd.f32 1.0, %v3338_v33  ;;  %v3389_v25 = vadd.f32 1.0, %v8207_v63  ;;  %v3392_v31 = vmul.f32 -0.5, %v8207_v63  ;;  %6470 = vmatprep.subr.bf16.mxu0 %v7984_v1  ;;  %v15268_v34 = vld [vmem:[#allocation25_spill] sm:$0xff] }
 0x1b4   : > { %v3395_v27 = vand.u32 2147483647, %v8207_v63  ;;  %v5366_v32 = vpack.c.bf16 %v10997_v49, %v10989_v45  ;;  %vm1118_vm8 = vcmp.gt.f32.partialorder %v10870_v20, 20.0  ;;  %vm11009_vm9 = vcmp.lt.f32.partialorder %v3332_v3, 0.0004427343 }
 0x1b5   : > { %6759 = vmatpush1.bf16.xpose.msra.mxu1 %v5360_v12  ;;  %8220 = vlog2.f32 %v3389_v25  ;;  %v3383_v16 = vmul.f32 -0.5, %v10994_v15  ;;  %vm1119_vm10 = vcmp.gt.f32.partialorder %v10872_v9, 20.0  ;;  %v11016_v57 = vmul.f32 %v8203_v43, %v3339_v2  ;;  %v7982_v12 = vld [vmem:[%s9696_s13 + $0x70] ss:$24 sps:$4 sm:$0xff]  }
 0x1b6   : > { %v8209_v61 = vpop.eup %8208  ;;  %vm11018_vm11 = vcmp.lt.f32.partialorder %v3341_v59, 0.0004427343  ;;  %v11022_v8 = vmul.f32 %v8201_v50, %v3330_v11  ;;  %8222 = vlog2.f32 %v3380_v7  ;;  %6760 = vmatprep.subr.bf16.mxu1 %v5367_v5  ;;  %v3393_v23 = vadd.f32 1.0, %v3392_v31 }
 0x1b7   : > { %v8211_v24 = vpop.eup %8210  ;;  %v3386_v48 = vand.u32 2147483647, %v10994_v15  ;;  %v3434_v36 = vadd.f32 1.0, %v8209_v61  ;;  %v3437_v56 = vmul.f32 -0.5, %v8209_v61  ;;  %vm1125_vm12 = vcmp.gt.f32.partialorder %v10896_v17, 20.0 }
 0x1b8   : > { %v11025_v60 = vpop.eup %8212  ;;  %vm11028_vm13 = vcmp.lt.f32.partialorder %v3395_v27, 0.0004427343  ;;  %v3384_v35 = vadd.f32 1.0, %v3383_v16  ;;  %v3443_v26 = vadd.f32 1.0, %v8211_v24  ;;  %v3446_v41 = vmul.f32 -0.5, %v8211_v24 }
 0x1b9   : > { %v8215_v19 = vpop.eup %8214  ;;  %vm1124_vm14 = vcmp.gt.f32.partialorder %v10874_v10, 20.0  ;;  %v3449_v39 = vand.u32 2147483647, %v8211_v24  ;;  %8224 = vlog2.f32 %v3434_v36  ;;  %v3438_v4 = vadd.f32 1.0, %v3437_v56  ;;  %6458 = vmatmul.mubr.bf16.gmra.mrb[12].mxu0 %v15268_v34  ;;  %v7985_v56 = vld [vmem:[%s9696_s13 + $0xa0] ss:$24 sps:$4 sm:$0xff]  }
 0x1ba   : > { %v11034_v50 = vunpack.c.h.bf16 %v635_v14  ;;  %8226 = vlog2.f32 %v3443_v26  ;;  %v3447_v42 = vadd.f32 1.0, %v3446_v41  ;;  %v3497_v45 = vadd.f32 1.0, %v8215_v19  ;;  %6471 = vmatpush1.bf16.xpose.msra.mxu0 %v7982_v12  ;;  %6498 = vmatprep.mubr.bf16.mxu0 %v15273_v46  ;;  %v638_v46 = vld [vmem:[%s9702_s23 + $0x2a0] sm:$0xff] }
 0x1bb   : > { %v3440_v43 = vand.u32 2147483647, %v8209_v61  ;;  %v3394_v21 = vmul.f32 %v8207_v63, %v3393_v23  ;;  %vm11037_vm15 = vcmp.lt.f32.partialorder %v3386_v48, 0.0004427343  ;;  %v3500_v13 = vmul.f32 -0.5, %v8215_v19  ;;  %6472 = vmatprep.subr.bf16.mxu0 %v7987_v37 }
 0x1bc   : > { %v3503_v52 = vand.u32 2147483647, %v8215_v19  ;;  %v8217_v49 = vpop.eup %8216  ;;  %v3385_v33 = vmul.f32 %v10994_v15, %v3384_v35  ;;  %8228 = vlog2.f32 %v3497_v45  ;;  %v3488_v14 = vadd.f32 1.0, %v11025_v60 }
 0x1bd   : > { %v3491_v3 = vmul.f32 -0.5, %v11025_v60  ;;  %v8219_v1 = vpop.eup %8218  ;;  %6761 = vmatpush1.bf16.xpose.msra.mxu1 %v5366_v32  ;;  %v3328_v63 = vmul.f32 0.6931472, %v8217_v49  ;;  %vm1131_vm0 = vcmp.gt.f32.partialorder %v10938_v28, 20.0  ;;  %vm11046_vm1 = vcmp.lt.f32.partialorder %v3449_v39, 0.0004427343 }
 0x1be   : > { %v3501_v11 = vadd.f32 1.0, %v3500_v13  ;;  %vm1130_vm2 = vcmp.gt.f32.partialorder %v10933_v54, 20.0  ;;  %v11051_v5 = vmul.f32 %v8209_v61, %v3438_v4  ;;  %v3337_v15 = vmul.f32 0.6931472, %v8219_v1  ;;  %v11058_v27 = vpop.f32.mrb[0].mxu1 }
 0x1bf   : > { %v3448_v2 = vmul.f32 %v8211_v24, %v3447_v42  ;;  %vm11053_vm3 = vcmp.lt.f32.partialorder %v3440_v43, 0.0004427343  ;;  %8230 = vlog2.f32 %v3488_v14  ;;  %v8221_v31 = vpop.eup %8220  ;;  %v3334_v7 = vsel %vm11009_vm9, %v11022_v8, %v3328_v63  ;;  %v6563_v24 = vpop.f32.mrb[1].mxu1 }
 0x1c0   : > { %vm1137_vm4 = vcmp.gt.f32.partialorder %v10942_v18, 20.0  ;;  %vm11064_vm5 = vcmp.lt.f32.partialorder %v3503_v52, 0.0004427343  ;;  %v3492_v16 = vadd.f32 1.0, %v3491_v3  ;;  %v1430_v61 = vmin.f32 %v10992_v30, 20.0  ;;  %v8223_v58 = vpop.eup %8222  ;;  %v11076_v36 = vpop.f32.mrb[2].mxu1 }
 0x1c1   : > { %v3343_v23 = vsel %vm11018_vm11, %v11016_v57, %v3337_v15  ;;  %v3391_v48 = vmul.f32 0.6931472, %v8221_v31  ;;  %v4862_v22 = vsel %vm1118_vm8, %v10870_v20, %v3334_v7  ;;  %v3494_v8 = vand.u32 2147483647, %v11025_v60  ;;  %v6566_v57 = vpop.f32.mrb[3].mxu1 }
 0x1c2   : > { %v4863_v35 = vsel %vm1119_vm10, %v10872_v9, %v3343_v23  ;;  %v3382_v26 = vmul.f32 0.6931472, %v8223_v58  ;;  %v5150_v41 = vmul.f32 %v4862_v22, %v4862_v22  ;;  %v3502_v12 = vmul.f32 %v8215_v19, %v3501_v11  ;;  %v7990_v20 = vld [vmem:[%s9696_s13 + $0xd4] ss:$24 sps:$4 sm:$0xff]   ;;  %6473 = vmatpush1.bf16.xpose.msra.mxu0 %v7985_v56 }
 0x1c3   : > { %vm1136_vm6 = vcmp.gt.f32.partialorder %v10940_v44, 20.0  ;;  %v3397_v6 = vsel %vm11028_vm13, %v3394_v21, %v3391_v48  ;;  %v5151_v39 = vmul.f32 %v4863_v35, %v4863_v35  ;;  %v1431_v4 = vmin.f32 %v11000_v29, 20.0  ;;  %v8225_v42 = vpop.eup %8224  ;;  %6474 = vmatprep.subr.bf16.mxu0 %v7990_v20  ;;  %v7993_v48 = vld [vmem:[%s9696_s13 + $0x104] ss:$24 sps:$4 sm:$0xff]  }
 0x1c4   : > { %v1436_v37 = vmin.f32 %v11004_v55, 20.0  ;;  %v4869_v9 = vsel %vm1125_vm12, %v10896_v17, %v3397_v6  ;;  %v3388_v19 = vsel %vm11037_vm15, %v3385_v33, %v3382_v26  ;;  %v1437_v45 = vmin.f32 %v11034_v50, 20.0  ;;  %v8227_v13 = vpop.eup %8226 }
 0x1c5   : > { %v1874_v43 = vmul.f32 1.442695, %v1430_v61  ;;  %v5157_v47 = vmul.f32 %v4869_v9, %v4869_v9  ;;  %v4868_v21 = vsel %vm1124_vm14, %v10874_v10, %v3388_v19  ;;  %v3436_v52 = vmul.f32 0.6931472, %v8225_v42  ;;  %v11104_v31 = vpop.f32.mrb[4].mxu1 }
 0x1c6   : > { %v1876_v49 = vmul.f32 1.442695, %v1431_v4  ;;  %v5156_v34 = vmul.f32 %v4868_v21, %v4868_v21  ;;  %v3445_v14 = vmul.f32 0.6931472, %v8227_v13  ;;  %v1886_v17 = vmul.f32 1.442695, %v1436_v37  ;;  %v8229_v3 = vpop.eup %8228 }
 0x1c7   : > { %8232 = vpow2.f32 %v1874_v43  ;;  %v5373_v53 = vpack.c.bf16 %v5157_v47, %v5151_v39  ;;  %v3442_v33 = vsel %vm11053_vm3, %v11051_v5, %v3436_v52  ;;  %v1888_v1 = vmul.f32 1.442695, %v1437_v45  ;;  %v7991_v47 = vld [vmem:[%s9696_s13 + $0x100] ss:$24 sps:$4 sm:$0xff]   ;;  %v644_v52 = vld [vmem:[%s9702_s23 + $0x2d0] sm:$0xff] }
 0x1c8   : > { %8234 = vpow2.f32 %v1876_v49  ;;  %v5372_v10 = vpack.c.bf16 %v5156_v34, %v5150_v41  ;;  %v3451_v63 = vsel %vm11046_vm1, %v3448_v2, %v3445_v14  ;;  %v3499_v11 = vmul.f32 0.6931472, %v8229_v3  ;;  %v6571_v2 = vpop.f32.mrb[5].mxu1  ;;  %v11148_v14 = vld [vmem:[%s9689_s29] sm:$0xff] }
 0x1c9   : > { %v3493_v15 = vmul.f32 %v11025_v60, %v3492_v16  ;;  %v8231_v7 = vpop.eup %8230  ;;  %6762 = vmatprep.subr.bf16.mxu1 %v5373_v53  ;;  %v4875_v5 = vsel %vm1131_vm0, %v10938_v28, %v3451_v63  ;;  %vm11109_vm7 = vcmp.lt.f32.partialorder %v3494_v8, 0.0004427343  ;;  %v4874_v59 = vsel %vm1130_vm2, %v10933_v54, %v3442_v33  ;;  %v641_v60 = vld [vmem:[%s9702_s23 + $0x2b8] sm:$0xff]  ;;  %v7988_v16 = vld [vmem:[%s9696_s13 + $0xd0] ss:$24 sps:$4 sm:$0xff]   ;;  %v11120_v28 = vpop.f32.mrb[6].mxu1 }
 0x1ca   : > { %8236 = vpow2.f32 %v1886_v17  ;;  %6763 = vmatpush1.bf16.xpose.msra.mxu1 %v5372_v10  ;;  %v3505_v61 = vsel %vm11064_vm5, %v3502_v12, %v3499_v11  ;;  %v5163_v58 = vmul.f32 %v4875_v5, %v4875_v5  ;;  %v3490_v24 = vmul.f32 0.6931472, %v8231_v7  ;;  %v6574_v8 = vpop.f32.mrb[7].mxu1  ;;  %6475 = vmatpush1.bf16.xpose.msra.mxu0 %v7988_v16  ;;  %v7996_v53 = vld [vmem:[%s9696_s13 + $0x134] ss:$24 sps:$4 sm:$0xff]  }
 0x1cb   : > { %8238 = vpow2.f32 %v1888_v1  ;;  %v4881_v23 = vsel %vm1137_vm4, %v10942_v18, %v3505_v61  ;;  %v11126_v22 = vunpack.c.l.bf16 %v638_v46  ;;  %v11128_v54 = vunpack.c.h.bf16 %v638_v46  ;;  %6476 = vmatprep.subr.bf16.mxu0 %v7993_v48 }
 0x1cc   : > { %v5169_v56 = vmul.f32 %v4881_v23, %v4881_v23  ;;  %v3496_v32 = vsel %vm11109_vm7, %v3493_v15, %v3490_v24  ;;  %v5162_v35 = vmul.f32 %v4874_v59, %v4874_v59  ;;  %v11132_v26 = vunpack.c.l.bf16 %v641_v60  ;;  %v647_v23 = vld [vmem:[%s9702_s23 + $0x2e8] sm:$0xff] }
 0x1cd   : > { %v4880_v41 = vsel %vm1136_vm6, %v10940_v44, %v3496_v32  ;;  %v11137_v12 = vunpack.c.h.bf16 %v641_v60  ;;  %v1442_v18 = vmin.f32 %v11126_v22, 20.0  ;;  %v1443_v57 = vmin.f32 %v11128_v54, 20.0  ;;  %v11142_v9 = vpop.f32.mrb[8].mxu1 }
 0x1ce   : > { %v5379_v6 = vpack.c.bf16 %v5169_v56, %v5163_v58  ;;  %v5168_v39 = vmul.f32 %v4880_v41, %v4880_v41  ;;  %v1448_v44 = vmin.f32 %v11132_v26, 20.0  ;;  %v6579_v13 = vpop.f32.mrb[9].mxu1  ;;  %v5450_v17 = vunpack.c.l.bf16 %v11148_v14  ;;  %v7994_v56 = vld [vmem:[%s9696_s13 + $0x130] ss:$24 sps:$4 sm:$0xff]  }
 0x1cf   : > { %v1898_v20 = vmul.f32 1.442695, %v1442_v18  ;;  %v1900_v4 = vmul.f32 1.442695, %v1443_v57  ;;  %v1449_v43 = vmin.f32 %v11137_v12, 20.0  ;;  %v6580_v49 = vpop.f32.mrb[10].mxu1  ;;  %v11152_v5 = vunpack.c.l.bf16 %v644_v52 }
 0x1d0   : > { %6764 = vmatprep.subr.bf16.mxu1 %v5379_v6  ;;  %v5378_v42 = vpack.c.bf16 %v5168_v39, %v5162_v35  ;;  %v6581_v33 = vpop.f32.mrb[11].mxu1  ;;  %v1910_v11 = vmul.f32 1.442695, %v1448_v44  ;;  %vm1143_vm8 = vcmp.gt.f32.partialorder %v11000_v29, 20.0  ;;  %v11155_v61 = vunpack.c.h.bf16 %v644_v52 }
 0x1d1   : > { %v8233_v37 = vpop.eup %8232  ;;  %8240 = vpow2.f32 %v1898_v20  ;;  %v1912_v7 = vmul.f32 1.442695, %v1449_v43  ;;  %vm1142_vm9 = vcmp.gt.f32.partialorder %v10992_v30, 20.0  ;;  %vm1148_vm10 = vcmp.gt.f32.partialorder %v11004_v55, 20.0  ;;  %v7999_v20 = vld [vmem:[%s9696_s13 + $0x164] ss:$24 sps:$4 sm:$0xff]  }
 0x1d2   : > { %v8235_v19 = vpop.eup %8234  ;;  %v3542_v45 = vadd.f32 1.0, %v8233_v37  ;;  %6765 = vmatpush1.bf16.xpose.msra.mxu1 %v5378_v42  ;;  %8242 = vpow2.f32 %v1900_v4  ;;  %v3545_v3 = vmul.f32 -0.5, %v8233_v37  ;;  %6477 = vmatpush1.bf16.xpose.msra.mxu0 %v7991_v47  ;;  %v3548_v59 = vand.u32 2147483647, %v8233_v37 }
 0x1d3   : > { %v3551_v21 = vadd.f32 1.0, %v8235_v19  ;;  %v3554_v10 = vmul.f32 -0.5, %v8235_v19  ;;  %v3557_v25 = vand.u32 2147483647, %v8235_v19  ;;  %6478 = vmatprep.subr.bf16.mxu0 %v7996_v53  ;;  %vm1149_vm11 = vcmp.gt.f32.partialorder %v11034_v50, 20.0 }
 0x1d4   : > { %v8237_v34 = vpop.eup %8236  ;;  %8244 = vlog2.f32 %v3542_v45  ;;  %v3546_v16 = vadd.f32 1.0, %v3545_v3  ;;  %vm11166_vm13 = vcmp.lt.f32.partialorder %v3548_v59, 0.0004427343  ;;  %v1454_v41 = vmin.f32 %v11152_v5, 20.0 }
 0x1d5   : > { %v8239_v1 = vpop.eup %8238  ;;  %8246 = vlog2.f32 %v3551_v21  ;;  %v3596_v63 = vadd.f32 1.0, %v8237_v34  ;;  %v3599_v60 = vmul.f32 -0.5, %v8237_v34  ;;  %v3555_v58 = vadd.f32 1.0, %v3554_v10 }
 0x1d6   : > { %v3605_v15 = vadd.f32 1.0, %v8239_v1  ;;  %v3608_v46 = vmul.f32 -0.5, %v8239_v1  ;;  %v3611_v2 = vand.u32 2147483647, %v8239_v1  ;;  %v3602_v24 = vand.u32 2147483647, %v8237_v34 }
 0x1d7   : > { %8248 = vlog2.f32 %v3596_v63  ;;  %v3600_v8 = vadd.f32 1.0, %v3599_v60  ;;  %vm11162_vm12 = vcmp.lt.f32.partialorder %v3557_v25, 0.0004427343  ;;  %v1455_v18 = vmin.f32 %v11155_v61, 20.0 }
 0x1d8   : > { %8250 = vlog2.f32 %v3605_v15  ;;  %v3609_v48 = vadd.f32 1.0, %v3608_v46  ;;  %vm11174_vm14 = vcmp.lt.f32.partialorder %v3611_v2, 0.0004427343  ;;  %v3547_v39 = vmul.f32 %v8233_v37, %v3546_v16 }
 0x1d9   : > { %8252 = vpow2.f32 %v1910_v11  ;;  %v11179_v4 = vunpack.c.l.bf16 %v647_v23  ;;  %v11181_v42 = vunpack.c.h.bf16 %v647_v23  ;;  %v3556_v45 = vmul.f32 %v8235_v19, %v3555_v58 }
 0x1da   : > { %8254 = vpow2.f32 %v1912_v7  ;;  %vm11185_vm15 = vcmp.lt.f32.partialorder %v3602_v24, 0.0004427343  ;;  %v1922_v47 = vmul.f32 1.442695, %v1454_v41  ;;  %v3610_v52 = vmul.f32 %v8239_v1, %v3609_v48  ;;  %6479 = vmatpush1.bf16.xpose.msra.mxu0 %v7994_v56 }
 0x1db   : > { %v11172_v57 = vpop.eup %8240  ;;  %v3601_v49 = vmul.f32 %v8237_v34, %v3600_v8  ;;  %v1924_v19 = vmul.f32 1.442695, %v1455_v18  ;;  %6480 = vmatprep.subr.bf16.mxu0 %v7999_v20  ;;  %v1460_v11 = vmin.f32 %v11179_v4, 20.0  ;;  %v1461_v1 = vmin.f32 %v11181_v42, 20.0  ;;  %v7997_v8 = vld [vmem:[%s9696_s13 + $0x160] ss:$24 sps:$4 sm:$0xff]  }
 0x1dc   : > { %v11183_v44 = vpop.eup %8242  ;;  %v3650_v13 = vadd.f32 1.0, %v11172_v57  ;;  %v3653_v3 = vmul.f32 -0.5, %v11172_v57  ;;  %v3656_v7 = vand.u32 2147483647, %v11172_v57  ;;  %v8002_v18 = vld [vmem:[%s9696_s13 + $0x194] ss:$24 sps:$4 sm:$0xff]  }
 0x1dd   : > { %v3659_v37 = vadd.f32 1.0, %v11183_v44  ;;  %v3662_v10 = vmul.f32 -0.5, %v11183_v44  ;;  %v3665_v46 = vand.u32 2147483647, %v11183_v44  ;;  %v1934_v41 = vmul.f32 1.442695, %v1460_v11 }
 0x1de   : > { %v8245_v21 = vpop.eup %8244  ;;  %8256 = vlog2.f32 %v3650_v13  ;;  %v3654_v16 = vadd.f32 1.0, %v3653_v3  ;;  %vm11232_vm0 = vcmp.lt.f32.partialorder %v3656_v7, 0.0004427343  ;;  %vm1155_vm2 = vcmp.gt.f32.partialorder %v11128_v54, 20.0 }
 0x1df   : > { %v8247_v53 = vpop.eup %8246  ;;  %v3544_v33 = vmul.f32 0.6931472, %v8245_v21  ;;  %8258 = vlog2.f32 %v3659_v37  ;;  %v3663_v48 = vadd.f32 1.0, %v3662_v10  ;;  %v11227_v21 = vld [vmem:[%s9689_s29 + $0x18] sm:$0xff]  ;;  %vm11237_vm1 = vcmp.lt.f32.partialorder %v3665_v46, 0.0004427343 }
 0x1e0   : > { %v3553_v63 = vmul.f32 0.6931472, %v8247_v53  ;;  %8260 = vpow2.f32 %v1922_v47  ;;  %v5456_v6 = vunpack.c.l.bf16 %v11227_v21  ;;  %v3655_v37 = vmul.f32 %v11172_v57, %v3654_v16  ;;  %v8000_v46 = vld [vmem:[%s9696_s13 + $0x190] ss:$24 sps:$4 sm:$0xff]  }
 0x1e1   : > { %v8249_v34 = vpop.eup %8248  ;;  %v3550_v15 = vsel %vm11166_vm13, %v3547_v39, %v3544_v33  ;;  %8262 = vpow2.f32 %v1924_v19  ;;  %v3664_v33 = vmul.f32 %v11183_v44, %v3663_v48  ;;  %v1936_v19 = vmul.f32 1.442695, %v1461_v1 }
 0x1e2   : > { %v8251_v25 = vpop.eup %8250  ;;  %v3559_v59 = vsel %vm11162_vm12, %v3556_v45, %v3553_v63  ;;  %v3598_v60 = vmul.f32 0.6931472, %v8249_v34  ;;  %v4886_v2 = vsel %vm1142_vm9, %v10992_v30, %v3550_v15  ;;  %6481 = vmatpush1.bf16.xpose.msra.mxu0 %v7997_v8  ;;  %v5451_v34 = vunpack.c.h.bf16 %v11148_v14 }
 0x1e3   : > { %v11204_v58 = vpop.eup %8252  ;;  %v3607_v24 = vmul.f32 0.6931472, %v8251_v25  ;;  %v4887_v23 = vsel %vm1143_vm8, %v11000_v29, %v3559_v59  ;;  %v5174_v35 = vmul.f32 %v4886_v2, %v4886_v2  ;;  %6482 = vmatprep.subr.bf16.mxu0 %v8002_v18  ;;  %v5457_v15 = vunpack.c.h.bf16 %v11227_v21  ;;  %v8005_v2 = vld [vmem:[%s9696_s13 + $0x1c4] ss:$24 sps:$4 sm:$0xff]  }
 0x1e4   : > { %v11210_v56 = vpop.eup %8254  ;;  %v3604_v32 = vsel %vm11185_vm15, %v3601_v49, %v3598_v60  ;;  %v3704_v30 = vadd.f32 1.0, %v11204_v58  ;;  %v5175_v20 = vmul.f32 %v4887_v23, %v4887_v23  ;;  %v3707_v49 = vmul.f32 -0.5, %v11204_v58 }
 0x1e5   : > { %v3613_v39 = vsel %vm11174_vm14, %v3610_v52, %v3607_v24  ;;  %v4892_v29 = vsel %vm1148_vm10, %v11004_v55, %v3604_v32  ;;  %v3713_v45 = vadd.f32 1.0, %v11210_v56  ;;  %v3716_v47 = vmul.f32 -0.5, %v11210_v56 }
 0x1e6   : > { %v4893_v43 = vsel %vm1149_vm11, %v11034_v50, %v3613_v39  ;;  %v5180_v13 = vmul.f32 %v4892_v29, %v4892_v29  ;;  %8264 = vlog2.f32 %v3704_v30  ;;  %v3708_v44 = vadd.f32 1.0, %v3707_v49  ;;  %v555_v30 = vld [vmem:[%s9702_s23 + $0x8] sm:$0xff] }
 0x1e7   : > { %v5181_v52 = vmul.f32 %v4893_v43, %v4893_v43  ;;  %8266 = vlog2.f32 %v3713_v45  ;;  %v3717_v11 = vadd.f32 1.0, %v3716_v47  ;;  %vm1154_vm3 = vcmp.gt.f32.partialorder %v11126_v22, 20.0  ;;  %v8006_v29 = vld [vmem:[%s9696_s13 + $0x1f0] ss:$24 sps:$4 sm:$0xff]  }
 0x1e8   : > { %v5384_v55 = vpack.c.bf16 %v5180_v13, %v5174_v35  ;;  %8268 = vpow2.f32 %v1934_v41  ;;  %v8257_v50 = vpop.eup %8256  ;;  %v3710_v59 = vand.u32 2147483647, %v11204_v58  ;;  %v3719_v23 = vand.u32 2147483647, %v11210_v56  ;;  %v558_v13 = vld [vmem:[%s9702_s23 + $0x20] sm:$0xff] }
 0x1e9   : > { %v5385_v53 = vpack.c.bf16 %v5181_v52, %v5175_v20  ;;  %v8259_v63 = vpop.eup %8258  ;;  %v3652_v57 = vmul.f32 0.6931472, %v8257_v50  ;;  %8270 = vpow2.f32 %v1936_v19  ;;  %v5481_v48 = vmul.f32 %v5451_v34, %v5451_v34  ;;  %v8003_v19 = vld [vmem:[%s9696_s13 + $0x1c0] ss:$24 sps:$4 sm:$0xff]  }
 0x1ea   : > { %v11243_v7 = vpop.eup %8260  ;;  %v3661_v25 = vmul.f32 0.6931472, %v8259_v63  ;;  %v5487_v8 = vmul.f32 %v5457_v15, %v5457_v15  ;;  %vm1161_vm4 = vcmp.gt.f32.partialorder %v11137_v12, 20.0  ;;  %v3718_v32 = vmul.f32 %v11210_v56, %v3717_v11  ;;  %6483 = vmatpush1.bf16.xpose.msra.mxu0 %v8000_v46  ;;  %v8008_v15 = vld [vmem:[%s9696_s13 + $0x1f4] ss:$24 sps:$4 sm:$0xff]  }
 0x1eb   : > { %6766 = vmatprep.subr.bf16.mxu1 %v5385_v53  ;;  %v3658_v1 = vsel %vm11232_vm0, %v3655_v37, %v3652_v57  ;;  %v3758_v60 = vadd.f32 1.0, %v11243_v7  ;;  %v11253_v16 = vpop.eup %8262  ;;  %vm1160_vm5 = vcmp.gt.f32.partialorder %v11132_v26, 20.0  ;;  %v3709_v41 = vmul.f32 %v11204_v58, %v3708_v44  ;;  %6484 = vmatprep.subr.bf16.mxu0 %v8005_v2 }
 0x1ec   : > { %6767 = vmatpush1.bf16.xpose.msra.mxu1 %v5384_v55  ;;  %v3667_v24 = vsel %vm11237_vm1, %v3664_v33, %v3661_v25  ;;  %v3767_v35 = vadd.f32 1.0, %v11253_v16  ;;  %v4898_v18 = vsel %vm1154_vm3, %v11126_v22, %v3658_v1  ;;  %v3761_v39 = vmul.f32 -0.5, %v11243_v7 }
 0x1ed   : > { %8272 = vlog2.f32 %v3758_v60  ;;  %v4899_v56 = vsel %vm1155_vm2, %v11128_v54, %v3667_v24  ;;  %vm11271_vm6 = vcmp.lt.f32.partialorder %v3710_v59, 0.0004427343  ;;  %v11275_v45 = vpack.c.bf16 %v5487_v8, %v5481_v48 }
 0x1ee   : > { %8274 = vlog2.f32 %v3767_v35  ;;  %vm11277_vm7 = vcmp.lt.f32.partialorder %v3719_v23, 0.0004427343  ;;  %v11282_v47 = vunpack.c.l.bf16 %v555_v30  ;;  %v11284_v52 = vunpack.c.h.bf16 %v555_v30  ;;  %v561_v30 = vld [vmem:[%s9702_s23 + $0x38] sm:$0xff] }
 0x1ef   : > { %v5186_v55 = vmul.f32 %v4898_v18, %v4898_v18  ;;  %v3770_v37 = vmul.f32 -0.5, %v11253_v16  ;;  %v3764_v3 = vand.u32 2147483647, %v11243_v7  ;;  %6772 = vmatprep.mubr.bf16.mxu1 %v11275_v45  ;;  %v5187_v50 = vmul.f32 %v4899_v56, %v4899_v56 }
 0x1f0   : > { %v8265_v20 = vpop.eup %8264  ;;  %v3762_v33 = vadd.f32 1.0, %v3761_v39  ;;  %v11300_v57 = vunpack.c.l.bf16 %v558_v13  ;;  %v11302_v34 = vunpack.c.h.bf16 %v558_v13  ;;  %v1276_v1 = vmin.f32 %v11282_v47, 20.0 }
 0x1f1   : > { %v8267_v58 = vpop.eup %8266  ;;  %v3706_v43 = vmul.f32 0.6931472, %v8265_v20  ;;  %v3771_v60 = vadd.f32 1.0, %v3770_v37  ;;  %vm1167_vm8 = vcmp.gt.f32.partialorder %v11155_v61, 20.0  ;;  %v3773_v23 = vand.u32 2147483647, %v11253_v16 }
 0x1f2   : > { %v11286_v54 = vpop.eup %8268  ;;  %v3715_v49 = vmul.f32 0.6931472, %v8267_v58  ;;  %vm11315_vm9 = vcmp.lt.f32.partialorder %v3764_v3, 0.0004427343  ;;  %6485 = vmatpush1.bf16.xpose.msra.mxu0 %v8003_v19  ;;  %v3763_v35 = vmul.f32 %v11243_v7, %v3762_v33  ;;  %v1282_v18 = vmin.f32 %v11300_v57, 20.0  ;;  %v564_v7 = vld [vmem:[%s9702_s23 + $0x50] sm:$0xff] }
 0x1f3   : > { %v3712_v53 = vsel %vm11271_vm6, %v3709_v41, %v3706_v43  ;;  %v3812_v10 = vadd.f32 1.0, %v11286_v54  ;;  %v11305_v25 = vpop.eup %8270  ;;  %v3815_v2 = vmul.f32 -0.5, %v11286_v54  ;;  %6486 = vmatprep.subr.bf16.mxu0 %v8008_v15  ;;  %v1283_v39 = vmin.f32 %v11302_v34, 20.0 }
 0x1f4   : > { %v3721_v63 = vsel %vm11277_vm7, %v3718_v32, %v3715_v49  ;;  %v4904_v11 = vsel %vm1160_vm5, %v11132_v26, %v3712_v53  ;;  %v3821_v26 = vadd.f32 1.0, %v11305_v25  ;;  %v3824_v32 = vmul.f32 -0.5, %v11305_v25  ;;  %v8011_v53 = vld [vmem:[%s9696_s13 + $0x224] ss:$24 sps:$4 sm:$0xff]  }
 0x1f5   : > { %v4905_v44 = vsel %vm1161_vm4, %v11137_v12, %v3721_v63  ;;  %v5192_v46 = vmul.f32 %v4904_v11, %v4904_v11  ;;  %8276 = vlog2.f32 %v3812_v10  ;;  %v1277_v12 = vmin.f32 %v11284_v52, 20.0 }
 0x1f6   : > { %v5193_v59 = vmul.f32 %v4905_v44, %v4905_v44  ;;  %8278 = vlog2.f32 %v3821_v26  ;;  %v1566_v20 = vmul.f32 1.442695, %v1276_v1  ;;  %v3772_v22 = vmul.f32 %v11253_v16, %v3771_v60  ;;  %v570_v1 = vld [vmem:[%s9702_s23 + $0x80] sm:$0xff] }
 0x1f7   : > { %v5390_v24 = vpack.c.bf16 %v5192_v46, %v5186_v55  ;;  %v8273_v41 = vpop.eup %8272  ;;  %v1568_v56 = vmul.f32 1.442695, %v1277_v12  ;;  %v3816_v13 = vadd.f32 1.0, %v3815_v2  ;;  %v3818_v49 = vand.u32 2147483647, %v11286_v54 }
 0x1f8   : > { %v5391_v8 = vpack.c.bf16 %v5193_v59, %v5187_v50  ;;  %v8275_v58 = vpop.eup %8274  ;;  %v3760_v43 = vmul.f32 0.6931472, %v8273_v41  ;;  %vm1173_vm10 = vcmp.gt.f32.partialorder %v11181_v42, 20.0  ;;  %8280 = vpow2.f32 %v1566_v20 }
 0x1f9   : > { %v3769_v55 = vmul.f32 0.6931472, %v8275_v58  ;;  %v1578_v37 = vmul.f32 1.442695, %v1282_v18  ;;  %v1580_v3 = vmul.f32 1.442695, %v1283_v39  ;;  %8282 = vpow2.f32 %v1568_v56 }
 0x1fa   : > { %6768 = vmatprep.subr.bf16.mxu1 %v5391_v8  ;;  %vm11330_vm11 = vcmp.lt.f32.partialorder %v3773_v23, 0.0004427343  ;;  %vm1166_vm12 = vcmp.gt.f32.partialorder %v11152_v5, 20.0  ;;  %v11335_v16 = vunpack.c.l.bf16 %v561_v30  ;;  %v3825_v33 = vadd.f32 1.0, %v3824_v32  ;;  %6487 = vmatpush1.bf16.xpose.msra.mxu0 %v8006_v29  ;;  %v567_v18 = vld [vmem:[%s9702_s23 + $0x68] sm:$0xff] }
 0x1fb   : > { %6769 = vmatpush1.bf16.xpose.msra.mxu1 %v5390_v24  ;;  %v3827_v10 = vand.u32 2147483647, %v11305_v25  ;;  %8284 = vpow2.f32 %v1578_v37  ;;  %v11339_v19 = vunpack.c.h.bf16 %v561_v30  ;;  %v3766_v63 = vsel %vm11315_vm9, %v3763_v35, %v3760_v43  ;;  %6488 = vmatprep.subr.bf16.mxu0 %v8011_v53  ;;  %v8009_v58 = vld [vmem:[%s9696_s13 + $0x220] ss:$24 sps:$4 sm:$0xff]  }
 0x1fc   : > { %v3817_v11 = vmul.f32 %v11286_v54, %v3816_v13  ;;  %8286 = vpow2.f32 %v1580_v3  ;;  %v11344_v15 = vunpack.c.l.bf16 %v564_v7  ;;  %v3775_v46 = vsel %vm11330_vm11, %v3772_v22, %v3769_v55 }
 0x1fd   : > { %vm11348_vm13 = vcmp.lt.f32.partialorder %v3818_v49, 0.0004427343  ;;  %v11352_v59 = vunpack.c.h.bf16 %v564_v7  ;;  %v1288_v60 = vmin.f32 %v11335_v16, 20.0  ;;  %vm1172_vm14 = vcmp.gt.f32.partialorder %v11179_v4, 20.0  ;;  %v11366_v8 = vpop.f32.mrb[12].mxu1 }
 0x1fe   : > { %v1289_v26 = vmin.f32 %v11339_v19, 20.0  ;;  %v1294_v2 = vmin.f32 %v11344_v15, 20.0  ;;  %v3826_v24 = vmul.f32 %v11305_v25, %v3825_v33  ;;  %vm11359_vm15 = vcmp.lt.f32.partialorder %v3827_v10, 0.0004427343  ;;  %v6619_v39 = vpop.f32.mrb[13].mxu1 }
 0x1ff   : > { %v8277_v44 = vpop.eup %8276  ;;  %v4910_v48 = vsel %vm1166_vm12, %v11152_v5, %v3766_v63  ;;  %v1590_v12 = vmul.f32 1.442695, %v1288_v60  ;;  %v4911_v35 = vsel %vm1167_vm8, %v11155_v61, %v3775_v46  ;;  %v1295_v56 = vmin.f32 %v11352_v59, 20.0  ;;  %v11378_v29 = vpop.f32.mrb[14].mxu1  ;;  %v8014_v49 = vld [vmem:[%s9696_s13 + $0x254] ss:$24 sps:$4 sm:$0xff]  }
 0x200   : > { %v3814_v54 = vmul.f32 0.6931472, %v8277_v44  ;;  %v8279_v32 = vpop.eup %8278  ;;  %v1592_v30 = vmul.f32 1.442695, %v1289_v26  ;;  %v1602_v41 = vmul.f32 1.442695, %v1294_v2  ;;  %v5480_v61 = vmul.f32 %v5450_v17, %v5450_v17 }
 0x201   : > { %v3823_v20 = vmul.f32 0.6931472, %v8279_v32  ;;  %8288 = vpow2.f32 %v1590_v12  ;;  %v5198_v22 = vmul.f32 %v4910_v48, %v4910_v48  ;;  %v6622_v13 = vpop.f32.mrb[15].mxu1  ;;  %v5199_v37 = vmul.f32 %v4911_v35, %v4911_v35  ;;  %v8012_v39 = vld [vmem:[%s9696_s13 + $0x250] ss:$24 sps:$4 sm:$0xff]  }
 0x202   : > { %v3820_v25 = vsel %vm11348_vm13, %v3817_v11, %v3814_v54  ;;  %8290 = vpow2.f32 %v1592_v30  ;;  %v11385_v7 = vpop.eup %8280  ;;  %v11397_v53 = vunpack.c.l.bf16 %v567_v18  ;;  %v1604_v63 = vmul.f32 1.442695, %v1295_v56  ;;  %6489 = vmatpush1.bf16.xpose.msra.mxu0 %v8009_v58 }
 0x203   : > { %v4916_v5 = vsel %vm1172_vm14, %v11179_v4, %v3820_v25  ;;  %v5486_v4 = vmul.f32 %v5456_v6, %v5456_v6  ;;  %v3829_v55 = vsel %vm11359_vm15, %v3826_v24, %v3823_v20  ;;  %8292 = vpow2.f32 %v1602_v41  ;;  %v8283_v3 = vpop.eup %8282  ;;  %6490 = vmatprep.subr.bf16.mxu0 %v8014_v49  ;;  %v8017_v20 = vld [vmem:[%s9696_s13 + $0x284] ss:$24 sps:$4 sm:$0xff]  }
 0x204   : > { %v5204_v43 = vmul.f32 %v4916_v5, %v4916_v5  ;;  %v4917_v14 = vsel %vm1173_vm10, %v11181_v42, %v3829_v55  ;;  %v2156_v17 = vadd.f32 1.0, %v11385_v7  ;;  %v2159_v50 = vmul.f32 -0.5, %v11385_v7 }
 0x205   : > { %v11399_v21 = vpop.eup %8284  ;;  %v5205_v6 = vmul.f32 %v4917_v14, %v4917_v14  ;;  %v2165_v33 = vadd.f32 1.0, %v8283_v3  ;;  %v2168_v10 = vmul.f32 -0.5, %v8283_v3  ;;  %v2171_v46 = vand.u32 2147483647, %v8283_v3  ;;  %v11405_v2 = vpop.f32.mrb[16].mxu1 }
 0x206   : > { %v11401_v11 = vpop.eup %8286  ;;  %v5396_v44 = vpack.c.bf16 %v5204_v43, %v5198_v22  ;;  %8294 = vlog2.f32 %v2156_v17  ;;  %v2210_v42 = vadd.f32 1.0, %v11399_v21  ;;  %v2160_v26 = vadd.f32 1.0, %v2159_v50  ;;  %v6627_v32 = vpop.f32.mrb[17].mxu1 }
 0x207   : > { %v5397_v60 = vpack.c.bf16 %v5205_v6, %v5199_v37  ;;  %8296 = vlog2.f32 %v2165_v33  ;;  %v2169_v54 = vadd.f32 1.0, %v2168_v10  ;;  %v2219_v24 = vadd.f32 1.0, %v11401_v11  ;;  %v11419_v41 = vpop.f32.mrb[18].mxu1  ;;  %v8020_v32 = vld [vmem:[%s9696_s13 + $0x2b4] ss:$24 sps:$4 sm:$0xff]  }
 0x208   : > { %v2222_v23 = vmul.f32 -0.5, %v11401_v11  ;;  %v11409_v48 = vpack.c.bf16 %v5486_v4, %v5480_v61  ;;  %v11411_v12 = vunpack.c.h.bf16 %v567_v18  ;;  %vm988_vm0 = vcmp.gt.f32.partialorder %v11282_v47, 20.0  ;;  %v6630_v58 = vpop.f32.mrb[19].mxu1 }
 0x209   : > { %6770 = vmatprep.subr.bf16.mxu1 %v5397_v60  ;;  %8298 = vlog2.f32 %v2210_v42  ;;  %v2213_v35 = vmul.f32 -0.5, %v11399_v21  ;;  %v11415_v25 = vunpack.c.l.bf16 %v570_v1  ;;  %v11417_v30 = vunpack.c.h.bf16 %v570_v1  ;;  %v8015_v60 = vld [vmem:[%s9696_s13 + $0x280] ss:$24 sps:$4 sm:$0xff]  }
 0x20a   : > { %6771 = vmatpush1.bf16.xpose.msra.mxu1 %v5396_v44  ;;  %vm989_vm1 = vcmp.gt.f32.partialorder %v11284_v52, 20.0  ;;  %vm11424_vm2 = vcmp.lt.f32.partialorder %v2171_v46, 0.0004427343  ;;  %8300 = vlog2.f32 %v2219_v24  ;;  %v2162_v5 = vand.u32 2147483647, %v11385_v7  ;;  %6491 = vmatpush1.bf16.xpose.msra.mxu0 %v8012_v39 }
 0x20b   : > { %v1300_v56 = vmin.f32 %v11397_v53, 20.0  ;;  %v8289_v61 = vpop.eup %8288  ;;  %v11430_v22 = vmul.f32 %v8283_v3, %v2169_v54  ;;  %v2225_v43 = vand.u32 2147483647, %v11401_v11  ;;  %v2161_v13 = vmul.f32 %v11385_v7, %v2160_v26  ;;  %6492 = vmatprep.subr.bf16.mxu0 %v8017_v20 }
 0x20c   : > { %8302 = vpow2.f32 %v1604_v63  ;;  %v8291_v49 = vpop.eup %8290  ;;  %v2223_v4 = vadd.f32 1.0, %v2222_v23  ;;  %vm994_vm3 = vcmp.gt.f32.partialorder %v11300_v57, 20.0  ;;  %v2216_v55 = vand.u32 2147483647, %v11399_v21 }
 0x20d   : > { %v2264_v37 = vadd.f32 1.0, %v8289_v61  ;;  %v2267_v14 = vmul.f32 -0.5, %v8289_v61  ;;  %v11436_v17 = vpop.eup %8292  ;;  %vm995_vm4 = vcmp.gt.f32.partialorder %v11302_v34, 20.0  ;;  %v2214_v3 = vadd.f32 1.0, %v2213_v35  ;;  %v11448_v1 = vpop.f32.mrb[20].mxu1 }
 0x20e   : > { %v2273_v50 = vadd.f32 1.0, %v8291_v49  ;;  %v2276_v6 = vmul.f32 -0.5, %v8291_v49  ;;  %v2279_v33 = vand.u32 2147483647, %v8291_v49  ;;  %v2270_v10 = vand.u32 2147483647, %v8289_v61 }
 0x20f   : > { %8304 = vlog2.f32 %v2264_v37  ;;  %v2268_v7 = vadd.f32 1.0, %v2267_v14  ;;  %v2318_v63 = vadd.f32 1.0, %v11436_v17  ;;  %vm11440_vm5 = vcmp.lt.f32.partialorder %v2225_v43, 0.0004427343  ;;  %v6635_v35 = vpop.f32.mrb[21].mxu1 }
 0x210   : > { %vm11444_vm6 = vcmp.lt.f32.partialorder %v2162_v5, 0.0004427343  ;;  %8306 = vlog2.f32 %v2273_v50  ;;  %v2277_v42 = vadd.f32 1.0, %v2276_v6  ;;  %v8295_v54 = vpop.eup %8294  ;;  %v2224_v26 = vmul.f32 %v11401_v11, %v2223_v4  ;;  %v6636_v4 = vpop.f32.mrb[22].mxu1 }
 0x211   : > { %vm11452_vm7 = vcmp.lt.f32.partialorder %v2216_v55, 0.0004427343  ;;  %8308 = vlog2.f32 %v2318_v63  ;;  %v2321_v23 = vmul.f32 -0.5, %v11436_v17  ;;  %v8297_v39 = vpop.eup %8296  ;;  %6773 = vmatmul.mubr.bf16.vlgmr.msra.gmra.mrb[36].mxu1 %v11409_v48  ;;  %v2158_v20 = vmul.f32 0.6931472, %v8295_v54  ;;  %v6637_v63 = vpop.f32.mrb[23].mxu1 }
 0x212   : > { %v2215_v5 = vmul.f32 %v11399_v21, %v2214_v3  ;;  %vm11460_vm8 = vcmp.lt.f32.partialorder %v2279_v33, 0.0004427343  ;;  %vm11464_vm9 = vcmp.lt.f32.partialorder %v2270_v10, 0.0004427343  ;;  %v1301_v43 = vmin.f32 %v11411_v12, 20.0  ;;  %6493 = vmatpush1.bf16.xpose.msra.mxu0 %v8015_v60 }
 0x213   : > { %v2167_v55 = vmul.f32 0.6931472, %v8297_v39  ;;  %vm1000_vm10 = vcmp.gt.f32.partialorder %v11335_v16, 20.0  ;;  %v2269_v37 = vmul.f32 %v8289_v61, %v2268_v7  ;;  %v2324_v14 = vand.u32 2147483647, %v11436_v17  ;;  %v8299_v21 = vpop.eup %8298  ;;  %6494 = vmatprep.subr.bf16.mxu0 %v8020_v32 }
 0x214   : > { %v1306_v50 = vmin.f32 %v11415_v25, 20.0  ;;  %v2164_v3 = vsel %vm11444_vm6, %v2161_v13, %v2158_v20  ;;  %vm1001_vm11 = vcmp.gt.f32.partialorder %v11339_v19, 20.0  ;;  %v2278_v6 = vmul.f32 %v8291_v49, %v2277_v42  ;;  %v8301_v54 = vpop.eup %8300 }
 0x215   : > { %v1614_v33 = vmul.f32 1.442695, %v1300_v56  ;;  %v1616_v10 = vmul.f32 1.442695, %v1301_v43  ;;  %v2173_v35 = vsel %vm11424_vm2, %v11430_v22, %v2167_v55  ;;  %v2212_v61 = vmul.f32 0.6931472, %v8299_v21 }
 0x216   : > { %v4732_v7 = vsel %vm988_vm0, %v11282_v47, %v2164_v3  ;;  %v2322_v39 = vadd.f32 1.0, %v2321_v23  ;;  %v8303_v4 = vpop.eup %8302  ;;  %v2221_v46 = vmul.f32 0.6931472, %v8301_v54  ;;  %v4733_v13 = vsel %vm989_vm1, %v11284_v52, %v2173_v35  ;;  %v8023_v54 = vld [vmem:[%s9696_s13 + $0x2e4] ss:$24 sps:$4 sm:$0xff]  }
 0x217   : > { %8310 = vpow2.f32 %v1614_v33  ;;  %v1626_v56 = vmul.f32 1.442695, %v1306_v50  ;;  %v2218_v49 = vsel %vm11452_vm7, %v2215_v5, %v2212_v61  ;;  %v5020_v18 = vmul.f32 %v4732_v7, %v4732_v7 }
 0x218   : > { %v2327_v22 = vadd.f32 1.0, %v8303_v4  ;;  %v1307_v42 = vmin.f32 %v11417_v30, 20.0  ;;  %v2227_v47 = vsel %vm11440_vm5, %v2224_v26, %v2221_v46  ;;  %v5021_v23 = vmul.f32 %v4733_v13, %v4733_v13  ;;  %v8018_v26 = vld [vmem:[%s9696_s13 + $0x2b0] ss:$24 sps:$4 sm:$0xff]  }
 0x219   : > { %v4738_v52 = vsel %vm994_vm3, %v11300_v57, %v2218_v49  ;;  %8312 = vpow2.f32 %v1616_v10  ;;  %v8305_v20 = vpop.eup %8304  ;;  %v4739_v60 = vsel %vm995_vm4, %v11302_v34, %v2227_v47  ;;  %v2330_v5 = vmul.f32 -0.5, %v8303_v4 }
 0x21a   : > { %v5026_v24 = vmul.f32 %v4738_v52, %v4738_v52  ;;  %8314 = vlog2.f32 %v2327_v22  ;;  %v8307_v43 = vpop.eup %8306  ;;  %v5027_v32 = vmul.f32 %v4739_v60, %v4739_v60  ;;  %v2266_v55 = vmul.f32 0.6931472, %v8305_v20  ;;  %6495 = vmatpush1.bf16.xpose.msra.mxu0 %v8018_v26  ;;  %v8021_v52 = vld [vmem:[%s9696_s13 + $0x2e0] ss:$24 sps:$4 sm:$0xff]  }
 0x21b   : > { %v2323_v44 = vmul.f32 %v11436_v17, %v2322_v39  ;;  %8316 = vpow2.f32 %v1626_v56  ;;  %v8309_v50 = vpop.eup %8308  ;;  %v2275_v21 = vmul.f32 0.6931472, %v8307_v43  ;;  %vm11497_vm12 = vcmp.lt.f32.partialorder %v2324_v14, 0.0004427343  ;;  %v573_v14 = vld [vmem:[%s9702_s23 + $0x98] sm:$0xff]  ;;  %6496 = vmatprep.subr.bf16.mxu0 %v8023_v54 }
 0x21c   : > { %v5308_v57 = vpack.c.bf16 %v5026_v24, %v5020_v18  ;;  %v1628_v34 = vmul.f32 1.442695, %v1307_v42  ;;  %v5309_v33 = vpack.c.bf16 %v5027_v32, %v5021_v23  ;;  %vm1006_vm13 = vcmp.gt.f32.partialorder %v11344_v15, 20.0 }
 0x21d   : > { %v2272_v10 = vsel %vm11464_vm9, %v2269_v37, %v2266_v55  ;;  %v2320_v63 = vmul.f32 0.6931472, %v8309_v50  ;;  %v2281_v17 = vsel %vm11460_vm8, %v2278_v6, %v2275_v21  ;;  %v2331_v35 = vadd.f32 1.0, %v2330_v5 }
 0x21e   : > { %v2333_v61 = vand.u32 2147483647, %v8303_v4  ;;  %8318 = vpow2.f32 %v1628_v34  ;;  %6801 = vmatprep.subr.bf16.mxu1 %v5309_v33  ;;  %v4744_v39 = vsel %vm1000_vm10, %v11335_v16, %v2272_v10  ;;  %v11515_v11 = vadd.f32 %v11366_v8, %v11058_v27  ;;  %v576_v16 = vld [vmem:[%s9702_s23 + $0xb0] sm:$0xff] }
 0x21f   : > { %v2326_v7 = vsel %vm11497_vm12, %v2323_v44, %v2320_v63  ;;  %6802 = vmatpush1.bf16.xpose.msra.mxu1 %v5308_v57  ;;  %v4745_v58 = vsel %vm1001_vm11, %v11339_v19, %v2281_v17  ;;  %v11523_v6 = vadd.f32 %v11378_v29, %v11076_v36  ;;  %vm1007_vm14 = vcmp.gt.f32.partialorder %v11352_v59, 20.0 }
 0x220   : > { %v4750_v37 = vsel %vm1006_vm13, %v11344_v15, %v2326_v7  ;;  %v11527_v13 = vunpack.c.l.bf16 %v573_v14  ;;  %v2332_v27 = vmul.f32 %v8303_v4, %v2331_v35  ;;  %vm11529_vm15 = vcmp.lt.f32.partialorder %v2333_v61, 0.0004427343 }
 0x221   : > { %v8311_v46 = vpop.eup %8310  ;;  %v5033_v49 = vmul.f32 %v4745_v58, %v4745_v58  ;;  %v5032_v36 = vmul.f32 %v4744_v39, %v4744_v39  ;;  %v5038_v29 = vmul.f32 %v4750_v37, %v4750_v37  ;;  %v11533_v18 = vunpack.c.h.bf16 %v573_v14  ;;  %v579_v37 = vld [vmem:[%s9702_s23 + $0xc8] sm:$0xff] }
 0x222   : > { %v2372_v19 = vadd.f32 1.0, %v8311_v46  ;;  %v2375_v15 = vmul.f32 -0.5, %v8311_v46  ;;  %v11535_v23 = vunpack.c.l.bf16 %v576_v16  ;;  %v2378_v60 = vand.u32 2147483647, %v8311_v46  ;;  %6497 = vmatpush1.bf16.xpose.msra.mxu0 %v8021_v52 }
 0x223   : > { %v8313_v56 = vpop.eup %8312  ;;  %v11538_v24 = vunpack.c.h.bf16 %v576_v16  ;;  %v1312_v5 = vmin.f32 %v11527_v13, 20.0  ;;  %v5314_v26 = vpack.c.bf16 %v5038_v29, %v5032_v36  ;;  %vm1012_vm0 = vcmp.gt.f32.partialorder %v11397_v53, 20.0 }
 0x224   : > { %v8315_v22 = vpop.eup %8314  ;;  %v2381_v42 = vadd.f32 1.0, %v8313_v56  ;;  %v2384_v47 = vmul.f32 -0.5, %v8313_v56  ;;  %8320 = vlog2.f32 %v2372_v19  ;;  %v2387_v43 = vand.u32 2147483647, %v8313_v56  ;;  %v582_v19 = vld [vmem:[%s9702_s23 + $0xe0] sm:$0xff] }
 0x225   : > { %v8317_v4 = vpop.eup %8316  ;;  %v2329_v20 = vmul.f32 0.6931472, %v8315_v22  ;;  %v2376_v32 = vadd.f32 1.0, %v2375_v15  ;;  %v1313_v57 = vmin.f32 %v11533_v18, 20.0  ;;  %v1318_v33 = vmin.f32 %v11535_v23, 20.0 }
 0x226   : > { %8322 = vlog2.f32 %v2381_v42  ;;  %v2426_v55 = vadd.f32 1.0, %v8317_v4  ;;  %v2385_v50 = vadd.f32 1.0, %v2384_v47  ;;  %v2429_v34 = vmul.f32 -0.5, %v8317_v4 }
 0x227   : > { %v2335_v44 = vsel %vm11529_vm15, %v2332_v27, %v2329_v20  ;;  %v2432_v54 = vand.u32 2147483647, %v8317_v4  ;;  %v1319_v17 = vmin.f32 %v11538_v24, 20.0  ;;  %vm1013_vm1 = vcmp.gt.f32.partialorder %v11411_v12, 20.0 }
 0x228   : > { %v8319_v21 = vpop.eup %8318  ;;  %v4751_v3 = vsel %vm1007_vm14, %v11352_v59, %v2335_v44  ;;  %8324 = vlog2.f32 %v2426_v55  ;;  %vm11551_vm2 = vcmp.lt.f32.partialorder %v2387_v43, 0.0004427343  ;;  %v2377_v61 = vmul.f32 %v8311_v46, %v2376_v32 }
 0x229   : > { %v5039_v10 = vmul.f32 %v4751_v3, %v4751_v3  ;;  %v2435_v63 = vadd.f32 1.0, %v8319_v21  ;;  %vm11555_vm3 = vcmp.lt.f32.partialorder %v2378_v60, 0.0004427343  ;;  %v1638_v14 = vmul.f32 1.442695, %v1312_v5  ;;  %6499 = vmatmul.mubr.bf16.vlgmr.msra.gmra.mrb[0].mxu0 %v15205_v62 }
 0x22a   : > { %v2386_v39 = vmul.f32 %v8313_v56, %v2385_v50  ;;  %v2438_v58 = vmul.f32 -0.5, %v8319_v21  ;;  %v2441_v16 = vand.u32 2147483647, %v8319_v21  ;;  %v2430_v27 = vadd.f32 1.0, %v2429_v34  ;;  %6508 = vmatprep.mubr.bf16.mxu0 %v15209_v0 }
 0x22b   : > { %v5315_v7 = vpack.c.bf16 %v5039_v10, %v5033_v49  ;;  %8326 = vlog2.f32 %v2435_v63  ;;  %v1640_v8 = vmul.f32 1.442695, %v1313_v57  ;;  %vm11561_vm4 = vcmp.lt.f32.partialorder %v2432_v54, 0.0004427343 }
 0x22c   : > { %8328 = vpow2.f32 %v1638_v14  ;;  %v1650_v46 = vmul.f32 1.442695, %v1318_v33  ;;  %v1652_v36 = vmul.f32 1.442695, %v1319_v17  ;;  %v11567_v29 = vadd.f32 %v11405_v2, %v11104_v31 }
 0x22d   : > { %6803 = vmatprep.subr.bf16.mxu1 %v5315_v7  ;;  %vm1019_vm5 = vcmp.gt.f32.partialorder %v11417_v30, 20.0  ;;  %8330 = vpow2.f32 %v1640_v8  ;;  %v11572_v49 = vadd.f32 %v11419_v41, %v11120_v28  ;;  %v11574_v22 = vunpack.c.l.bf16 %v579_v37 }
 0x22e   : > { %v8321_v56 = vpop.eup %8320  ;;  %6804 = vmatpush1.bf16.xpose.msra.mxu1 %v5314_v26  ;;  %v11576_v42 = vunpack.c.h.bf16 %v579_v37  ;;  %v2439_v47 = vadd.f32 1.0, %v2438_v58  ;;  %v11578_v20 = vunpack.c.l.bf16 %v582_v19  ;;  %v11580_v60 = vunpack.c.h.bf16 %v582_v19 }
 0x22f   : > { %v2374_v52 = vmul.f32 0.6931472, %v8321_v56  ;;  %v2431_v2 = vmul.f32 %v8317_v4, %v2430_v27  ;;  %8332 = vpow2.f32 %v1652_v36  ;;  %v1324_v5 = vmin.f32 %v11574_v22, 20.0  ;;  %v585_v27 = vld [vmem:[%s9702_s23 + $0xf8] sm:$0xff] }
 0x230   : > { %v8323_v31 = vpop.eup %8322  ;;  %v1325_v28 = vmin.f32 %v11576_v42, 20.0  ;;  %8334 = vpow2.f32 %v1650_v46  ;;  %v1330_v32 = vmin.f32 %v11578_v20, 20.0  ;;  %v1331_v4 = vmin.f32 %v11580_v60, 20.0 }
 0x231   : > { %v2383_v41 = vmul.f32 0.6931472, %v8323_v31  ;;  %v2380_v43 = vsel %vm11555_vm3, %v2377_v61, %v2374_v52  ;;  %v1662_v44 = vmul.f32 1.442695, %v1324_v5  ;;  %vm1018_vm6 = vcmp.gt.f32.partialorder %v11415_v25, 20.0  ;;  %6509 = vmatmul.mubr.bf16.gmra.mrb[4].mxu0 %v10144_v51 }
 0x232   : > { %v8325_v55 = vpop.eup %8324  ;;  %v4756_v62 = vsel %vm1012_vm0, %v11397_v53, %v2380_v43  ;;  %v1664_v26 = vmul.f32 1.442695, %v1325_v28  ;;  %v1674_v57 = vmul.f32 1.442695, %v1330_v32  ;;  %v2440_v3 = vmul.f32 %v8319_v21, %v2439_v47  ;;  %6518 = vmatprep.mubr.bf16.mxu0 %v10159_v38 }
 0x233   : > { %v2389_v50 = vsel %vm11551_vm2, %v2386_v39, %v2383_v41  ;;  %v2428_v0 = vmul.f32 0.6931472, %v8325_v55  ;;  %vm11596_vm7 = vcmp.lt.f32.partialorder %v2441_v16, 0.0004427343  ;;  %8336 = vpow2.f32 %v1662_v44 }
 0x234   : > { %v1676_v33 = vmul.f32 1.442695, %v1331_v4  ;;  %v4757_v53 = vsel %vm1013_vm1, %v11411_v12, %v2389_v50  ;;  %v5044_v54 = vmul.f32 %v4756_v62, %v4756_v62  ;;  %8338 = vpow2.f32 %v1664_v26 }
 0x235   : > { %v8327_v10 = vpop.eup %8326  ;;  %v2434_v63 = vsel %vm11561_vm4, %v2431_v2, %v2428_v0  ;;  %8340 = vpow2.f32 %v1674_v57  ;;  %v11608_v61 = vadd.f32 %v11448_v1, %v11142_v9  ;;  %v5045_v58 = vmul.f32 %v4757_v53, %v4757_v53 }
 0x236   : > { %v8329_v17 = vpop.eup %8328  ;;  %v2437_v35 = vmul.f32 0.6931472, %v8327_v10  ;;  %v4762_v21 = vsel %vm1018_vm6, %v11415_v25, %v2434_v63  ;;  %8342 = vpow2.f32 %v1676_v33  ;;  %v11618_v38 = vunpack.c.l.bf16 %v585_v27 }
 0x237   : > { %v5050_v59 = vmul.f32 %v4762_v21, %v4762_v21  ;;  %v2480_v14 = vadd.f32 1.0, %v8329_v17  ;;  %v2483_v7 = vmul.f32 -0.5, %v8329_v17  ;;  %v8331_v12 = vpop.eup %8330  ;;  %v2486_v37 = vand.u32 2147483647, %v8329_v17 }
 0x238   : > { %v2443_v39 = vsel %vm11596_vm7, %v2440_v3, %v2437_v35  ;;  %v2489_v1 = vadd.f32 1.0, %v8331_v12  ;;  %v2492_v16 = vmul.f32 -0.5, %v8331_v12  ;;  %v2495_v51 = vand.u32 2147483647, %v8331_v12 }
 0x239   : > { %v4763_v25 = vsel %vm1019_vm5, %v11417_v30, %v2443_v39  ;;  %v5320_v9 = vpack.c.bf16 %v5050_v59, %v5044_v54  ;;  %v8333_v8 = vpop.eup %8332  ;;  %8344 = vlog2.f32 %v2480_v14  ;;  %v2484_v15 = vadd.f32 1.0, %v2483_v7  ;;  %6519 = vmatmul.mubr.bf16.gmra.mrb[16].mxu0 %v10161_v40 }
 0x23a   : > { %v5051_v19 = vmul.f32 %v4763_v25, %v4763_v25  ;;  %v8335_v46 = vpop.eup %8334  ;;  %8346 = vlog2.f32 %v2489_v1  ;;  %v2493_v36 = vadd.f32 1.0, %v2492_v16  ;;  %v2543_v56 = vadd.f32 1.0, %v8333_v8  ;;  %6955 = vmatprep.mubr.bf16.mxu0 %v11275_v45 }
 0x23b   : > { %v2546_v47 = vmul.f32 -0.5, %v8333_v8  ;;  %v11620_v31 = vunpack.c.h.bf16 %v585_v27  ;;  %vm11622_vm8 = vcmp.lt.f32.partialorder %v2495_v51, 0.0004427343  ;;  %v2549_v2 = vand.u32 2147483647, %v8333_v8 }
 0x23c   : > { %v5321_v52 = vpack.c.bf16 %v5051_v19, %v5045_v58  ;;  %8348 = vlog2.f32 %v2543_v56  ;;  %vm1024_vm9 = vcmp.gt.f32.partialorder %v11527_v13, 20.0  ;;  %v11627_v5 = vmul.f32 %v8329_v17, %v2484_v15  ;;  %v588_v58 = vld [vmem:[%s9702_s23 + $0x110] sm:$0xff] }
 0x23d   : > { %v8337_v28 = vpop.eup %8336  ;;  %vm1025_vm10 = vcmp.gt.f32.partialorder %v11533_v18, 20.0  ;;  %v2494_v41 = vmul.f32 %v8331_v12, %v2493_v36  ;;  %v2547_v43 = vadd.f32 1.0, %v2546_v47  ;;  %v2534_v32 = vadd.f32 1.0, %v8335_v46 }
 0x23e   : > { %6805 = vmatprep.subr.bf16.mxu1 %v5321_v52  ;;  %v2537_v55 = vmul.f32 -0.5, %v8335_v46  ;;  %v8339_v62 = vpop.eup %8338  ;;  %vm11630_vm11 = vcmp.lt.f32.partialorder %v2486_v37, 0.0004427343  ;;  %v2540_v44 = vand.u32 2147483647, %v8335_v46  ;;  %v2588_v26 = vadd.f32 1.0, %v8337_v28 }
 0x23f   : > { %6806 = vmatpush1.bf16.xpose.msra.mxu1 %v5320_v9  ;;  %v2591_v50 = vmul.f32 -0.5, %v8337_v28  ;;  %v8341_v0 = vpop.eup %8340  ;;  %vm1031_vm12 = vcmp.gt.f32.partialorder %v11538_v24, 20.0  ;;  %8350 = vlog2.f32 %v2534_v32  ;;  %v2597_v3 = vadd.f32 1.0, %v8339_v62 }
 0x240   : > { %v2538_v57 = vadd.f32 1.0, %v2537_v55  ;;  %v2594_v34 = vand.u32 2147483647, %v8337_v28  ;;  %vm11637_vm13 = vcmp.lt.f32.partialorder %v2549_v2, 0.0004427343  ;;  %v2600_v10 = vmul.f32 -0.5, %v8339_v62  ;;  %v11641_v63 = vpop.eup %8342 }
 0x241   : > { %v2603_v53 = vand.u32 2147483647, %v8339_v62  ;;  %8352 = vlog2.f32 %v2588_v26  ;;  %v2548_v40 = vmul.f32 %v8333_v8, %v2547_v43  ;;  %v2592_v54 = vadd.f32 1.0, %v2591_v50 }
 0x242   : > { %8354 = vlog2.f32 %v2597_v3  ;;  %v2642_v17 = vadd.f32 1.0, %v8341_v0  ;;  %vm1030_vm14 = vcmp.gt.f32.partialorder %v11535_v23, 20.0  ;;  %vm11644_vm15 = vcmp.lt.f32.partialorder %v2540_v44, 0.0004427343 }
 0x243   : > { %v2601_v45 = vadd.f32 1.0, %v2600_v10  ;;  %v2651_v21 = vadd.f32 1.0, %v11641_v63  ;;  %v2654_v59 = vmul.f32 -0.5, %v11641_v63  ;;  %v8345_v14 = vpop.eup %8344  ;;  %v2539_v7 = vmul.f32 %v8335_v46, %v2538_v57 }
 0x244   : > { %vm11650_vm0 = vcmp.lt.f32.partialorder %v2594_v34, 0.0004427343  ;;  %8356 = vlog2.f32 %v2642_v17  ;;  %v2645_v39 = vmul.f32 -0.5, %v8341_v0  ;;  %v8347_v37 = vpop.eup %8346  ;;  %v2482_v25 = vmul.f32 0.6931472, %v8345_v14 }
 0x245   : > { %vm1037_vm1 = vcmp.gt.f32.partialorder %v11576_v42, 20.0  ;;  %vm11656_vm2 = vcmp.lt.f32.partialorder %v2603_v53, 0.0004427343  ;;  %8358 = vlog2.f32 %v2651_v21  ;;  %v2655_v1 = vadd.f32 1.0, %v2654_v59 }
 0x246   : > { %vm1036_vm3 = vcmp.gt.f32.partialorder %v11574_v22, 20.0  ;;  %v2491_v16 = vmul.f32 0.6931472, %v8347_v37  ;;  %v2657_v27 = vand.u32 2147483647, %v11641_v63  ;;  %v2593_v8 = vmul.f32 %v8337_v28, %v2592_v54  ;;  %v8349_v51 = vpop.eup %8348  ;;  %v591_v37 = vld [vmem:[%s9702_s23 + $0x128] sm:$0xff] }
 0x247   : > { %v2646_v19 = vadd.f32 1.0, %v2645_v39  ;;  %v2488_v15 = vsel %vm11630_vm11, %v11627_v5, %v2482_v25  ;;  %v2602_v46 = vmul.f32 %v8339_v62, %v2601_v45  ;;  %vm1042_vm4 = vcmp.gt.f32.partialorder %v11578_v20, 20.0 }
 0x248   : > { %v2648_v36 = vand.u32 2147483647, %v8341_v0  ;;  %v11666_v56 = vunpack.c.l.bf16 %v588_v58  ;;  %v2497_v47 = vsel %vm11622_vm8, %v2494_v41, %v2491_v16  ;;  %v2545_v52 = vmul.f32 0.6931472, %v8349_v51 }
 0x249   : > { %v4768_v2 = vsel %vm1024_vm9, %v11527_v13, %v2488_v15  ;;  %vm1043_vm5 = vcmp.gt.f32.partialorder %v11580_v60, 20.0  ;;  %v11674_v28 = vunpack.c.h.bf16 %v588_v58  ;;  %v4769_v5 = vsel %vm1025_vm10, %v11533_v18, %v2497_v47  ;;  %v8351_v62 = vpop.eup %8350 }
 0x24a   : > { %v5056_v43 = vmul.f32 %v4768_v2, %v4768_v2  ;;  %v2656_v32 = vmul.f32 %v11641_v63, %v2655_v1  ;;  %v2647_v55 = vmul.f32 %v8341_v0, %v2646_v19  ;;  %v2551_v30 = vsel %vm11637_vm13, %v2548_v40, %v2545_v52  ;;  %v594_v1 = vld [vmem:[%s9702_s23 + $0x140] sm:$0xff] }
 0x24b   : > { %v5057_v41 = vmul.f32 %v4769_v5, %v4769_v5  ;;  %vm11682_vm6 = vcmp.lt.f32.partialorder %v2648_v36, 0.0004427343  ;;  %v1336_v13 = vmin.f32 %v11618_v38, 20.0  ;;  %v8353_v44 = vpop.eup %8352  ;;  %v4775_v18 = vsel %vm1031_vm12, %v11538_v24, %v2551_v30 }
 0x24c   : > { %v2536_v26 = vmul.f32 0.6931472, %v8351_v62  ;;  %v1337_v50 = vmin.f32 %v11620_v31, 20.0  ;;  %v1342_v0 = vmin.f32 %v11666_v56, 20.0  ;;  %v8355_v57 = vpop.eup %8354  ;;  %v5063_v3 = vmul.f32 %v4775_v18, %v4775_v18 }
 0x24d   : > { %v2590_v34 = vmul.f32 0.6931472, %v8353_v44  ;;  %v1343_v33 = vmin.f32 %v11674_v28, 20.0  ;;  %v1686_v10 = vmul.f32 1.442695, %v1336_v13  ;;  %v11724_v15 = vunpack.c.l.bf16 %v591_v37  ;;  %v597_v13 = vld [vmem:[%s9702_s23 + $0x158] sm:$0xff] }
 0x24e   : > { %v2542_v53 = vsel %vm11644_vm15, %v2539_v7, %v2536_v26  ;;  %v2599_v63 = vmul.f32 0.6931472, %v8355_v57  ;;  %v1688_v40 = vmul.f32 1.442695, %v1337_v50  ;;  %v1698_v54 = vmul.f32 1.442695, %v1342_v0  ;;  %v8357_v17 = vpop.eup %8356 }
 0x24f   : > { %v5327_v24 = vpack.c.bf16 %v5063_v3, %v5057_v41  ;;  %v4774_v45 = vsel %vm1030_vm14, %v11535_v23, %v2542_v53  ;;  %v2596_v21 = vsel %vm11650_vm0, %v2593_v8, %v2590_v34  ;;  %8360 = vpow2.f32 %v1686_v10  ;;  %v8359_v59 = vpop.eup %8358  ;;  %v600_v34 = vld [vmem:[%s9702_s23 + $0x170] sm:$0xff] }
 0x250   : > { %v5062_v14 = vmul.f32 %v4774_v45, %v4774_v45  ;;  %v2605_v35 = vsel %vm11656_vm2, %v2602_v46, %v2599_v63  ;;  %vm11702_vm7 = vcmp.lt.f32.partialorder %v2657_v27, 0.0004427343  ;;  %v2644_v39 = vmul.f32 0.6931472, %v8357_v17 }
 0x251   : > { %6807 = vmatprep.subr.bf16.mxu1 %v5327_v24  ;;  %v2653_v58 = vmul.f32 0.6931472, %v8359_v59  ;;  %v4781_v23 = vsel %vm1037_vm1, %v11576_v42, %v2605_v35  ;;  %v4780_v12 = vsel %vm1036_vm3, %v11574_v22, %v2596_v21  ;;  %8362 = vpow2.f32 %v1688_v40 }
 0x252   : > { %v5326_v25 = vpack.c.bf16 %v5062_v14, %v5056_v43  ;;  %v2650_v9 = vsel %vm11682_vm6, %v2647_v55, %v2644_v39  ;;  %8364 = vpow2.f32 %v1698_v54  ;;  %v5069_v27 = vmul.f32 %v4781_v23, %v4781_v23 }
 0x253   : > { %v2659_v16 = vsel %vm11702_vm7, %v2656_v32, %v2653_v58  ;;  %v4786_v42 = vsel %vm1042_vm4, %v11578_v20, %v2650_v9  ;;  %v1700_v8 = vmul.f32 1.442695, %v1343_v33  ;;  %v5068_v19 = vmul.f32 %v4780_v12, %v4780_v12 }
 0x254   : > { %6808 = vmatpush1.bf16.xpose.msra.mxu1 %v5326_v25  ;;  %v4787_v22 = vsel %vm1043_vm5, %v11580_v60, %v2659_v16  ;;  %v5074_v51 = vmul.f32 %v4786_v42, %v4786_v42  ;;  %v11726_v36 = vunpack.c.h.bf16 %v591_v37  ;;  %v11728_v47 = vunpack.c.l.bf16 %v594_v1 }
 0x255   : > { %v5075_v46 = vmul.f32 %v4787_v22, %v4787_v22  ;;  %8366 = vpow2.f32 %v1700_v8  ;;  %v1348_v52 = vmin.f32 %v11724_v15, 20.0  ;;  %v11731_v2 = vunpack.c.h.bf16 %v594_v1 }
 0x256   : > { %v1349_v5 = vmin.f32 %v11726_v36, 20.0  ;;  %v5332_v43 = vpack.c.bf16 %v5074_v51, %v5068_v19  ;;  %v1354_v55 = vmin.f32 %v11728_v47, 20.0  ;;  %v11738_v10 = vunpack.c.l.bf16 %v597_v13 }
 0x257   : > { %v5333_v20 = vpack.c.bf16 %v5075_v46, %v5069_v27  ;;  %v1710_v60 = vmul.f32 1.442695, %v1348_v52  ;;  %v1355_v4 = vmin.f32 %v11731_v2, 20.0  ;;  %v11740_v54 = vunpack.c.h.bf16 %v597_v13 }
 0x258   : > { %v1712_v62 = vmul.f32 1.442695, %v1349_v5  ;;  %v1722_v3 = vmul.f32 1.442695, %v1354_v55  ;;  %v11742_v21 = vunpack.c.l.bf16 %v600_v34  ;;  %vm1049_vm8 = vcmp.gt.f32.partialorder %v11620_v31, 20.0 }
 0x259   : > { %v8361_v32 = vpop.eup %8360  ;;  %6809 = vmatprep.subr.bf16.mxu1 %v5333_v20  ;;  %8368 = vpow2.f32 %v1710_v60  ;;  %v1724_v40 = vmul.f32 1.442695, %v1355_v4  ;;  %vm1048_vm9 = vcmp.gt.f32.partialorder %v11618_v38, 20.0  ;;  %v11746_v14 = vunpack.c.h.bf16 %v600_v34 }
 0x25a   : > { %v2696_v30 = vadd.f32 1.0, %v8361_v32  ;;  %8370 = vpow2.f32 %v1712_v62  ;;  %v2699_v50 = vmul.f32 -0.5, %v8361_v32  ;;  %v2702_v33 = vand.u32 2147483647, %v8361_v32 }
 0x25b   : > { %v8363_v41 = vpop.eup %8362  ;;  %vm1054_vm10 = vcmp.gt.f32.partialorder %v11666_v56, 20.0  ;;  %v1360_v39 = vmin.f32 %v11738_v10, 20.0  ;;  %v1361_v12 = vmin.f32 %v11740_v54, 20.0  ;;  %v1366_v1 = vmin.f32 %v11742_v21, 20.0 }
 0x25c   : > { %v8365_v44 = vpop.eup %8364  ;;  %6810 = vmatpush1.bf16.xpose.msra.mxu1 %v5332_v43  ;;  %v2705_v18 = vadd.f32 1.0, %v8363_v41  ;;  %v2708_v26 = vmul.f32 -0.5, %v8363_v41  ;;  %8372 = vlog2.f32 %v2696_v30  ;;  %v2711_v63 = vand.u32 2147483647, %v8363_v41 }
 0x25d   : > { %v2750_v0 = vadd.f32 1.0, %v8365_v44  ;;  %v2753_v57 = vmul.f32 -0.5, %v8365_v44  ;;  %v2700_v45 = vadd.f32 1.0, %v2699_v50  ;;  %vm11749_vm11 = vcmp.lt.f32.partialorder %v2702_v33, 0.0004427343 }
 0x25e   : > { %8374 = vlog2.f32 %v2705_v18  ;;  %v2709_v17 = vadd.f32 1.0, %v2708_v26  ;;  %vm11754_vm12 = vcmp.lt.f32.partialorder %v2711_v63, 0.0004427343  ;;  %v2756_v23 = vand.u32 2147483647, %v8365_v44 }
 0x25f   : > { %v8367_v53 = vpop.eup %8366  ;;  %8376 = vlog2.f32 %v2750_v0  ;;  %v2754_v59 = vadd.f32 1.0, %v2753_v57  ;;  %v2701_v9 = vmul.f32 %v8361_v32, %v2700_v45  ;;  %v1734_v16 = vmul.f32 1.442695, %v1360_v39 }
 0x260   : > { %v2759_v24 = vadd.f32 1.0, %v8367_v53  ;;  %8378 = vpow2.f32 %v1722_v3  ;;  %v2762_v35 = vmul.f32 -0.5, %v8367_v53  ;;  %v2710_v25 = vmul.f32 %v8363_v41, %v2709_v17 }
 0x261   : > { %vm1055_vm13 = vcmp.gt.f32.partialorder %v11674_v28, 20.0  ;;  %v2765_v42 = vand.u32 2147483647, %v8367_v53  ;;  %v2755_v8 = vmul.f32 %v8365_v44, %v2754_v59  ;;  %v1736_v19 = vmul.f32 1.442695, %v1361_v12  ;;  %v603_v12 = vld [vmem:[%s9702_s23 + $0x188] sm:$0xff] }
 0x262   : > { %8380 = vlog2.f32 %v2759_v24  ;;  %v2763_v46 = vadd.f32 1.0, %v2762_v35  ;;  %vm11761_vm14 = vcmp.lt.f32.partialorder %v2756_v23, 0.0004427343  ;;  %v1367_v62 = vmin.f32 %v11746_v14, 20.0 }
 0x263   : > { %8382 = vpow2.f32 %v1724_v40  ;;  %v8369_v37 = vpop.eup %8368  ;;  %v1746_v30 = vmul.f32 1.442695, %v1366_v1  ;;  %vm11768_vm15 = vcmp.lt.f32.partialorder %v2765_v42, 0.0004427343  ;;  %vm1060_vm0 = vcmp.gt.f32.partialorder %v11724_v15, 20.0 }
 0x264   : > { %v8371_v27 = vpop.eup %8370  ;;  %v2804_v22 = vadd.f32 1.0, %v8369_v37  ;;  %v2807_v20 = vmul.f32 -0.5, %v8369_v37  ;;  %8384 = vpow2.f32 %v1734_v16  ;;  %v2810_v60 = vand.u32 2147483647, %v8369_v37  ;;  %v11802_v16 = vpop.f32.mrb[24].mxu1 }
 0x265   : > { %v2813_v52 = vadd.f32 1.0, %v8371_v27  ;;  %v2816_v55 = vmul.f32 -0.5, %v8371_v27  ;;  %v2819_v44 = vand.u32 2147483647, %v8371_v27  ;;  %v2764_v18 = vmul.f32 %v8367_v53, %v2763_v46 }
 0x266   : > { %v8373_v51 = vpop.eup %8372  ;;  %8386 = vlog2.f32 %v2804_v22  ;;  %v2808_v0 = vadd.f32 1.0, %v2807_v20  ;;  %vm1061_vm1 = vcmp.gt.f32.partialorder %v11726_v36, 20.0  ;;  %vm11781_vm2 = vcmp.lt.f32.partialorder %v2810_v60, 0.0004427343 }
 0x267   : > { %v2698_v5 = vmul.f32 0.6931472, %v8373_v51  ;;  %8388 = vlog2.f32 %v2813_v52  ;;  %v2817_v17 = vadd.f32 1.0, %v2816_v55  ;;  %vm11794_vm3 = vcmp.lt.f32.partialorder %v2819_v44, 0.0004427343 }
 0x268   : > { %v8375_v32 = vpop.eup %8374  ;;  %8390 = vpow2.f32 %v1736_v19  ;;  %v1748_v7 = vmul.f32 1.442695, %v1367_v62  ;;  %v2809_v23 = vmul.f32 %v8369_v37, %v2808_v0  ;;  %v6675_v19 = vpop.f32.mrb[25].mxu1  ;;  %v11808_v52 = vunpack.c.l.bf16 %v603_v12 }
 0x269   : > { %v8377_v41 = vpop.eup %8376  ;;  %v2707_v4 = vmul.f32 0.6931472, %v8375_v32  ;;  %v2704_v13 = vsel %vm11749_vm11, %v2701_v9, %v2698_v5  ;;  %8392 = vpow2.f32 %v1746_v30  ;;  %v11810_v20 = vpop.f32.mrb[26].mxu1  ;;  %vm1066_vm4 = vcmp.gt.f32.partialorder %v11728_v47, 20.0 }
 0x26a   : > { %v2752_v50 = vmul.f32 0.6931472, %v8377_v41  ;;  %v11773_v57 = vpop.eup %8378  ;;  %v4792_v34 = vsel %vm1048_vm9, %v11618_v38, %v2704_v13  ;;  %vm1067_vm5 = vcmp.gt.f32.partialorder %v11731_v2, 20.0  ;;  %vm1072_vm9 = vcmp.gt.f32.partialorder %v11738_v10, 20.0 }
 0x26b   : > { %v2713_v3 = vsel %vm11754_vm12, %v2710_v25, %v2707_v4  ;;  %v2858_v24 = vadd.f32 1.0, %v11773_v57  ;;  %v5080_v39 = vmul.f32 %v4792_v34, %v4792_v34  ;;  %v2861_v1 = vmul.f32 -0.5, %v11773_v57 }
 0x26c   : > { %v8381_v53 = vpop.eup %8380  ;;  %v4793_v63 = vsel %vm1049_vm8, %v11620_v31, %v2713_v3  ;;  %v2758_v40 = vsel %vm11761_vm14, %v2755_v8, %v2752_v50  ;;  %v2818_v8 = vmul.f32 %v8371_v27, %v2817_v17  ;;  %v2864_v46 = vand.u32 2147483647, %v11773_v57  ;;  %v6678_v27 = vpop.f32.mrb[27].mxu1 }
 0x26d   : > { %v8383_v38 = vpop.eup %8382  ;;  %v2761_v45 = vmul.f32 0.6931472, %v8381_v53  ;;  %v4798_v59 = vsel %vm1054_vm10, %v11666_v56, %v2758_v40  ;;  %v5081_v9 = vmul.f32 %v4793_v63, %v4793_v63  ;;  %8394 = vlog2.f32 %v2858_v24  ;;  %v606_v40 = vld [vmem:[%s9702_s23 + $0x1a0] sm:$0xff] }
 0x26e   : > { %v5086_v58 = vmul.f32 %v4798_v59, %v4798_v59  ;;  %v2867_v31 = vadd.f32 1.0, %v8383_v38  ;;  %v8385_v56 = vpop.eup %8384  ;;  %v2870_v22 = vmul.f32 -0.5, %v8383_v38  ;;  %v2873_v41 = vand.u32 2147483647, %v8383_v38 }
 0x26f   : > { %v2767_v25 = vsel %vm11768_vm15, %v2764_v18, %v2761_v45  ;;  %v2912_v32 = vadd.f32 1.0, %v8385_v56  ;;  %v2862_v4 = vadd.f32 1.0, %v2861_v1  ;;  %vm11826_vm6 = vcmp.lt.f32.partialorder %v2864_v46, 0.0004427343 }
 0x270   : > { %v4799_v42 = vsel %vm1055_vm13, %v11674_v28, %v2767_v25  ;;  %8396 = vlog2.f32 %v2867_v31  ;;  %v8387_v37 = vpop.eup %8386  ;;  %v5338_v43 = vpack.c.bf16 %v5086_v58, %v5080_v39  ;;  %v2915_v28 = vmul.f32 -0.5, %v8385_v56 }
 0x271   : > { %v5087_v51 = vmul.f32 %v4799_v42, %v4799_v42  ;;  %8398 = vpow2.f32 %v1748_v7  ;;  %v8389_v5 = vpop.eup %8388  ;;  %v2806_v60 = vmul.f32 0.6931472, %v8387_v37  ;;  %v2871_v13 = vadd.f32 1.0, %v2870_v22 }
 0x272   : > { %v8391_v55 = vpop.eup %8390  ;;  %v2815_v30 = vmul.f32 0.6931472, %v8389_v5  ;;  %8400 = vlog2.f32 %v2912_v32  ;;  %v2916_v63 = vadd.f32 1.0, %v2915_v28  ;;  %vm11831_vm7 = vcmp.lt.f32.partialorder %v2873_v41, 0.0004427343 }
 0x273   : > { %v5339_v62 = vpack.c.bf16 %v5087_v51, %v5081_v9  ;;  %v2812_v44 = vsel %vm11781_vm2, %v2809_v23, %v2806_v60  ;;  %v2921_v18 = vadd.f32 1.0, %v8391_v55  ;;  %v2924_v26 = vmul.f32 -0.5, %v8391_v55  ;;  %v11816_v50 = vpop.eup %8392 }
 0x274   : > { %v2821_v0 = vsel %vm11794_vm3, %v2818_v8, %v2815_v30  ;;  %v4804_v3 = vsel %vm1060_vm0, %v11724_v15, %v2812_v44  ;;  %v2927_v34 = vand.u32 2147483647, %v8391_v55  ;;  %v2863_v15 = vmul.f32 %v11773_v57, %v2862_v4 }
 0x275   : > { %6811 = vmatprep.subr.bf16.mxu1 %v5339_v62  ;;  %v4805_v33 = vsel %vm1061_vm1, %v11726_v36, %v2821_v0  ;;  %8402 = vlog2.f32 %v2921_v18  ;;  %v2918_v24 = vand.u32 2147483647, %v8385_v56  ;;  %v11836_v45 = vunpack.c.h.bf16 %v603_v12  ;;  %v650_v62 = vld [vmem:[%s9702_s23 + $0x300] sm:$0xff]  ;;  %v653_v18 = vld [vmem:[%s9702_s23 + $0x318] sm:$0xff] }
 0x276   : > { %6812 = vmatpush1.bf16.xpose.msra.mxu1 %v5338_v43  ;;  %v2872_v59 = vmul.f32 %v8383_v38, %v2871_v13  ;;  %v5092_v35 = vmul.f32 %v4804_v3, %v4804_v3  ;;  %v2925_v7 = vadd.f32 1.0, %v2924_v26  ;;  %v2966_v36 = vadd.f32 1.0, %v11816_v50 }
 0x277   : > { %v8395_v39 = vpop.eup %8394  ;;  %v5093_v58 = vmul.f32 %v4805_v33, %v4805_v33  ;;  %vm11839_vm8 = vcmp.lt.f32.partialorder %v2927_v34, 0.0004427343  ;;  %v11843_v23 = vunpack.c.l.bf16 %v606_v40  ;;  %v11845_v25 = vunpack.c.h.bf16 %v606_v40 }
 0x278   : > { %v2860_v57 = vmul.f32 0.6931472, %v8395_v39  ;;  %v2917_v1 = vmul.f32 %v8385_v56, %v2916_v63  ;;  %8404 = vlog2.f32 %v2966_v36  ;;  %v2969_v38 = vmul.f32 -0.5, %v11816_v50 }
 0x279   : > { %vm11849_vm10 = vcmp.lt.f32.partialorder %v2918_v24, 0.0004427343  ;;  %v1372_v22 = vmin.f32 %v11808_v52, 20.0  ;;  %v1373_v19 = vmin.f32 %v11836_v45, 20.0  ;;  %vm1073_vm11 = vcmp.gt.f32.partialorder %v11740_v54, 20.0 }
 0x27a   : > { %v8397_v9 = vpop.eup %8396  ;;  %v2866_v37 = vsel %vm11826_vm6, %v2863_v15, %v2860_v57  ;;  %v2926_v56 = vmul.f32 %v8391_v55, %v2925_v7  ;;  %v1378_v46 = vmin.f32 %v11843_v23, 20.0  ;;  %v2972_v60 = vand.u32 2147483647, %v11816_v50 }
 0x27b   : > { %v8399_v12 = vpop.eup %8398  ;;  %v2869_v42 = vmul.f32 0.6931472, %v8397_v9  ;;  %v4810_v43 = vsel %vm1066_vm4, %v11728_v47, %v2866_v37  ;;  %v1379_v32 = vmin.f32 %v11845_v25, 20.0  ;;  %v2970_v55 = vadd.f32 1.0, %v2969_v38 }
 0x27c   : > { %v2975_v51 = vadd.f32 1.0, %v8399_v12  ;;  %v5098_v27 = vmul.f32 %v4810_v43, %v4810_v43  ;;  %v8401_v30 = vpop.eup %8400  ;;  %v2978_v4 = vmul.f32 -0.5, %v8399_v12  ;;  %v1758_v13 = vmul.f32 1.442695, %v1372_v22 }
 0x27d   : > { %v2875_v5 = vsel %vm11831_vm7, %v2872_v59, %v2869_v42  ;;  %v1760_v44 = vmul.f32 1.442695, %v1373_v19  ;;  %v2981_v0 = vand.u32 2147483647, %v8399_v12  ;;  %v2914_v3 = vmul.f32 0.6931472, %v8401_v30 }
 0x27e   : > { %v4811_v28 = vsel %vm1067_vm5, %v11731_v2, %v2875_v5  ;;  %8406 = vlog2.f32 %v2975_v51  ;;  %v5344_v47 = vpack.c.bf16 %v5098_v27, %v5092_v35  ;;  %v1770_v34 = vmul.f32 1.442695, %v1378_v46 }
 0x27f   : > { %v5099_v41 = vmul.f32 %v4811_v28, %v4811_v28  ;;  %v8403_v26 = vpop.eup %8402  ;;  %vm1079_vm12 = vcmp.gt.f32.partialorder %v11746_v14, 20.0  ;;  %8408 = vpow2.f32 %v1758_v13  ;;  %v1772_v2 = vmul.f32 1.442695, %v1379_v32 }
 0x280   : > { %v2923_v53 = vmul.f32 0.6931472, %v8403_v26  ;;  %v2971_v63 = vmul.f32 %v11816_v50, %v2970_v55  ;;  %8410 = vpow2.f32 %v1760_v44  ;;  %v11873_v40 = vunpack.c.l.bf16 %v650_v62  ;;  %v609_v44 = vld [vmem:[%s9702_s23 + $0x1b8] sm:$0xff] }
 0x281   : > { %v5345_v33 = vpack.c.bf16 %v5099_v41, %v5093_v58  ;;  %v11875_v17 = vunpack.c.h.bf16 %v650_v62  ;;  %v2979_v15 = vadd.f32 1.0, %v2978_v4  ;;  %v2920_v24 = vsel %vm11849_vm10, %v2917_v1, %v2914_v3  ;;  %v612_v3 = vld [vmem:[%s9702_s23 + $0x1d0] sm:$0xff] }
 0x282   : > { %8412 = vpow2.f32 %v1770_v34  ;;  %v11879_v59 = vunpack.c.l.bf16 %v653_v18  ;;  %v8405_v35 = vpop.eup %8404  ;;  %v2929_v7 = vsel %vm11839_vm8, %v2926_v56, %v2923_v53  ;;  %vm11883_vm13 = vcmp.lt.f32.partialorder %v2972_v60, 0.0004427343 }
 0x283   : > { %6813 = vmatprep.subr.bf16.mxu1 %v5345_v33  ;;  %8414 = vpow2.f32 %v1772_v2  ;;  %v11887_v36 = vunpack.c.h.bf16 %v653_v18  ;;  %vm11889_vm14 = vcmp.lt.f32.partialorder %v2981_v0, 0.0004427343  ;;  %vm1078_vm15 = vcmp.gt.f32.partialorder %v11742_v21, 20.0 }
 0x284   : > { %6814 = vmatpush1.bf16.xpose.msra.mxu1 %v5344_v47  ;;  %v2968_v58 = vmul.f32 0.6931472, %v8405_v35  ;;  %v1466_v9 = vmin.f32 %v11873_v40, 20.0  ;;  %v4816_v31 = vsel %vm1072_vm9, %v11738_v10, %v2920_v24  ;;  %v1467_v57 = vmin.f32 %v11875_v17, 20.0 }
 0x285   : > { %v1472_v1 = vmin.f32 %v11879_v59, 20.0  ;;  %v1473_v38 = vmin.f32 %v11887_v36, 20.0  ;;  %v2980_v42 = vmul.f32 %v8399_v12, %v2979_v15  ;;  %v4817_v8 = vsel %vm1073_vm11, %v11740_v54, %v2929_v7 }
 0x286   : > { %v2974_v22 = vsel %vm11883_vm13, %v2971_v63, %v2968_v58  ;;  %v1946_v19 = vmul.f32 1.442695, %v1466_v9  ;;  %v1948_v51 = vmul.f32 1.442695, %v1467_v57  ;;  %v5104_v43 = vmul.f32 %v4816_v31, %v4816_v31 }
 0x287   : > { %v4822_v56 = vsel %vm1078_vm15, %v11742_v21, %v2974_v22  ;;  %v1958_v10 = vmul.f32 1.442695, %v1472_v1  ;;  %v1960_v46 = vmul.f32 1.442695, %v1473_v38  ;;  %v5105_v32 = vmul.f32 %v4817_v8, %v4817_v8 }
 0x288   : > { %v8407_v37 = vpop.eup %8406  ;;  %v5110_v60 = vmul.f32 %v4822_v56, %v4822_v56  ;;  %8416 = vpow2.f32 %v1946_v19  ;;  %v11917_v15 = vunpack.c.l.bf16 %v609_v44  ;;  %vm1084_vm0 = vcmp.gt.f32.partialorder %v11808_v52, 20.0 }
 0x289   : > { %v2977_v5 = vmul.f32 0.6931472, %v8407_v37  ;;  %8418 = vpow2.f32 %v1948_v51  ;;  %v8409_v12 = vpop.eup %8408  ;;  %v11921_v35 = vunpack.c.h.bf16 %v609_v44  ;;  %v11923_v7 = vunpack.c.l.bf16 %v612_v3  ;;  %v11943_v51 = vpop.f32.mrb[28].mxu1 }
 0x28a   : > { %8420 = vpow2.f32 %v1958_v10  ;;  %v8411_v28 = vpop.eup %8410  ;;  %v3020_v27 = vadd.f32 1.0, %v8409_v12  ;;  %v3023_v55 = vmul.f32 -0.5, %v8409_v12  ;;  %v5350_v41 = vpack.c.bf16 %v5110_v60, %v5104_v43 }
 0x28b   : > { %v2983_v54 = vsel %vm11889_vm14, %v2980_v42, %v2977_v5  ;;  %8422 = vpow2.f32 %v1960_v46  ;;  %v3029_v4 = vadd.f32 1.0, %v8411_v28  ;;  %v3032_v13 = vmul.f32 -0.5, %v8411_v28 }
 0x28c   : > { %v4823_v21 = vsel %vm1079_vm12, %v11746_v14, %v2983_v54  ;;  %v11912_v62 = vpop.eup %8412  ;;  %v3035_v26 = vand.u32 2147483647, %v8411_v28  ;;  %8424 = vlog2.f32 %v3020_v27  ;;  %v3024_v47 = vadd.f32 1.0, %v3023_v55 }
 0x28d   : > { %v5111_v30 = vmul.f32 %v4823_v21, %v4823_v21  ;;  %v8415_v18 = vpop.eup %8414  ;;  %v3074_v0 = vadd.f32 1.0, %v11912_v62  ;;  %8426 = vlog2.f32 %v3029_v4  ;;  %v3033_v14 = vadd.f32 1.0, %v3032_v13 }
 0x28e   : > { %v3026_v33 = vand.u32 2147483647, %v8409_v12  ;;  %v3083_v53 = vadd.f32 1.0, %v8415_v18  ;;  %v3086_v2 = vmul.f32 -0.5, %v8415_v18  ;;  %v3089_v63 = vand.u32 2147483647, %v8415_v18 }
 0x28f   : > { %v5351_v34 = vpack.c.bf16 %v5111_v30, %v5105_v32  ;;  %8428 = vlog2.f32 %v3074_v0  ;;  %v3077_v24 = vmul.f32 -0.5, %v11912_v62  ;;  %vm1085_vm1 = vcmp.gt.f32.partialorder %v11836_v45, 20.0 }
 0x290   : > { %vm11926_vm2 = vcmp.lt.f32.partialorder %v3035_v26, 0.0004427343  ;;  %8430 = vlog2.f32 %v3083_v53  ;;  %v3087_v39 = vadd.f32 1.0, %v3086_v2  ;;  %v3025_v58 = vmul.f32 %v8409_v12, %v3024_v47  ;;  %v6683_v12 = vpop.f32.mrb[29].mxu1 }
 0x291   : > { %6815 = vmatprep.subr.bf16.mxu1 %v5351_v34  ;;  %v3034_v31 = vmul.f32 %v8411_v28, %v3033_v14  ;;  %vm11930_vm3 = vcmp.lt.f32.partialorder %v3026_v33, 0.0004427343  ;;  %v3078_v1 = vadd.f32 1.0, %v3077_v24  ;;  %v3080_v38 = vand.u32 2147483647, %v11912_v62  ;;  %v11946_v27 = vpop.f32.mrb[30].mxu1 }
 0x292   : > { %6816 = vmatpush1.bf16.xpose.msra.mxu1 %v5350_v41  ;;  %v8417_v9 = vpop.eup %8416  ;;  %vm11935_vm4 = vcmp.lt.f32.partialorder %v3089_v63, 0.0004427343  ;;  %vm1090_vm5 = vcmp.gt.f32.partialorder %v11843_v23, 20.0  ;;  %v11940_v37 = vunpack.c.h.bf16 %v612_v3  ;;  %v1384_v56 = vmin.f32 %v11917_v15, 20.0  ;;  %v6686_v4 = vpop.f32.mrb[31].mxu1 }
 0x293   : > { %v8419_v42 = vpop.eup %8418  ;;  %v3866_v22 = vadd.f32 1.0, %v8417_v9  ;;  %v3869_v19 = vmul.f32 -0.5, %v8417_v9  ;;  %vm1091_vm6 = vcmp.gt.f32.partialorder %v11845_v25, 20.0  ;;  %v3088_v46 = vmul.f32 %v8415_v18, %v3087_v39 }
 0x294   : > { %v8421_v10 = vpop.eup %8420  ;;  %v3875_v5 = vadd.f32 1.0, %v8419_v42  ;;  %v3878_v43 = vmul.f32 -0.5, %v8419_v42  ;;  %v3881_v60 = vand.u32 2147483647, %v8419_v42  ;;  %v3872_v28 = vand.u32 2147483647, %v8417_v9 }
 0x295   : > { %v8423_v54 = vpop.eup %8422  ;;  %8432 = vlog2.f32 %v3866_v22  ;;  %v3870_v32 = vadd.f32 1.0, %v3869_v19  ;;  %v3920_v21 = vadd.f32 1.0, %v8421_v10  ;;  %vm11948_vm7 = vcmp.lt.f32.partialorder %v3080_v38, 0.0004427343 }
 0x296   : > { %8434 = vlog2.f32 %v3875_v5  ;;  %v3879_v55 = vadd.f32 1.0, %v3878_v43  ;;  %v3929_v30 = vadd.f32 1.0, %v8423_v54  ;;  %v8425_v13 = vpop.eup %8424  ;;  %v3932_v44 = vmul.f32 -0.5, %v8423_v54 }
 0x297   : > { %v3935_v18 = vand.u32 2147483647, %v8423_v54  ;;  %v3079_v26 = vmul.f32 %v11912_v62, %v3078_v1  ;;  %v3871_v47 = vmul.f32 %v8417_v9, %v3870_v32  ;;  %v8427_v0 = vpop.eup %8426  ;;  %vm11953_vm8 = vcmp.lt.f32.partialorder %v3881_v60, 0.0004427343 }
 0x298   : > { %8436 = vlog2.f32 %v3929_v30  ;;  %v3022_v34 = vmul.f32 0.6931472, %v8425_v13  ;;  %vm1178_vm9 = vcmp.gt.f32.partialorder %v11873_v40, 20.0  ;;  %vm11958_vm10 = vcmp.lt.f32.partialorder %v3872_v28, 0.0004427343  ;;  %v656_v28 = vld [vmem:[%s9702_s23 + $0x330] sm:$0xff] }
 0x299   : > { %v3923_v33 = vmul.f32 -0.5, %v8421_v10  ;;  %v3031_v53 = vmul.f32 0.6931472, %v8427_v0  ;;  %vm1179_vm11 = vcmp.gt.f32.partialorder %v11875_v17, 20.0  ;;  %v3880_v2 = vmul.f32 %v8419_v42, %v3879_v55  ;;  %v8429_v63 = vpop.eup %8428 }
 0x29a   : > { %v3933_v62 = vadd.f32 1.0, %v3932_v44  ;;  %8438 = vlog2.f32 %v3920_v21  ;;  %vm11963_vm12 = vcmp.lt.f32.partialorder %v3935_v18, 0.0004427343  ;;  %v3028_v39 = vsel %vm11930_vm3, %v3025_v58, %v3022_v34  ;;  %v8431_v38 = vpop.eup %8430 }
 0x29b   : > { %v3924_v9 = vadd.f32 1.0, %v3923_v33  ;;  %v3926_v1 = vand.u32 2147483647, %v8421_v10  ;;  %v3037_v22 = vsel %vm11926_vm2, %v3034_v31, %v3031_v53  ;;  %vm1185_vm13 = vcmp.gt.f32.partialorder %v11887_v36, 20.0  ;;  %v659_v53 = vld [vmem:[%s9702_s23 + $0x348] sm:$0xff] }
 0x29c   : > { %v3934_v42 = vmul.f32 %v8423_v54, %v3933_v62  ;;  %v3076_v19 = vmul.f32 0.6931472, %v8429_v63  ;;  %v4828_v5 = vsel %vm1084_vm0, %v11808_v52, %v3028_v39  ;;  %v3085_v43 = vmul.f32 0.6931472, %v8431_v38 }
 0x29d   : > { %v4829_v58 = vsel %vm1085_vm1, %v11836_v45, %v3037_v22  ;;  %v5116_v57 = vmul.f32 %v4828_v5, %v4828_v5  ;;  %v3925_v60 = vmul.f32 %v8421_v10, %v3924_v9  ;;  %vm11980_vm14 = vcmp.lt.f32.partialorder %v3926_v1, 0.0004427343 }
 0x29e   : > { %v5117_v12 = vmul.f32 %v4829_v58, %v4829_v58  ;;  %v3082_v50 = vsel %vm11948_vm7, %v3079_v26, %v3076_v19  ;;  %v1385_v54 = vmin.f32 %v11921_v35, 20.0  ;;  %v3091_v52 = vsel %vm11935_vm4, %v3088_v46, %v3085_v43 }
 0x29f   : > { %v4834_v32 = vsel %vm1090_vm5, %v11843_v23, %v3082_v50  ;;  %v1390_v45 = vmin.f32 %v11923_v7, 20.0  ;;  %v1391_v10 = vmin.f32 %v11940_v37, 20.0  ;;  %v8433_v21 = vpop.eup %8432  ;;  %v4835_v55 = vsel %vm1091_vm6, %v11845_v25, %v3091_v52 }
 0x2a0   : > { %v5122_v30 = vmul.f32 %v4834_v32, %v4834_v32  ;;  %v1782_v8 = vmul.f32 1.442695, %v1384_v56  ;;  %v1784_v46 = vmul.f32 1.442695, %v1385_v54  ;;  %v8435_v41 = vpop.eup %8434  ;;  %v5123_v4 = vmul.f32 %v4835_v55, %v4835_v55 }
 0x2a1   : > { %v3868_v13 = vmul.f32 0.6931472, %v8433_v21  ;;  %v1794_v23 = vmul.f32 1.442695, %v1390_v45  ;;  %v1796_v44 = vmul.f32 1.442695, %v1391_v10  ;;  %v11998_v0 = vunpack.c.l.bf16 %v656_v28 }
 0x2a2   : > { %v3877_v18 = vmul.f32 0.6931472, %v8435_v41  ;;  %v5356_v26 = vpack.c.bf16 %v5122_v30, %v5116_v57  ;;  %8440 = vpow2.f32 %v1782_v8  ;;  %v8437_v34 = vpop.eup %8436  ;;  %v5357_v33 = vpack.c.bf16 %v5123_v4, %v5117_v12  ;;  %v615_v41 = vld [vmem:[%s9702_s23 + $0x1e8] sm:$0xff] }
 0x2a3   : > { %v3874_v25 = vsel %vm11958_vm10, %v3871_v47, %v3868_v13  ;;  %8442 = vpow2.f32 %v1784_v46  ;;  %v12003_v62 = vunpack.c.h.bf16 %v656_v28  ;;  %v3931_v39 = vmul.f32 0.6931472, %v8437_v34 }
 0x2a4   : > { %v8439_v56 = vpop.eup %8438  ;;  %v3883_v63 = vsel %vm11953_vm8, %v3880_v2, %v3877_v18  ;;  %v4922_v9 = vsel %vm1178_vm9, %v11873_v40, %v3874_v25  ;;  %8444 = vpow2.f32 %v1794_v23  ;;  %6817 = vmatprep.subr.bf16.mxu1 %v5357_v33  ;;  %vm1184_vm15 = vcmp.gt.f32.partialorder %v11879_v59, 20.0 }
 0x2a5   : > { %v4923_v14 = vsel %vm1179_vm11, %v11875_v17, %v3883_v63  ;;  %v3922_v47 = vmul.f32 0.6931472, %v8439_v56  ;;  %8446 = vpow2.f32 %v1796_v44  ;;  %v3937_v1 = vsel %vm11963_vm12, %v3934_v42, %v3931_v39  ;;  %6818 = vmatpush1.bf16.xpose.msra.mxu1 %v5356_v26  ;;  %v618_v26 = vld [vmem:[%s9702_s23 + $0x200] sm:$0xff] }
 0x2a6   : > { %v5211_v3 = vmul.f32 %v4923_v14, %v4923_v14  ;;  %v12016_v2 = vunpack.c.l.bf16 %v659_v53  ;;  %v12018_v38 = vunpack.c.h.bf16 %v659_v53  ;;  %v4929_v40 = vsel %vm1185_vm13, %v11887_v36, %v3937_v1  ;;  %v12049_v1 = vpop.f32.mrb[32].mxu1 }
 0x2a7   : > { %v3928_v17 = vsel %vm11980_vm14, %v3925_v60, %v3922_v47  ;;  %v5210_v22 = vmul.f32 %v4922_v9, %v4922_v9  ;;  %v1478_v19 = vmin.f32 %v11998_v0, 20.0  ;;  %v5217_v5 = vmul.f32 %v4929_v40, %v4929_v40 }
 0x2a8   : > { %v4928_v24 = vsel %vm1184_vm15, %v11879_v59, %v3928_v17  ;;  %v1479_v42 = vmin.f32 %v12003_v62, 20.0  ;;  %v1484_v58 = vmin.f32 %v12016_v2, 20.0  ;;  %v1485_v57 = vmin.f32 %v12018_v38, 20.0 }
 0x2a9   : > { %v5216_v43 = vmul.f32 %v4928_v24, %v4928_v24  ;;  %v1970_v12 = vmul.f32 1.442695, %v1478_v19  ;;  %v5403_v50 = vpack.c.bf16 %v5217_v5, %v5211_v3  ;;  %v12032_v25 = vunpack.c.l.bf16 %v615_v41  ;;  %v6691_v5 = vpop.f32.mrb[33].mxu1 }
 0x2aa   : > { %v1972_v54 = vmul.f32 1.442695, %v1479_v42  ;;  %v1982_v31 = vmul.f32 1.442695, %v1484_v58  ;;  %v1984_v60 = vmul.f32 1.442695, %v1485_v57  ;;  %v12045_v14 = vunpack.c.h.bf16 %v615_v41 }
 0x2ab   : > { %v5402_v36 = vpack.c.bf16 %v5216_v43, %v5210_v22  ;;  %8448 = vpow2.f32 %v1970_v12  ;;  %6923 = vmatprep.subr.bf16.mxu0 %v5403_v50  ;;  %vm1097_vm0 = vcmp.gt.f32.partialorder %v11921_v35, 20.0  ;;  %vm1096_vm2 = vcmp.gt.f32.partialorder %v11917_v15, 20.0  ;;  %v6692_v12 = vpop.f32.mrb[34].mxu1 }
 0x2ac   : > { %v8441_v52 = vpop.eup %8440  ;;  %8450 = vpow2.f32 %v1972_v54  ;;  %vm1102_vm4 = vcmp.gt.f32.partialorder %v11923_v7, 20.0  ;;  %v12047_v47 = vunpack.c.l.bf16 %v618_v26  ;;  %vm1103_vm5 = vcmp.gt.f32.partialorder %v11940_v37, 20.0 }
 0x2ad   : > { %v8443_v32 = vpop.eup %8442  ;;  %6924 = vmatpush1.bf16.xpose.msra.mxu0 %v5402_v36  ;;  %8452 = vpow2.f32 %v1982_v31  ;;  %v3128_v59 = vadd.f32 1.0, %v8441_v52  ;;  %v3131_v45 = vmul.f32 -0.5, %v8441_v52  ;;  %v3134_v8 = vand.u32 2147483647, %v8441_v52 }
 0x2ae   : > { %v8445_v10 = vpop.eup %8444  ;;  %v3137_v28 = vadd.f32 1.0, %v8443_v32  ;;  %v3140_v21 = vmul.f32 -0.5, %v8443_v32  ;;  %8454 = vpow2.f32 %v1984_v60  ;;  %v3143_v30 = vand.u32 2147483647, %v8443_v32 }
 0x2af   : > { %v8447_v55 = vpop.eup %8446  ;;  %8456 = vlog2.f32 %v3128_v59  ;;  %v3182_v46 = vadd.f32 1.0, %v8445_v10  ;;  %v3132_v23 = vadd.f32 1.0, %v3131_v45  ;;  %v3185_v34 = vmul.f32 -0.5, %v8445_v10 }
 0x2b0   : > { %8458 = vlog2.f32 %v3137_v28  ;;  %v3141_v4 = vadd.f32 1.0, %v3140_v21  ;;  %v3191_v13 = vadd.f32 1.0, %v8447_v55  ;;  %v3194_v44 = vmul.f32 -0.5, %v8447_v55  ;;  %v6693_v28 = vpop.f32.mrb[35].mxu1 }
 0x2b1   : > { %v3197_v18 = vand.u32 2147483647, %v8447_v55  ;;  %8460 = vlog2.f32 %v3182_v46  ;;  %v3188_v33 = vand.u32 2147483647, %v8445_v10  ;;  %vm12035_vm1 = vcmp.lt.f32.partialorder %v3143_v30, 0.0004427343 }
 0x2b2   : > { %8462 = vlog2.f32 %v3191_v13  ;;  %v3195_v56 = vadd.f32 1.0, %v3194_v44  ;;  %vm12040_vm3 = vcmp.lt.f32.partialorder %v3134_v8, 0.0004427343  ;;  %v3142_v39 = vmul.f32 %v8443_v32, %v3141_v4 }
 0x2b3   : > { %v3133_v9 = vmul.f32 %v8441_v52, %v3132_v23  ;;  %vm12052_vm6 = vcmp.lt.f32.partialorder %v3197_v18, 0.0004427343  ;;  %v3186_v17 = vadd.f32 1.0, %v3185_v34  ;;  %vm12056_vm7 = vcmp.lt.f32.partialorder %v3188_v33, 0.0004427343 }
 0x2b4   : > { %v12060_v19 = vunpack.c.h.bf16 %v618_v26  ;;  %v1396_v57 = vmin.f32 %v12032_v25, 20.0  ;;  %v3196_v54 = vmul.f32 %v8447_v55, %v3195_v56  ;;  %v1397_v59 = vmin.f32 %v12045_v14, 20.0 }
 0x2b5   : > { %v8449_v3 = vpop.eup %8448  ;;  %v1402_v45 = vmin.f32 %v12047_v47, 20.0  ;;  %v3187_v8 = vmul.f32 %v8445_v10, %v3186_v17  ;;  %vm1191_vm10 = vcmp.gt.f32.partialorder %v12003_v62, 20.0  ;;  %vm1190_vm11 = vcmp.gt.f32.partialorder %v11998_v0, 20.0 }
 0x2b6   : > { %v8451_v24 = vpop.eup %8450  ;;  %v3974_v42 = vadd.f32 1.0, %v8449_v3  ;;  %v3977_v43 = vmul.f32 -0.5, %v8449_v3  ;;  %v3980_v58 = vand.u32 2147483647, %v8449_v3  ;;  %vm1197_vm12 = vcmp.gt.f32.partialorder %v12018_v38, 20.0 }
 0x2b7   : > { %v12063_v50 = vpop.eup %8452  ;;  %v3983_v36 = vadd.f32 1.0, %v8451_v24  ;;  %v3986_v31 = vmul.f32 -0.5, %v8451_v24  ;;  %v3989_v60 = vand.u32 2147483647, %v8451_v24  ;;  %v1806_v28 = vmul.f32 1.442695, %v1396_v57 }
 0x2b8   : > { %v8455_v52 = vpop.eup %8454  ;;  %8464 = vlog2.f32 %v3974_v42  ;;  %v3978_v32 = vadd.f32 1.0, %v3977_v43  ;;  %v4028_v46 = vadd.f32 1.0, %v12063_v50  ;;  %vm12068_vm8 = vcmp.lt.f32.partialorder %v3980_v58, 0.0004427343 }
 0x2b9   : > { %v8457_v21 = vpop.eup %8456  ;;  %8466 = vlog2.f32 %v3983_v36  ;;  %v4037_v30 = vadd.f32 1.0, %v8455_v52  ;;  %v3987_v4 = vadd.f32 1.0, %v3986_v31  ;;  %v4040_v55 = vmul.f32 -0.5, %v8455_v52 }
 0x2ba   : > { %v8459_v41 = vpop.eup %8458  ;;  %v3130_v13 = vmul.f32 0.6931472, %v8457_v21  ;;  %vm12072_vm9 = vcmp.lt.f32.partialorder %v3989_v60, 0.0004427343  ;;  %v4043_v34 = vand.u32 2147483647, %v8455_v52  ;;  %v3979_v33 = vmul.f32 %v8449_v3, %v3978_v32 }
 0x2bb   : > { %v8461_v44 = vpop.eup %8460  ;;  %v3139_v18 = vmul.f32 0.6931472, %v8459_v41  ;;  %8468 = vlog2.f32 %v4037_v30  ;;  %v4041_v56 = vadd.f32 1.0, %v4040_v55  ;;  %v4031_v42 = vmul.f32 -0.5, %v12063_v50  ;;  %v662_v32 = vld [vmem:[%s9702_s23 + $0x360] sm:$0xff]  ;;  %v665_v30 = vld [vmem:[%s9702_s23 + $0x378] sm:$0xff] }
 0x2bc   : > { %v8463_v10 = vpop.eup %8462  ;;  %v3136_v17 = vsel %vm12040_vm3, %v3133_v9, %v3130_v13  ;;  %v3184_v5 = vmul.f32 0.6931472, %v8461_v44  ;;  %8470 = vlog2.f32 %v4028_v46  ;;  %v3988_v9 = vmul.f32 %v8451_v24, %v3987_v4 }
 0x2bd   : > { %v3145_v43 = vsel %vm12035_vm1, %v3142_v39, %v3139_v18  ;;  %v3193_v58 = vmul.f32 0.6931472, %v8463_v10  ;;  %v4840_v3 = vsel %vm1096_vm2, %v11917_v15, %v3136_v17  ;;  %vm12094_vm13 = vcmp.lt.f32.partialorder %v4043_v34, 0.0004427343 }
 0x2be   : > { %v4841_v63 = vsel %vm1097_vm0, %v11921_v35, %v3145_v43  ;;  %v3190_v12 = vsel %vm12056_vm7, %v3187_v8, %v3184_v5  ;;  %v5128_v53 = vmul.f32 %v4840_v3, %v4840_v3  ;;  %v4042_v22 = vmul.f32 %v8455_v52, %v4041_v56 }
 0x2bf   : > { %v3199_v39 = vsel %vm12052_vm6, %v3196_v54, %v3193_v58  ;;  %v5129_v36 = vmul.f32 %v4841_v63, %v4841_v63  ;;  %v4846_v15 = vsel %vm1102_vm4, %v11923_v7, %v3190_v12  ;;  %v1403_v60 = vmin.f32 %v12060_v19, 20.0 }
 0x2c0   : > { %v4847_v35 = vsel %vm1103_vm5, %v11940_v37, %v3199_v39  ;;  %v5134_v24 = vmul.f32 %v4846_v15, %v4846_v15  ;;  %v4032_v54 = vadd.f32 1.0, %v4031_v42  ;;  %v1808_v21 = vmul.f32 1.442695, %v1397_v59 }
 0x2c1   : > { %v5135_v40 = vmul.f32 %v4847_v35, %v4847_v35  ;;  %v4034_v41 = vand.u32 2147483647, %v12063_v50  ;;  %v1818_v4 = vmul.f32 1.442695, %v1402_v45  ;;  %v1820_v7 = vmul.f32 1.442695, %v1403_v60 }
 0x2c2   : > { %v8465_v8 = vpop.eup %8464  ;;  %v5362_v46 = vpack.c.bf16 %v5134_v24, %v5128_v53  ;;  %8472 = vpow2.f32 %v1806_v28  ;;  %v12108_v37 = vunpack.c.l.bf16 %v662_v32  ;;  %v12110_v18 = vunpack.c.h.bf16 %v662_v32 }
 0x2c3   : > { %v8467_v55 = vpop.eup %8466  ;;  %v5363_v13 = vpack.c.bf16 %v5135_v40, %v5129_v36  ;;  %v3976_v44 = vmul.f32 0.6931472, %v8465_v8  ;;  %8474 = vpow2.f32 %v1808_v21  ;;  %v12112_v34 = vunpack.c.l.bf16 %v665_v30 }
 0x2c4   : > { %v3985_v52 = vmul.f32 0.6931472, %v8467_v55  ;;  %8476 = vpow2.f32 %v1818_v4  ;;  %v12116_v45 = vunpack.c.h.bf16 %v665_v30  ;;  %v1490_v10 = vmin.f32 %v12108_v37, 20.0 }
 0x2c5   : > { %v8469_v57 = vpop.eup %8468  ;;  %6819 = vmatprep.subr.bf16.mxu1 %v5363_v13  ;;  %v3982_v59 = vsel %vm12068_vm8, %v3979_v33, %v3976_v44  ;;  %v4033_v5 = vmul.f32 %v12063_v50, %v4032_v54  ;;  %8478 = vpow2.f32 %v1820_v7  ;;  %vm1196_vm14 = vcmp.gt.f32.partialorder %v12016_v2, 20.0 }
 0x2c6   : > { %v3991_v56 = vsel %vm12072_vm9, %v3988_v9, %v3985_v52  ;;  %v4039_v17 = vmul.f32 0.6931472, %v8469_v57  ;;  %6820 = vmatpush1.bf16.xpose.msra.mxu1 %v5362_v46  ;;  %v8471_v42 = vpop.eup %8470  ;;  %vm4035_vm15 = vcmp.lt.f32.partialorder %v4034_v41, 0.0004427343  ;;  %v4934_v23 = vsel %vm1190_vm11, %v11998_v0, %v3982_v59 }
 0x2c7   : > { %v4935_v43 = vsel %vm1191_vm10, %v12003_v62, %v3991_v56  ;;  %v4030_v58 = vmul.f32 0.6931472, %v8471_v42  ;;  %v1491_v50 = vmin.f32 %v12110_v18, 20.0  ;;  %v1496_v62 = vmin.f32 %v12112_v34, 20.0  ;;  %v5533_v42 = vld [vmem:[#allocation11 + $0x28] sm:$0xff] }
 0x2c8   : > { %v4045_v26 = vsel %vm12094_vm13, %v4042_v22, %v4039_v17  ;;  %v5223_v33 = vmul.f32 %v4935_v43, %v4935_v43  ;;  %v1497_v63 = vmin.f32 %v12116_v45, 20.0  ;;  %v1994_v9 = vmul.f32 1.442695, %v1490_v10 }
 0x2c9   : > { %v4941_v3 = vsel %vm1197_vm12, %v12018_v38, %v4045_v26  ;;  %v4036_v53 = vsel %vm4035_vm15, %v4033_v5, %v4030_v58  ;;  %v5222_v39 = vmul.f32 %v4934_v23, %v4934_v23  ;;  %v1996_v0 = vmul.f32 1.442695, %v1491_v50  ;;  %v621_v50 = vld [vmem:[%s9702_s23 + $0x218] sm:$0xff] }
 0x2ca   : > { %v5229_v12 = vmul.f32 %v4941_v3, %v4941_v3  ;;  %v4940_v36 = vsel %vm1196_vm14, %v12016_v2, %v4036_v53  ;;  %8480 = vpow2.f32 %v1994_v9  ;;  %v2006_v31 = vmul.f32 1.442695, %v1496_v62 }
 0x2cb   : > { %v2008_v15 = vmul.f32 1.442695, %v1497_v63  ;;  %v5228_v22 = vmul.f32 %v4940_v36, %v4940_v36  ;;  %8482 = vpow2.f32 %v1996_v0  ;;  %v6674_v38 = vadd.f32 %v11802_v16, %v11515_v11  ;;  %v5530_v16 = vld [vmem:[#allocation11 + $0x10] sm:$0xff] }
 0x2cc   : > { %v5409_v35 = vpack.c.bf16 %v5229_v12, %v5223_v33  ;;  %v8473_v24 = vpop.eup %8472  ;;  %8484 = vpow2.f32 %v2006_v31  ;;  %vm1108_vm1 = vcmp.gt.f32.partialorder %v12032_v25, 20.0  ;;  %vm1109_vm2 = vcmp.gt.f32.partialorder %v12045_v14, 20.0 }
 0x2cd   : > { %v8475_v60 = vpop.eup %8474  ;;  %v5408_v32 = vpack.c.bf16 %v5228_v22, %v5222_v39  ;;  %8486 = vpow2.f32 %v2008_v15  ;;  %v3236_v40 = vadd.f32 1.0, %v8473_v24  ;;  %v3239_v54 = vmul.f32 -0.5, %v8473_v24 }
 0x2ce   : > { %6925 = vmatprep.subr.bf16.mxu0 %v5409_v35  ;;  %v8477_v28 = vpop.eup %8476  ;;  %v3245_v21 = vadd.f32 1.0, %v8475_v60  ;;  %v3248_v2 = vmul.f32 -0.5, %v8475_v60  ;;  %v3251_v30 = vand.u32 2147483647, %v8475_v60  ;;  %v3242_v8 = vand.u32 2147483647, %v8473_v24 }
 0x2cf   : > { %v8479_v46 = vpop.eup %8478  ;;  %6926 = vmatpush1.bf16.xpose.msra.mxu0 %v5408_v32  ;;  %8488 = vlog2.f32 %v3236_v40  ;;  %v3240_v41 = vadd.f32 1.0, %v3239_v54  ;;  %v3290_v4 = vadd.f32 1.0, %v8477_v28  ;;  %v3293_v7 = vmul.f32 -0.5, %v8477_v28 }
 0x2d0   : > { %8490 = vlog2.f32 %v3245_v21  ;;  %v3249_v55 = vadd.f32 1.0, %v3248_v2  ;;  %v3299_v11 = vadd.f32 1.0, %v8479_v46  ;;  %v3302_v13 = vmul.f32 -0.5, %v8479_v46 }
 0x2d1   : > { %v3305_v44 = vand.u32 2147483647, %v8479_v46  ;;  %vm12140_vm0 = vcmp.lt.f32.partialorder %v3251_v30, 0.0004427343  ;;  %v12145_v57 = vmul.f32 %v8473_v24, %v3240_v41  ;;  %v3294_v59 = vadd.f32 1.0, %v3293_v7  ;;  %v624_v7 = vld [vmem:[%s9702_s23 + $0x230] sm:$0xff] }
 0x2d2   : > { %8492 = vlog2.f32 %v3299_v11  ;;  %v3296_v10 = vand.u32 2147483647, %v8477_v28  ;;  %v12148_v56 = vmul.f32 %v8475_v60, %v3249_v55  ;;  %vm12150_vm3 = vcmp.lt.f32.partialorder %v3242_v8, 0.0004427343 }
 0x2d3   : > { %8494 = vlog2.f32 %v3290_v4  ;;  %v6697_v5 = vadd.f32 %v6674_v38, %v5530_v16  ;;  %v3303_v23 = vadd.f32 1.0, %v3302_v13  ;;  %vm12154_vm4 = vcmp.lt.f32.partialorder %v3305_v44, 0.0004427343 }
 0x2d4   : > { %v8481_v43 = vpop.eup %8480  ;;  %v12158_v33 = vmul.f32 %v8477_v28, %v3294_v59  ;;  %v6677_v58 = vadd.f32 %v11810_v20, %v11523_v6  ;;  %vm1115_vm5 = vcmp.gt.f32.partialorder %v12060_v19, 20.0  ;;  %vm12164_vm6 = vcmp.lt.f32.partialorder %v3296_v10, 0.0004427343 }
 0x2d5   : > { %v8483_v3 = vpop.eup %8482  ;;  %v4082_v63 = vadd.f32 1.0, %v8481_v43  ;;  %v4085_v9 = vmul.f32 -0.5, %v8481_v43  ;;  %v4088_v12 = vand.u32 2147483647, %v8481_v43  ;;  %6712 = vst [vmem:[#allocation11 + $0x10] sm:$0xff] %v6697_v5  ;;  %vm1114_vm7 = vcmp.gt.f32.partialorder %v12047_v47, 20.0 }
 0x2d6   : > { %v8485_v53 = vpop.eup %8484  ;;  %v4091_v39 = vadd.f32 1.0, %v8483_v3  ;;  %v4094_v0 = vmul.f32 -0.5, %v8483_v3  ;;  %v4097_v36 = vand.u32 2147483647, %v8483_v3  ;;  %v6700_v31 = vadd.f32 %v6677_v58, %v5533_v42 }
 0x2d7   : > { %v8487_v6 = vpop.eup %8486  ;;  %8496 = vlog2.f32 %v4082_v63  ;;  %v4086_v20 = vadd.f32 1.0, %v4085_v9  ;;  %v4136_v15 = vadd.f32 1.0, %v8485_v53  ;;  %v12169_v35 = vunpack.c.l.bf16 %v621_v50 }
 0x2d8   : > { %v3304_v22 = vmul.f32 %v8479_v46, %v3303_v23  ;;  %8498 = vlog2.f32 %v4091_v39  ;;  %v4095_v24 = vadd.f32 1.0, %v4094_v0  ;;  %v4145_v38 = vadd.f32 1.0, %v8487_v6  ;;  %6715 = vst [vmem:[#allocation11 + $0x28] sm:$0xff] %v6700_v31 }
 0x2d9   : > { %v8489_v60 = vpop.eup %8488  ;;  %v4148_v32 = vmul.f32 -0.5, %v8487_v6  ;;  %v4151_v40 = vand.u32 2147483647, %v8487_v6  ;;  %vm12171_vm8 = vcmp.lt.f32.partialorder %v4088_v12, 0.0004427343  ;;  %8500 = vlog2.f32 %v4136_v15 }
 0x2da   : > { %v8491_v28 = vpop.eup %8490  ;;  %vm12175_vm9 = vcmp.lt.f32.partialorder %v4097_v36, 0.0004427343  ;;  %8502 = vlog2.f32 %v4145_v38  ;;  %v3238_v2 = vmul.f32 0.6931472, %v8489_v60  ;;  %vm1202_vm10 = vcmp.gt.f32.partialorder %v12108_v37, 20.0 }
 0x2db   : > { %v4139_v30 = vmul.f32 -0.5, %v8485_v53  ;;  %v3247_v8 = vmul.f32 0.6931472, %v8491_v28  ;;  %vm1203_vm11 = vcmp.gt.f32.partialorder %v12110_v18, 20.0  ;;  %v4096_v46 = vmul.f32 %v8483_v3, %v4095_v24 }
 0x2dc   : > { %v4149_v41 = vadd.f32 1.0, %v4148_v32  ;;  %v4087_v4 = vmul.f32 %v8481_v43, %v4086_v20  ;;  %v8493_v55 = vpop.eup %8492  ;;  %vm12182_vm12 = vcmp.lt.f32.partialorder %v4151_v40, 0.0004427343  ;;  %v3244_v16 = vsel %vm12150_vm3, %v12145_v57, %v3238_v2 }
 0x2dd   : > { %vm1208_vm13 = vcmp.gt.f32.partialorder %v12112_v34, 20.0  ;;  %v4140_v13 = vadd.f32 1.0, %v4139_v30  ;;  %v12190_v44 = vunpack.c.h.bf16 %v621_v50  ;;  %v8495_v59 = vpop.eup %8494  ;;  %v3253_v10 = vsel %vm12140_vm0, %v12148_v56, %v3247_v8  ;;  %v668_v8 = vld [vmem:[%s9702_s23 + $0x390] sm:$0xff] }
 0x2de   : > { %v3301_v5 = vmul.f32 0.6931472, %v8493_v55  ;;  %vm1209_vm14 = vcmp.gt.f32.partialorder %v12116_v45, 20.0  ;;  %v4852_v42 = vsel %vm1108_vm1, %v12032_v25, %v3244_v16  ;;  %v4142_v43 = vand.u32 2147483647, %v8485_v53 }
 0x2df   : > { %v4853_v57 = vsel %vm1109_vm2, %v12045_v14, %v3253_v10  ;;  %v4150_v17 = vmul.f32 %v8487_v6, %v4149_v41  ;;  %v3292_v23 = vmul.f32 0.6931472, %v8495_v59  ;;  %v12202_v58 = vunpack.c.l.bf16 %v624_v7 }
 0x2e0   : > { %v3307_v52 = vsel %vm12154_vm4, %v3304_v22, %v3301_v5  ;;  %v5141_v56 = vmul.f32 %v4853_v57, %v4853_v57  ;;  %v5140_v50 = vmul.f32 %v4852_v42, %v4852_v42  ;;  %v12206_v3 = vunpack.c.h.bf16 %v624_v7  ;;  %v671_v7 = vld [vmem:[%s9702_s23 + $0x3a8] sm:$0xff] }
 0x2e1   : > { %v4859_v25 = vsel %vm1115_vm5, %v12060_v19, %v3307_v52  ;;  %v3298_v63 = vsel %vm12164_vm6, %v12158_v33, %v3292_v23  ;;  %v4141_v14 = vmul.f32 %v8485_v53, %v4140_v13  ;;  %v1408_v9 = vmin.f32 %v12169_v35, 20.0  ;;  %v8497_v12 = vpop.eup %8496  ;;  %v5536_v52 = vld [vmem:[#allocation11 + $0x40] sm:$0xff] }
 0x2e2   : > { %v5147_v39 = vmul.f32 %v4859_v25, %v4859_v25  ;;  %v4858_v26 = vsel %vm1114_vm7, %v12047_v47, %v3298_v63  ;;  %vm12218_vm15 = vcmp.lt.f32.partialorder %v4142_v43, 0.0004427343  ;;  %v1409_v36 = vmin.f32 %v12190_v44, 20.0  ;;  %v8499_v19 = vpop.eup %8498 }
 0x2e3   : > { %v5146_v31 = vmul.f32 %v4858_v26, %v4858_v26  ;;  %v4084_v6 = vmul.f32 0.6931472, %v8497_v12  ;;  %v1414_v33 = vmin.f32 %v12202_v58, 20.0  ;;  %v1415_v62 = vmin.f32 %v12206_v3, 20.0  ;;  %v8501_v53 = vpop.eup %8500 }
 0x2e4   : > { %v5369_v20 = vpack.c.bf16 %v5147_v39, %v5141_v56  ;;  %v4093_v15 = vmul.f32 0.6931472, %v8499_v19  ;;  %v1830_v22 = vmul.f32 1.442695, %v1408_v9  ;;  %v1832_v24 = vmul.f32 1.442695, %v1409_v36  ;;  %v8503_v47 = vpop.eup %8502 }
 0x2e5   : > { %v5368_v38 = vpack.c.bf16 %v5146_v31, %v5140_v50  ;;  %v4090_v60 = vsel %vm12171_vm8, %v4087_v4, %v4084_v6  ;;  %v4138_v32 = vmul.f32 0.6931472, %v8501_v53  ;;  %v1842_v40 = vmul.f32 1.442695, %v1414_v33 }
 0x2e6   : > { %6821 = vmatprep.subr.bf16.mxu1 %v5369_v20  ;;  %v4099_v28 = vsel %vm12175_vm9, %v4096_v46, %v4093_v15  ;;  %v4147_v2 = vmul.f32 0.6931472, %v8503_v47  ;;  %v4946_v30 = vsel %vm1202_vm10, %v12108_v37, %v4090_v60  ;;  %8504 = vpow2.f32 %v1830_v22  ;;  %v630_v60 = vld [vmem:[%s9702_s23 + $0x260] sm:$0xff] }
 0x2e7   : > { %v4947_v41 = vsel %vm1203_vm11, %v12110_v18, %v4099_v28  ;;  %6822 = vmatpush1.bf16.xpose.msra.mxu1 %v5368_v38  ;;  %v4144_v54 = vsel %vm12218_vm15, %v4141_v14, %v4138_v32  ;;  %v5234_v4 = vmul.f32 %v4946_v30, %v4946_v30  ;;  %8506 = vpow2.f32 %v1832_v24 }
 0x2e8   : > { %v4153_v21 = vsel %vm12182_vm12, %v4150_v17, %v4147_v2  ;;  %v5235_v46 = vmul.f32 %v4947_v41, %v4947_v41  ;;  %v4952_v37 = vsel %vm1208_vm13, %v12112_v34, %v4144_v54  ;;  %8508 = vpow2.f32 %v1842_v40 }
 0x2e9   : > { %v4953_v18 = vsel %vm1209_vm14, %v12116_v45, %v4153_v21  ;;  %v5240_v55 = vmul.f32 %v4952_v37, %v4952_v37  ;;  %v1844_v16 = vmul.f32 1.442695, %v1415_v62  ;;  %v12247_v13 = vunpack.c.l.bf16 %v668_v8  ;;  %v627_v62 = vld [vmem:[%s9702_s23 + $0x248] sm:$0xff] }
 0x2ea   : > { %v5241_v59 = vmul.f32 %v4953_v18, %v4953_v18  ;;  %v12249_v10 = vunpack.c.h.bf16 %v668_v8  ;;  %v12251_v5 = vunpack.c.l.bf16 %v671_v7  ;;  %v12253_v11 = vunpack.c.h.bf16 %v671_v7 }
 0x2eb   : > { %v5414_v42 = vpack.c.bf16 %v5240_v55, %v5234_v4  ;;  %8510 = vpow2.f32 %v1844_v16  ;;  %v1502_v34 = vmin.f32 %v12247_v13, 20.0  ;;  %v6682_v50 = vadd.f32 %v11943_v51, %v11567_v29  ;;  %v5539_v29 = vld [vmem:[#allocation11 + $0x58] sm:$0xff] }
 0x2ec   : > { %v5415_v43 = vpack.c.bf16 %v5241_v59, %v5235_v46  ;;  %v1503_v57 = vmin.f32 %v12249_v10, 20.0  ;;  %v1508_v45 = vmin.f32 %v12251_v5, 20.0  ;;  %v1509_v17 = vmin.f32 %v12253_v11, 20.0 }
 0x2ed   : > { %v2018_v23 = vmul.f32 1.442695, %v1502_v34  ;;  %v6685_v14 = vadd.f32 %v11946_v27, %v11572_v49  ;;  %v6703_v12 = vadd.f32 %v6682_v50, %v5536_v52  ;;  %vm1120_vm0 = vcmp.gt.f32.partialorder %v12169_v35, 20.0 }
 0x2ee   : > { %6927 = vmatprep.subr.bf16.mxu0 %v5415_v43  ;;  %v2020_v56 = vmul.f32 1.442695, %v1503_v57  ;;  %v2030_v25 = vmul.f32 1.442695, %v1508_v45  ;;  %v2032_v63 = vmul.f32 1.442695, %v1509_v17  ;;  %v12271_v28 = vunpack.c.l.bf16 %v627_v62 }
 0x2ef   : > { %6928 = vmatpush1.bf16.xpose.msra.mxu0 %v5414_v42  ;;  %8512 = vpow2.f32 %v2018_v23  ;;  %6718 = vst [vmem:[#allocation11 + $0x40] sm:$0xff] %v6703_v12  ;;  %v6706_v22 = vadd.f32 %v6685_v14, %v5539_v29  ;;  %vm1121_vm1 = vcmp.gt.f32.partialorder %v12190_v44, 20.0  ;;  %v12273_v2 = vunpack.c.h.bf16 %v627_v62 }
 0x2f0   : > { %v8505_v9 = vpop.eup %8504  ;;  %8514 = vpow2.f32 %v2020_v56  ;;  %vm1126_vm4 = vcmp.gt.f32.partialorder %v12202_v58, 20.0  ;;  %v12284_v21 = vunpack.c.l.bf16 %v630_v60  ;;  %v12286_v46 = vunpack.c.h.bf16 %v630_v60 }
 0x2f1   : > { %v8507_v39 = vpop.eup %8506  ;;  %8516 = vpow2.f32 %v2030_v25  ;;  %v3344_v26 = vadd.f32 1.0, %v8505_v9  ;;  %v3347_v0 = vmul.f32 -0.5, %v8505_v9  ;;  %v3350_v51 = vand.u32 2147483647, %v8505_v9  ;;  %6721 = vst [vmem:[#allocation11 + $0x58] sm:$0xff] %v6706_v22 }
 0x2f2   : > { %v8509_v36 = vpop.eup %8508  ;;  %v3353_v19 = vadd.f32 1.0, %v8507_v39  ;;  %v3356_v31 = vmul.f32 -0.5, %v8507_v39  ;;  %8518 = vpow2.f32 %v2032_v63  ;;  %v3359_v49 = vand.u32 2147483647, %v8507_v39 }
 0x2f3   : > { %8520 = vlog2.f32 %v3344_v26  ;;  %v3398_v6 = vadd.f32 1.0, %v8509_v36  ;;  %v3348_v27 = vadd.f32 1.0, %v3347_v0  ;;  %v3401_v33 = vmul.f32 -0.5, %v8509_v36 }
 0x2f4   : > { %8522 = vlog2.f32 %v3353_v19  ;;  %v3357_v20 = vadd.f32 1.0, %v3356_v31  ;;  %v3404_v15 = vand.u32 2147483647, %v8509_v36  ;;  %vm12267_vm2 = vcmp.lt.f32.partialorder %v3350_v51, 0.0004427343 }
 0x2f5   : > { %v8511_v53 = vpop.eup %8510  ;;  %8524 = vlog2.f32 %v3398_v6  ;;  %v3402_v40 = vadd.f32 1.0, %v3401_v33  ;;  %vm12275_vm3 = vcmp.lt.f32.partialorder %v3359_v49, 0.0004427343  ;;  %v3349_v41 = vmul.f32 %v8505_v9, %v3348_v27 }
 0x2f6   : > { %v3407_v24 = vadd.f32 1.0, %v8511_v53  ;;  %v3410_v47 = vmul.f32 -0.5, %v8511_v53  ;;  %v3413_v38 = vand.u32 2147483647, %v8511_v53  ;;  %v3358_v4 = vmul.f32 %v8507_v39, %v3357_v20 }
 0x2f7   : > { %vm12280_vm5 = vcmp.lt.f32.partialorder %v3404_v15, 0.0004427343  ;;  %v3403_v55 = vmul.f32 %v8509_v36, %v3402_v40  ;;  %vm1127_vm7 = vcmp.gt.f32.partialorder %v12206_v3, 20.0  ;;  %v1420_v17 = vmin.f32 %v12271_v28, 20.0 }
 0x2f8   : > { %8526 = vlog2.f32 %v3407_v24  ;;  %v3411_v8 = vadd.f32 1.0, %v3410_v47  ;;  %vm12288_vm6 = vcmp.lt.f32.partialorder %v3413_v38, 0.0004427343  ;;  %v1421_v50 = vmin.f32 %v12273_v2, 20.0 }
 0x2f9   : > { %v8513_v54 = vpop.eup %8512  ;;  %v1426_v19 = vmin.f32 %v12284_v21, 20.0  ;;  %vm1215_vm10 = vcmp.gt.f32.partialorder %v12249_v10, 20.0  ;;  %vm1214_vm11 = vcmp.gt.f32.partialorder %v12247_v13, 20.0  ;;  %vm1221_vm12 = vcmp.gt.f32.partialorder %v12253_v11, 20.0 }
 0x2fa   : > { %v8515_v37 = vpop.eup %8514  ;;  %v4190_v16 = vadd.f32 1.0, %v8513_v54  ;;  %v4193_v59 = vmul.f32 -0.5, %v8513_v54  ;;  %v4196_v42 = vand.u32 2147483647, %v8513_v54  ;;  %v3412_v52 = vmul.f32 %v8511_v53, %v3411_v8  ;;  %v674_v8 = vld [vmem:[%s9702_s23 + $0x3c0] sm:$0xff] }
 0x2fb   : > { %v12292_v34 = vpop.eup %8516  ;;  %v4199_v43 = vadd.f32 1.0, %v8515_v37  ;;  %v4202_v57 = vmul.f32 -0.5, %v8515_v37  ;;  %v4205_v45 = vand.u32 2147483647, %v8515_v37  ;;  %vm1220_vm14 = vcmp.gt.f32.partialorder %v12251_v5, 20.0 }
 0x2fc   : > { %v8519_v23 = vpop.eup %8518  ;;  %8528 = vlog2.f32 %v4190_v16  ;;  %v4194_v56 = vadd.f32 1.0, %v4193_v59  ;;  %v4244_v9 = vadd.f32 1.0, %v12292_v34  ;;  %vm12298_vm8 = vcmp.lt.f32.partialorder %v4196_v42, 0.0004427343 }
 0x2fd   : > { %v8521_v25 = vpop.eup %8520  ;;  %8530 = vlog2.f32 %v4199_v43  ;;  %v4203_v63 = vadd.f32 1.0, %v4202_v57  ;;  %v4253_v14 = vadd.f32 1.0, %v8519_v23  ;;  %v4256_v39 = vmul.f32 -0.5, %v8519_v23 }
 0x2fe   : > { %v8523_v12 = vpop.eup %8522  ;;  %v4259_v26 = vand.u32 2147483647, %v8519_v23  ;;  %v3346_v0 = vmul.f32 0.6931472, %v8521_v25  ;;  %vm12303_vm9 = vcmp.lt.f32.partialorder %v4205_v45, 0.0004427343  ;;  %v4195_v62 = vmul.f32 %v8513_v54, %v4194_v56 }
 0x2ff   : > { %v8525_v31 = vpop.eup %8524  ;;  %v3355_v29 = vmul.f32 0.6931472, %v8523_v12  ;;  %8532 = vlog2.f32 %v4253_v14  ;;  %v4247_v6 = vmul.f32 -0.5, %v12292_v34  ;;  %v4257_v49 = vadd.f32 1.0, %v4256_v39 }
 0x300   : > { %v3352_v27 = vsel %vm12267_vm2, %v3349_v41, %v3346_v0  ;;  %v3400_v33 = vmul.f32 0.6931472, %v8525_v31  ;;  %v4204_v20 = vmul.f32 %v8515_v37, %v4203_v63  ;;  %8534 = vlog2.f32 %v4244_v9  ;;  %v677_v37 = vld [vmem:[%s9702_s23 + $0x3d8] sm:$0xff] }
 0x301   : > { %v3361_v53 = vsel %vm12275_vm3, %v3358_v4, %v3355_v29  ;;  %v4864_v15 = vsel %vm1120_vm0, %v12169_v35, %v3352_v27  ;;  %vm12321_vm13 = vcmp.lt.f32.partialorder %v4259_v26, 0.0004427343  ;;  %v4258_v40 = vmul.f32 %v8519_v23, %v4257_v49 }
 0x302   : > { %v8527_v22 = vpop.eup %8526  ;;  %v4865_v24 = vsel %vm1121_vm1, %v12190_v44, %v3361_v53  ;;  %v3406_v38 = vsel %vm12280_vm5, %v3403_v55, %v3400_v33  ;;  %v5152_v60 = vmul.f32 %v4864_v15, %v4864_v15  ;;  %v4248_v30 = vadd.f32 1.0, %v4247_v6 }
 0x303   : > { %v3409_v32 = vmul.f32 0.6931472, %v8527_v22  ;;  %v4870_v35 = vsel %vm1126_vm4, %v12202_v58, %v3406_v38  ;;  %v5153_v41 = vmul.f32 %v4865_v24, %v4865_v24  ;;  %v1427_v54 = vmin.f32 %v12286_v46, 20.0 }
 0x304   : > { %v5158_v44 = vmul.f32 %v4870_v35, %v4870_v35  ;;  %v1854_v4 = vmul.f32 1.442695, %v1420_v17  ;;  %v4250_v7 = vand.u32 2147483647, %v12292_v34  ;;  %v1856_v55 = vmul.f32 1.442695, %v1421_v50 }
 0x305   : > { %v3415_v16 = vsel %vm12288_vm6, %v3412_v52, %v3409_v32  ;;  %v1866_v59 = vmul.f32 1.442695, %v1426_v19  ;;  %v12339_v57 = vunpack.c.l.bf16 %v674_v8  ;;  %v1868_v56 = vmul.f32 1.442695, %v1427_v54 }
 0x306   : > { %v8529_v42 = vpop.eup %8528  ;;  %v4871_v58 = vsel %vm1127_vm7, %v12206_v3, %v3415_v16  ;;  %v5374_v43 = vpack.c.bf16 %v5158_v44, %v5152_v60  ;;  %8536 = vpow2.f32 %v1854_v4  ;;  %v12341_v52 = vunpack.c.h.bf16 %v674_v8 }
 0x307   : > { %v8531_v45 = vpop.eup %8530  ;;  %v5159_v23 = vmul.f32 %v4871_v58, %v4871_v58  ;;  %v4192_v17 = vmul.f32 0.6931472, %v8529_v42  ;;  %8538 = vpow2.f32 %v1856_v55  ;;  %v12343_v50 = vunpack.c.l.bf16 %v677_v37 }
 0x308   : > { %v4201_v18 = vmul.f32 0.6931472, %v8531_v45  ;;  %8540 = vpow2.f32 %v1866_v59  ;;  %v12347_v14 = vunpack.c.h.bf16 %v677_v37  ;;  %v4249_v39 = vmul.f32 %v12292_v34, %v4248_v30 }
 0x309   : > { %v8533_v25 = vpop.eup %8532  ;;  %v5375_v63 = vpack.c.bf16 %v5159_v23, %v5153_v41  ;;  %v4198_v3 = vsel %vm12298_vm8, %v4195_v62, %v4192_v17  ;;  %8542 = vpow2.f32 %v1868_v56  ;;  %vm12356_vm15 = vcmp.lt.f32.partialorder %v4250_v7, 0.0004427343  ;;  %v633_v23 = vld [vmem:[%s9702_s23 + $0x278] sm:$0xff] }
 0x30a   : > { %v4207_v9 = vsel %vm12303_vm9, %v4204_v20, %v4201_v18  ;;  %v4255_v12 = vmul.f32 0.6931472, %v8533_v25  ;;  %v8535_v26 = vpop.eup %8534  ;;  %v4958_v19 = vsel %vm1214_vm11, %v12247_v13, %v4198_v3  ;;  %v1514_v31 = vmin.f32 %v12339_v57, 20.0  ;;  %v5542_v25 = vld [vmem:[#allocation11 + $0x70] sm:$0xff] }
 0x30b   : > { %6823 = vmatprep.subr.bf16.mxu1 %v5375_v63  ;;  %v4959_v0 = vsel %vm1215_vm10, %v12249_v10, %v4207_v9  ;;  %v4246_v51 = vmul.f32 0.6931472, %v8535_v26  ;;  %v1515_v6 = vmin.f32 %v12341_v52, 20.0  ;;  %v1520_v49 = vmin.f32 %v12343_v50, 20.0 }
 0x30c   : > { %v4261_v29 = vsel %vm12321_vm13, %v4258_v40, %v4255_v12  ;;  %v5247_v34 = vmul.f32 %v4959_v0, %v4959_v0  ;;  %6824 = vmatpush1.bf16.xpose.msra.mxu1 %v5374_v43  ;;  %v1521_v27 = vmin.f32 %v12347_v14, 20.0  ;;  %v2042_v33 = vmul.f32 1.442695, %v1514_v31  ;;  %v636_v31 = vld [vmem:[%s9702_s23 + $0x290] sm:$0xff] }
 0x30d   : > { %v4965_v10 = vsel %vm1221_vm12, %v12253_v11, %v4261_v29  ;;  %v4252_v62 = vsel %vm12356_vm15, %v4249_v39, %v4246_v51  ;;  %v5246_v53 = vmul.f32 %v4958_v19, %v4958_v19  ;;  %v2044_v20 = vmul.f32 1.442695, %v1515_v6 }
 0x30e   : > { %v5253_v13 = vmul.f32 %v4965_v10, %v4965_v10  ;;  %v4964_v15 = vsel %vm1220_vm14, %v12251_v5, %v4252_v62  ;;  %8544 = vpow2.f32 %v2042_v33  ;;  %v2054_v22 = vmul.f32 1.442695, %v1520_v49 }
 0x30f   : > { %v2056_v24 = vmul.f32 1.442695, %v1521_v27  ;;  %v5252_v38 = vmul.f32 %v4964_v15, %v4964_v15  ;;  %8546 = vpow2.f32 %v2044_v20  ;;  %vm1133_vm0 = vcmp.gt.f32.partialorder %v12273_v2, 20.0 }
 0x310   : > { %v8537_v47 = vpop.eup %8536  ;;  %v5421_v11 = vpack.c.bf16 %v5253_v13, %v5247_v34  ;;  %8548 = vpow2.f32 %v2054_v22  ;;  %vm1132_vm3 = vcmp.gt.f32.partialorder %v12271_v28, 20.0  ;;  %v6690_v63 = vadd.f32 %v12049_v1, %v11608_v61 }
 0x311   : > { %v8539_v60 = vpop.eup %8538  ;;  %v3452_v32 = vadd.f32 1.0, %v8537_v47  ;;  %v3455_v40 = vmul.f32 -0.5, %v8537_v47  ;;  %v5420_v30 = vpack.c.bf16 %v5252_v38, %v5246_v53  ;;  %8550 = vpow2.f32 %v2056_v24 }
 0x312   : > { %v12377_v35 = vpop.eup %8540  ;;  %6929 = vmatprep.subr.bf16.mxu0 %v5421_v11  ;;  %v3461_v8 = vadd.f32 1.0, %v8539_v60  ;;  %v3464_v41 = vmul.f32 -0.5, %v8539_v60  ;;  %v3467_v54 = vand.u32 2147483647, %v8539_v60  ;;  %v3458_v5 = vand.u32 2147483647, %v8537_v47 }
 0x313   : > { %v8543_v44 = vpop.eup %8542  ;;  %v3506_v4 = vadd.f32 1.0, %v12377_v35  ;;  %6930 = vmatpush1.bf16.xpose.msra.mxu0 %v5420_v30  ;;  %v3456_v7 = vadd.f32 1.0, %v3455_v40  ;;  %v3509_v42 = vmul.f32 -0.5, %v12377_v35  ;;  %v3512_v58 = vand.u32 2147483647, %v12377_v35 }
 0x314   : > { %8552 = vlog2.f32 %v3461_v8  ;;  %v3465_v37 = vadd.f32 1.0, %v3464_v41  ;;  %v3515_v16 = vadd.f32 1.0, %v8543_v44  ;;  %v3518_v55 = vmul.f32 -0.5, %v8543_v44 }
 0x315   : > { %v3521_v59 = vand.u32 2147483647, %v8543_v44  ;;  %8554 = vlog2.f32 %v3452_v32  ;;  %vm12383_vm1 = vcmp.lt.f32.partialorder %v3458_v5, 0.0004427343  ;;  %vm12388_vm2 = vcmp.lt.f32.partialorder %v3467_v54, 0.0004427343 }
 0x316   : > { %8556 = vlog2.f32 %v3515_v16  ;;  %v3519_v43 = vadd.f32 1.0, %v3518_v55  ;;  %v3466_v17 = vmul.f32 %v8539_v60, %v3465_v37  ;;  %v12393_v18 = vmul.f32 %v8537_v47, %v3456_v7 }
 0x317   : > { %8558 = vlog2.f32 %v3506_v4  ;;  %vm1139_vm4 = vcmp.gt.f32.partialorder %v12286_v46, 20.0  ;;  %vm12398_vm5 = vcmp.lt.f32.partialorder %v3521_v59, 0.0004427343  ;;  %v3510_v39 = vadd.f32 1.0, %v3509_v42 }
 0x318   : > { %v8545_v3 = vpop.eup %8544  ;;  %v3520_v9 = vmul.f32 %v8543_v44, %v3519_v43  ;;  %vm12402_vm6 = vcmp.lt.f32.partialorder %v3512_v58, 0.0004427343  ;;  %vm1138_vm7 = vcmp.gt.f32.partialorder %v12284_v21, 20.0  ;;  %v12408_v61 = vunpack.c.l.bf16 %v633_v23 }
 0x319   : > { %v8547_v0 = vpop.eup %8546  ;;  %v4298_v36 = vadd.f32 1.0, %v8545_v3  ;;  %v4301_v19 = vmul.f32 -0.5, %v8545_v3  ;;  %v12410_v1 = vunpack.c.h.bf16 %v633_v23  ;;  %v4304_v6 = vand.u32 2147483647, %v8545_v3 }
 0x31a   : > { %v8549_v29 = vpop.eup %8548  ;;  %v4307_v34 = vadd.f32 1.0, %v8547_v0  ;;  %v4310_v51 = vmul.f32 -0.5, %v8547_v0  ;;  %v6709_v10 = vadd.f32 %v6690_v63, %v5542_v25  ;;  %v4313_v49 = vand.u32 2147483647, %v8547_v0 }
 0x31b   : > { %8560 = vlog2.f32 %v4298_v36  ;;  %v4302_v27 = vadd.f32 1.0, %v4301_v19  ;;  %v4352_v33 = vadd.f32 1.0, %v8549_v29  ;;  %v8551_v13 = vpop.eup %8550  ;;  %v4355_v53 = vmul.f32 -0.5, %v8549_v29 }
 0x31c   : > { %8562 = vlog2.f32 %v4307_v34  ;;  %v4311_v62 = vadd.f32 1.0, %v4310_v51  ;;  %6724 = vst [vmem:[#allocation11 + $0x70] sm:$0xff] %v6709_v10  ;;  %v12412_v20 = vunpack.c.l.bf16 %v636_v31  ;;  %v4361_v22 = vadd.f32 1.0, %v8551_v13 }
 0x31d   : > { %v4364_v24 = vmul.f32 -0.5, %v8551_v13  ;;  %v4367_v47 = vand.u32 2147483647, %v8551_v13  ;;  %v3511_v11 = vmul.f32 %v12377_v35, %v3510_v39  ;;  %vm1226_vm8 = vcmp.gt.f32.partialorder %v12339_v57, 20.0 }
 0x31e   : > { %v8553_v15 = vpop.eup %8552  ;;  %vm12416_vm9 = vcmp.lt.f32.partialorder %v4304_v6, 0.0004427343  ;;  %8564 = vlog2.f32 %v4352_v33  ;;  %v4356_v40 = vadd.f32 1.0, %v4355_v53  ;;  %vm1227_vm10 = vcmp.gt.f32.partialorder %v12341_v52, 20.0 }
 0x31f   : > { %v8555_v38 = vpop.eup %8554  ;;  %v3463_v60 = vmul.f32 0.6931472, %v8553_v15  ;;  %vm12421_vm11 = vcmp.lt.f32.partialorder %v4313_v49, 0.0004427343  ;;  %8566 = vlog2.f32 %v4361_v22  ;;  %v4303_v35 = vmul.f32 %v8545_v3, %v4302_v27 }
 0x320   : > { %v8557_v30 = vpop.eup %8556  ;;  %v3454_v41 = vmul.f32 0.6931472, %v8555_v38  ;;  %v4312_v4 = vmul.f32 %v8547_v0, %v4311_v62  ;;  %v4365_v37 = vadd.f32 1.0, %v4364_v24  ;;  %vm12430_vm12 = vcmp.lt.f32.partialorder %v4367_v47, 0.0004427343  ;;  %v680_v0 = vld [vmem:[%s9702_s23 + $0x3f0] sm:$0xff] }
 0x321   : > { %v8559_v44 = vpop.eup %8558  ;;  %v3469_v54 = vsel %vm12388_vm2, %v3466_v17, %v3463_v60  ;;  %v3517_v5 = vmul.f32 0.6931472, %v8557_v30  ;;  %vm1232_vm13 = vcmp.gt.f32.partialorder %v12343_v50, 20.0  ;;  %v4358_v42 = vand.u32 2147483647, %v8549_v29  ;;  %v683_v24 = vld [vmem:[%s9702_s23 + $0x408] sm:$0xff] }
 0x322   : > { %v4877_v16 = vsel %vm1133_vm0, %v12273_v2, %v3469_v54  ;;  %v3460_v55 = vsel %vm12383_vm1, %v12393_v18, %v3454_v41  ;;  %v3508_v59 = vmul.f32 0.6931472, %v8559_v44  ;;  %vm1233_vm14 = vcmp.gt.f32.partialorder %v12347_v14, 20.0 }
 0x323   : > { %v3523_v58 = vsel %vm12398_vm5, %v3520_v9, %v3517_v5  ;;  %v5165_v43 = vmul.f32 %v4877_v16, %v4877_v16  ;;  %v4876_v2 = vsel %vm1132_vm3, %v12271_v28, %v3460_v55  ;;  %v4357_v23 = vmul.f32 %v8549_v29, %v4356_v40 }
 0x324   : > { %v4883_v45 = vsel %vm1139_vm4, %v12286_v46, %v3523_v58  ;;  %v3514_v17 = vsel %vm12402_vm6, %v3511_v11, %v3508_v59  ;;  %v5164_v56 = vmul.f32 %v4876_v2, %v4876_v2  ;;  %v12449_v18 = vunpack.c.h.bf16 %v636_v31 }
 0x325   : > { %v5171_v25 = vmul.f32 %v4883_v45, %v4883_v45  ;;  %v4366_v63 = vmul.f32 %v8551_v13, %v4365_v37  ;;  %v4882_v3 = vsel %vm1138_vm7, %v12284_v21, %v3514_v17  ;;  %v1432_v9 = vmin.f32 %v12408_v61, 20.0  ;;  %v8561_v28 = vpop.eup %8560 }
 0x326   : > { %v5170_v12 = vmul.f32 %v4882_v3, %v4882_v3  ;;  %vm12455_vm15 = vcmp.lt.f32.partialorder %v4358_v42, 0.0004427343  ;;  %v1433_v46 = vmin.f32 %v12410_v1, 20.0  ;;  %v1438_v26 = vmin.f32 %v12412_v20, 20.0  ;;  %v8563_v36 = vpop.eup %8562 }
 0x327   : > { %v5381_v19 = vpack.c.bf16 %v5171_v25, %v5165_v43  ;;  %v4300_v31 = vmul.f32 0.6931472, %v8561_v28  ;;  %v1439_v29 = vmin.f32 %v12449_v18, 20.0  ;;  %v1878_v34 = vmul.f32 1.442695, %v1432_v9 }
 0x328   : > { %v4309_v21 = vmul.f32 0.6931472, %v8563_v36  ;;  %v5380_v51 = vpack.c.bf16 %v5170_v12, %v5164_v56  ;;  %v1880_v6 = vmul.f32 1.442695, %v1433_v46  ;;  %v1890_v10 = vmul.f32 1.442695, %v1438_v26  ;;  %v8565_v49 = vpop.eup %8564 }
 0x329   : > { %6825 = vmatprep.subr.bf16.mxu1 %v5381_v19  ;;  %v4306_v27 = vsel %vm12416_vm9, %v4303_v35, %v4300_v31  ;;  %8568 = vpow2.f32 %v1878_v34  ;;  %v1892_v33 = vmul.f32 1.442695, %v1439_v29  ;;  %v12465_v13 = vunpack.c.l.bf16 %v680_v0  ;;  %v8567_v62 = vpop.eup %8566  ;;  %v9179_v12 = vld [vmem:[%s9689_s29 + $0x48] sm:$0xff] }
 0x32a   : > { %v4315_v53 = vsel %vm12421_vm11, %v4312_v4, %v4309_v21  ;;  %6826 = vmatpush1.bf16.xpose.msra.mxu1 %v5380_v51  ;;  %v4354_v15 = vmul.f32 0.6931472, %v8565_v49  ;;  %v4970_v22 = vsel %vm1226_vm8, %v12339_v57, %v4306_v27  ;;  %8570 = vpow2.f32 %v1880_v6 }
 0x32b   : > { %v4363_v47 = vmul.f32 0.6931472, %v8567_v62  ;;  %v4971_v11 = vsel %vm1227_vm10, %v12341_v52, %v4315_v53  ;;  %v5258_v38 = vmul.f32 %v4970_v22, %v4970_v22  ;;  %8572 = vpow2.f32 %v1890_v10 }
 0x32c   : > { %v5259_v60 = vmul.f32 %v4971_v11, %v4971_v11  ;;  %v4360_v32 = vsel %vm12455_vm15, %v4357_v23, %v4354_v15  ;;  %8574 = vpow2.f32 %v1892_v33  ;;  %v12478_v40 = vunpack.c.h.bf16 %v680_v0  ;;  %v9178_v23 = vld [vmem:[%s9689_s29 + $0x30] sm:$0xff]  ;;  %v639_v15 = vld [vmem:[%s9702_s23 + $0x2a8] sm:$0xff] }
 0x32d   : > { %v4369_v30 = vsel %vm12430_vm12, %v4366_v63, %v4363_v47  ;;  %v4976_v57 = vsel %vm1232_vm13, %v12343_v50, %v4360_v32  ;;  %v12485_v8 = vunpack.c.l.bf16 %v683_v24  ;;  %v12487_v41 = vunpack.c.h.bf16 %v683_v24 }
 0x32e   : > { %v4977_v52 = vsel %vm1233_vm14, %v12347_v14, %v4369_v30  ;;  %v5264_v35 = vmul.f32 %v4976_v57, %v4976_v57  ;;  %v1526_v44 = vmin.f32 %v12465_v13, 20.0  ;;  %v1527_v5 = vmin.f32 %v12478_v40, 20.0 }
 0x32f   : > { %v5265_v54 = vmul.f32 %v4977_v52, %v4977_v52  ;;  %v1532_v4 = vmin.f32 %v12485_v8, 20.0  ;;  %v1533_v50 = vmin.f32 %v12487_v41, 20.0  ;;  %v5463_v45 = vunpack.c.h.bf16 %v9178_v23 }
 0x330   : > { %v5426_v37 = vpack.c.bf16 %v5264_v35, %v5258_v38  ;;  %v2066_v16 = vmul.f32 1.442695, %v1526_v44  ;;  %v2068_v55 = vmul.f32 1.442695, %v1527_v5  ;;  %v5469_v39 = vunpack.c.h.bf16 %v9179_v12 }
 0x331   : > { %v5427_v7 = vpack.c.bf16 %v5265_v54, %v5259_v60  ;;  %v2078_v59 = vmul.f32 1.442695, %v1532_v4  ;;  %v2080_v42 = vmul.f32 1.442695, %v1533_v50  ;;  %v5462_v31 = vunpack.c.l.bf16 %v9178_v23 }
 0x332   : > { %8576 = vpow2.f32 %v2066_v16  ;;  %vm1144_vm0 = vcmp.gt.f32.partialorder %v12408_v61, 20.0  ;;  %vm1145_vm2 = vcmp.gt.f32.partialorder %v12410_v1, 20.0  ;;  %v5493_v10 = vmul.f32 %v5463_v45, %v5463_v45 }
 0x333   : > { %v8569_v58 = vpop.eup %8568  ;;  %6931 = vmatprep.subr.bf16.mxu0 %v5427_v7  ;;  %8578 = vpow2.f32 %v2068_v55  ;;  %v5499_v49 = vmul.f32 %v5469_v39, %v5469_v39  ;;  %vm1150_vm5 = vcmp.gt.f32.partialorder %v12412_v20, 20.0  ;;  %vm1151_vm6 = vcmp.gt.f32.partialorder %v12449_v18, 20.0 }
 0x334   : > { %v8571_v14 = vpop.eup %8570  ;;  %6932 = vmatpush1.bf16.xpose.msra.mxu0 %v5426_v37  ;;  %8580 = vpow2.f32 %v2078_v59  ;;  %v3560_v43 = vadd.f32 1.0, %v8569_v58  ;;  %v3563_v2 = vmul.f32 -0.5, %v8569_v58  ;;  %v3566_v63 = vand.u32 2147483647, %v8569_v58 }
 0x335   : > { %v8573_v17 = vpop.eup %8572  ;;  %v3569_v56 = vadd.f32 1.0, %v8571_v14  ;;  %v3572_v25 = vmul.f32 -0.5, %v8571_v14  ;;  %8582 = vpow2.f32 %v2080_v42  ;;  %v3575_v9 = vand.u32 2147483647, %v8571_v14 }
 0x336   : > { %v8575_v3 = vpop.eup %8574  ;;  %8584 = vlog2.f32 %v3560_v43  ;;  %v3614_v28 = vadd.f32 1.0, %v8573_v17  ;;  %v3564_v0 = vadd.f32 1.0, %v3563_v2  ;;  %vm12499_vm1 = vcmp.lt.f32.partialorder %v3566_v63, 0.0004427343 }
 0x337   : > { %8586 = vlog2.f32 %v3569_v56  ;;  %v3573_v46 = vadd.f32 1.0, %v3572_v25  ;;  %v3623_v26 = vadd.f32 1.0, %v8575_v3  ;;  %v3626_v36 = vmul.f32 -0.5, %v8575_v3 }
 0x338   : > { %v3629_v19 = vand.u32 2147483647, %v8575_v3  ;;  %8588 = vlog2.f32 %v3614_v28  ;;  %v3617_v34 = vmul.f32 -0.5, %v8573_v17  ;;  %v3620_v21 = vand.u32 2147483647, %v8573_v17 }
 0x339   : > { %8590 = vlog2.f32 %v3623_v26  ;;  %vm12504_vm3 = vcmp.lt.f32.partialorder %v3575_v9, 0.0004427343  ;;  %v3627_v6 = vadd.f32 1.0, %v3626_v36  ;;  %v3574_v27 = vmul.f32 %v8571_v14, %v3573_v46 }
 0x33a   : > { %vm12508_vm4 = vcmp.lt.f32.partialorder %v3629_v19, 0.0004427343  ;;  %v3565_v62 = vmul.f32 %v8569_v58, %v3564_v0  ;;  %v3618_v53 = vadd.f32 1.0, %v3617_v34  ;;  %vm12515_vm7 = vcmp.lt.f32.partialorder %v3620_v21, 0.0004427343  ;;  %v642_v34 = vld [vmem:[%s9702_s23 + $0x2c0] sm:$0xff] }
 0x33b   : > { %v12519_v47 = vpack.c.bf16 %v5499_v49, %v5493_v10  ;;  %v5468_v11 = vunpack.c.l.bf16 %v9179_v12  ;;  %v5492_v38 = vmul.f32 %v5462_v31, %v5462_v31  ;;  %v3628_v32 = vmul.f32 %v8575_v3, %v3627_v6 }
 0x33c   : > { %v8577_v22 = vpop.eup %8576  ;;  %v12524_v4 = vunpack.c.l.bf16 %v639_v15  ;;  %v3619_v50 = vmul.f32 %v8573_v17, %v3618_v53  ;;  %v12526_v7 = vunpack.c.h.bf16 %v639_v15  ;;  %vm1239_vm10 = vcmp.gt.f32.partialorder %v12478_v40, 20.0 }
 0x33d   : > { %v8579_v60 = vpop.eup %8578  ;;  %v4406_v30 = vadd.f32 1.0, %v8577_v22  ;;  %v4409_v57 = vmul.f32 -0.5, %v8577_v22  ;;  %v4412_v52 = vand.u32 2147483647, %v8577_v22  ;;  %6782 = vmatprep.mubr.bf16.mxu1 %v12519_v47  ;;  %v5498_v58 = vmul.f32 %v5468_v11, %v5468_v11 }
 0x33e   : > { %v12521_v35 = vpop.eup %8580  ;;  %v4415_v44 = vadd.f32 1.0, %v8579_v60  ;;  %v4418_v54 = vmul.f32 -0.5, %v8579_v60  ;;  %v4421_v5 = vand.u32 2147483647, %v8579_v60  ;;  %vm1238_vm11 = vcmp.gt.f32.partialorder %v12465_v13, 20.0 }
 0x33f   : > { %v8583_v37 = vpop.eup %8582  ;;  %8592 = vlog2.f32 %v4406_v30  ;;  %v4410_v16 = vadd.f32 1.0, %v4409_v57  ;;  %v4460_v42 = vadd.f32 1.0, %v12521_v35  ;;  %vm12529_vm8 = vcmp.lt.f32.partialorder %v4412_v52, 0.0004427343 }
 0x340   : > { %v8585_v55 = vpop.eup %8584  ;;  %8594 = vlog2.f32 %v4415_v44  ;;  %v4469_v59 = vadd.f32 1.0, %v8583_v37  ;;  %v4419_v43 = vadd.f32 1.0, %v4418_v54  ;;  %v4472_v2 = vmul.f32 -0.5, %v8583_v37 }
 0x341   : > { %v8587_v14 = vpop.eup %8586  ;;  %v3562_v23 = vmul.f32 0.6931472, %v8585_v55  ;;  %vm12533_vm9 = vcmp.lt.f32.partialorder %v4421_v5, 0.0004427343  ;;  %v4463_v63 = vmul.f32 -0.5, %v12521_v35  ;;  %v4411_v39 = vmul.f32 %v8577_v22, %v4410_v16 }
 0x342   : > { %v8589_v56 = vpop.eup %8588  ;;  %v3571_v17 = vmul.f32 0.6931472, %v8587_v14  ;;  %8596 = vlog2.f32 %v4469_v59  ;;  %v4475_v9 = vand.u32 2147483647, %v8583_v37  ;;  %vm1245_vm12 = vcmp.gt.f32.partialorder %v12487_v41, 20.0  ;;  %v689_v14 = vld [vmem:[%s9702_s23 + $0x438] sm:$0xff] }
 0x343   : > { %v8591_v3 = vpop.eup %8590  ;;  %v3568_v28 = vsel %vm12499_vm1, %v3565_v62, %v3562_v23  ;;  %v3616_v12 = vmul.f32 0.6931472, %v8589_v56  ;;  %8598 = vlog2.f32 %v4460_v42  ;;  %v4473_v19 = vadd.f32 1.0, %v4472_v2 }
 0x344   : > { %v3577_v46 = vsel %vm12504_vm3, %v3574_v27, %v3571_v17  ;;  %v3625_v26 = vmul.f32 0.6931472, %v8591_v3  ;;  %v4888_v0 = vsel %vm1144_vm0, %v12408_v61, %v3568_v28  ;;  %v4464_v6 = vadd.f32 1.0, %v4463_v63 }
 0x345   : > { %v4889_v36 = vsel %vm1145_vm2, %v12410_v1, %v3577_v46  ;;  %v3622_v31 = vsel %vm12515_vm7, %v3619_v50, %v3616_v12  ;;  %v5176_v29 = vmul.f32 %v4888_v0, %v4888_v0  ;;  %v4420_v10 = vmul.f32 %v8579_v60, %v4419_v43 }
 0x346   : > { %v3631_v21 = vsel %vm12508_vm4, %v3628_v32, %v3625_v26  ;;  %v5177_v51 = vmul.f32 %v4889_v36, %v4889_v36  ;;  %v4894_v61 = vsel %vm1150_vm5, %v12412_v20, %v3622_v31  ;;  %vm1244_vm13 = vcmp.gt.f32.partialorder %v12485_v8, 20.0 }
 0x347   : > { %v4895_v1 = vsel %vm1151_vm6, %v12449_v18, %v3631_v21  ;;  %v5182_v49 = vmul.f32 %v4894_v61, %v4894_v61  ;;  %v12563_v27 = vpack.c.bf16 %v5498_v58, %v5492_v38  ;;  %v4466_v33 = vand.u32 2147483647, %v12521_v35  ;;  %v686_v38 = vld [vmem:[%s9702_s23 + $0x420] sm:$0xff] }
 0x348   : > { %v5183_v62 = vmul.f32 %v4895_v1, %v4895_v1  ;;  %v12566_v53 = vunpack.c.l.bf16 %v642_v34  ;;  %v12568_v15 = vunpack.c.h.bf16 %v642_v34  ;;  %v4474_v22 = vmul.f32 %v8583_v37, %v4473_v19  ;;  %v645_v1 = vld [vmem:[%s9702_s23 + $0x2d8] sm:$0xff] }
 0x349   : > { %v8593_v20 = vpop.eup %8592  ;;  %vm12570_vm14 = vcmp.lt.f32.partialorder %v4475_v9, 0.0004427343  ;;  %v5386_v18 = vpack.c.bf16 %v5182_v49, %v5176_v29  ;;  %6783 = vmatmul.mubr.bf16.gmra.mrb[40].mxu1 %v12563_v27  ;;  %v1444_v11 = vmin.f32 %v12524_v4, 20.0  ;;  %v4465_v57 = vmul.f32 %v12521_v35, %v4464_v6  ;;  %v9180_v6 = vld [vmem:[%s9689_s29 + $0x60] sm:$0xff] }
 0x34a   : > { %v8595_v60 = vpop.eup %8594  ;;  %v5387_v32 = vpack.c.bf16 %v5183_v62, %v5177_v51  ;;  %v4408_v30 = vmul.f32 0.6931472, %v8593_v20  ;;  %v1445_v52 = vmin.f32 %v12526_v7, 20.0  ;;  %v1450_v54 = vmin.f32 %v12566_v53, 20.0 }
 0x34b   : > { %v4417_v44 = vmul.f32 0.6931472, %v8595_v60  ;;  %v1451_v5 = vmin.f32 %v12568_v15, 20.0  ;;  %v1902_v37 = vmul.f32 1.442695, %v1444_v11  ;;  %v12587_v35 = vunpack.c.l.bf16 %v686_v38 }
 0x34c   : > { %v8597_v50 = vpop.eup %8596  ;;  %6827 = vmatprep.subr.bf16.mxu1 %v5387_v32  ;;  %v4414_v16 = vsel %vm12529_vm8, %v4411_v39, %v4408_v30  ;;  %vm12583_vm15 = vcmp.lt.f32.partialorder %v4466_v33, 0.0004427343  ;;  %v1904_v59 = vmul.f32 1.442695, %v1445_v52  ;;  %v12592_v43 = vunpack.c.h.bf16 %v686_v38  ;;  %v648_v30 = vld [vmem:[%s9702_s23 + $0x2f0] sm:$0xff] }
 0x34d   : > { %v4423_v42 = vsel %vm12533_vm9, %v4420_v10, %v4417_v44  ;;  %v4471_v58 = vmul.f32 0.6931472, %v8597_v50  ;;  %6828 = vmatpush1.bf16.xpose.msra.mxu1 %v5386_v18  ;;  %8600 = vpow2.f32 %v1902_v37  ;;  %v8599_v2 = vpop.eup %8598  ;;  %v4982_v45 = vsel %vm1238_vm11, %v12465_v13, %v4414_v16 }
 0x34e   : > { %v4983_v23 = vsel %vm1239_vm10, %v12478_v40, %v4423_v42  ;;  %8602 = vpow2.f32 %v1904_v59  ;;  %v1914_v56 = vmul.f32 1.442695, %v1450_v54  ;;  %v4462_v63 = vmul.f32 0.6931472, %v8599_v2 }
 0x34f   : > { %v4477_v17 = vsel %vm12570_vm14, %v4474_v22, %v4471_v58  ;;  %v5271_v25 = vmul.f32 %v4983_v23, %v4983_v23  ;;  %v1916_v3 = vmul.f32 1.442695, %v1451_v5  ;;  %v12605_v28 = vunpack.c.l.bf16 %v689_v14 }
 0x350   : > { %v4989_v9 = vsel %vm1245_vm12, %v12487_v41, %v4477_v17  ;;  %8604 = vpow2.f32 %v1914_v56  ;;  %v12607_v40 = vunpack.c.h.bf16 %v689_v14  ;;  %v4468_v13 = vsel %vm12583_vm15, %v4465_v57, %v4462_v63 }
 0x351   : > { %v5277_v12 = vmul.f32 %v4989_v9, %v4989_v9  ;;  %v5270_v39 = vmul.f32 %v4982_v45, %v4982_v45  ;;  %8606 = vpow2.f32 %v1916_v3  ;;  %v4988_v46 = vsel %vm1244_vm13, %v12485_v8, %v4468_v13 }
 0x352   : > { %v1538_v26 = vmin.f32 %v12587_v35, 20.0  ;;  %v1539_v41 = vmin.f32 %v12592_v43, 20.0  ;;  %v5276_v36 = vmul.f32 %v4988_v46, %v4988_v46  ;;  %v1544_v19 = vmin.f32 %v12605_v28, 20.0 }
 0x353   : > { %v5433_v0 = vpack.c.bf16 %v5277_v12, %v5271_v25  ;;  %v1545_v31 = vmin.f32 %v12607_v40, 20.0  ;;  %v5475_v8 = vunpack.c.h.bf16 %v9180_v6  ;;  %v5474_v20 = vunpack.c.l.bf16 %v9180_v6  ;;  %v12664_v6 = vpop.f32.mrb[8].mxu0 }
 0x354   : > { %v2090_v29 = vmul.f32 1.442695, %v1538_v26  ;;  %v2092_v34 = vmul.f32 1.442695, %v1539_v41  ;;  %v5432_v21 = vpack.c.bf16 %v5276_v36, %v5270_v39  ;;  %v2102_v51 = vmul.f32 1.442695, %v1544_v19 }
 0x355   : > { %6933 = vmatprep.subr.bf16.mxu0 %v5433_v0  ;;  %v2104_v61 = vmul.f32 1.442695, %v1545_v31  ;;  %v12620_v18 = vunpack.c.l.bf16 %v645_v1  ;;  %v5505_v32 = vmul.f32 %v5475_v8, %v5475_v8  ;;  %v12626_v16 = vunpack.c.h.bf16 %v645_v1 }
 0x356   : > { %8608 = vpow2.f32 %v2090_v29  ;;  %6934 = vmatpush1.bf16.xpose.msra.mxu0 %v5432_v21  ;;  %vm1156_vm0 = vcmp.gt.f32.partialorder %v12524_v4, 20.0  ;;  %v12631_v42 = vunpack.c.l.bf16 %v648_v30  ;;  %vm1157_vm1 = vcmp.gt.f32.partialorder %v12526_v7, 20.0 }
 0x357   : > { %v8601_v10 = vpop.eup %8600  ;;  %8610 = vpow2.f32 %v2092_v34  ;;  %v12638_v2 = vpack.c.bf16 %v5505_v32, %v5505_v32  ;;  %v5504_v17 = vmul.f32 %v5474_v20, %v5474_v20  ;;  %vm1162_vm5 = vcmp.gt.f32.partialorder %v12566_v53, 20.0 }
 0x358   : > { %v8603_v49 = vpop.eup %8602  ;;  %8612 = vpow2.f32 %v2102_v51  ;;  %v3668_v62 = vadd.f32 1.0, %v8601_v10  ;;  %v3671_v33 = vmul.f32 -0.5, %v8601_v10  ;;  %v3674_v60 = vand.u32 2147483647, %v8601_v10 }
 0x359   : > { %v3677_v22 = vadd.f32 1.0, %v8603_v49  ;;  %v3680_v24 = vmul.f32 -0.5, %v8603_v49  ;;  %8614 = vpow2.f32 %v2104_v61  ;;  %v3683_v38 = vand.u32 2147483647, %v8603_v49  ;;  %6792 = vmatprep.mubr.bf16.mxu1 %v12638_v2 }
 0x35a   : > { %v12622_v11 = vpop.eup %8604  ;;  %8616 = vlog2.f32 %v3668_v62  ;;  %v3672_v44 = vadd.f32 1.0, %v3671_v33  ;;  %vm12634_vm2 = vcmp.lt.f32.partialorder %v3674_v60, 0.0004427343  ;;  %v12656_v12 = vunpack.c.h.bf16 %v648_v30  ;;  %v12668_v62 = vpop.f32.mrb[9].mxu0 }
 0x35b   : > { %v8607_v57 = vpop.eup %8606  ;;  %8618 = vlog2.f32 %v3677_v22  ;;  %v3681_v52 = vadd.f32 1.0, %v3680_v24  ;;  %v3722_v54 = vadd.f32 1.0, %v12622_v11  ;;  %v3725_v55 = vmul.f32 -0.5, %v12622_v11  ;;  %v6402_v32 = vpop.f32.mrb[10].mxu0 }
 0x35c   : > { %v3731_v5 = vadd.f32 1.0, %v8607_v57  ;;  %v3734_v37 = vmul.f32 -0.5, %v8607_v57  ;;  %v3737_v50 = vand.u32 2147483647, %v8607_v57  ;;  %v3728_v59 = vand.u32 2147483647, %v12622_v11 }
 0x35d   : > { %8620 = vlog2.f32 %v3722_v54  ;;  %v12640_v23 = vmul.f32 %v8603_v49, %v3681_v52  ;;  %vm12642_vm3 = vcmp.lt.f32.partialorder %v3683_v38, 0.0004427343  ;;  %v3673_v56 = vmul.f32 %v8601_v10, %v3672_v44  ;;  %v6403_v54 = vpop.f32.mrb[11].mxu0 }
 0x35e   : > { %8622 = vlog2.f32 %v3731_v5  ;;  %v3735_v58 = vadd.f32 1.0, %v3734_v37  ;;  %vm12646_vm4 = vcmp.lt.f32.partialorder %v3737_v50, 0.0004427343  ;;  %v3726_v3 = vadd.f32 1.0, %v3725_v55 }
 0x35f   : > { %vm12651_vm6 = vcmp.lt.f32.partialorder %v3728_v59, 0.0004427343  ;;  %vm1163_vm7 = vcmp.gt.f32.partialorder %v12568_v15, 20.0  ;;  %v12661_v29 = vpack.c.bf16 %v5504_v17, %v5504_v17  ;;  %v1456_v61 = vmin.f32 %v12620_v18, 20.0 }
 0x360   : > { %v8609_v25 = vpop.eup %8608  ;;  %v12659_v39 = vmul.f32 %v8607_v57, %v3735_v58  ;;  %v1457_v49 = vmin.f32 %v12626_v16, 20.0  ;;  %v3727_v38 = vmul.f32 %v12622_v11, %v3726_v3  ;;  %vm1250_vm10 = vcmp.gt.f32.partialorder %v12587_v35, 20.0 }
 0x361   : > { %v8611_v13 = vpop.eup %8610  ;;  %v4514_v46 = vadd.f32 1.0, %v8609_v25  ;;  %v4517_v26 = vmul.f32 -0.5, %v8609_v25  ;;  %v4520_v41 = vand.u32 2147483647, %v8609_v25  ;;  %6793 = vmatmul.mubr.bf16.gmra.mrb[44].mxu1 %v12661_v29  ;;  %vm1251_vm11 = vcmp.gt.f32.partialorder %v12592_v43, 20.0 }
 0x362   : > { %v8613_v0 = vpop.eup %8612  ;;  %v4523_v36 = vadd.f32 1.0, %v8611_v13  ;;  %v4526_v19 = vmul.f32 -0.5, %v8611_v13  ;;  %v4529_v31 = vand.u32 2147483647, %v8611_v13  ;;  %vm1257_vm12 = vcmp.gt.f32.partialorder %v12607_v40, 20.0 }
 0x363   : > { %v8615_v34 = vpop.eup %8614  ;;  %8624 = vlog2.f32 %v4514_v46  ;;  %v4518_v21 = vadd.f32 1.0, %v4517_v26  ;;  %v4568_v51 = vadd.f32 1.0, %v8613_v0  ;;  %vm12671_vm8 = vcmp.lt.f32.partialorder %v4520_v41, 0.0004427343 }
 0x364   : > { %v8617_v8 = vpop.eup %8616  ;;  %8626 = vlog2.f32 %v4523_v36  ;;  %v4527_v1 = vadd.f32 1.0, %v4526_v19  ;;  %v4577_v10 = vadd.f32 1.0, %v8615_v34  ;;  %v4580_v20 = vmul.f32 -0.5, %v8615_v34  ;;  %v692_v19 = vld [vmem:[%s9702_s23 + $0x450] sm:$0xff] }
 0x365   : > { %v8619_v33 = vpop.eup %8618  ;;  %v4583_v22 = vand.u32 2147483647, %v8615_v34  ;;  %v3670_v24 = vmul.f32 0.6931472, %v8617_v8  ;;  %vm12675_vm9 = vcmp.lt.f32.partialorder %v4529_v31, 0.0004427343  ;;  %v4519_v52 = vmul.f32 %v8609_v25, %v4518_v21 }
 0x366   : > { %v3679_v30 = vmul.f32 0.6931472, %v8619_v33  ;;  %8628 = vlog2.f32 %v4577_v10  ;;  %v4571_v44 = vmul.f32 -0.5, %v8613_v0  ;;  %v4528_v11 = vmul.f32 %v8611_v13, %v4527_v1 }
 0x367   : > { %v8621_v5 = vpop.eup %8620  ;;  %v4581_v37 = vadd.f32 1.0, %v4580_v20  ;;  %v3676_v50 = vsel %vm12634_vm2, %v3673_v56, %v3670_v24  ;;  %8630 = vlog2.f32 %v4568_v51  ;;  %vm12693_vm13 = vcmp.lt.f32.partialorder %v4583_v22, 0.0004427343 }
 0x368   : > { %v8623_v55 = vpop.eup %8622  ;;  %v3685_v59 = vsel %vm12642_vm3, %v12640_v23, %v3679_v30  ;;  %v3724_v58 = vmul.f32 0.6931472, %v8621_v5  ;;  %v4900_v17 = vsel %vm1156_vm0, %v12524_v4, %v3676_v50  ;;  %v4572_v25 = vadd.f32 1.0, %v4571_v44  ;;  %v9181_v50 = vld [vmem:[%s9689_s29 + $0x8] sm:$0xff] }
 0x369   : > { %v3733_v3 = vmul.f32 0.6931472, %v8623_v55  ;;  %v4901_v13 = vsel %vm1157_vm1, %v12526_v7, %v3685_v59  ;;  %v4582_v14 = vmul.f32 %v8615_v34, %v4581_v37  ;;  %v5188_v46 = vmul.f32 %v4900_v17, %v4900_v17 }
 0x36a   : > { %v5189_v23 = vmul.f32 %v4901_v13, %v4901_v13  ;;  %v3730_v45 = vsel %vm12651_vm6, %v3727_v38, %v3724_v58  ;;  %v4574_v4 = vand.u32 2147483647, %v8613_v0  ;;  %v4573_v41 = vmul.f32 %v8613_v0, %v4572_v25 }
 0x36b   : > { %v3739_v26 = vsel %vm12646_vm4, %v12659_v39, %v3733_v3  ;;  %v4906_v7 = vsel %vm1162_vm5, %v12566_v53, %v3730_v45  ;;  %v1462_v36 = vmin.f32 %v12631_v42, 20.0  ;;  %v1463_v63 = vmin.f32 %v12656_v12, 20.0  ;;  %v695_v39 = vld [vmem:[%s9702_s23 + $0x468] sm:$0xff] }
 0x36c   : > { %v4907_v31 = vsel %vm1163_vm7, %v12568_v15, %v3739_v26  ;;  %v5194_v9 = vmul.f32 %v4906_v7, %v4906_v7  ;;  %vm12710_vm14 = vcmp.lt.f32.partialorder %v4574_v4, 0.0004427343  ;;  %v1926_v8 = vmul.f32 1.442695, %v1456_v61 }
 0x36d   : > { %v8625_v21 = vpop.eup %8624  ;;  %v5195_v51 = vmul.f32 %v4907_v31, %v4907_v31  ;;  %v1928_v53 = vmul.f32 1.442695, %v1457_v49  ;;  %v1938_v0 = vmul.f32 1.442695, %v1462_v36  ;;  %v1940_v20 = vmul.f32 1.442695, %v1463_v63 }
 0x36e   : > { %v8627_v1 = vpop.eup %8626  ;;  %v5392_v10 = vpack.c.bf16 %v5194_v9, %v5188_v46  ;;  %v4516_v33 = vmul.f32 0.6931472, %v8625_v21  ;;  %v12716_v22 = vunpack.c.l.bf16 %v692_v19  ;;  %8632 = vpow2.f32 %v1926_v8 }
 0x36f   : > { %v5393_v15 = vpack.c.bf16 %v5195_v51, %v5189_v23  ;;  %v4525_v24 = vmul.f32 0.6931472, %v8627_v1  ;;  %v12718_v38 = vunpack.c.h.bf16 %v692_v19  ;;  %8634 = vpow2.f32 %v1928_v53 }
 0x370   : > { %v8629_v32 = vpop.eup %8628  ;;  %v4522_v30 = vsel %vm12671_vm8, %v4519_v52, %v4516_v33  ;;  %v12722_v61 = vunpack.c.l.bf16 %v695_v39  ;;  %v12724_v49 = vunpack.c.h.bf16 %v695_v39  ;;  %8636 = vpow2.f32 %v1938_v0 }
 0x371   : > { %v8631_v44 = vpop.eup %8630  ;;  %6829 = vmatprep.subr.bf16.mxu1 %v5393_v15  ;;  %v4531_v54 = vsel %vm12675_vm9, %v4528_v11, %v4525_v24  ;;  %v4579_v5 = vmul.f32 0.6931472, %v8629_v32  ;;  %v4994_v37 = vsel %vm1250_vm10, %v12587_v35, %v4522_v30  ;;  %vm1256_vm15 = vcmp.gt.f32.partialorder %v12605_v28, 20.0 }
 0x372   : > { %v4995_v60 = vsel %vm1251_vm11, %v12592_v43, %v4531_v54  ;;  %6830 = vmatpush1.bf16.xpose.msra.mxu1 %v5392_v10  ;;  %v4570_v52 = vmul.f32 0.6931472, %v8631_v44  ;;  %8638 = vpow2.f32 %v1940_v20  ;;  %v5452_v55 = vunpack.c.l.bf16 %v9181_v50  ;;  %v556_v54 = vld [vmem:[%s9702_s23 + $0x10] sm:$0xff] }
 0x373   : > { %v4585_v57 = vsel %vm12693_vm13, %v4582_v14, %v4579_v5  ;;  %v5283_v11 = vmul.f32 %v4995_v60, %v4995_v60  ;;  %v5282_v59 = vmul.f32 %v4994_v37, %v4994_v37  ;;  %v1550_v43 = vmin.f32 %v12716_v22, 20.0 }
 0x374   : > { %v5001_v35 = vsel %vm1257_vm12, %v12607_v40, %v4585_v57  ;;  %v4576_v58 = vsel %vm12710_vm14, %v4573_v41, %v4570_v52  ;;  %v1551_v17 = vmin.f32 %v12718_v38, 20.0  ;;  %v1556_v13 = vmin.f32 %v12722_v61, 20.0  ;;  %v9182_v41 = vld [vmem:[%s9689_s29 + $0x20] sm:$0xff] }
 0x375   : > { %v5289_v25 = vmul.f32 %v5001_v35, %v5001_v35  ;;  %v5000_v3 = vsel %vm1256_vm15, %v12605_v28, %v4576_v58  ;;  %v1557_v14 = vmin.f32 %v12724_v49, 20.0  ;;  %v2114_v23 = vmul.f32 1.442695, %v1550_v43 }
 0x376   : > { %v5288_v56 = vmul.f32 %v5000_v3, %v5000_v3  ;;  %v2116_v45 = vmul.f32 1.442695, %v1551_v17  ;;  %v2126_v40 = vmul.f32 1.442695, %v1556_v13  ;;  %v5458_v36 = vunpack.c.l.bf16 %v9182_v41  ;;  %v559_v17 = vld [vmem:[%s9702_s23 + $0x28] sm:$0xff] }
 0x377   : > { %v5439_v46 = vpack.c.bf16 %v5289_v25, %v5283_v11  ;;  %v2128_v4 = vmul.f32 1.442695, %v1557_v14  ;;  %8640 = vpow2.f32 %v2114_v23  ;;  %v12749_v19 = vmul.f32 %v5452_v55, %v5452_v55 }
 0x378   : > { %v5438_v26 = vpack.c.bf16 %v5288_v56, %v5282_v59  ;;  %v8633_v7 = vpop.eup %8632  ;;  %8642 = vpow2.f32 %v2116_v45  ;;  %v5453_v34 = vunpack.c.h.bf16 %v9181_v50  ;;  %v5459_v51 = vunpack.c.h.bf16 %v9182_v41 }
 0x379   : > { %6935 = vmatprep.subr.bf16.mxu0 %v5439_v46  ;;  %v8635_v28 = vpop.eup %8634  ;;  %8644 = vpow2.f32 %v2126_v40  ;;  %v3776_v31 = vadd.f32 1.0, %v8633_v7  ;;  %v3779_v9 = vmul.f32 -0.5, %v8633_v7  ;;  %v3782_v0 = vand.u32 2147483647, %v8633_v7 }
 0x37a   : > { %6936 = vmatpush1.bf16.xpose.msra.mxu0 %v5438_v26  ;;  %v8637_v63 = vpop.eup %8636  ;;  %v3785_v39 = vadd.f32 1.0, %v8635_v28  ;;  %v3788_v21 = vmul.f32 -0.5, %v8635_v28  ;;  %8646 = vpow2.f32 %v2128_v4  ;;  %v3791_v53 = vand.u32 2147483647, %v8635_v28 }
 0x37b   : > { %8648 = vlog2.f32 %v3776_v31  ;;  %v3830_v1 = vadd.f32 1.0, %v8637_v63  ;;  %v3780_v20 = vadd.f32 1.0, %v3779_v9  ;;  %v12751_v15 = vmul.f32 %v5458_v36, %v5458_v36 }
 0x37c   : > { %v8639_v8 = vpop.eup %8638  ;;  %8650 = vlog2.f32 %v3785_v39  ;;  %v3789_v10 = vadd.f32 1.0, %v3788_v21  ;;  %vm1168_vm0 = vcmp.gt.f32.partialorder %v12620_v18, 20.0  ;;  %v3833_v30 = vmul.f32 -0.5, %v8637_v63 }
 0x37d   : > { %v3839_v33 = vadd.f32 1.0, %v8639_v8  ;;  %v3842_v24 = vmul.f32 -0.5, %v8639_v8  ;;  %v3845_v32 = vand.u32 2147483647, %v8639_v8  ;;  %8652 = vlog2.f32 %v3830_v1 }
 0x37e   : > { %v3836_v44 = vand.u32 2147483647, %v8637_v63  ;;  %vm1169_vm1 = vcmp.gt.f32.partialorder %v12626_v16, 20.0  ;;  %vm12756_vm2 = vcmp.lt.f32.partialorder %v3782_v0, 0.0004427343  ;;  %v5483_v60 = vmul.f32 %v5453_v34, %v5453_v34 }
 0x37f   : > { %8654 = vlog2.f32 %v3839_v33  ;;  %v3843_v5 = vadd.f32 1.0, %v3842_v24  ;;  %v5489_v52 = vmul.f32 %v5459_v51, %v5459_v51  ;;  %v3790_v50 = vmul.f32 %v8635_v28, %v3789_v10 }
 0x380   : > { %vm12760_vm3 = vcmp.lt.f32.partialorder %v3791_v53, 0.0004427343  ;;  %vm12764_vm4 = vcmp.lt.f32.partialorder %v3845_v32, 0.0004427343  ;;  %vm1174_vm5 = vcmp.gt.f32.partialorder %v12631_v42, 20.0  ;;  %v3781_v11 = vmul.f32 %v8633_v7, %v3780_v20 }
 0x381   : > { %v8641_v59 = vpop.eup %8640  ;;  %vm1175_vm6 = vcmp.gt.f32.partialorder %v12656_v12, 20.0  ;;  %v3834_v35 = vadd.f32 1.0, %v3833_v30  ;;  %vm12770_vm7 = vcmp.lt.f32.partialorder %v3836_v44, 0.0004427343  ;;  %v12774_v43 = vpack.c.bf16 %v5489_v52, %v5483_v60 }
 0x382   : > { %v12777_v25 = vunpack.c.l.bf16 %v556_v54  ;;  %v8643_v3 = vpop.eup %8642  ;;  %v4622_v13 = vadd.f32 1.0, %v8641_v59  ;;  %v4625_v14 = vmul.f32 -0.5, %v8641_v59  ;;  %v4628_v56 = vand.u32 2147483647, %v8641_v59 }
 0x383   : > { %v12779_v23 = vunpack.c.h.bf16 %v556_v54  ;;  %v12781_v45 = vpop.eup %8644  ;;  %v3844_v46 = vmul.f32 %v8639_v8, %v3843_v5  ;;  %v4631_v40 = vadd.f32 1.0, %v8643_v3  ;;  %v4634_v4 = vmul.f32 -0.5, %v8643_v3  ;;  %6833 = vmatprep.mubr.bf16.mxu1 %v12774_v43 }
 0x384   : > { %v4637_v26 = vand.u32 2147483647, %v8643_v3  ;;  %v8647_v7 = vpop.eup %8646  ;;  %8656 = vlog2.f32 %v4622_v13  ;;  %v4626_v41 = vadd.f32 1.0, %v4625_v14  ;;  %v12784_v36 = vunpack.c.l.bf16 %v559_v17 }
 0x385   : > { %v12786_v28 = vunpack.c.h.bf16 %v559_v17  ;;  %v8649_v31 = vpop.eup %8648  ;;  %8658 = vlog2.f32 %v4631_v40  ;;  %v4685_v9 = vadd.f32 1.0, %v8647_v7  ;;  %v3835_v34 = vmul.f32 %v8637_v63, %v3834_v35 }
 0x386   : > { %v4676_v39 = vadd.f32 1.0, %v12781_v45  ;;  %v8651_v21 = vpop.eup %8650  ;;  %v4635_v51 = vadd.f32 1.0, %v4634_v4  ;;  %v4688_v8 = vmul.f32 -0.5, %v8647_v7  ;;  %v3778_v53 = vmul.f32 0.6931472, %v8649_v31 }
 0x387   : > { %vm12789_vm8 = vcmp.lt.f32.partialorder %v4628_v56, 0.0004427343  ;;  %v8653_v1 = vpop.eup %8652  ;;  %v3787_v10 = vmul.f32 0.6931472, %v8651_v21  ;;  %vm12793_vm9 = vcmp.lt.f32.partialorder %v4637_v26, 0.0004427343  ;;  %8660 = vlog2.f32 %v4685_v9 }
 0x388   : > { %v4691_v20 = vand.u32 2147483647, %v8647_v7  ;;  %vm1262_vm10 = vcmp.gt.f32.partialorder %v12716_v22, 20.0  ;;  %v4679_v63 = vmul.f32 -0.5, %v12781_v45  ;;  %vm1263_vm11 = vcmp.gt.f32.partialorder %v12718_v38, 20.0 }
 0x389   : > { %v8655_v24 = vpop.eup %8654  ;;  %v4689_v32 = vadd.f32 1.0, %v4688_v8  ;;  %v3784_v30 = vsel %vm12756_vm2, %v3781_v11, %v3778_v53  ;;  %v3832_v44 = vmul.f32 0.6931472, %v8653_v1  ;;  %v4627_v54 = vmul.f32 %v8641_v59, %v4626_v41  ;;  %v654_v41 = vld [vmem:[%s9702_s23 + $0x320] sm:$0xff] }
 0x38a   : > { %v3793_v5 = vsel %vm12760_vm3, %v3790_v50, %v3787_v10  ;;  %v3841_v60 = vmul.f32 0.6931472, %v8655_v24  ;;  %v4912_v52 = vsel %vm1168_vm0, %v12620_v18, %v3784_v30  ;;  %8662 = vlog2.f32 %v4676_v39 }
 0x38b   : > { %v4913_v35 = vsel %vm1169_vm1, %v12626_v16, %v3793_v5  ;;  %vm1269_vm12 = vcmp.gt.f32.partialorder %v12724_v49, 20.0  ;;  %v4636_v17 = vmul.f32 %v8643_v3, %v4635_v51  ;;  %v3838_v37 = vsel %vm12770_vm7, %v3835_v34, %v3832_v44 }
 0x38c   : > { %v5200_v11 = vmul.f32 %v4912_v52, %v4912_v52  ;;  %v3847_v50 = vsel %vm12764_vm4, %v3844_v46, %v3841_v60  ;;  %v5201_v55 = vmul.f32 %v4913_v35, %v4913_v35  ;;  %v4918_v18 = vsel %vm1174_vm5, %v12631_v42, %v3838_v37  ;;  %v651_v46 = vld [vmem:[%s9702_s23 + $0x308] sm:$0xff] }
 0x38d   : > { %v4680_v59 = vadd.f32 1.0, %v4679_v63  ;;  %v4919_v16 = vsel %vm1175_vm6, %v12656_v12, %v3847_v50  ;;  %v4690_v3 = vmul.f32 %v8647_v7, %v4689_v32  ;;  %vm12821_vm13 = vcmp.lt.f32.partialorder %v4691_v20, 0.0004427343 }
 0x38e   : > { %v5206_v13 = vmul.f32 %v4918_v18, %v4918_v18  ;;  %vm1268_vm14 = vcmp.gt.f32.partialorder %v12722_v61, 20.0  ;;  %v5207_v57 = vmul.f32 %v4919_v16, %v4919_v16  ;;  %v4682_v14 = vand.u32 2147483647, %v12781_v45  ;;  %v8657_v40 = vpop.eup %8656 }
 0x38f   : > { %v1278_v56 = vmin.f32 %v12777_v25, 20.0  ;;  %v1279_v42 = vmin.f32 %v12779_v23, 20.0  ;;  %v4681_v12 = vmul.f32 %v12781_v45, %v4680_v59  ;;  %v1284_v26 = vmin.f32 %v12784_v36, 20.0  ;;  %v8659_v31 = vpop.eup %8658 }
 0x390   : > { %v5398_v4 = vpack.c.bf16 %v5206_v13, %v5200_v11  ;;  %v1285_v7 = vmin.f32 %v12786_v28, 20.0  ;;  %v5399_v9 = vpack.c.bf16 %v5207_v57, %v5201_v55  ;;  %v4624_v34 = vmul.f32 0.6931472, %v8657_v40  ;;  %v9184_v40 = vld [vmem:[%s9689_s29 + $0x50] sm:$0xff] }
 0x391   : > { %v1570_v39 = vmul.f32 1.442695, %v1278_v56  ;;  %v1572_v21 = vmul.f32 1.442695, %v1279_v42  ;;  %v4633_v51 = vmul.f32 0.6931472, %v8659_v31  ;;  %v12834_v1 = vunpack.c.l.bf16 %v651_v46  ;;  %v8661_v10 = vpop.eup %8660 }
 0x392   : > { %v1582_v8 = vmul.f32 1.442695, %v1284_v26  ;;  %v1584_v53 = vmul.f32 1.442695, %v1285_v7  ;;  %6831 = vmatprep.subr.bf16.mxu1 %v5399_v9  ;;  %v4630_v45 = vsel %vm12789_vm8, %v4627_v54, %v4624_v34  ;;  %v12838_v20 = vunpack.c.h.bf16 %v651_v46 }
 0x393   : > { %8664 = vpow2.f32 %v1570_v39  ;;  %v12840_v63 = vunpack.c.l.bf16 %v654_v41  ;;  %v4639_v24 = vsel %vm12793_vm9, %v4636_v17, %v4633_v51  ;;  %v4687_v32 = vmul.f32 0.6931472, %v8661_v10  ;;  %6832 = vmatpush1.bf16.xpose.msra.mxu1 %v5398_v4 }
 0x394   : > { %v5006_v30 = vsel %vm1262_vm10, %v12716_v22, %v4630_v45  ;;  %8666 = vpow2.f32 %v1572_v21  ;;  %v8663_v44 = vpop.eup %8662  ;;  %v5007_v0 = vsel %vm1263_vm11, %v12718_v38, %v4639_v24  ;;  %vm12850_vm15 = vcmp.lt.f32.partialorder %v4682_v14, 0.0004427343  ;;  %v9183_v14 = vld [vmem:[%s9689_s29 + $0x38] sm:$0xff] }
 0x395   : > { %8668 = vpow2.f32 %v1582_v8  ;;  %v12854_v5 = vunpack.c.h.bf16 %v654_v41  ;;  %v4693_v33 = vsel %vm12821_vm13, %v4690_v3, %v4687_v32  ;;  %v5295_v60 = vmul.f32 %v5007_v0, %v5007_v0 }
 0x396   : > { %v4678_v52 = vmul.f32 0.6931472, %v8663_v44  ;;  %8670 = vpow2.f32 %v1584_v53  ;;  %v5013_v22 = vsel %vm1269_vm12, %v12724_v49, %v4693_v33  ;;  %v5294_v35 = vmul.f32 %v5006_v30, %v5006_v30 }
 0x397   : > { %v12863_v38 = vpack.c.bf16 %v12751_v15, %v12749_v19  ;;  %v1468_v17 = vmin.f32 %v12834_v1, 20.0  ;;  %v5301_v37 = vmul.f32 %v5013_v22, %v5013_v22  ;;  %v1469_v50 = vmin.f32 %v12838_v20, 20.0 }
 0x398   : > { %v4684_v11 = vsel %vm12850_vm15, %v4681_v12, %v4678_v52  ;;  %v1474_v55 = vmin.f32 %v12840_v63, 20.0  ;;  %v1475_v18 = vmin.f32 %v12854_v5, 20.0  ;;  %v5465_v56 = vunpack.c.h.bf16 %v9183_v14  ;;  %v12890_v52 = vld [vmem:[%s9702_s23 + $0x40] sm:$0xff] }
 0x399   : > { %v5012_v49 = vsel %vm1268_vm14, %v12722_v61, %v4684_v11  ;;  %v1950_v59 = vmul.f32 1.442695, %v1468_v17  ;;  %v5445_v19 = vpack.c.bf16 %v5301_v37, %v5295_v60  ;;  %v1952_v16 = vmul.f32 1.442695, %v1469_v50 }
 0x39a   : > { %v5300_v15 = vmul.f32 %v5012_v49, %v5012_v49  ;;  %v1962_v3 = vmul.f32 1.442695, %v1474_v55  ;;  %6834 = vmatmul.mubr.bf16.vlgmr.msra.gmra.mrb[36].mxu1 %v12863_v38  ;;  %v1964_v58 = vmul.f32 1.442695, %v1475_v18  ;;  %v5471_v4 = vunpack.c.h.bf16 %v9184_v40 }
 0x39b   : > { %8672 = vpow2.f32 %v1950_v59  ;;  %6937 = vmatprep.subr.bf16.mxu0 %v5445_v19  ;;  %v5464_v31 = vunpack.c.l.bf16 %v9183_v14  ;;  %v5470_v53 = vunpack.c.l.bf16 %v9184_v40  ;;  %v5495_v24 = vmul.f32 %v5465_v56, %v5465_v56 }
 0x39c   : > { %v5444_v13 = vpack.c.bf16 %v5300_v15, %v5294_v35  ;;  %8674 = vpow2.f32 %v1952_v16  ;;  %vm990_vm0 = vcmp.gt.f32.partialorder %v12777_v25, 20.0  ;;  %vm991_vm2 = vcmp.gt.f32.partialorder %v12779_v23, 20.0 }
 0x39d   : > { %v8665_v57 = vpop.eup %8664  ;;  %8676 = vpow2.f32 %v1962_v3  ;;  %vm996_vm5 = vcmp.gt.f32.partialorder %v12784_v36, 20.0  ;;  %v5501_v11 = vmul.f32 %v5471_v4, %v5471_v4  ;;  %v12902_v50 = vmul.f32 %v5464_v31, %v5464_v31 }
 0x39e   : > { %v8667_v61 = vpop.eup %8666  ;;  %6938 = vmatpush1.bf16.xpose.msra.mxu0 %v5444_v13  ;;  %8678 = vpow2.f32 %v1964_v58  ;;  %v2174_v42 = vadd.f32 1.0, %v8665_v57  ;;  %v2177_v46 = vmul.f32 -0.5, %v8665_v57  ;;  %v2180_v41 = vand.u32 2147483647, %v8665_v57 }
 0x39f   : > { %v8669_v12 = vpop.eup %8668  ;;  %v2183_v26 = vadd.f32 1.0, %v8667_v61  ;;  %v2186_v7 = vmul.f32 -0.5, %v8667_v61  ;;  %v2189_v34 = vand.u32 2147483647, %v8667_v61  ;;  %vm997_vm7 = vcmp.gt.f32.partialorder %v12786_v28, 20.0 }
 0x3a0   : > { %v8671_v9 = vpop.eup %8670  ;;  %8680 = vlog2.f32 %v2174_v42  ;;  %v2178_v39 = vadd.f32 1.0, %v2177_v46  ;;  %v2228_v21 = vadd.f32 1.0, %v8669_v12  ;;  %vm12878_vm1 = vcmp.lt.f32.partialorder %v2180_v41, 0.0004427343  ;;  %v657_v41 = vld [vmem:[%s9702_s23 + $0x338] sm:$0xff] }
 0x3a1   : > { %8682 = vlog2.f32 %v2183_v26  ;;  %v2187_v51 = vadd.f32 1.0, %v2186_v7  ;;  %v2237_v8 = vadd.f32 1.0, %v8671_v9  ;;  %v2240_v10 = vmul.f32 -0.5, %v8671_v9 }
 0x3a2   : > { %v2243_v45 = vand.u32 2147483647, %v8671_v9  ;;  %8684 = vlog2.f32 %v2228_v21  ;;  %v2231_v30 = vmul.f32 -0.5, %v8669_v12  ;;  %v2234_v44 = vand.u32 2147483647, %v8669_v12 }
 0x3a3   : > { %8686 = vlog2.f32 %v2237_v8  ;;  %v12883_v0 = vmul.f32 %v8667_v61, %v2187_v51  ;;  %vm12885_vm3 = vcmp.lt.f32.partialorder %v2189_v34, 0.0004427343  ;;  %v2241_v33 = vadd.f32 1.0, %v2240_v10 }
 0x3a4   : > { %v2179_v60 = vmul.f32 %v8665_v57, %v2178_v39  ;;  %vm12892_vm4 = vcmp.lt.f32.partialorder %v2243_v45, 0.0004427343  ;;  %v2232_v17 = vadd.f32 1.0, %v2231_v30  ;;  %vm12898_vm6 = vcmp.lt.f32.partialorder %v2234_v44, 0.0004427343 }
 0x3a5   : > { %v8673_v22 = vpop.eup %8672  ;;  %6956 = vmatmul.mubr.bf16.vlgmr.msra.gmra.mrb[20].mxu0 %v11409_v48  ;;  %v5500_v19 = vmul.f32 %v5470_v53, %v5470_v53  ;;  %v12909_v58 = vunpack.c.l.bf16 %v12890_v52  ;;  %v2242_v57 = vmul.f32 %v8671_v9, %v2241_v33  ;;  %vm1180_vm10 = vcmp.gt.f32.partialorder %v12834_v1, 20.0 }
 0x3a6   : > { %v8675_v55 = vpop.eup %8674  ;;  %v3884_v49 = vadd.f32 1.0, %v8673_v22  ;;  %v3887_v18 = vmul.f32 -0.5, %v8673_v22  ;;  %v3890_v59 = vand.u32 2147483647, %v8673_v22  ;;  %6963 = vmatprep.mubr.bf16.mxu0 %v12519_v47  ;;  %v2233_v46 = vmul.f32 %v8669_v12, %v2232_v17 }
 0x3a7   : > { %v12906_v48 = vpop.eup %8676  ;;  %v3893_v15 = vadd.f32 1.0, %v8675_v55  ;;  %v3896_v16 = vmul.f32 -0.5, %v8675_v55  ;;  %v3899_v3 = vand.u32 2147483647, %v8675_v55  ;;  %vm1181_vm11 = vcmp.gt.f32.partialorder %v12838_v20, 20.0 }
 0x3a8   : > { %v8679_v13 = vpop.eup %8678  ;;  %8688 = vlog2.f32 %v3884_v49  ;;  %v3888_v14 = vadd.f32 1.0, %v3887_v18  ;;  %v3938_v56 = vadd.f32 1.0, %v12906_v48  ;;  %vm12912_vm8 = vcmp.lt.f32.partialorder %v3890_v59, 0.0004427343 }
 0x3a9   : > { %8690 = vlog2.f32 %v3893_v15  ;;  %v3897_v61 = vadd.f32 1.0, %v3896_v16  ;;  %v3947_v42 = vadd.f32 1.0, %v8679_v13  ;;  %v3950_v47 = vmul.f32 -0.5, %v8679_v13 }
 0x3aa   : > { %v8681_v40 = vpop.eup %8680  ;;  %v3953_v4 = vand.u32 2147483647, %v8679_v13  ;;  %8692 = vlog2.f32 %v3938_v56  ;;  %vm12916_vm9 = vcmp.lt.f32.partialorder %v3899_v3, 0.0004427343  ;;  %v3941_v9 = vmul.f32 -0.5, %v12906_v48 }
 0x3ab   : > { %v8683_v7 = vpop.eup %8682  ;;  %8694 = vlog2.f32 %v3947_v42  ;;  %v2176_v31 = vmul.f32 0.6931472, %v8681_v40  ;;  %v3951_v39 = vadd.f32 1.0, %v3950_v47  ;;  %v3889_v21 = vmul.f32 %v8673_v22, %v3888_v14 }
 0x3ac   : > { %v8685_v12 = vpop.eup %8684  ;;  %v2185_v34 = vmul.f32 0.6931472, %v8683_v7  ;;  %v12923_v51 = vpack.c.bf16 %v5501_v11, %v5495_v24  ;;  %v3898_v53 = vmul.f32 %v8675_v55, %v3897_v61  ;;  %vm12925_vm12 = vcmp.lt.f32.partialorder %v3953_v4, 0.0004427343 }
 0x3ad   : > { %v8687_v8 = vpop.eup %8686  ;;  %v2182_v45 = vsel %vm12878_vm1, %v2179_v60, %v2176_v31  ;;  %v2230_v30 = vmul.f32 0.6931472, %v8685_v12  ;;  %vm1186_vm13 = vcmp.gt.f32.partialorder %v12840_v63, 20.0  ;;  %6964 = vmatmul.mubr.bf16.gmra.mrb[24].mxu0 %v12563_v27  ;;  %vm1187_vm14 = vcmp.gt.f32.partialorder %v12854_v5, 20.0  ;;  %v565_v60 = vld [vmem:[%s9702_s23 + $0x58] sm:$0xff]  ;;  %v660_v12 = vld [vmem:[%s9702_s23 + $0x350] sm:$0xff] }
 0x3ae   : > { %v2191_v24 = vsel %vm12885_vm3, %v12883_v0, %v2185_v34  ;;  %v2239_v44 = vmul.f32 0.6931472, %v8687_v8  ;;  %v4734_v33 = vsel %vm990_vm0, %v12777_v25, %v2182_v45  ;;  %v3942_v22 = vadd.f32 1.0, %v3941_v9  ;;  %6843 = vmatprep.mubr.bf16.mxu1 %v12923_v51  ;;  %6971 = vmatprep.mubr.bf16.mxu0 %v12638_v2 }
 0x3af   : > { %v4735_v27 = vsel %vm991_vm2, %v12779_v23, %v2191_v24  ;;  %v2236_v32 = vsel %vm12898_vm6, %v2233_v46, %v2230_v30  ;;  %v5022_v0 = vmul.f32 %v4734_v33, %v4734_v33  ;;  %v3944_v54 = vand.u32 2147483647, %v12906_v48 }
 0x3b0   : > { %v2245_v17 = vsel %vm12892_vm4, %v2242_v57, %v2239_v44  ;;  %v5023_v25 = vmul.f32 %v4735_v27, %v4735_v27  ;;  %v3952_v11 = vmul.f32 %v8679_v13, %v3951_v39  ;;  %v4740_v2 = vsel %vm996_vm5, %v12784_v36, %v2236_v32 }
 0x3b1   : > { %v4741_v23 = vsel %vm997_vm7, %v12786_v28, %v2245_v17  ;;  %v5028_v55 = vmul.f32 %v4740_v2, %v4740_v2  ;;  %v12958_v37 = vpack.c.bf16 %v5500_v19, %v12902_v50  ;;  %v12961_v49 = vunpack.c.h.bf16 %v12890_v52  ;;  %v9185_v17 = vld [vmem:[%s9689_s29 + $0x68] sm:$0xff] }
 0x3b2   : > { %v8689_v18 = vpop.eup %8688  ;;  %v5029_v35 = vmul.f32 %v4741_v23, %v4741_v23  ;;  %v12963_v59 = vunpack.c.l.bf16 %v565_v60  ;;  %v12965_v15 = vunpack.c.h.bf16 %v565_v60  ;;  %v1290_v16 = vmin.f32 %v12909_v58, 20.0 }
 0x3b3   : > { %v8691_v36 = vpop.eup %8690  ;;  %v5310_v3 = vpack.c.bf16 %v5028_v55, %v5022_v0  ;;  %v3886_v13 = vmul.f32 0.6931472, %v8689_v18  ;;  %v3943_v28 = vmul.f32 %v12906_v48, %v3942_v22  ;;  %6844 = vmatmul.mubr.bf16.gmra.mrb[40].mxu1 %v12958_v37  ;;  %v1291_v50 = vmin.f32 %v12961_v49, 20.0  ;;  %v568_v55 = vld [vmem:[%s9702_s23 + $0x70] sm:$0xff] }
 0x3b4   : > { %v8693_v19 = vpop.eup %8692  ;;  %v5311_v52 = vpack.c.bf16 %v5029_v35, %v5023_v25  ;;  %v3895_v57 = vmul.f32 0.6931472, %v8691_v36  ;;  %vm12971_vm15 = vcmp.lt.f32.partialorder %v3944_v54, 0.0004427343  ;;  %v1296_v56 = vmin.f32 %v12963_v59, 20.0 }
 0x3b5   : > { %v8695_v61 = vpop.eup %8694  ;;  %v3892_v42 = vsel %vm12912_vm8, %v3889_v21, %v3886_v13  ;;  %v3940_v46 = vmul.f32 0.6931472, %v8693_v19  ;;  %v1297_v48 = vmin.f32 %v12965_v15, 20.0  ;;  %v1594_v40 = vmul.f32 1.442695, %v1290_v16  ;;  %6972 = vmatmul.mubr.bf16.gmra.mrb[28].mxu0 %v12661_v29 }
 0x3b6   : > { %6862 = vmatprep.subr.bf16.mxu1 %v5311_v52  ;;  %v3901_v47 = vsel %vm12916_vm9, %v3898_v53, %v3895_v57  ;;  %v3949_v4 = vmul.f32 0.6931472, %v8695_v61  ;;  %v4924_v7 = vsel %vm1180_vm10, %v12834_v1, %v3892_v42  ;;  %v1596_v31 = vmul.f32 1.442695, %v1291_v50  ;;  %7011 = vmatprep.mubr.bf16.mxu0 %v12774_v43 }
 0x3b7   : > { %v4925_v26 = vsel %vm1181_vm11, %v12838_v20, %v3901_v47  ;;  %6863 = vmatpush1.bf16.xpose.msra.mxu1 %v5310_v3  ;;  %v3946_v29 = vsel %vm12971_vm15, %v3943_v28, %v3940_v46  ;;  %v5212_v9 = vmul.f32 %v4924_v7, %v4924_v7  ;;  %8696 = vpow2.f32 %v1594_v40 }
 0x3b8   : > { %v3955_v34 = vsel %vm12925_vm12, %v3952_v11, %v3949_v4  ;;  %v5213_v39 = vmul.f32 %v4925_v26, %v4925_v26  ;;  %v4930_v43 = vsel %vm1186_vm13, %v12840_v63, %v3946_v29  ;;  %8698 = vpow2.f32 %v1596_v31 }
 0x3b9   : > { %v4931_v1 = vsel %vm1187_vm14, %v12854_v5, %v3955_v34  ;;  %v5218_v20 = vmul.f32 %v4930_v43, %v4930_v43  ;;  %v1606_v21 = vmul.f32 1.442695, %v1296_v56  ;;  %v1608_v8 = vmul.f32 1.442695, %v1297_v48  ;;  %v571_v56 = vld [vmem:[%s9702_s23 + $0x88] sm:$0xff] }
 0x3ba   : > { %v5219_v53 = vmul.f32 %v4931_v1, %v4931_v1  ;;  %v13001_v45 = vunpack.c.l.bf16 %v657_v41  ;;  %v13003_v30 = vunpack.c.h.bf16 %v657_v41  ;;  %v13005_v10 = vunpack.c.l.bf16 %v660_v12 }
 0x3bb   : > { %v5404_v24 = vpack.c.bf16 %v5218_v20, %v5212_v9  ;;  %8700 = vpow2.f32 %v1606_v21  ;;  %v13007_v44 = vunpack.c.h.bf16 %v660_v12  ;;  %v5477_v25 = vunpack.c.h.bf16 %v9185_v17 }
 0x3bc   : > { %v5405_v63 = vpack.c.bf16 %v5219_v53, %v5213_v39  ;;  %8702 = vpow2.f32 %v1608_v8  ;;  %v1480_v33 = vmin.f32 %v13001_v45, 20.0  ;;  %v1481_v5 = vmin.f32 %v13003_v30, 20.0  ;;  %v13039_v39 = vpop.f32.mrb[12].mxu0 }
 0x3bd   : > { %v1486_v22 = vmin.f32 %v13005_v10, 20.0  ;;  %v1487_v27 = vmin.f32 %v13007_v44, 20.0  ;;  %v5507_v2 = vmul.f32 %v5477_v25, %v5477_v25  ;;  %v5476_v23 = vunpack.c.l.bf16 %v9185_v17  ;;  %v13046_v53 = vpop.f32.mrb[13].mxu0 }
 0x3be   : > { %6979 = vmatprep.subr.bf16.mxu0 %v5405_v63  ;;  %v1974_v32 = vmul.f32 1.442695, %v1480_v33  ;;  %v1976_v0 = vmul.f32 1.442695, %v1481_v5  ;;  %v13017_v50 = vunpack.c.l.bf16 %v568_v55  ;;  %vm1002_vm0 = vcmp.gt.f32.partialorder %v12909_v58, 20.0 }
 0x3bf   : > { %6980 = vmatpush1.bf16.xpose.msra.mxu0 %v5404_v24  ;;  %v1986_v54 = vmul.f32 1.442695, %v1486_v22  ;;  %v1988_v60 = vmul.f32 1.442695, %v1487_v27  ;;  %v13015_v28 = vpack.c.bf16 %v5507_v2, %v5507_v2  ;;  %v5506_v14 = vmul.f32 %v5476_v23, %v5476_v23 }
 0x3c0   : > { %8704 = vpow2.f32 %v1974_v32  ;;  %v13022_v31 = vunpack.c.h.bf16 %v568_v55  ;;  %vm1003_vm1 = vcmp.gt.f32.partialorder %v12961_v49, 20.0  ;;  %v13027_v9 = vunpack.c.l.bf16 %v571_v56  ;;  %v6463_v32 = vpop.f32.mrb[14].mxu0 }
 0x3c1   : > { %v8697_v11 = vpop.eup %8696  ;;  %8706 = vpow2.f32 %v1976_v0  ;;  %6853 = vmatprep.mubr.bf16.mxu1 %v13015_v28  ;;  %v13025_v29 = vpack.c.bf16 %v5506_v14, %v5506_v14  ;;  %v13037_v34 = vunpack.c.h.bf16 %v571_v56  ;;  %vm1008_vm6 = vcmp.gt.f32.partialorder %v12963_v59, 20.0 }
 0x3c2   : > { %v8699_v18 = vpop.eup %8698  ;;  %8708 = vpow2.f32 %v1986_v54  ;;  %v2282_v35 = vadd.f32 1.0, %v8697_v11  ;;  %v2285_v16 = vmul.f32 -0.5, %v8697_v11  ;;  %v2288_v13 = vand.u32 2147483647, %v8697_v11 }
 0x3c3   : > { %v2291_v36 = vadd.f32 1.0, %v8699_v18  ;;  %v2294_v3 = vmul.f32 -0.5, %v8699_v18  ;;  %8710 = vpow2.f32 %v1988_v60  ;;  %v2297_v52 = vand.u32 2147483647, %v8699_v18  ;;  %6854 = vmatmul.mubr.bf16.gmra.mrb[48].mxu1 %v13025_v29 }
 0x3c4   : > { %8712 = vlog2.f32 %v2282_v35  ;;  %v2286_v57 = vadd.f32 1.0, %v2285_v16  ;;  %vm13033_vm3 = vcmp.lt.f32.partialorder %v2288_v13, 0.0004427343  ;;  %vm1009_vm7 = vcmp.gt.f32.partialorder %v12965_v15, 20.0 }
 0x3c5   : > { %v8701_v19 = vpop.eup %8700  ;;  %8714 = vlog2.f32 %v2291_v36  ;;  %v2295_v42 = vadd.f32 1.0, %v2294_v3  ;;  %vm13029_vm2 = vcmp.lt.f32.partialorder %v2297_v52, 0.0004427343  ;;  %v1302_v25 = vmin.f32 %v13017_v50, 20.0 }
 0x3c6   : > { %v8703_v61 = vpop.eup %8702  ;;  %v2336_v46 = vadd.f32 1.0, %v8701_v19  ;;  %v2339_v48 = vmul.f32 -0.5, %v8701_v19  ;;  %v2342_v40 = vand.u32 2147483647, %v8701_v19  ;;  %v2287_v21 = vmul.f32 %v8697_v11, %v2286_v57  ;;  %v6464_v11 = vpop.f32.mrb[15].mxu0 }
 0x3c7   : > { %v2345_v47 = vadd.f32 1.0, %v8703_v61  ;;  %v2348_v4 = vmul.f32 -0.5, %v8703_v61  ;;  %v2351_v7 = vand.u32 2147483647, %v8703_v61  ;;  %v2296_v1 = vmul.f32 %v8699_v18, %v2295_v42 }
 0x3c8   : > { %8716 = vlog2.f32 %v2336_v46  ;;  %v2340_v26 = vadd.f32 1.0, %v2339_v48  ;;  %vm13041_vm4 = vcmp.lt.f32.partialorder %v2342_v40, 0.0004427343  ;;  %v1303_v18 = vmin.f32 %v13022_v31, 20.0 }
 0x3c9   : > { %8718 = vlog2.f32 %v2345_v47  ;;  %v2349_v20 = vadd.f32 1.0, %v2348_v4  ;;  %vm13048_vm5 = vcmp.lt.f32.partialorder %v2351_v7, 0.0004427343  ;;  %v1308_v56 = vmin.f32 %v13027_v9, 20.0 }
 0x3ca   : > { %v8705_v43 = vpop.eup %8704  ;;  %v2341_v33 = vmul.f32 %v8701_v19, %v2340_v26  ;;  %vm1192_vm10 = vcmp.gt.f32.partialorder %v13001_v45, 20.0  ;;  %vm1193_vm11 = vcmp.gt.f32.partialorder %v13003_v30, 20.0  ;;  %vm1199_vm13 = vcmp.gt.f32.partialorder %v13007_v44, 20.0 }
 0x3cb   : > { %v8707_v24 = vpop.eup %8706  ;;  %v3992_v5 = vadd.f32 1.0, %v8705_v43  ;;  %v3995_v22 = vmul.f32 -0.5, %v8705_v43  ;;  %v3998_v27 = vand.u32 2147483647, %v8705_v43  ;;  %v2350_v16 = vmul.f32 %v8703_v61, %v2349_v20 }
 0x3cc   : > { %v13053_v0 = vpop.eup %8708  ;;  %v4001_v54 = vadd.f32 1.0, %v8707_v24  ;;  %v4004_v60 = vmul.f32 -0.5, %v8707_v24  ;;  %v4007_v17 = vand.u32 2147483647, %v8707_v24  ;;  %v1618_v11 = vmul.f32 1.442695, %v1302_v25 }
 0x3cd   : > { %v8711_v2 = vpop.eup %8710  ;;  %8720 = vlog2.f32 %v3992_v5  ;;  %v3996_v23 = vadd.f32 1.0, %v3995_v22  ;;  %v4046_v55 = vadd.f32 1.0, %v13053_v0  ;;  %vm13059_vm8 = vcmp.lt.f32.partialorder %v3998_v27, 0.0004427343 }
 0x3ce   : > { %v8713_v35 = vpop.eup %8712  ;;  %8722 = vlog2.f32 %v4001_v54  ;;  %v4005_v36 = vadd.f32 1.0, %v4004_v60  ;;  %v4055_v3 = vadd.f32 1.0, %v8711_v2  ;;  %v4058_v19 = vmul.f32 -0.5, %v8711_v2 }
 0x3cf   : > { %v8715_v13 = vpop.eup %8714  ;;  %v4061_v52 = vand.u32 2147483647, %v8711_v2  ;;  %v2284_v57 = vmul.f32 0.6931472, %v8713_v35  ;;  %vm13064_vm9 = vcmp.lt.f32.partialorder %v4007_v17, 0.0004427343  ;;  %v3997_v61 = vmul.f32 %v8705_v43, %v3996_v23 }
 0x3d0   : > { %v2293_v42 = vmul.f32 0.6931472, %v8715_v13  ;;  %8724 = vlog2.f32 %v4055_v3  ;;  %v4049_v48 = vmul.f32 -0.5, %v13053_v0  ;;  %v4006_v40 = vmul.f32 %v8707_v24, %v4005_v36  ;;  %v663_v24 = vld [vmem:[%s9702_s23 + $0x368] sm:$0xff]  ;;  %v666_v35 = vld [vmem:[%s9702_s23 + $0x380] sm:$0xff] }
 0x3d1   : > { %v4059_v47 = vadd.f32 1.0, %v4058_v19  ;;  %v2290_v4 = vsel %vm13033_vm3, %v2287_v21, %v2284_v57  ;;  %8726 = vlog2.f32 %v4046_v55  ;;  %vm13075_vm12 = vcmp.lt.f32.partialorder %v4061_v52, 0.0004427343 }
 0x3d2   : > { %v8717_v7 = vpop.eup %8716  ;;  %v2299_v26 = vsel %vm13029_vm2, %v2296_v1, %v2293_v42  ;;  %v4746_v43 = vsel %vm1002_vm0, %v12909_v58, %v2290_v4  ;;  %v4050_v5 = vadd.f32 1.0, %v4049_v48  ;;  %v4052_v1 = vand.u32 2147483647, %v13053_v0 }
 0x3d3   : > { %v8719_v22 = vpop.eup %8718  ;;  %v4747_v12 = vsel %vm1003_vm1, %v12961_v49, %v2299_v26  ;;  %v4060_v21 = vmul.f32 %v8711_v2, %v4059_v47  ;;  %v2338_v41 = vmul.f32 0.6931472, %v8717_v7  ;;  %v5034_v54 = vmul.f32 %v4746_v43, %v4746_v43 }
 0x3d4   : > { %v2347_v27 = vmul.f32 0.6931472, %v8719_v22  ;;  %v5035_v32 = vmul.f32 %v4747_v12, %v4747_v12  ;;  %v4051_v60 = vmul.f32 %v13053_v0, %v4050_v5  ;;  %v1309_v17 = vmin.f32 %v13037_v34, 20.0 }
 0x3d5   : > { %v2344_v58 = vsel %vm13041_vm4, %v2341_v33, %v2338_v41  ;;  %v1620_v49 = vmul.f32 1.442695, %v1303_v18  ;;  %v1630_v55 = vmul.f32 1.442695, %v1308_v56  ;;  %v13098_v36 = vunpack.c.l.bf16 %v663_v24 }
 0x3d6   : > { %v2353_v23 = vsel %vm13048_vm5, %v2350_v16, %v2347_v27  ;;  %v4752_v2 = vsel %vm1008_vm6, %v12963_v59, %v2344_v58  ;;  %8728 = vpow2.f32 %v1618_v11  ;;  %v1632_v0 = vmul.f32 1.442695, %v1309_v17 }
 0x3d7   : > { %v8721_v3 = vpop.eup %8720  ;;  %v4753_v8 = vsel %vm1009_vm7, %v12965_v15, %v2353_v23  ;;  %v5040_v33 = vmul.f32 %v4752_v2, %v4752_v2  ;;  %8730 = vpow2.f32 %v1620_v49  ;;  %v13103_v16 = vunpack.c.h.bf16 %v663_v24 }
 0x3d8   : > { %v8723_v25 = vpop.eup %8722  ;;  %v5041_v18 = vmul.f32 %v4753_v8, %v4753_v8  ;;  %v3994_v63 = vmul.f32 0.6931472, %v8721_v3  ;;  %8732 = vpow2.f32 %v1630_v55  ;;  %v13105_v19 = vunpack.c.l.bf16 %v666_v35 }
 0x3d9   : > { %v4003_v13 = vmul.f32 0.6931472, %v8723_v25  ;;  %v5316_v59 = vpack.c.bf16 %v5040_v33, %v5034_v54  ;;  %8734 = vpow2.f32 %v1632_v0  ;;  %v13109_v15 = vunpack.c.h.bf16 %v666_v35 }
 0x3da   : > { %v8725_v52 = vpop.eup %8724  ;;  %v5317_v57 = vpack.c.bf16 %v5041_v18, %v5035_v32  ;;  %v4000_v56 = vsel %vm13059_vm8, %v3997_v61, %v3994_v63  ;;  %vm13113_vm14 = vcmp.lt.f32.partialorder %v4052_v1, 0.0004427343  ;;  %vm1198_vm15 = vcmp.gt.f32.partialorder %v13005_v10, 20.0 }
 0x3db   : > { %v8727_v42 = vpop.eup %8726  ;;  %v4009_v48 = vsel %vm13064_vm9, %v4006_v40, %v4003_v13  ;;  %v4057_v47 = vmul.f32 0.6931472, %v8725_v52  ;;  %v4936_v7 = vsel %vm1192_vm10, %v13001_v45, %v4000_v56  ;;  %v1492_v43 = vmin.f32 %v13098_v36, 20.0  ;;  %v574_v13 = vld [vmem:[%s9702_s23 + $0xa0] sm:$0xff] }
 0x3dc   : > { %6864 = vmatprep.subr.bf16.mxu1 %v5317_v57  ;;  %v4937_v14 = vsel %vm1193_vm11, %v13003_v30, %v4009_v48  ;;  %v4048_v61 = vmul.f32 0.6931472, %v8727_v42  ;;  %v5224_v26 = vmul.f32 %v4936_v7, %v4936_v7  ;;  %v1493_v5 = vmin.f32 %v13103_v16, 20.0  ;;  %v577_v57 = vld [vmem:[%s9702_s23 + $0xb8] sm:$0xff] }
 0x3dd   : > { %v4063_v46 = vsel %vm13075_vm12, %v4060_v21, %v4057_v47  ;;  %v5225_v40 = vmul.f32 %v4937_v14, %v4937_v14  ;;  %6865 = vmatpush1.bf16.xpose.msra.mxu1 %v5316_v59  ;;  %v1498_v22 = vmin.f32 %v13105_v19, 20.0  ;;  %v1499_v12 = vmin.f32 %v13109_v15, 20.0 }
 0x3de   : > { %v4943_v45 = vsel %vm1199_vm13, %v13007_v44, %v4063_v46  ;;  %v4054_v30 = vsel %vm13113_vm14, %v4051_v60, %v4048_v61  ;;  %v1998_v21 = vmul.f32 1.442695, %v1492_v43  ;;  %v2000_v1 = vmul.f32 1.442695, %v1493_v5 }
 0x3df   : > { %v5231_v41 = vmul.f32 %v4943_v45, %v4943_v45  ;;  %v4942_v20 = vsel %vm1198_vm15, %v13005_v10, %v4054_v30  ;;  %v2010_v27 = vmul.f32 1.442695, %v1498_v22  ;;  %v2012_v32 = vmul.f32 1.442695, %v1499_v12 }
 0x3e0   : > { %v5230_v24 = vmul.f32 %v4942_v20, %v4942_v20  ;;  %v8729_v54 = vpop.eup %8728  ;;  %8736 = vpow2.f32 %v1998_v21  ;;  %vm1015_vm0 = vcmp.gt.f32.partialorder %v13022_v31, 20.0  ;;  %vm1014_vm2 = vcmp.gt.f32.partialorder %v13017_v50, 20.0 }
 0x3e1   : > { %v5411_v58 = vpack.c.bf16 %v5231_v41, %v5225_v40  ;;  %v8731_v17 = vpop.eup %8730  ;;  %8738 = vpow2.f32 %v2000_v1  ;;  %v2390_v11 = vadd.f32 1.0, %v8729_v54  ;;  %v2393_v60 = vmul.f32 -0.5, %v8729_v54 }
 0x3e2   : > { %v5410_v44 = vpack.c.bf16 %v5230_v24, %v5224_v26  ;;  %v8733_v49 = vpop.eup %8732  ;;  %v2399_v23 = vadd.f32 1.0, %v8731_v17  ;;  %v2402_v2 = vmul.f32 -0.5, %v8731_v17  ;;  %8740 = vpow2.f32 %v2010_v27 }
 0x3e3   : > { %6981 = vmatprep.subr.bf16.mxu0 %v5411_v58  ;;  %v8735_v10 = vpop.eup %8734  ;;  %8742 = vpow2.f32 %v2012_v32  ;;  %v2444_v55 = vadd.f32 1.0, %v8733_v49  ;;  %v2405_v35 = vand.u32 2147483647, %v8731_v17  ;;  %v2394_v8 = vadd.f32 1.0, %v2393_v60 }
 0x3e4   : > { %6982 = vmatpush1.bf16.xpose.msra.mxu0 %v5410_v44  ;;  %8744 = vlog2.f32 %v2399_v23  ;;  %v2453_v3 = vadd.f32 1.0, %v8735_v10  ;;  %v2403_v33 = vadd.f32 1.0, %v2402_v2  ;;  %v2456_v0 = vmul.f32 -0.5, %v8735_v10 }
 0x3e5   : > { %8746 = vlog2.f32 %v2390_v11  ;;  %v2396_v25 = vand.u32 2147483647, %v8729_v54  ;;  %v2459_v18 = vand.u32 2147483647, %v8735_v10  ;;  %v2447_v63 = vmul.f32 -0.5, %v8733_v49 }
 0x3e6   : > { %8748 = vlog2.f32 %v2453_v3  ;;  %v2457_v59 = vadd.f32 1.0, %v2456_v0  ;;  %v2450_v52 = vand.u32 2147483647, %v8733_v49  ;;  %vm13139_vm1 = vcmp.lt.f32.partialorder %v2405_v35, 0.0004427343 }
 0x3e7   : > { %8750 = vlog2.f32 %v2444_v55  ;;  %v2395_v42 = vmul.f32 %v8729_v54, %v2394_v8  ;;  %v2448_v48 = vadd.f32 1.0, %v2447_v63  ;;  %vm1021_vm3 = vcmp.gt.f32.partialorder %v13037_v34, 20.0 }
 0x3e8   : > { %v2404_v47 = vmul.f32 %v8731_v17, %v2403_v33  ;;  %vm13145_vm4 = vcmp.lt.f32.partialorder %v2396_v25, 0.0004427343  ;;  %v13149_v7 = vunpack.c.l.bf16 %v574_v13  ;;  %v13151_v14 = vunpack.c.h.bf16 %v574_v13 }
 0x3e9   : > { %v2458_v26 = vmul.f32 %v8735_v10, %v2457_v59  ;;  %vm13153_vm5 = vcmp.lt.f32.partialorder %v2459_v18, 0.0004427343  ;;  %vm1020_vm6 = vcmp.gt.f32.partialorder %v13027_v9, 20.0  ;;  %vm13158_vm7 = vcmp.lt.f32.partialorder %v2450_v52, 0.0004427343 }
 0x3ea   : > { %v8737_v61 = vpop.eup %8736  ;;  %v13162_v43 = vunpack.c.l.bf16 %v577_v57  ;;  %v13164_v12 = vunpack.c.h.bf16 %v577_v57  ;;  %v2449_v24 = vmul.f32 %v8733_v49, %v2448_v48  ;;  %v1314_v54 = vmin.f32 %v13149_v7, 20.0 }
 0x3eb   : > { %v8739_v5 = vpop.eup %8738  ;;  %v4100_v45 = vadd.f32 1.0, %v8737_v61  ;;  %v4103_v30 = vmul.f32 -0.5, %v8737_v61  ;;  %v4106_v22 = vand.u32 2147483647, %v8737_v61  ;;  %v1315_v58 = vmin.f32 %v13151_v14, 20.0 }
 0x3ec   : > { %v13166_v41 = vpop.eup %8740  ;;  %v4109_v20 = vadd.f32 1.0, %v8739_v5  ;;  %v4112_v21 = vmul.f32 -0.5, %v8739_v5  ;;  %v4115_v1 = vand.u32 2147483647, %v8739_v5  ;;  %v1320_v60 = vmin.f32 %v13162_v43, 20.0 }
 0x3ed   : > { %v8743_v27 = vpop.eup %8742  ;;  %8752 = vlog2.f32 %v4100_v45  ;;  %v4104_v32 = vadd.f32 1.0, %v4103_v30  ;;  %v4154_v11 = vadd.f32 1.0, %v13166_v41  ;;  %vm13172_vm8 = vcmp.lt.f32.partialorder %v4106_v22, 0.0004427343  ;;  %v669_v22 = vld [vmem:[%s9702_s23 + $0x398] sm:$0xff] }
 0x3ee   : > { %v8745_v17 = vpop.eup %8744  ;;  %8754 = vlog2.f32 %v4109_v20  ;;  %v4163_v44 = vadd.f32 1.0, %v8743_v27  ;;  %v4113_v10 = vadd.f32 1.0, %v4112_v21  ;;  %v4166_v55 = vmul.f32 -0.5, %v8743_v27 }
 0x3ef   : > { %v8747_v23 = vpop.eup %8746  ;;  %v2401_v2 = vmul.f32 0.6931472, %v8745_v17  ;;  %vm13176_vm9 = vcmp.lt.f32.partialorder %v4115_v1, 0.0004427343  ;;  %v4169_v8 = vand.u32 2147483647, %v8743_v27  ;;  %v4105_v0 = vmul.f32 %v8737_v61, %v4104_v32 }
 0x3f0   : > { %v8749_v35 = vpop.eup %8748  ;;  %8756 = vlog2.f32 %v4163_v44  ;;  %v2392_v33 = vmul.f32 0.6931472, %v8747_v23  ;;  %vm1205_vm10 = vcmp.gt.f32.partialorder %v13103_v16, 20.0  ;;  %v4167_v13 = vadd.f32 1.0, %v4166_v55  ;;  %v672_v32 = vld [vmem:[%s9702_s23 + $0x3b0] sm:$0xff] }
 0x3f1   : > { %v8751_v25 = vpop.eup %8750  ;;  %v2407_v18 = vsel %vm13139_vm1, %v2404_v47, %v2401_v2  ;;  %v2455_v63 = vmul.f32 0.6931472, %v8749_v35  ;;  %vm1204_vm11 = vcmp.gt.f32.partialorder %v13098_v36, 20.0  ;;  %v4157_v59 = vmul.f32 -0.5, %v13166_v41 }
 0x3f2   : > { %v4759_v52 = vsel %vm1015_vm0, %v13022_v31, %v2407_v18  ;;  %v2398_v57 = vsel %vm13145_vm4, %v2395_v42, %v2392_v33  ;;  %v2446_v48 = vmul.f32 0.6931472, %v8751_v25  ;;  %8758 = vlog2.f32 %v4154_v11 }
 0x3f3   : > { %v2461_v56 = vsel %vm13153_vm5, %v2458_v26, %v2455_v63  ;;  %v5047_v47 = vmul.f32 %v4759_v52, %v4759_v52  ;;  %vm1211_vm12 = vcmp.gt.f32.partialorder %v13109_v15, 20.0  ;;  %v4114_v61 = vmul.f32 %v8739_v5, %v4113_v10 }
 0x3f4   : > { %v4758_v45 = vsel %vm1014_vm2, %v13017_v50, %v2398_v57  ;;  %v4765_v31 = vsel %vm1021_vm3, %v13037_v34, %v2461_v56  ;;  %vm13199_vm13 = vcmp.lt.f32.partialorder %v4169_v8, 0.0004427343  ;;  %v2452_v4 = vsel %vm13158_vm7, %v2449_v24, %v2446_v48 }
 0x3f5   : > { %v5046_v26 = vmul.f32 %v4758_v45, %v4758_v45  ;;  %v5053_v46 = vmul.f32 %v4765_v31, %v4765_v31  ;;  %v4168_v30 = vmul.f32 %v8743_v27, %v4167_v13  ;;  %v4764_v5 = vsel %vm1020_vm6, %v13027_v9, %v2452_v4 }
 0x3f6   : > { %v1321_v50 = vmin.f32 %v13164_v12, 20.0  ;;  %v5052_v20 = vmul.f32 %v4764_v5, %v4764_v5  ;;  %v4158_v21 = vadd.f32 1.0, %v4157_v59  ;;  %v1642_v34 = vmul.f32 1.442695, %v1314_v54 }
 0x3f7   : > { %v1644_v1 = vmul.f32 1.442695, %v1315_v58  ;;  %v8753_v17 = vpop.eup %8752  ;;  %v5323_v44 = vpack.c.bf16 %v5053_v46, %v5047_v47  ;;  %v4160_v40 = vand.u32 2147483647, %v13166_v41  ;;  %v1654_v24 = vmul.f32 1.442695, %v1320_v60 }
 0x3f8   : > { %v1656_v11 = vmul.f32 1.442695, %v1321_v50  ;;  %v8755_v23 = vpop.eup %8754  ;;  %v5322_v27 = vpack.c.bf16 %v5052_v20, %v5046_v26  ;;  %v4102_v2 = vmul.f32 0.6931472, %v8753_v17  ;;  %8760 = vpow2.f32 %v1642_v34 }
 0x3f9   : > { %v13212_v10 = vunpack.c.l.bf16 %v669_v22  ;;  %6866 = vmatprep.subr.bf16.mxu1 %v5323_v44  ;;  %v4111_v9 = vmul.f32 0.6931472, %v8755_v23  ;;  %8762 = vpow2.f32 %v1644_v1  ;;  %v13214_v55 = vunpack.c.h.bf16 %v669_v22  ;;  %v580_v22 = vld [vmem:[%s9702_s23 + $0xd0] sm:$0xff] }
 0x3fa   : > { %v13216_v54 = vunpack.c.l.bf16 %v672_v32  ;;  %v8757_v58 = vpop.eup %8756  ;;  %6867 = vmatpush1.bf16.xpose.msra.mxu1 %v5322_v27  ;;  %v4108_v35 = vsel %vm13172_vm8, %v4105_v0, %v4102_v2  ;;  %8764 = vpow2.f32 %v1654_v24  ;;  %v13220_v60 = vunpack.c.h.bf16 %v672_v32 }
 0x3fb   : > { %v1504_v8 = vmin.f32 %v13212_v10, 20.0  ;;  %v4117_v33 = vsel %vm13176_vm9, %v4114_v61, %v4111_v9  ;;  %v4165_v25 = vmul.f32 0.6931472, %v8757_v58  ;;  %v4159_v18 = vmul.f32 %v13166_v41, %v4158_v21 }
 0x3fc   : > { %8766 = vpow2.f32 %v1656_v11  ;;  %v8759_v63 = vpop.eup %8758  ;;  %v4949_v13 = vsel %vm1205_vm10, %v13103_v16, %v4117_v33  ;;  %vm1210_vm14 = vcmp.gt.f32.partialorder %v13105_v19, 20.0  ;;  %vm4161_vm15 = vcmp.lt.f32.partialorder %v4160_v40, 0.0004427343 }
 0x3fd   : > { %v4948_v49 = vsel %vm1204_vm11, %v13098_v36, %v4108_v35  ;;  %v4171_v3 = vsel %vm13199_vm13, %v4168_v30, %v4165_v25  ;;  %v5237_v0 = vmul.f32 %v4949_v13, %v4949_v13  ;;  %v4156_v59 = vmul.f32 0.6931472, %v8759_v63 }
 0x3fe   : > { %v1505_v41 = vmin.f32 %v13214_v55, 20.0  ;;  %v4955_v52 = vsel %vm1211_vm12, %v13109_v15, %v4171_v3  ;;  %v1510_v16 = vmin.f32 %v13216_v54, 20.0  ;;  %v1511_v57 = vmin.f32 %v13220_v60, 20.0 }
 0x3ff   : > { %v2022_v48 = vmul.f32 1.442695, %v1504_v8  ;;  %v5243_v56 = vmul.f32 %v4955_v52, %v4955_v52  ;;  %v4162_v47 = vsel %vm4161_vm15, %v4159_v18, %v4156_v59  ;;  %v5236_v61 = vmul.f32 %v4948_v49, %v4948_v49  ;;  %v583_v18 = vld [vmem:[%s9702_s23 + $0xe8] sm:$0xff] }
 0x400   : > { %v2024_v36 = vmul.f32 1.442695, %v1505_v41  ;;  %v4954_v45 = vsel %vm1210_vm14, %v13105_v19, %v4162_v47  ;;  %v2034_v31 = vmul.f32 1.442695, %v1510_v16  ;;  %v2036_v42 = vmul.f32 1.442695, %v1511_v57 }
 0x401   : > { %8768 = vpow2.f32 %v2022_v48  ;;  %v5417_v4 = vpack.c.bf16 %v5243_v56, %v5237_v0  ;;  %v5242_v26 = vmul.f32 %v4954_v45, %v4954_v45  ;;  %v13243_v2 = vunpack.c.l.bf16 %v580_v22 }
 0x402   : > { %8770 = vpow2.f32 %v2024_v36  ;;  %v8761_v46 = vpop.eup %8760  ;;  %vm1026_vm1 = vcmp.gt.f32.partialorder %v13149_v7, 20.0  ;;  %vm1027_vm2 = vcmp.gt.f32.partialorder %v13151_v14, 20.0  ;;  %v13262_v0 = vunpack.c.h.bf16 %v580_v22 }
 0x403   : > { %8772 = vpow2.f32 %v2034_v31  ;;  %v8763_v15 = vpop.eup %8762  ;;  %6983 = vmatprep.subr.bf16.mxu0 %v5417_v4  ;;  %v5416_v30 = vpack.c.bf16 %v5242_v26, %v5236_v61  ;;  %v2498_v5 = vadd.f32 1.0, %v8761_v46  ;;  %v2501_v50 = vmul.f32 -0.5, %v8761_v46 }
 0x404   : > { %8774 = vpow2.f32 %v2036_v42  ;;  %v8765_v20 = vpop.eup %8764  ;;  %v2507_v21 = vadd.f32 1.0, %v8763_v15  ;;  %v2510_v34 = vmul.f32 -0.5, %v8763_v15  ;;  %v2513_v1 = vand.u32 2147483647, %v8763_v15 }
 0x405   : > { %v2504_v19 = vand.u32 2147483647, %v8761_v46  ;;  %6984 = vmatpush1.bf16.xpose.msra.mxu0 %v5416_v30  ;;  %8776 = vlog2.f32 %v2498_v5  ;;  %v2502_v17 = vadd.f32 1.0, %v2501_v50  ;;  %v2552_v44 = vadd.f32 1.0, %v8765_v20 }
 0x406   : > { %v8767_v32 = vpop.eup %8766  ;;  %v2555_v40 = vmul.f32 -0.5, %v8765_v20  ;;  %8778 = vlog2.f32 %v2507_v21  ;;  %v2511_v24 = vadd.f32 1.0, %v2510_v34  ;;  %vm13245_vm0 = vcmp.lt.f32.partialorder %v2513_v1, 0.0004427343 }
 0x407   : > { %v2561_v11 = vadd.f32 1.0, %v8767_v32  ;;  %v2564_v23 = vmul.f32 -0.5, %v8767_v32  ;;  %v2567_v27 = vand.u32 2147483647, %v8767_v32  ;;  %v2558_v35 = vand.u32 2147483647, %v8765_v20 }
 0x408   : > { %v2556_v58 = vadd.f32 1.0, %v2555_v40  ;;  %v2512_v8 = vmul.f32 %v8763_v15, %v2511_v24  ;;  %v2503_v33 = vmul.f32 %v8761_v46, %v2502_v17  ;;  %vm13251_vm3 = vcmp.lt.f32.partialorder %v2504_v19, 0.0004427343 }
 0x409   : > { %8780 = vlog2.f32 %v2561_v11  ;;  %v2565_v13 = vadd.f32 1.0, %v2564_v23  ;;  %vm13256_vm4 = vcmp.lt.f32.partialorder %v2567_v27, 0.0004427343  ;;  %vm1033_vm5 = vcmp.gt.f32.partialorder %v13164_v12, 20.0 }
 0x40a   : > { %8782 = vlog2.f32 %v2552_v44  ;;  %v13260_v3 = vmul.f32 %v8765_v20, %v2556_v58  ;;  %vm13265_vm6 = vcmp.lt.f32.partialorder %v2558_v35, 0.0004427343  ;;  %vm1032_vm7 = vcmp.gt.f32.partialorder %v13162_v43, 20.0 }
 0x40b   : > { %v8769_v63 = vpop.eup %8768  ;;  %v13270_v36 = vunpack.c.l.bf16 %v583_v18  ;;  %v13272_v4 = vunpack.c.h.bf16 %v583_v18  ;;  %v2566_v26 = vmul.f32 %v8767_v32, %v2565_v13  ;;  %vm1216_vm10 = vcmp.gt.f32.partialorder %v13212_v10, 20.0 }
 0x40c   : > { %v8771_v59 = vpop.eup %8770  ;;  %v4208_v52 = vadd.f32 1.0, %v8769_v63  ;;  %v4211_v16 = vmul.f32 -0.5, %v8769_v63  ;;  %v4214_v57 = vand.u32 2147483647, %v8769_v63  ;;  %vm1217_vm11 = vcmp.gt.f32.partialorder %v13214_v55, 20.0 }
 0x40d   : > { %v8773_v48 = vpop.eup %8772  ;;  %v4217_v56 = vadd.f32 1.0, %v8771_v59  ;;  %v4220_v47 = vmul.f32 -0.5, %v8771_v59  ;;  %v4223_v61 = vand.u32 2147483647, %v8771_v59  ;;  %vm1222_vm13 = vcmp.gt.f32.partialorder %v13216_v54, 20.0 }
 0x40e   : > { %v8775_v45 = vpop.eup %8774  ;;  %8784 = vlog2.f32 %v4208_v52  ;;  %v4212_v31 = vadd.f32 1.0, %v4211_v16  ;;  %v4262_v42 = vadd.f32 1.0, %v8773_v48  ;;  %vm13274_vm8 = vcmp.lt.f32.partialorder %v4214_v57, 0.0004427343 }
 0x40f   : > { %8786 = vlog2.f32 %v4217_v56  ;;  %v4221_v46 = vadd.f32 1.0, %v4220_v47  ;;  %v4271_v15 = vadd.f32 1.0, %v8775_v45  ;;  %v8777_v30 = vpop.eup %8776  ;;  %v4274_v5 = vmul.f32 -0.5, %v8775_v45  ;;  %v675_v47 = vld [vmem:[%s9702_s23 + $0x3c8] sm:$0xff] }
 0x410   : > { %v4277_v50 = vand.u32 2147483647, %v8775_v45  ;;  %8788 = vlog2.f32 %v4262_v42  ;;  %v8779_v20 = vpop.eup %8778  ;;  %vm13278_vm9 = vcmp.lt.f32.partialorder %v4223_v61, 0.0004427343  ;;  %v2500_v34 = vmul.f32 0.6931472, %v8777_v30 }
 0x411   : > { %8790 = vlog2.f32 %v4271_v15  ;;  %v4265_v1 = vmul.f32 -0.5, %v8773_v48  ;;  %v2509_v19 = vmul.f32 0.6931472, %v8779_v20  ;;  %v4222_v32 = vmul.f32 %v8771_v59, %v4221_v46 }
 0x412   : > { %v4275_v17 = vadd.f32 1.0, %v4274_v5  ;;  %v4213_v44 = vmul.f32 %v8769_v63, %v4212_v31  ;;  %vm13284_vm12 = vcmp.lt.f32.partialorder %v4277_v50, 0.0004427343  ;;  %v2506_v11 = vsel %vm13251_vm3, %v2503_v33, %v2500_v34 }
 0x413   : > { %v8781_v40 = vpop.eup %8780  ;;  %v4266_v23 = vadd.f32 1.0, %v4265_v1  ;;  %v4268_v27 = vand.u32 2147483647, %v8773_v48  ;;  %v1326_v58 = vmin.f32 %v13243_v2, 20.0  ;;  %v2515_v18 = vsel %vm13245_vm0, %v2512_v8, %v2509_v19 }
 0x414   : > { %v8783_v35 = vpop.eup %8782  ;;  %v2563_v13 = vmul.f32 0.6931472, %v8781_v40  ;;  %vm1223_vm14 = vcmp.gt.f32.partialorder %v13220_v60, 20.0  ;;  %v4276_v63 = vmul.f32 %v8775_v45, %v4275_v17  ;;  %v4770_v25 = vsel %vm1026_vm1, %v13149_v7, %v2506_v11 }
 0x415   : > { %v4771_v33 = vsel %vm1027_vm2, %v13151_v14, %v2515_v18  ;;  %v2554_v59 = vmul.f32 0.6931472, %v8783_v35  ;;  %v5058_v52 = vmul.f32 %v4770_v25, %v4770_v25  ;;  %v4267_v16 = vmul.f32 %v8773_v48, %v4266_v23  ;;  %v678_v23 = vld [vmem:[%s9702_s23 + $0x3e0] sm:$0xff] }
 0x416   : > { %v2569_v9 = vsel %vm13256_vm4, %v2566_v26, %v2563_v13  ;;  %v5059_v8 = vmul.f32 %v4771_v33, %v4771_v33  ;;  %vm13303_vm15 = vcmp.lt.f32.partialorder %v4268_v27, 0.0004427343  ;;  %v1327_v56 = vmin.f32 %v13262_v0, 20.0 }
 0x417   : > { %v4777_v7 = vsel %vm1033_vm5, %v13164_v12, %v2569_v9  ;;  %v2560_v14 = vsel %vm13265_vm6, %v13260_v3, %v2554_v59  ;;  %v1332_v48 = vmin.f32 %v13270_v36, 20.0  ;;  %v1333_v49 = vmin.f32 %v13272_v4, 20.0 }
 0x418   : > { %v8785_v61 = vpop.eup %8784  ;;  %v5065_v45 = vmul.f32 %v4777_v7, %v4777_v7  ;;  %v4776_v31 = vsel %vm1032_vm7, %v13162_v43, %v2560_v14  ;;  %v1666_v42 = vmul.f32 1.442695, %v1326_v58  ;;  %v1668_v26 = vmul.f32 1.442695, %v1327_v56 }
 0x419   : > { %v8787_v46 = vpop.eup %8786  ;;  %v5064_v15 = vmul.f32 %v4776_v31, %v4776_v31  ;;  %v4210_v12 = vmul.f32 0.6931472, %v8785_v61  ;;  %v1678_v30 = vmul.f32 1.442695, %v1332_v48  ;;  %v1680_v5 = vmul.f32 1.442695, %v1333_v49 }
 0x41a   : > { %v8789_v3 = vpop.eup %8788  ;;  %v5329_v41 = vpack.c.bf16 %v5065_v45, %v5059_v8  ;;  %v4219_v50 = vmul.f32 0.6931472, %v8787_v46  ;;  %8792 = vpow2.f32 %v1666_v42  ;;  %v13320_v20 = vunpack.c.l.bf16 %v675_v47 }
 0x41b   : > { %v8791_v34 = vpop.eup %8790  ;;  %v5328_v1 = vpack.c.bf16 %v5064_v15, %v5058_v52  ;;  %v4216_v19 = vsel %vm13274_vm8, %v4213_v44, %v4210_v12  ;;  %v4264_v43 = vmul.f32 0.6931472, %v8789_v3  ;;  %8794 = vpow2.f32 %v1668_v26  ;;  %v589_v3 = vld [vmem:[%s9702_s23 + $0x118] sm:$0xff] }
 0x41c   : > { %6868 = vmatprep.subr.bf16.mxu1 %v5329_v41  ;;  %v4225_v17 = vsel %vm13278_vm9, %v4222_v32, %v4219_v50  ;;  %v4273_v40 = vmul.f32 0.6931472, %v8791_v34  ;;  %v4960_v11 = vsel %vm1216_vm10, %v13212_v10, %v4216_v19  ;;  %8796 = vpow2.f32 %v1678_v30 }
 0x41d   : > { %v4961_v27 = vsel %vm1217_vm11, %v13214_v55, %v4225_v17  ;;  %6869 = vmatpush1.bf16.xpose.msra.mxu1 %v5328_v1  ;;  %v4270_v22 = vsel %vm13303_vm15, %v4267_v16, %v4264_v43  ;;  %v5248_v44 = vmul.f32 %v4960_v11, %v4960_v11  ;;  %8798 = vpow2.f32 %v1680_v5  ;;  %v13376_v17 = vld [vmem:[%s9702_s23 + $0x3f8] sm:$0xff] }
 0x41e   : > { %v4279_v21 = vsel %vm13284_vm12, %v4276_v63, %v4273_v40  ;;  %v5249_v32 = vmul.f32 %v4961_v27, %v4961_v27  ;;  %v4966_v10 = vsel %vm1222_vm13, %v13216_v54, %v4270_v22  ;;  %v13340_v58 = vunpack.c.h.bf16 %v675_v47 }
 0x41f   : > { %v4967_v55 = vsel %vm1223_vm14, %v13220_v60, %v4279_v21  ;;  %v5254_v35 = vmul.f32 %v4966_v10, %v4966_v10  ;;  %v13345_v18 = vunpack.c.l.bf16 %v678_v23  ;;  %v13347_v13 = vunpack.c.h.bf16 %v678_v23 }
 0x420   : > { %v5255_v25 = vmul.f32 %v4967_v55, %v4967_v55  ;;  %v1516_v24 = vmin.f32 %v13320_v20, 20.0  ;;  %v1517_v63 = vmin.f32 %v13340_v58, 20.0  ;;  %v13355_v56 = vadd.f32 %v13039_v39, %v12664_v6 }
 0x421   : > { %v5422_v33 = vpack.c.bf16 %v5254_v35, %v5248_v44  ;;  %v1522_v59 = vmin.f32 %v13345_v18, 20.0  ;;  %v1523_v54 = vmin.f32 %v13347_v13, 20.0  ;;  %v13359_v7 = vadd.f32 %v13046_v53, %v12668_v62  ;;  %v586_v53 = vld [vmem:[%s9702_s23 + $0x100] sm:$0xff] }
 0x422   : > { %v5423_v52 = vpack.c.bf16 %v5255_v25, %v5249_v32  ;;  %v2046_v16 = vmul.f32 1.442695, %v1516_v24  ;;  %v2048_v9 = vmul.f32 1.442695, %v1517_v63  ;;  %vm1039_vm0 = vcmp.gt.f32.partialorder %v13262_v0, 20.0 }
 0x423   : > { %v2058_v8 = vmul.f32 1.442695, %v1522_v59  ;;  %v2060_v60 = vmul.f32 1.442695, %v1523_v54  ;;  %v13364_v50 = vunpack.c.l.bf16 %v586_v53  ;;  %vm1038_vm2 = vcmp.gt.f32.partialorder %v13243_v2, 20.0 }
 0x424   : > { %v8793_v57 = vpop.eup %8792  ;;  %6985 = vmatprep.subr.bf16.mxu0 %v5423_v52  ;;  %8800 = vpow2.f32 %v2046_v16  ;;  %vm1045_vm4 = vcmp.gt.f32.partialorder %v13272_v4, 20.0  ;;  %v13379_v11 = vunpack.c.h.bf16 %v586_v53  ;;  %v13381_v23 = vunpack.c.l.bf16 %v589_v3 }
 0x425   : > { %v8795_v14 = vpop.eup %8794  ;;  %6986 = vmatpush1.bf16.xpose.msra.mxu0 %v5422_v33  ;;  %8802 = vpow2.f32 %v2048_v9  ;;  %v2606_v48 = vadd.f32 1.0, %v8793_v57  ;;  %v2609_v49 = vmul.f32 -0.5, %v8793_v57  ;;  %v2612_v42 = vand.u32 2147483647, %v8793_v57 }
 0x426   : > { %v8797_v47 = vpop.eup %8796  ;;  %v2615_v61 = vadd.f32 1.0, %v8795_v14  ;;  %v2618_v45 = vmul.f32 -0.5, %v8795_v14  ;;  %8804 = vpow2.f32 %v2058_v8  ;;  %v2621_v39 = vand.u32 2147483647, %v8795_v14 }
 0x427   : > { %v8799_v31 = vpop.eup %8798  ;;  %8806 = vpow2.f32 %v2060_v60  ;;  %v2660_v6 = vadd.f32 1.0, %v8797_v47  ;;  %v2610_v62 = vadd.f32 1.0, %v2609_v49  ;;  %v2663_v30 = vmul.f32 -0.5, %v8797_v47 }
 0x428   : > { %8808 = vlog2.f32 %v2615_v61  ;;  %v2669_v26 = vadd.f32 1.0, %v8799_v31  ;;  %v2619_v46 = vadd.f32 1.0, %v2618_v45  ;;  %v2672_v15 = vmul.f32 -0.5, %v8799_v31 }
 0x429   : > { %8810 = vlog2.f32 %v2606_v48  ;;  %v2675_v12 = vand.u32 2147483647, %v8799_v31  ;;  %v2666_v5 = vand.u32 2147483647, %v8797_v47  ;;  %vm13366_vm1 = vcmp.lt.f32.partialorder %v2621_v39, 0.0004427343 }
 0x42a   : > { %8812 = vlog2.f32 %v2669_v26  ;;  %v2673_v41 = vadd.f32 1.0, %v2672_v15  ;;  %v2611_v1 = vmul.f32 %v8793_v57, %v2610_v62  ;;  %vm13371_vm3 = vcmp.lt.f32.partialorder %v2612_v42, 0.0004427343 }
 0x42b   : > { %8814 = vlog2.f32 %v2660_v6  ;;  %v2664_v43 = vadd.f32 1.0, %v2663_v30  ;;  %v2620_v40 = vmul.f32 %v8795_v14, %v2619_v46  ;;  %v13383_v27 = vunpack.c.h.bf16 %v589_v3 }
 0x42c   : > { %v2674_v44 = vmul.f32 %v8799_v31, %v2673_v41  ;;  %vm13385_vm5 = vcmp.lt.f32.partialorder %v2675_v12, 0.0004427343  ;;  %vm1044_vm6 = vcmp.gt.f32.partialorder %v13270_v36, 20.0  ;;  %vm13390_vm7 = vcmp.lt.f32.partialorder %v2666_v5, 0.0004427343 }
 0x42d   : > { %v1338_v10 = vmin.f32 %v13364_v50, 20.0  ;;  %v13396_v63 = vunpack.c.l.bf16 %v13376_v17  ;;  %v2665_v16 = vmul.f32 %v8797_v47, %v2664_v43  ;;  %v1339_v8 = vmin.f32 %v13379_v11, 20.0 }
 0x42e   : > { %v8801_v22 = vpop.eup %8800  ;;  %v1344_v60 = vmin.f32 %v13381_v23, 20.0  ;;  %v1345_v57 = vmin.f32 %v13383_v27, 20.0  ;;  %vm1229_vm10 = vcmp.gt.f32.partialorder %v13340_v58, 20.0  ;;  %vm1228_vm11 = vcmp.gt.f32.partialorder %v13320_v20, 20.0 }
 0x42f   : > { %v8803_v55 = vpop.eup %8802  ;;  %v4316_v35 = vadd.f32 1.0, %v8801_v22  ;;  %v4319_v25 = vmul.f32 -0.5, %v8801_v22  ;;  %v4322_v24 = vand.u32 2147483647, %v8801_v22  ;;  %vm1235_vm12 = vcmp.gt.f32.partialorder %v13347_v13, 20.0 }
 0x430   : > { %v13398_v33 = vpop.eup %8804  ;;  %v4325_v59 = vadd.f32 1.0, %v8803_v55  ;;  %v4328_v54 = vmul.f32 -0.5, %v8803_v55  ;;  %v4331_v52 = vand.u32 2147483647, %v8803_v55  ;;  %vm1234_vm13 = vcmp.gt.f32.partialorder %v13345_v18, 20.0 }
 0x431   : > { %v13400_v9 = vpop.eup %8806  ;;  %8816 = vlog2.f32 %v4316_v35  ;;  %v4320_v49 = vadd.f32 1.0, %v4319_v25  ;;  %v4370_v61 = vadd.f32 1.0, %v13398_v33  ;;  %vm13408_vm8 = vcmp.lt.f32.partialorder %v4322_v24, 0.0004427343 }
 0x432   : > { %v8809_v14 = vpop.eup %8808  ;;  %8818 = vlog2.f32 %v4325_v59  ;;  %v4379_v48 = vadd.f32 1.0, %v13400_v9  ;;  %v4329_v42 = vadd.f32 1.0, %v4328_v54  ;;  %v4382_v47 = vmul.f32 -0.5, %v13400_v9 }
 0x433   : > { %v8811_v45 = vpop.eup %8810  ;;  %v2617_v31 = vmul.f32 0.6931472, %v8809_v14  ;;  %vm13412_vm9 = vcmp.lt.f32.partialorder %v4331_v52, 0.0004427343  ;;  %v4385_v62 = vand.u32 2147483647, %v13400_v9  ;;  %v4321_v25 = vmul.f32 %v8801_v22, %v4320_v49 }
 0x434   : > { %v8813_v39 = vpop.eup %8812  ;;  %8820 = vlog2.f32 %v4379_v48  ;;  %v2608_v53 = vmul.f32 0.6931472, %v8811_v45  ;;  %v4383_v30 = vadd.f32 1.0, %v4382_v47  ;;  %v4373_v5 = vmul.f32 -0.5, %v13398_v33 }
 0x435   : > { %v8815_v46 = vpop.eup %8814  ;;  %v2623_v15 = vsel %vm13366_vm1, %v2620_v40, %v2617_v31  ;;  %v2671_v12 = vmul.f32 0.6931472, %v8813_v39  ;;  %8822 = vlog2.f32 %v4370_v61  ;;  %v4330_v19 = vmul.f32 %v8803_v55, %v4329_v42 }
 0x436   : > { %v4783_v3 = vsel %vm1039_vm0, %v13262_v0, %v2623_v15  ;;  %v2614_v41 = vsel %vm13371_vm3, %v2611_v1, %v2608_v53  ;;  %v2662_v43 = vmul.f32 0.6931472, %v8815_v46  ;;  %v4374_v54 = vadd.f32 1.0, %v4373_v5 }
 0x437   : > { %v2677_v34 = vsel %vm13385_vm5, %v2674_v44, %v2671_v12  ;;  %v5071_v40 = vmul.f32 %v4783_v3, %v4783_v3  ;;  %v4782_v35 = vsel %vm1038_vm2, %v13243_v2, %v2614_v41  ;;  %v4384_v44 = vmul.f32 %v13400_v9, %v4383_v30 }
 0x438   : > { %v4789_v0 = vsel %vm1045_vm4, %v13272_v4, %v2677_v34  ;;  %v2668_v1 = vsel %vm13390_vm7, %v2665_v16, %v2662_v43  ;;  %v5070_v24 = vmul.f32 %v4782_v35, %v4782_v35  ;;  %v1690_v2 = vmul.f32 1.442695, %v1338_v10  ;;  %v684_v4 = vld [vmem:[%s9702_s23 + $0x410] sm:$0xff] }
 0x439   : > { %v5077_v21 = vmul.f32 %v4789_v0, %v4789_v0  ;;  %v4788_v59 = vsel %vm1044_vm6, %v13270_v36, %v2668_v1  ;;  %v1692_v52 = vmul.f32 1.442695, %v1339_v8  ;;  %v1702_v14 = vmul.f32 1.442695, %v1344_v60 }
 0x43a   : > { %v5076_v22 = vmul.f32 %v4788_v59, %v4788_v59  ;;  %v4376_v32 = vand.u32 2147483647, %v13398_v33  ;;  %8824 = vpow2.f32 %v1690_v2  ;;  %v1704_v16 = vmul.f32 1.442695, %v1345_v57 }
 0x43b   : > { %v8817_v55 = vpop.eup %8816  ;;  %v5335_v48 = vpack.c.bf16 %v5077_v21, %v5071_v40  ;;  %8826 = vpow2.f32 %v1692_v52  ;;  %v13446_v36 = vunpack.c.h.bf16 %v13376_v17  ;;  %v13448_v45 = vunpack.c.l.bf16 %v684_v4 }
 0x43c   : > { %v8819_v49 = vpop.eup %8818  ;;  %v5334_v9 = vpack.c.bf16 %v5076_v22, %v5070_v24  ;;  %v4318_v61 = vmul.f32 0.6931472, %v8817_v55  ;;  %8828 = vpow2.f32 %v1702_v14  ;;  %v13450_v8 = vunpack.c.h.bf16 %v684_v4 }
 0x43d   : > { %6870 = vmatprep.subr.bf16.mxu1 %v5335_v48  ;;  %v4327_v10 = vmul.f32 0.6931472, %v8819_v49  ;;  %vm13452_vm14 = vcmp.lt.f32.partialorder %v4385_v62, 0.0004427343  ;;  %8830 = vpow2.f32 %v1704_v16  ;;  %v1528_v17 = vmin.f32 %v13396_v63, 20.0 }
 0x43e   : > { %v8821_v60 = vpop.eup %8820  ;;  %6871 = vmatpush1.bf16.xpose.msra.mxu1 %v5334_v9  ;;  %v4324_v57 = vsel %vm13408_vm8, %v4321_v25, %v4318_v61  ;;  %v4375_v39 = vmul.f32 %v13398_v33, %v4374_v54  ;;  %vm13462_vm15 = vcmp.lt.f32.partialorder %v4376_v32, 0.0004427343  ;;  %v1529_v15 = vmin.f32 %v13446_v36, 20.0  ;;  %v592_v32 = vld [vmem:[%s9702_s23 + $0x130] sm:$0xff] }
 0x43f   : > { %v4333_v42 = vsel %vm13412_vm9, %v4330_v19, %v4327_v10  ;;  %v4381_v47 = vmul.f32 0.6931472, %v8821_v60  ;;  %v8823_v62 = vpop.eup %8822  ;;  %v4972_v6 = vsel %vm1228_vm11, %v13320_v20, %v4324_v57  ;;  %v1534_v26 = vmin.f32 %v13448_v45, 20.0  ;;  %v595_v10 = vld [vmem:[%s9702_s23 + $0x148] sm:$0xff] }
 0x440   : > { %v4973_v46 = vsel %vm1229_vm10, %v13340_v58, %v4333_v42  ;;  %v4372_v30 = vmul.f32 0.6931472, %v8823_v62  ;;  %v1535_v5 = vmin.f32 %v13450_v8, 20.0  ;;  %v2070_v58 = vmul.f32 1.442695, %v1528_v17 }
 0x441   : > { %v4387_v33 = vsel %vm13452_vm14, %v4384_v44, %v4381_v47  ;;  %v5261_v12 = vmul.f32 %v4973_v46, %v4973_v46  ;;  %v2072_v41 = vmul.f32 1.442695, %v1529_v15  ;;  %v2082_v43 = vmul.f32 1.442695, %v1534_v26 }
 0x442   : > { %v4979_v3 = vsel %vm1235_vm12, %v13347_v13, %v4387_v33  ;;  %v4378_v20 = vsel %vm13462_vm15, %v4375_v39, %v4372_v30  ;;  %v5260_v40 = vmul.f32 %v4972_v6, %v4972_v6  ;;  %8832 = vpow2.f32 %v2070_v58  ;;  %v13513_v33 = vld [vmem:[%s9702_s23 + $0x428] sm:$0xff] }
 0x443   : > { %v5267_v34 = vmul.f32 %v4979_v3, %v4979_v3  ;;  %v4978_v35 = vsel %vm1234_vm13, %v13345_v18, %v4378_v20  ;;  %v2084_v25 = vmul.f32 1.442695, %v1535_v5  ;;  %8834 = vpow2.f32 %v2072_v41 }
 0x444   : > { %v8825_v0 = vpop.eup %8824  ;;  %v5266_v1 = vmul.f32 %v4978_v35, %v4978_v35  ;;  %8836 = vpow2.f32 %v2082_v43  ;;  %vm1051_vm0 = vcmp.gt.f32.partialorder %v13379_v11, 20.0  ;;  %v13496_v17 = vunpack.c.l.bf16 %v592_v32 }
 0x445   : > { %v5429_v19 = vpack.c.bf16 %v5267_v34, %v5261_v12  ;;  %v8827_v24 = vpop.eup %8826  ;;  %v2714_v13 = vadd.f32 1.0, %v8825_v0  ;;  %v2717_v21 = vmul.f32 -0.5, %v8825_v0  ;;  %8838 = vpow2.f32 %v2084_v25 }
 0x446   : > { %v8829_v44 = vpop.eup %8828  ;;  %v5428_v59 = vpack.c.bf16 %v5266_v1, %v5260_v40  ;;  %v2723_v2 = vadd.f32 1.0, %v8827_v24  ;;  %v2726_v22 = vmul.f32 -0.5, %v8827_v24  ;;  %v2729_v52 = vand.u32 2147483647, %v8827_v24 }
 0x447   : > { %6987 = vmatprep.subr.bf16.mxu0 %v5429_v19  ;;  %v8831_v54 = vpop.eup %8830  ;;  %v2720_v18 = vand.u32 2147483647, %v8825_v0  ;;  %v2768_v14 = vadd.f32 1.0, %v8829_v44  ;;  %v2718_v48 = vadd.f32 1.0, %v2717_v21  ;;  %v2771_v9 = vmul.f32 -0.5, %v8829_v44 }
 0x448   : > { %6988 = vmatpush1.bf16.xpose.msra.mxu0 %v5428_v59  ;;  %8840 = vlog2.f32 %v2723_v2  ;;  %v2727_v4 = vadd.f32 1.0, %v2726_v22  ;;  %v2777_v55 = vadd.f32 1.0, %v8831_v54  ;;  %v2780_v16 = vmul.f32 -0.5, %v8831_v54 }
 0x449   : > { %v2783_v49 = vand.u32 2147483647, %v8831_v54  ;;  %8842 = vlog2.f32 %v2714_v13  ;;  %v2774_v61 = vand.u32 2147483647, %v8829_v44  ;;  %vm13488_vm1 = vcmp.lt.f32.partialorder %v2729_v52, 0.0004427343 }
 0x44a   : > { %8844 = vlog2.f32 %v2777_v55  ;;  %v2781_v31 = vadd.f32 1.0, %v2780_v16  ;;  %vm13492_vm2 = vcmp.lt.f32.partialorder %v2720_v18, 0.0004427343  ;;  %v2728_v42 = vmul.f32 %v8827_v24, %v2727_v4 }
 0x44b   : > { %8846 = vlog2.f32 %v2768_v14  ;;  %vm13498_vm3 = vcmp.lt.f32.partialorder %v2783_v49, 0.0004427343  ;;  %vm1050_vm4 = vcmp.gt.f32.partialorder %v13364_v50, 20.0  ;;  %v2719_v39 = vmul.f32 %v8825_v0, %v2718_v48 }
 0x44c   : > { %v2772_v53 = vadd.f32 1.0, %v2771_v9  ;;  %v8833_v62 = vpop.eup %8832  ;;  %vm1057_vm5 = vcmp.gt.f32.partialorder %v13383_v27, 20.0  ;;  %v2782_v46 = vmul.f32 %v8831_v54, %v2781_v31  ;;  %vm13504_vm6 = vcmp.lt.f32.partialorder %v2774_v61, 0.0004427343 }
 0x44d   : > { %v13508_v15 = vunpack.c.h.bf16 %v592_v32  ;;  %v13510_v26 = vunpack.c.l.bf16 %v595_v10  ;;  %v8835_v12 = vpop.eup %8834  ;;  %vm1056_vm7 = vcmp.gt.f32.partialorder %v13381_v23, 20.0  ;;  %v4424_v30 = vadd.f32 1.0, %v8833_v62 }
 0x44e   : > { %v4427_v5 = vmul.f32 -0.5, %v8833_v62  ;;  %v4430_v3 = vand.u32 2147483647, %v8833_v62  ;;  %v13516_v58 = vunpack.c.h.bf16 %v595_v10  ;;  %v8837_v41 = vpop.eup %8836  ;;  %v4433_v43 = vadd.f32 1.0, %v8835_v12 }
 0x44f   : > { %v4436_v34 = vmul.f32 -0.5, %v8835_v12  ;;  %v4439_v20 = vand.u32 2147483647, %v8835_v12  ;;  %v1350_v40 = vmin.f32 %v13496_v17, 20.0  ;;  %8848 = vlog2.f32 %v4424_v30  ;;  %v8839_v19 = vpop.eup %8838 }
 0x450   : > { %v4428_v35 = vadd.f32 1.0, %v4427_v5  ;;  %v4478_v25 = vadd.f32 1.0, %v8837_v41  ;;  %v13520_v0 = vunpack.c.l.bf16 %v13513_v33  ;;  %8850 = vlog2.f32 %v4433_v43 }
 0x451   : > { %v4437_v1 = vadd.f32 1.0, %v4436_v34  ;;  %v2773_v24 = vmul.f32 %v8829_v44, %v2772_v53  ;;  %v4481_v13 = vmul.f32 -0.5, %v8837_v41  ;;  %v4487_v59 = vadd.f32 1.0, %v8839_v19 }
 0x452   : > { %v8841_v21 = vpop.eup %8840  ;;  %v4490_v2 = vmul.f32 -0.5, %v8839_v19  ;;  %v4493_v22 = vand.u32 2147483647, %v8839_v19  ;;  %vm13522_vm8 = vcmp.lt.f32.partialorder %v4430_v3, 0.0004427343  ;;  %vm1240_vm10 = vcmp.gt.f32.partialorder %v13396_v63, 20.0 }
 0x453   : > { %v8843_v52 = vpop.eup %8842  ;;  %v2725_v18 = vmul.f32 0.6931472, %v8841_v21  ;;  %vm13526_vm9 = vcmp.lt.f32.partialorder %v4439_v20, 0.0004427343  ;;  %8852 = vlog2.f32 %v4478_v25  ;;  %v4482_v4 = vadd.f32 1.0, %v4481_v13 }
 0x454   : > { %v8845_v44 = vpop.eup %8844  ;;  %vm1241_vm11 = vcmp.gt.f32.partialorder %v13446_v36, 20.0  ;;  %8854 = vlog2.f32 %v4487_v59  ;;  %v4491_v55 = vadd.f32 1.0, %v4490_v2  ;;  %v2716_v48 = vmul.f32 0.6931472, %v8843_v52 }
 0x455   : > { %v4429_v32 = vmul.f32 %v8833_v62, %v4428_v35  ;;  %v8847_v16 = vpop.eup %8846  ;;  %v2731_v49 = vsel %vm13488_vm1, %v2728_v42, %v2725_v18  ;;  %v2779_v9 = vmul.f32 0.6931472, %v8845_v44  ;;  %v4438_v61 = vmul.f32 %v8835_v12, %v4437_v1  ;;  %v690_v35 = vld [vmem:[%s9702_s23 + $0x440] sm:$0xff] }
 0x456   : > { %v4484_v10 = vand.u32 2147483647, %v8837_v41  ;;  %v4795_v31 = vsel %vm1051_vm0, %v13379_v11, %v2731_v49  ;;  %vm13537_vm12 = vcmp.lt.f32.partialorder %v4493_v22, 0.0004427343  ;;  %v2722_v30 = vsel %vm13492_vm2, %v2719_v39, %v2716_v48 }
 0x457   : > { %v2770_v5 = vmul.f32 0.6931472, %v8847_v16  ;;  %vm1246_vm13 = vcmp.gt.f32.partialorder %v13448_v45, 20.0  ;;  %v4483_v62 = vmul.f32 %v8837_v41, %v4482_v4  ;;  %v2785_v60 = vsel %vm13498_vm3, %v2782_v46, %v2779_v9 }
 0x458   : > { %v5083_v42 = vmul.f32 %v4795_v31, %v4795_v31  ;;  %v4492_v12 = vmul.f32 %v8839_v19, %v4491_v55  ;;  %v4794_v11 = vsel %vm1050_vm4, %v13364_v50, %v2722_v30  ;;  %v4801_v3 = vsel %vm1057_vm5, %v13383_v27, %v2785_v60 }
 0x459   : > { %v2776_v57 = vsel %vm13504_vm6, %v2773_v24, %v2770_v5  ;;  %v5082_v39 = vmul.f32 %v4794_v11, %v4794_v11  ;;  %vm13554_vm14 = vcmp.lt.f32.partialorder %v4484_v10, 0.0004427343  ;;  %v5089_v47 = vmul.f32 %v4801_v3, %v4801_v3  ;;  %v8849_v34 = vpop.eup %8848 }
 0x45a   : > { %v4800_v46 = vsel %vm1056_vm7, %v13381_v23, %v2776_v57  ;;  %v1351_v43 = vmin.f32 %v13508_v15, 20.0  ;;  %v1356_v50 = vmin.f32 %v13510_v26, 20.0  ;;  %v1357_v27 = vmin.f32 %v13516_v58, 20.0  ;;  %v8851_v19 = vpop.eup %8850 }
 0x45b   : > { %v5088_v20 = vmul.f32 %v4800_v46, %v4800_v46  ;;  %v1714_v6 = vmul.f32 1.442695, %v1350_v40  ;;  %v13566_v25 = vunpack.c.h.bf16 %v13513_v33  ;;  %v5341_v1 = vpack.c.bf16 %v5089_v47, %v5083_v42 }
 0x45c   : > { %v4426_v24 = vmul.f32 0.6931472, %v8849_v34  ;;  %v1716_v13 = vmul.f32 1.442695, %v1351_v43  ;;  %v1726_v21 = vmul.f32 1.442695, %v1356_v50  ;;  %v13570_v40 = vunpack.c.l.bf16 %v690_v35 }
 0x45d   : > { %v4435_v59 = vmul.f32 0.6931472, %v8851_v19  ;;  %v5340_v23 = vpack.c.bf16 %v5088_v20, %v5082_v39  ;;  %8856 = vpow2.f32 %v1714_v6  ;;  %v1728_v2 = vmul.f32 1.442695, %v1357_v27  ;;  %v8853_v22 = vpop.eup %8852  ;;  %6872 = vmatprep.subr.bf16.mxu1 %v5341_v1  ;;  %v601_v19 = vld [vmem:[%s9702_s23 + $0x178] sm:$0xff] }
 0x45e   : > { %v4432_v52 = vsel %vm13522_vm8, %v4429_v32, %v4426_v24  ;;  %8858 = vpow2.f32 %v1716_v13  ;;  %v13572_v18 = vunpack.c.h.bf16 %v690_v35  ;;  %v8855_v33 = vpop.eup %8854  ;;  %v4480_v44 = vmul.f32 0.6931472, %v8853_v22 }
 0x45f   : > { %v4441_v4 = vsel %vm13526_vm9, %v4438_v61, %v4435_v59  ;;  %6873 = vmatpush1.bf16.xpose.msra.mxu1 %v5340_v23  ;;  %v4984_v55 = vsel %vm1240_vm10, %v13396_v63, %v4432_v52  ;;  %8860 = vpow2.f32 %v1726_v21  ;;  %vm1247_vm15 = vcmp.gt.f32.partialorder %v13450_v8, 20.0 }
 0x460   : > { %v4489_v54 = vmul.f32 0.6931472, %v8855_v33  ;;  %v4985_v48 = vsel %vm1241_vm11, %v13446_v36, %v4441_v4  ;;  %8862 = vpow2.f32 %v1728_v2  ;;  %v4486_v14 = vsel %vm13554_vm14, %v4483_v62, %v4480_v44 }
 0x461   : > { %v5273_v32 = vmul.f32 %v4985_v48, %v4985_v48  ;;  %v5272_v16 = vmul.f32 %v4984_v55, %v4984_v55  ;;  %v4990_v63 = vsel %vm1246_vm13, %v13448_v45, %v4486_v14  ;;  %v1540_v9 = vmin.f32 %v13520_v0, 20.0  ;;  %v598_v45 = vld [vmem:[%s9702_s23 + $0x160] sm:$0xff] }
 0x462   : > { %v4495_v49 = vsel %vm13537_vm12, %v4492_v12, %v4489_v54  ;;  %v1541_v61 = vmin.f32 %v13566_v25, 20.0  ;;  %v5278_v10 = vmul.f32 %v4990_v63, %v4990_v63  ;;  %v1546_v31 = vmin.f32 %v13570_v40, 20.0 }
 0x463   : > { %v4991_v36 = vsel %vm1247_vm15, %v13450_v8, %v4495_v49  ;;  %v1547_v30 = vmin.f32 %v13572_v18, 20.0  ;;  %v2094_v62 = vmul.f32 1.442695, %v1540_v9  ;;  %v13596_v43 = vunpack.c.l.bf16 %v598_v45 }
 0x464   : > { %v5279_v5 = vmul.f32 %v4991_v36, %v4991_v36  ;;  %v2096_v53 = vmul.f32 1.442695, %v1541_v61  ;;  %v5434_v60 = vpack.c.bf16 %v5278_v10, %v5272_v16  ;;  %v2106_v42 = vmul.f32 1.442695, %v1546_v31 }
 0x465   : > { %v2108_v12 = vmul.f32 1.442695, %v1547_v30  ;;  %8864 = vpow2.f32 %v2094_v62  ;;  %v13599_v1 = vunpack.c.h.bf16 %v598_v45  ;;  %vm1062_vm0 = vcmp.gt.f32.partialorder %v13496_v17, 20.0 }
 0x466   : > { %v5435_v11 = vpack.c.bf16 %v5279_v5, %v5273_v32  ;;  %8866 = vpow2.f32 %v2096_v53  ;;  %vm1063_vm1 = vcmp.gt.f32.partialorder %v13508_v15, 20.0  ;;  %v13611_v33 = vunpack.c.l.bf16 %v601_v19 }
 0x467   : > { %v8857_v3 = vpop.eup %8856  ;;  %8868 = vpow2.f32 %v2106_v42  ;;  %vm1068_vm4 = vcmp.gt.f32.partialorder %v13510_v26, 20.0  ;;  %v13614_v55 = vunpack.c.h.bf16 %v601_v19  ;;  %v1362_v54 = vmin.f32 %v13596_v43, 20.0 }
 0x468   : > { %v8859_v57 = vpop.eup %8858  ;;  %6989 = vmatprep.subr.bf16.mxu0 %v5435_v11  ;;  %v2822_v8 = vadd.f32 1.0, %v8857_v3  ;;  %v2825_v39 = vmul.f32 -0.5, %v8857_v3  ;;  %8870 = vpow2.f32 %v2108_v12  ;;  %v2828_v20 = vand.u32 2147483647, %v8857_v3 }
 0x469   : > { %v8861_v41 = vpop.eup %8860  ;;  %6990 = vmatpush1.bf16.xpose.msra.mxu0 %v5434_v60  ;;  %v2831_v47 = vadd.f32 1.0, %v8859_v57  ;;  %v2834_v46 = vmul.f32 -0.5, %v8859_v57  ;;  %v2837_v34 = vand.u32 2147483647, %v8859_v57  ;;  %vm1069_vm5 = vcmp.gt.f32.partialorder %v13516_v58, 20.0 }
 0x46a   : > { %v8863_v50 = vpop.eup %8862  ;;  %8872 = vlog2.f32 %v2822_v8  ;;  %v2876_v27 = vadd.f32 1.0, %v8861_v41  ;;  %v2826_v35 = vadd.f32 1.0, %v2825_v39  ;;  %v2879_v59 = vmul.f32 -0.5, %v8861_v41 }
 0x46b   : > { %8874 = vlog2.f32 %v2831_v47  ;;  %v2885_v6 = vadd.f32 1.0, %v8863_v50  ;;  %v2835_v24 = vadd.f32 1.0, %v2834_v46  ;;  %v2888_v13 = vmul.f32 -0.5, %v8863_v50 }
 0x46c   : > { %v2891_v21 = vand.u32 2147483647, %v8863_v50  ;;  %8876 = vlog2.f32 %v2876_v27  ;;  %v2882_v23 = vand.u32 2147483647, %v8861_v41  ;;  %vm13603_vm2 = vcmp.lt.f32.partialorder %v2837_v34, 0.0004427343 }
 0x46d   : > { %8878 = vlog2.f32 %v2885_v6  ;;  %v2889_v22 = vadd.f32 1.0, %v2888_v13  ;;  %vm13607_vm3 = vcmp.lt.f32.partialorder %v2828_v20, 0.0004427343  ;;  %v2827_v4 = vmul.f32 %v8857_v3, %v2826_v35 }
 0x46e   : > { %v2880_v44 = vadd.f32 1.0, %v2879_v59  ;;  %v2836_v32 = vmul.f32 %v8859_v57, %v2835_v24  ;;  %vm13618_vm6 = vcmp.lt.f32.partialorder %v2891_v21, 0.0004427343  ;;  %vm13622_vm7 = vcmp.lt.f32.partialorder %v2882_v23, 0.0004427343 }
 0x46f   : > { %v8865_v48 = vpop.eup %8864  ;;  %v1363_v49 = vmin.f32 %v13599_v1, 20.0  ;;  %v2890_v9 = vmul.f32 %v8863_v50, %v2889_v22  ;;  %v1368_v53 = vmin.f32 %v13611_v33, 20.0  ;;  %v1369_v12 = vmin.f32 %v13614_v55, 20.0 }
 0x470   : > { %v8867_v63 = vpop.eup %8866  ;;  %v4532_v61 = vadd.f32 1.0, %v8865_v48  ;;  %v4535_v36 = vmul.f32 -0.5, %v8865_v48  ;;  %v4538_v10 = vand.u32 2147483647, %v8865_v48  ;;  %v2881_v42 = vmul.f32 %v8861_v41, %v2880_v44 }
 0x471   : > { %v13627_v31 = vpop.eup %8868  ;;  %v4541_v30 = vadd.f32 1.0, %v8867_v63  ;;  %v4544_v5 = vmul.f32 -0.5, %v8867_v63  ;;  %v4547_v62 = vand.u32 2147483647, %v8867_v63  ;;  %v1738_v11 = vmul.f32 1.442695, %v1362_v54 }
 0x472   : > { %v13630_v60 = vpop.eup %8870  ;;  %8880 = vlog2.f32 %v4532_v61  ;;  %v4536_v57 = vadd.f32 1.0, %v4535_v36  ;;  %v4586_v8 = vadd.f32 1.0, %v13627_v31  ;;  %vm13636_vm8 = vcmp.lt.f32.partialorder %v4538_v10, 0.0004427343  ;;  %v693_v36 = vld [vmem:[%s9702_s23 + $0x458] sm:$0xff] }
 0x473   : > { %8882 = vlog2.f32 %v4541_v30  ;;  %v4595_v3 = vadd.f32 1.0, %v13630_v60  ;;  %v4545_v47 = vadd.f32 1.0, %v4544_v5  ;;  %v4598_v46 = vmul.f32 -0.5, %v13630_v60 }
 0x474   : > { %v8873_v45 = vpop.eup %8872  ;;  %vm13640_vm9 = vcmp.lt.f32.partialorder %v4547_v62, 0.0004427343  ;;  %v4601_v6 = vand.u32 2147483647, %v13630_v60  ;;  %vm1253_vm10 = vcmp.gt.f32.partialorder %v13566_v25, 20.0  ;;  %vm1252_vm11 = vcmp.gt.f32.partialorder %v13520_v0, 20.0 }
 0x475   : > { %v8875_v39 = vpop.eup %8874  ;;  %v2824_v50 = vmul.f32 0.6931472, %v8873_v45  ;;  %8884 = vlog2.f32 %v4595_v3  ;;  %v4599_v19 = vadd.f32 1.0, %v4598_v46  ;;  %v4589_v21 = vmul.f32 -0.5, %v13627_v31 }
 0x476   : > { %v8877_v41 = vpop.eup %8876  ;;  %v2833_v20 = vmul.f32 0.6931472, %v8875_v39  ;;  %8886 = vlog2.f32 %v4586_v8  ;;  %vm1259_vm12 = vcmp.gt.f32.partialorder %v13572_v18, 20.0  ;;  %v4537_v54 = vmul.f32 %v8865_v48, %v4536_v57 }
 0x477   : > { %v8879_v35 = vpop.eup %8878  ;;  %v2830_v24 = vsel %vm13607_vm3, %v2827_v4, %v2824_v50  ;;  %v2878_v13 = vmul.f32 0.6931472, %v8877_v41  ;;  %v4546_v61 = vmul.f32 %v8867_v63, %v4545_v47  ;;  %v4600_v16 = vmul.f32 %v13630_v60, %v4599_v19  ;;  %v696_v63 = vld [vmem:[%s9702_s23 + $0x470] sm:$0xff] }
 0x478   : > { %v2839_v59 = vsel %vm13603_vm2, %v2836_v32, %v2833_v20  ;;  %v2887_v23 = vmul.f32 0.6931472, %v8879_v35  ;;  %v4806_v22 = vsel %vm1062_vm0, %v13496_v17, %v2830_v24  ;;  %vm1258_vm13 = vcmp.gt.f32.partialorder %v13570_v40, 20.0 }
 0x479   : > { %v4807_v52 = vsel %vm1063_vm1, %v13508_v15, %v2839_v59  ;;  %v2884_v4 = vsel %vm13622_vm7, %v2881_v42, %v2878_v13  ;;  %v5094_v44 = vmul.f32 %v4806_v22, %v4806_v22  ;;  %8888 = vpow2.f32 %v1738_v11 }
 0x47a   : > { %v2893_v2 = vsel %vm13618_vm6, %v2890_v9, %v2887_v23  ;;  %v5095_v32 = vmul.f32 %v4807_v52, %v4807_v52  ;;  %v4812_v17 = vsel %vm1068_vm4, %v13510_v26, %v2884_v4  ;;  %v4590_v14 = vadd.f32 1.0, %v4589_v21 }
 0x47b   : > { %v4813_v15 = vsel %vm1069_vm5, %v13516_v58, %v2893_v2  ;;  %v5100_v10 = vmul.f32 %v4812_v17, %v4812_v17  ;;  %v1740_v9 = vmul.f32 1.442695, %v1363_v49  ;;  %v1750_v30 = vmul.f32 1.442695, %v1368_v53 }
 0x47c   : > { %v5101_v48 = vmul.f32 %v4813_v15, %v4813_v15  ;;  %v8881_v5 = vpop.eup %8880  ;;  %v4592_v26 = vand.u32 2147483647, %v13627_v31  ;;  %v1752_v42 = vmul.f32 1.442695, %v1369_v12  ;;  %v13674_v45 = vunpack.c.l.bf16 %v693_v36 }
 0x47d   : > { %v5346_v62 = vpack.c.bf16 %v5100_v10, %v5094_v44  ;;  %v8883_v3 = vpop.eup %8882  ;;  %v4534_v57 = vmul.f32 0.6931472, %v8881_v5  ;;  %8890 = vpow2.f32 %v1740_v9  ;;  %v13676_v60 = vunpack.c.h.bf16 %v693_v36 }
 0x47e   : > { %v5347_v58 = vpack.c.bf16 %v5101_v48, %v5095_v32  ;;  %v4543_v8 = vmul.f32 0.6931472, %v8883_v3  ;;  %8892 = vpow2.f32 %v1750_v30  ;;  %v13678_v11 = vunpack.c.l.bf16 %v696_v63 }
 0x47f   : > { %v13680_v49 = vunpack.c.h.bf16 %v696_v63  ;;  %v8885_v53 = vpop.eup %8884  ;;  %vm13682_vm14 = vcmp.lt.f32.partialorder %v4601_v6, 0.0004427343  ;;  %v4540_v12 = vsel %vm13636_vm8, %v4537_v54, %v4534_v57  ;;  %8894 = vpow2.f32 %v1752_v42 }
 0x480   : > { %6874 = vmatprep.subr.bf16.mxu1 %v5347_v58  ;;  %v1552_v47 = vmin.f32 %v13674_v45, 20.0  ;;  %v4549_v46 = vsel %vm13640_vm9, %v4546_v61, %v4543_v8  ;;  %v4597_v50 = vmul.f32 0.6931472, %v8885_v53  ;;  %v4591_v41 = vmul.f32 %v13627_v31, %v4590_v14  ;;  %v8887_v6 = vpop.eup %8886  ;;  %v607_v8 = vld [vmem:[%s9702_s23 + $0x1a8] sm:$0xff] }
 0x481   : > { %6875 = vmatpush1.bf16.xpose.msra.mxu1 %v5346_v62  ;;  %vm13692_vm15 = vcmp.lt.f32.partialorder %v4592_v26, 0.0004427343  ;;  %v4997_v34 = vsel %vm1253_vm10, %v13566_v25, %v4549_v46  ;;  %v4996_v35 = vsel %vm1252_vm11, %v13520_v0, %v4540_v12  ;;  %v1553_v27 = vmin.f32 %v13676_v60, 20.0  ;;  %v604_v26 = vld [vmem:[%s9702_s23 + $0x190] sm:$0xff] }
 0x482   : > { %v1558_v19 = vmin.f32 %v13678_v11, 20.0  ;;  %v4603_v31 = vsel %vm13682_vm14, %v4600_v16, %v4597_v50  ;;  %v5285_v24 = vmul.f32 %v4997_v34, %v4997_v34  ;;  %v4588_v13 = vmul.f32 0.6931472, %v8887_v6 }
 0x483   : > { %v1559_v21 = vmin.f32 %v13680_v49, 20.0  ;;  %v5003_v59 = vsel %vm1259_vm12, %v13572_v18, %v4603_v31  ;;  %v2118_v25 = vmul.f32 1.442695, %v1552_v47  ;;  %v2120_v23 = vmul.f32 1.442695, %v1553_v27  ;;  %v8889_v52 = vpop.eup %8888  ;;  %v13743_v31 = vld [vmem:[%s9702_s23 + $0x310] sm:$0xff] }
 0x484   : > { %v2130_v22 = vmul.f32 1.442695, %v1558_v19  ;;  %v5291_v0 = vmul.f32 %v5003_v59, %v5003_v59  ;;  %v4594_v4 = vsel %vm13692_vm15, %v4591_v41, %v4588_v13  ;;  %v5284_v44 = vmul.f32 %v4996_v35, %v4996_v35 }
 0x485   : > { %v5002_v54 = vsel %vm1258_vm13, %v13570_v40, %v4594_v4  ;;  %8896 = vpow2.f32 %v2118_v25  ;;  %v2132_v2 = vmul.f32 1.442695, %v1559_v21  ;;  %v2933_v17 = vmul.f32 -0.5, %v8889_v52 }
 0x486   : > { %v5441_v32 = vpack.c.bf16 %v5291_v0, %v5285_v24  ;;  %v5290_v61 = vmul.f32 %v5002_v54, %v5002_v54  ;;  %8898 = vpow2.f32 %v2120_v23  ;;  %v2930_v36 = vadd.f32 1.0, %v8889_v52 }
 0x487   : > { %v8891_v18 = vpop.eup %8890  ;;  %8900 = vpow2.f32 %v2130_v22  ;;  %v2936_v40 = vand.u32 2147483647, %v8889_v52  ;;  %v2934_v62 = vadd.f32 1.0, %v2933_v17  ;;  %vm1075_vm0 = vcmp.gt.f32.partialorder %v13599_v1, 20.0 }
 0x488   : > { %v8893_v15 = vpop.eup %8892  ;;  %6991 = vmatprep.subr.bf16.mxu0 %v5441_v32  ;;  %v5440_v16 = vpack.c.bf16 %v5290_v61, %v5284_v44  ;;  %v2939_v10 = vadd.f32 1.0, %v8891_v18  ;;  %v2942_v48 = vmul.f32 -0.5, %v8891_v18  ;;  %v2945_v9 = vand.u32 2147483647, %v8891_v18 }
 0x489   : > { %v8895_v14 = vpop.eup %8894  ;;  %8902 = vpow2.f32 %v2132_v2  ;;  %v2984_v30 = vadd.f32 1.0, %v8893_v15  ;;  %v2987_v58 = vmul.f32 -0.5, %v8893_v15  ;;  %v2990_v57 = vand.u32 2147483647, %v8893_v15 }
 0x48a   : > { %6992 = vmatpush1.bf16.xpose.msra.mxu0 %v5440_v16  ;;  %8904 = vlog2.f32 %v2939_v10  ;;  %v2943_v63 = vadd.f32 1.0, %v2942_v48  ;;  %v2993_v5 = vadd.f32 1.0, %v8895_v14  ;;  %v2996_v42 = vmul.f32 -0.5, %v8895_v14 }
 0x48b   : > { %v2999_v3 = vand.u32 2147483647, %v8895_v14  ;;  %8906 = vlog2.f32 %v2930_v36  ;;  %vm13718_vm1 = vcmp.lt.f32.partialorder %v2945_v9, 0.0004427343  ;;  %vm13722_vm2 = vcmp.lt.f32.partialorder %v2936_v40, 0.0004427343 }
 0x48c   : > { %8908 = vlog2.f32 %v2993_v5  ;;  %v2997_v39 = vadd.f32 1.0, %v2996_v42  ;;  %v13726_v47 = vunpack.c.l.bf16 %v604_v26  ;;  %v2944_v46 = vmul.f32 %v8891_v18, %v2943_v63 }
 0x48d   : > { %8910 = vlog2.f32 %v2984_v30  ;;  %vm13728_vm3 = vcmp.lt.f32.partialorder %v2999_v3, 0.0004427343  ;;  %vm1074_vm4 = vcmp.gt.f32.partialorder %v13596_v43, 20.0  ;;  %v2935_v41 = vmul.f32 %v8889_v52, %v2934_v62 }
 0x48e   : > { %v2988_v20 = vadd.f32 1.0, %v2987_v58  ;;  %vm1081_vm5 = vcmp.gt.f32.partialorder %v13614_v55, 20.0  ;;  %v2998_v34 = vmul.f32 %v8895_v14, %v2997_v39  ;;  %vm13734_vm6 = vcmp.lt.f32.partialorder %v2990_v57, 0.0004427343 }
 0x48f   : > { %v8897_v6 = vpop.eup %8896  ;;  %v13738_v27 = vunpack.c.h.bf16 %v604_v26  ;;  %v13740_v19 = vunpack.c.l.bf16 %v607_v8  ;;  %vm1080_vm7 = vcmp.gt.f32.partialorder %v13611_v33, 20.0  ;;  %v13746_v25 = vunpack.c.h.bf16 %v607_v8 }
 0x490   : > { %v8899_v24 = vpop.eup %8898  ;;  %v4640_v13 = vadd.f32 1.0, %v8897_v6  ;;  %v4643_v21 = vmul.f32 -0.5, %v8897_v6  ;;  %v4646_v59 = vand.u32 2147483647, %v8897_v6  ;;  %v1374_v4 = vmin.f32 %v13726_v47, 20.0 }
 0x491   : > { %v8901_v23 = vpop.eup %8900  ;;  %v4649_v22 = vadd.f32 1.0, %v8899_v24  ;;  %v4652_v52 = vmul.f32 -0.5, %v8899_v24  ;;  %v4655_v0 = vand.u32 2147483647, %v8899_v24  ;;  %v13750_v2 = vunpack.c.l.bf16 %v13743_v31 }
 0x492   : > { %8912 = vlog2.f32 %v4640_v13  ;;  %v4644_v44 = vadd.f32 1.0, %v4643_v21  ;;  %v4694_v54 = vadd.f32 1.0, %v8901_v23  ;;  %v2989_v17 = vmul.f32 %v8893_v15, %v2988_v20 }
 0x493   : > { %v8903_v32 = vpop.eup %8902  ;;  %8914 = vlog2.f32 %v4649_v22  ;;  %v4653_v61 = vadd.f32 1.0, %v4652_v52  ;;  %v4697_v18 = vmul.f32 -0.5, %v8901_v23  ;;  %vm13752_vm8 = vcmp.lt.f32.partialorder %v4646_v59, 0.0004427343 }
 0x494   : > { %v8905_v36 = vpop.eup %8904  ;;  %v4703_v16 = vadd.f32 1.0, %v8903_v32  ;;  %v4706_v10 = vmul.f32 -0.5, %v8903_v32  ;;  %v4709_v48 = vand.u32 2147483647, %v8903_v32  ;;  %vm13756_vm9 = vcmp.lt.f32.partialorder %v4655_v0, 0.0004427343 }
 0x495   : > { %v8907_v9 = vpop.eup %8906  ;;  %v2941_v40 = vmul.f32 0.6931472, %v8905_v36  ;;  %vm1264_vm10 = vcmp.gt.f32.partialorder %v13674_v45, 20.0  ;;  %8916 = vlog2.f32 %v4694_v54  ;;  %v4698_v63 = vadd.f32 1.0, %v4697_v18 }
 0x496   : > { %v8909_v15 = vpop.eup %8908  ;;  %vm1265_vm11 = vcmp.gt.f32.partialorder %v13676_v60, 20.0  ;;  %8918 = vlog2.f32 %v4703_v16  ;;  %v4707_v5 = vadd.f32 1.0, %v4706_v10  ;;  %v2932_v62 = vmul.f32 0.6931472, %v8907_v9 }
 0x497   : > { %v4645_v26 = vmul.f32 %v8897_v6, %v4644_v44  ;;  %v8911_v42 = vpop.eup %8910  ;;  %v2947_v3 = vsel %vm13718_vm1, %v2944_v46, %v2941_v40  ;;  %v2995_v58 = vmul.f32 0.6931472, %v8909_v15  ;;  %v4654_v57 = vmul.f32 %v8899_v24, %v4653_v61  ;;  %v655_v44 = vld [vmem:[%s9702_s23 + $0x328] sm:$0xff] }
 0x498   : > { %v4700_v8 = vand.u32 2147483647, %v8901_v23  ;;  %v4819_v39 = vsel %vm1075_vm0, %v13599_v1, %v2947_v3  ;;  %vm13767_vm12 = vcmp.lt.f32.partialorder %v4709_v48, 0.0004427343  ;;  %v2938_v13 = vsel %vm13722_vm2, %v2935_v41, %v2932_v62 }
 0x499   : > { %v2986_v21 = vmul.f32 0.6931472, %v8911_v42  ;;  %vm1270_vm13 = vcmp.gt.f32.partialorder %v13678_v11, 20.0  ;;  %v4699_v6 = vmul.f32 %v8901_v23, %v4698_v63  ;;  %v3001_v53 = vsel %vm13728_vm3, %v2998_v34, %v2995_v58 }
 0x49a   : > { %v5107_v46 = vmul.f32 %v4819_v39, %v4819_v39  ;;  %v4708_v24 = vmul.f32 %v8903_v32, %v4707_v5  ;;  %v4818_v1 = vsel %vm1074_vm4, %v13596_v43, %v2938_v13  ;;  %v4825_v59 = vsel %vm1081_vm5, %v13614_v55, %v3001_v53 }
 0x49b   : > { %v2992_v12 = vsel %vm13734_vm6, %v2989_v17, %v2986_v21  ;;  %v5106_v41 = vmul.f32 %v4818_v1, %v4818_v1  ;;  %vm13784_vm14 = vcmp.lt.f32.partialorder %v4700_v8, 0.0004427343  ;;  %v5113_v50 = vmul.f32 %v4825_v59, %v4825_v59 }
 0x49c   : > { %v4824_v34 = vsel %vm1080_vm7, %v13611_v33, %v2992_v12  ;;  %v1375_v22 = vmin.f32 %v13738_v27, 20.0  ;;  %v1380_v43 = vmin.f32 %v13740_v19, 20.0  ;;  %v8913_v52 = vpop.eup %8912  ;;  %v1381_v55 = vmin.f32 %v13746_v25, 20.0 }
 0x49d   : > { %v5112_v0 = vmul.f32 %v4824_v34, %v4824_v34  ;;  %v1762_v35 = vmul.f32 1.442695, %v1374_v4  ;;  %v13796_v54 = vunpack.c.h.bf16 %v13743_v31  ;;  %v8915_v32 = vpop.eup %8914  ;;  %v5353_v61 = vpack.c.bf16 %v5113_v50, %v5107_v46 }
 0x49e   : > { %v4642_v17 = vmul.f32 0.6931472, %v8913_v52  ;;  %v1764_v18 = vmul.f32 1.442695, %v1375_v22  ;;  %v1774_v36 = vmul.f32 1.442695, %v1380_v43  ;;  %v13800_v4 = vunpack.c.l.bf16 %v655_v44 }
 0x49f   : > { %v4651_v16 = vmul.f32 0.6931472, %v8915_v32  ;;  %v5352_v33 = vpack.c.bf16 %v5112_v0, %v5106_v41  ;;  %8920 = vpow2.f32 %v1762_v35  ;;  %v1776_v10 = vmul.f32 1.442695, %v1381_v55  ;;  %v8917_v48 = vpop.eup %8916  ;;  %6876 = vmatprep.subr.bf16.mxu1 %v5353_v61  ;;  %v613_v32 = vld [vmem:[%s9702_s23 + $0x1d8] sm:$0xff] }
 0x4a0   : > { %v4648_v9 = vsel %vm13752_vm8, %v4645_v26, %v4642_v17  ;;  %8922 = vpow2.f32 %v1764_v18  ;;  %v13802_v40 = vunpack.c.h.bf16 %v655_v44  ;;  %v8919_v31 = vpop.eup %8918  ;;  %v4696_v15 = vmul.f32 0.6931472, %v8917_v48 }
 0x4a1   : > { %v4657_v63 = vsel %vm13756_vm9, %v4654_v57, %v4651_v16  ;;  %6877 = vmatpush1.bf16.xpose.msra.mxu1 %v5352_v33  ;;  %v5008_v5 = vsel %vm1264_vm10, %v13674_v45, %v4648_v9  ;;  %8924 = vpow2.f32 %v1774_v36  ;;  %vm1271_vm15 = vcmp.gt.f32.partialorder %v13680_v49, 20.0 }
 0x4a2   : > { %v4705_v14 = vmul.f32 0.6931472, %v8919_v31  ;;  %v5009_v62 = vsel %vm1265_vm11, %v13676_v60, %v4657_v63  ;;  %8926 = vpow2.f32 %v1776_v10  ;;  %v4702_v30 = vsel %vm13784_vm14, %v4699_v6, %v4696_v15 }
 0x4a3   : > { %v5297_v26 = vmul.f32 %v5009_v62, %v5009_v62  ;;  %v5296_v42 = vmul.f32 %v5008_v5, %v5008_v5  ;;  %v5014_v45 = vsel %vm1270_vm13, %v13678_v11, %v4702_v30  ;;  %v1470_v58 = vmin.f32 %v13750_v2, 20.0  ;;  %v610_v11 = vld [vmem:[%s9702_s23 + $0x1c0] sm:$0xff] }
 0x4a4   : > { %v4711_v3 = vsel %vm13767_vm12, %v4708_v24, %v4705_v14  ;;  %v1471_v57 = vmin.f32 %v13796_v54, 20.0  ;;  %v5302_v8 = vmul.f32 %v5014_v45, %v5014_v45  ;;  %v1476_v39 = vmin.f32 %v13800_v4, 20.0 }
 0x4a5   : > { %v5015_v60 = vsel %vm1271_vm15, %v13680_v49, %v4711_v3  ;;  %v1477_v13 = vmin.f32 %v13802_v40, 20.0  ;;  %v1954_v6 = vmul.f32 1.442695, %v1470_v58  ;;  %v13826_v22 = vunpack.c.l.bf16 %v610_v11 }
 0x4a6   : > { %v5303_v21 = vmul.f32 %v5015_v60, %v5015_v60  ;;  %v1956_v20 = vmul.f32 1.442695, %v1471_v57  ;;  %v5446_v53 = vpack.c.bf16 %v5302_v8, %v5296_v42  ;;  %v1966_v46 = vmul.f32 1.442695, %v1476_v39 }
 0x4a7   : > { %v1968_v24 = vmul.f32 1.442695, %v1477_v13  ;;  %8928 = vpow2.f32 %v1954_v6  ;;  %v13829_v61 = vunpack.c.h.bf16 %v610_v11  ;;  %vm1086_vm0 = vcmp.gt.f32.partialorder %v13726_v47, 20.0 }
 0x4a8   : > { %v5447_v1 = vpack.c.bf16 %v5303_v21, %v5297_v26  ;;  %8930 = vpow2.f32 %v1956_v20  ;;  %vm1087_vm1 = vcmp.gt.f32.partialorder %v13738_v27, 20.0  ;;  %v13841_v31 = vunpack.c.l.bf16 %v613_v32 }
 0x4a9   : > { %v8921_v59 = vpop.eup %8920  ;;  %8932 = vpow2.f32 %v1966_v46  ;;  %vm1092_vm4 = vcmp.gt.f32.partialorder %v13740_v19, 20.0  ;;  %v13844_v5 = vunpack.c.h.bf16 %v613_v32  ;;  %v1386_v14 = vmin.f32 %v13826_v22, 20.0 }
 0x4aa   : > { %v8923_v12 = vpop.eup %8922  ;;  %6993 = vmatprep.subr.bf16.mxu0 %v5447_v1  ;;  %v3038_v49 = vadd.f32 1.0, %v8921_v59  ;;  %v3041_v41 = vmul.f32 -0.5, %v8921_v59  ;;  %8934 = vpow2.f32 %v1968_v24  ;;  %v3044_v0 = vand.u32 2147483647, %v8921_v59 }
 0x4ab   : > { %v8925_v23 = vpop.eup %8924  ;;  %6994 = vmatpush1.bf16.xpose.msra.mxu0 %v5446_v53  ;;  %v3047_v50 = vadd.f32 1.0, %v8923_v12  ;;  %v3050_v34 = vmul.f32 -0.5, %v8923_v12  ;;  %v3053_v52 = vand.u32 2147483647, %v8923_v12  ;;  %vm1093_vm5 = vcmp.gt.f32.partialorder %v13746_v25, 20.0 }
 0x4ac   : > { %v8927_v43 = vpop.eup %8926  ;;  %8936 = vlog2.f32 %v3038_v49  ;;  %v3092_v55 = vadd.f32 1.0, %v8925_v23  ;;  %v3042_v44 = vadd.f32 1.0, %v3041_v41  ;;  %v3095_v16 = vmul.f32 -0.5, %v8925_v23 }
 0x4ad   : > { %8938 = vlog2.f32 %v3047_v50  ;;  %v3101_v35 = vadd.f32 1.0, %v8927_v43  ;;  %v3051_v17 = vadd.f32 1.0, %v3050_v34  ;;  %v3104_v18 = vmul.f32 -0.5, %v8927_v43 }
 0x4ae   : > { %v3107_v36 = vand.u32 2147483647, %v8927_v43  ;;  %8940 = vlog2.f32 %v3092_v55  ;;  %v3098_v33 = vand.u32 2147483647, %v8925_v23  ;;  %vm13833_vm2 = vcmp.lt.f32.partialorder %v3053_v52, 0.0004427343 }
 0x4af   : > { %8942 = vlog2.f32 %v3101_v35  ;;  %v3105_v48 = vadd.f32 1.0, %v3104_v18  ;;  %vm13837_vm3 = vcmp.lt.f32.partialorder %v3044_v0, 0.0004427343  ;;  %v3043_v63 = vmul.f32 %v8921_v59, %v3042_v44 }
 0x4b0   : > { %v3096_v15 = vadd.f32 1.0, %v3095_v16  ;;  %v3052_v26 = vmul.f32 %v8923_v12, %v3051_v17  ;;  %vm13848_vm6 = vcmp.lt.f32.partialorder %v3107_v36, 0.0004427343  ;;  %vm13853_vm7 = vcmp.lt.f32.partialorder %v3098_v33, 0.0004427343 }
 0x4b1   : > { %v8929_v62 = vpop.eup %8928  ;;  %v1387_v3 = vmin.f32 %v13829_v61, 20.0  ;;  %v3106_v58 = vmul.f32 %v8927_v43, %v3105_v48  ;;  %v1393_v46 = vmin.f32 %v13844_v5, 20.0  ;;  %v1786_v24 = vmul.f32 1.442695, %v1386_v14 }
 0x4b2   : > { %7012 = vmatmul.mubr.bf16.vlgmr.msra.gmra.mrb[32].mxu0 %v12863_v38  ;;  %v8931_v45 = vpop.eup %8930  ;;  %v3902_v57 = vadd.f32 1.0, %v8929_v62  ;;  %v3905_v60 = vmul.f32 -0.5, %v8929_v62  ;;  %v3908_v8 = vand.u32 2147483647, %v8929_v62  ;;  %v1392_v38 = vmin.f32 %v13841_v31, 20.0 }
 0x4b3   : > { %7019 = vmatprep.mubr.bf16.mxu0 %v12923_v51  ;;  %v13859_v39 = vpop.eup %8932  ;;  %v3911_v13 = vadd.f32 1.0, %v8931_v45  ;;  %v3914_v21 = vmul.f32 -0.5, %v8931_v45  ;;  %v3917_v6 = vand.u32 2147483647, %v8931_v45  ;;  %v3097_v53 = vmul.f32 %v8925_v23, %v3096_v15 }
 0x4b4   : > { %v13862_v20 = vpop.eup %8934  ;;  %8944 = vlog2.f32 %v3902_v57  ;;  %v3906_v59 = vadd.f32 1.0, %v3905_v60  ;;  %v3956_v51 = vadd.f32 1.0, %v13859_v39  ;;  %vm13868_vm8 = vcmp.lt.f32.partialorder %v3908_v8, 0.0004427343 }
 0x4b5   : > { %8946 = vlog2.f32 %v3911_v13  ;;  %v3965_v11 = vadd.f32 1.0, %v13862_v20  ;;  %v3915_v49 = vadd.f32 1.0, %v3914_v21  ;;  %v3968_v41 = vmul.f32 -0.5, %v13862_v20 }
 0x4b6   : > { %v8937_v1 = vpop.eup %8936  ;;  %vm13872_vm9 = vcmp.lt.f32.partialorder %v3917_v6, 0.0004427343  ;;  %v3971_v0 = vand.u32 2147483647, %v13862_v20  ;;  %vm1183_vm10 = vcmp.gt.f32.partialorder %v13796_v54, 20.0  ;;  %vm1182_vm11 = vcmp.gt.f32.partialorder %v13750_v2, 20.0 }
 0x4b7   : > { %v8939_v12 = vpop.eup %8938  ;;  %v3040_v50 = vmul.f32 0.6931472, %v8937_v1  ;;  %8948 = vlog2.f32 %v3965_v11  ;;  %v3969_v35 = vadd.f32 1.0, %v3968_v41  ;;  %v3959_v17 = vmul.f32 -0.5, %v13859_v39 }
 0x4b8   : > { %v8941_v23 = vpop.eup %8940  ;;  %v3049_v43 = vmul.f32 0.6931472, %v8939_v12  ;;  %8950 = vlog2.f32 %v3956_v51  ;;  %vm1189_vm12 = vcmp.gt.f32.partialorder %v13802_v40, 20.0  ;;  %v3907_v9 = vmul.f32 %v8929_v62, %v3906_v59 }
 0x4b9   : > { %v8943_v55 = vpop.eup %8942  ;;  %v3046_v44 = vsel %vm13837_vm3, %v3043_v63, %v3040_v50  ;;  %v3094_v32 = vmul.f32 0.6931472, %v8941_v23  ;;  %v3916_v15 = vmul.f32 %v8931_v45, %v3915_v49  ;;  %vm1188_vm13 = vcmp.gt.f32.partialorder %v13800_v4, 20.0  ;;  %v661_v45 = vld [vmem:[%s9702_s23 + $0x358] sm:$0xff] }
 0x4ba   : > { %v3055_v18 = vsel %vm13833_vm2, %v3052_v26, %v3049_v43  ;;  %v3103_v36 = vmul.f32 0.6931472, %v8943_v55  ;;  %v4830_v16 = vsel %vm1086_vm0, %v13726_v47, %v3046_v44  ;;  %7020 = vmatmul.mubr.bf16.gmra.mrb[36].mxu0 %v12958_v37  ;;  %v3970_v26 = vmul.f32 %v13862_v20, %v3969_v35 }
 0x4bb   : > { %v4831_v33 = vsel %vm1087_vm1, %v13738_v27, %v3055_v18  ;;  %v3100_v48 = vsel %vm13853_vm7, %v3097_v53, %v3094_v32  ;;  %v5118_v10 = vmul.f32 %v4830_v16, %v4830_v16  ;;  %7027 = vmatprep.mubr.bf16.mxu0 %v13015_v28  ;;  %v658_v27 = vld [vmem:[%s9702_s23 + $0x340] sm:$0xff]  ;;  %8952 = vpow2.f32 %v1786_v24 }
 0x4bc   : > { %v3109_v47 = vsel %vm13848_vm6, %v3106_v58, %v3103_v36  ;;  %v5119_v63 = vmul.f32 %v4831_v33, %v4831_v33  ;;  %v4836_v37 = vsel %vm1092_vm4, %v13740_v19, %v3100_v48  ;;  %v3960_v30 = vadd.f32 1.0, %v3959_v17 }
 0x4bd   : > { %v4837_v14 = vsel %vm1093_vm5, %v13746_v25, %v3109_v47  ;;  %v5124_v62 = vmul.f32 %v4836_v37, %v4836_v37  ;;  %v1788_v42 = vmul.f32 1.442695, %v1387_v3  ;;  %v1798_v58 = vmul.f32 1.442695, %v1392_v38 }
 0x4be   : > { %v5125_v28 = vmul.f32 %v4837_v14, %v4837_v14  ;;  %v8945_v57 = vpop.eup %8944  ;;  %v3962_v19 = vand.u32 2147483647, %v13859_v39  ;;  %v1800_v8 = vmul.f32 1.442695, %v1393_v46  ;;  %v13908_v13 = vunpack.c.l.bf16 %v658_v27 }
 0x4bf   : > { %v5358_v60 = vpack.c.bf16 %v5124_v62, %v5118_v10  ;;  %v8947_v21 = vpop.eup %8946  ;;  %v3904_v6 = vmul.f32 0.6931472, %v8945_v57  ;;  %8954 = vpow2.f32 %v1788_v42  ;;  %v13910_v20 = vunpack.c.h.bf16 %v658_v27  ;;  %v616_v42 = vld [vmem:[%s9702_s23 + $0x1f0] sm:$0xff] }
 0x4c0   : > { %v5359_v25 = vpack.c.bf16 %v5125_v28, %v5119_v63  ;;  %v3913_v53 = vmul.f32 0.6931472, %v8947_v21  ;;  %8956 = vpow2.f32 %v1798_v58  ;;  %v13912_v24 = vunpack.c.l.bf16 %v661_v45 }
 0x4c1   : > { %v13914_v3 = vunpack.c.h.bf16 %v661_v45  ;;  %v8949_v38 = vpop.eup %8948  ;;  %vm13916_vm14 = vcmp.lt.f32.partialorder %v3971_v0, 0.0004427343  ;;  %v3910_v46 = vsel %vm13868_vm8, %v3907_v9, %v3904_v6  ;;  %8958 = vpow2.f32 %v1800_v8 }
 0x4c2   : > { %6878 = vmatprep.subr.bf16.mxu1 %v5359_v25  ;;  %v1482_v11 = vmin.f32 %v13908_v13, 20.0  ;;  %7028 = vmatmul.mubr.bf16.gmra.mrb[40].mxu0 %v13025_v29  ;;  %v3919_v59 = vsel %vm13872_vm9, %v3916_v15, %v3913_v53  ;;  %v3967_v51 = vmul.f32 0.6931472, %v8949_v38  ;;  %v3961_v12 = vmul.f32 %v13859_v39, %v3960_v30  ;;  %v8951_v41 = vpop.eup %8950 }
 0x4c3   : > { %6879 = vmatpush1.bf16.xpose.msra.mxu1 %v5358_v60  ;;  %vm13927_vm15 = vcmp.lt.f32.partialorder %v3962_v19, 0.0004427343  ;;  %v4927_v50 = vsel %vm1183_vm10, %v13796_v54, %v3919_v59  ;;  %v4926_v29 = vsel %vm1182_vm11, %v13750_v2, %v3910_v46  ;;  %v1483_v34 = vmin.f32 %v13910_v20, 20.0  ;;  %v619_v19 = vld [vmem:[%s9702_s23 + $0x208] sm:$0xff] }
 0x4c4   : > { %v1488_v23 = vmin.f32 %v13912_v24, 20.0  ;;  %v3973_v39 = vsel %vm13916_vm14, %v3970_v26, %v3967_v51  ;;  %v5215_v43 = vmul.f32 %v4927_v50, %v4927_v50  ;;  %v3958_v52 = vmul.f32 0.6931472, %v8951_v41  ;;  %v13978_v41 = vld [vmem:[%s9702_s23 + $0x370] sm:$0xff] }
 0x4c5   : > { %v1489_v0 = vmin.f32 %v13914_v3, 20.0  ;;  %v4933_v55 = vsel %vm1189_vm12, %v13802_v40, %v3973_v39  ;;  %v1978_v54 = vmul.f32 1.442695, %v1482_v11  ;;  %v1980_v35 = vmul.f32 1.442695, %v1483_v34  ;;  %v8953_v32 = vpop.eup %8952 }
 0x4c6   : > { %v1990_v44 = vmul.f32 1.442695, %v1488_v23  ;;  %v5221_v2 = vmul.f32 %v4933_v55, %v4933_v55  ;;  %v3964_v17 = vsel %vm13927_vm15, %v3961_v12, %v3958_v52  ;;  %v5214_v18 = vmul.f32 %v4926_v29, %v4926_v29 }
 0x4c7   : > { %v4932_v36 = vsel %vm1188_vm13, %v13800_v4, %v3964_v17  ;;  %8960 = vpow2.f32 %v1978_v54  ;;  %v1992_v16 = vmul.f32 1.442695, %v1489_v0  ;;  %v3149_v10 = vmul.f32 -0.5, %v8953_v32 }
 0x4c8   : > { %v5407_v33 = vpack.c.bf16 %v5221_v2, %v5215_v43  ;;  %v5220_v48 = vmul.f32 %v4932_v36, %v4932_v36  ;;  %8962 = vpow2.f32 %v1980_v35  ;;  %v3146_v9 = vadd.f32 1.0, %v8953_v32 }
 0x4c9   : > { %v8955_v40 = vpop.eup %8954  ;;  %8964 = vpow2.f32 %v1990_v44  ;;  %v3152_v4 = vand.u32 2147483647, %v8953_v32  ;;  %v3150_v30 = vadd.f32 1.0, %v3149_v10  ;;  %vm1099_vm0 = vcmp.gt.f32.partialorder %v13829_v61, 20.0 }
 0x4ca   : > { %v8957_v47 = vpop.eup %8956  ;;  %7035 = vmatprep.subr.bf16.mxu0 %v5407_v33  ;;  %v5406_v63 = vpack.c.bf16 %v5220_v48, %v5214_v18  ;;  %v3155_v15 = vadd.f32 1.0, %v8955_v40  ;;  %v3158_v37 = vmul.f32 -0.5, %v8955_v40  ;;  %v3161_v14 = vand.u32 2147483647, %v8955_v40 }
 0x4cb   : > { %v8959_v27 = vpop.eup %8958  ;;  %8966 = vpow2.f32 %v1992_v16  ;;  %v3200_v26 = vadd.f32 1.0, %v8957_v47  ;;  %v3203_v57 = vmul.f32 -0.5, %v8957_v47  ;;  %v3206_v60 = vand.u32 2147483647, %v8957_v47 }
 0x4cc   : > { %7036 = vmatpush1.bf16.xpose.msra.mxu0 %v5406_v63  ;;  %8968 = vlog2.f32 %v3155_v15  ;;  %v3159_v62 = vadd.f32 1.0, %v3158_v37  ;;  %v3209_v28 = vadd.f32 1.0, %v8959_v27  ;;  %v3212_v58 = vmul.f32 -0.5, %v8959_v27 }
 0x4cd   : > { %v3215_v45 = vand.u32 2147483647, %v8959_v27  ;;  %8970 = vlog2.f32 %v3146_v9  ;;  %vm13953_vm1 = vcmp.lt.f32.partialorder %v3161_v14, 0.0004427343  ;;  %vm13957_vm2 = vcmp.lt.f32.partialorder %v3152_v4, 0.0004427343 }
 0x4ce   : > { %8972 = vlog2.f32 %v3209_v28  ;;  %v3213_v21 = vadd.f32 1.0, %v3212_v58  ;;  %v13961_v6 = vunpack.c.l.bf16 %v616_v42  ;;  %v3160_v53 = vmul.f32 %v8955_v40, %v3159_v62 }
 0x4cf   : > { %8974 = vlog2.f32 %v3200_v26  ;;  %vm13963_vm3 = vcmp.lt.f32.partialorder %v3215_v45, 0.0004427343  ;;  %vm1098_vm4 = vcmp.gt.f32.partialorder %v13826_v22, 20.0  ;;  %v3151_v1 = vmul.f32 %v8953_v32, %v3150_v30 }
 0x4d0   : > { %v3204_v46 = vadd.f32 1.0, %v3203_v57  ;;  %vm1105_vm5 = vcmp.gt.f32.partialorder %v13844_v5, 20.0  ;;  %v3214_v59 = vmul.f32 %v8959_v27, %v3213_v21  ;;  %vm13969_vm6 = vcmp.lt.f32.partialorder %v3206_v60, 0.0004427343 }
 0x4d1   : > { %v8961_v11 = vpop.eup %8960  ;;  %v13973_v12 = vunpack.c.h.bf16 %v616_v42  ;;  %v13975_v49 = vunpack.c.l.bf16 %v619_v19  ;;  %vm1104_vm7 = vcmp.gt.f32.partialorder %v13841_v31, 20.0  ;;  %v13981_v39 = vunpack.c.h.bf16 %v619_v19 }
 0x4d2   : > { %v8963_v50 = vpop.eup %8962  ;;  %v4010_v29 = vadd.f32 1.0, %v8961_v11  ;;  %v4013_v34 = vmul.f32 -0.5, %v8961_v11  ;;  %v4016_v23 = vand.u32 2147483647, %v8961_v11  ;;  %v1398_v54 = vmin.f32 %v13961_v6, 20.0 }
 0x4d3   : > { %v8965_v43 = vpop.eup %8964  ;;  %v4019_v52 = vadd.f32 1.0, %v8963_v50  ;;  %v4022_v0 = vmul.f32 -0.5, %v8963_v50  ;;  %v4025_v55 = vand.u32 2147483647, %v8963_v50  ;;  %v13985_v32 = vunpack.c.l.bf16 %v13978_v41 }
 0x4d4   : > { %8976 = vlog2.f32 %v4010_v29  ;;  %v4014_v35 = vadd.f32 1.0, %v4013_v34  ;;  %v4064_v44 = vadd.f32 1.0, %v8965_v43  ;;  %v3205_v18 = vmul.f32 %v8957_v47, %v3204_v46 }
 0x4d5   : > { %v8967_v2 = vpop.eup %8966  ;;  %8978 = vlog2.f32 %v4019_v52  ;;  %v4023_v17 = vadd.f32 1.0, %v4022_v0  ;;  %v4067_v36 = vmul.f32 -0.5, %v8965_v43  ;;  %vm13987_vm8 = vcmp.lt.f32.partialorder %v4016_v23, 0.0004427343  ;;  %v667_v23 = vld [vmem:[%s9702_s23 + $0x388] sm:$0xff] }
 0x4d6   : > { %v8969_v16 = vpop.eup %8968  ;;  %v4073_v33 = vadd.f32 1.0, %v8967_v2  ;;  %v4076_v48 = vmul.f32 -0.5, %v8967_v2  ;;  %v4079_v10 = vand.u32 2147483647, %v8967_v2  ;;  %vm13991_vm9 = vcmp.lt.f32.partialorder %v4025_v55, 0.0004427343 }
 0x4d7   : > { %v8971_v9 = vpop.eup %8970  ;;  %v3157_v63 = vmul.f32 0.6931472, %v8969_v16  ;;  %vm1194_vm10 = vcmp.gt.f32.partialorder %v13908_v13, 20.0  ;;  %8980 = vlog2.f32 %v4064_v44  ;;  %v4068_v37 = vadd.f32 1.0, %v4067_v36 }
 0x4d8   : > { %v8973_v47 = vpop.eup %8972  ;;  %vm1195_vm11 = vcmp.gt.f32.partialorder %v13910_v20, 20.0  ;;  %8982 = vlog2.f32 %v4073_v33  ;;  %v4077_v27 = vadd.f32 1.0, %v4076_v48  ;;  %v3148_v14 = vmul.f32 0.6931472, %v8971_v9 }
 0x4d9   : > { %v4015_v4 = vmul.f32 %v8961_v11, %v4014_v35  ;;  %v8975_v26 = vpop.eup %8974  ;;  %v3163_v62 = vsel %vm13953_vm1, %v3160_v53, %v3157_v63  ;;  %v3211_v28 = vmul.f32 0.6931472, %v8973_v47  ;;  %v4024_v30 = vmul.f32 %v8963_v50, %v4023_v17 }
 0x4da   : > { %v4070_v42 = vand.u32 2147483647, %v8965_v43  ;;  %v4843_v58 = vsel %vm1099_vm0, %v13829_v61, %v3163_v62  ;;  %vm14002_vm12 = vcmp.lt.f32.partialorder %v4079_v10, 0.0004427343  ;;  %v3154_v57 = vsel %vm13957_vm2, %v3151_v1, %v3148_v14 }
 0x4db   : > { %v3202_v60 = vmul.f32 0.6931472, %v8975_v26  ;;  %vm1200_vm13 = vcmp.gt.f32.partialorder %v13912_v24, 20.0  ;;  %v4069_v19 = vmul.f32 %v8965_v43, %v4068_v37  ;;  %v3217_v8 = vsel %vm13963_vm3, %v3214_v59, %v3211_v28 }
 0x4dc   : > { %v5131_v21 = vmul.f32 %v4843_v58, %v4843_v58  ;;  %v4078_v53 = vmul.f32 %v8967_v2, %v4077_v27  ;;  %v4842_v61 = vsel %vm1098_vm4, %v13826_v22, %v3154_v57  ;;  %v4849_v46 = vsel %vm1105_vm5, %v13844_v5, %v3217_v8 }
 0x4dd   : > { %v3208_v25 = vsel %vm13969_vm6, %v3205_v18, %v3202_v60  ;;  %v5130_v1 = vmul.f32 %v4842_v61, %v4842_v61  ;;  %vm14019_vm14 = vcmp.lt.f32.partialorder %v4070_v42, 0.0004427343  ;;  %v5137_v38 = vmul.f32 %v4849_v46, %v4849_v46 }
 0x4de   : > { %v4848_v59 = vsel %vm1104_vm7, %v13841_v31, %v3208_v25  ;;  %v1399_v50 = vmin.f32 %v13973_v12, 20.0  ;;  %v1404_v22 = vmin.f32 %v13975_v49, 20.0  ;;  %v8977_v29 = vpop.eup %8976  ;;  %v1405_v5 = vmin.f32 %v13981_v39, 20.0 }
 0x4df   : > { %v5136_v34 = vmul.f32 %v4848_v59, %v4848_v59  ;;  %v1810_v51 = vmul.f32 1.442695, %v1398_v54  ;;  %v14031_v43 = vunpack.c.h.bf16 %v13978_v41  ;;  %v8979_v52 = vpop.eup %8978  ;;  %v5365_v0 = vpack.c.bf16 %v5137_v38, %v5131_v21 }
 0x4e0   : > { %v4012_v55 = vmul.f32 0.6931472, %v8977_v29  ;;  %v1812_v35 = vmul.f32 1.442695, %v1399_v50  ;;  %v1822_v44 = vmul.f32 1.442695, %v1404_v22  ;;  %v14035_v54 = vunpack.c.l.bf16 %v667_v23 }
 0x4e1   : > { %v4021_v2 = vmul.f32 0.6931472, %v8979_v52  ;;  %v5364_v31 = vpack.c.bf16 %v5136_v34, %v5130_v1  ;;  %8984 = vpow2.f32 %v1810_v51  ;;  %v1824_v17 = vmul.f32 1.442695, %v1405_v5  ;;  %v8981_v18 = vpop.eup %8980  ;;  %6880 = vmatprep.subr.bf16.mxu1 %v5365_v0  ;;  %v625_v29 = vld [vmem:[%s9702_s23 + $0x238] sm:$0xff] }
 0x4e2   : > { %v4018_v36 = vsel %vm13987_vm8, %v4015_v4, %v4012_v55  ;;  %8986 = vpow2.f32 %v1812_v35  ;;  %v14037_v16 = vunpack.c.h.bf16 %v667_v23  ;;  %v8983_v41 = vpop.eup %8982  ;;  %v4066_v48 = vmul.f32 0.6931472, %v8981_v18 }
 0x4e3   : > { %v4027_v33 = vsel %vm13991_vm9, %v4024_v30, %v4021_v2  ;;  %6881 = vmatpush1.bf16.xpose.msra.mxu1 %v5364_v31  ;;  %v4938_v10 = vsel %vm1194_vm10, %v13908_v13, %v4018_v36  ;;  %8988 = vpow2.f32 %v1822_v44  ;;  %vm1201_vm15 = vcmp.gt.f32.partialorder %v13914_v3, 20.0 }
 0x4e4   : > { %v4075_v40 = vmul.f32 0.6931472, %v8983_v41  ;;  %v4939_v9 = vsel %vm1195_vm11, %v13910_v20, %v4027_v33  ;;  %8990 = vpow2.f32 %v1824_v17  ;;  %v4072_v15 = vsel %vm14019_vm14, %v4069_v19, %v4066_v48 }
 0x4e5   : > { %v5227_v63 = vmul.f32 %v4939_v9, %v4939_v9  ;;  %v5226_v37 = vmul.f32 %v4938_v10, %v4938_v10  ;;  %v4944_v13 = vsel %vm1200_vm13, %v13912_v24, %v4072_v15  ;;  %v1494_v27 = vmin.f32 %v13985_v32, 20.0  ;;  %v622_v24 = vld [vmem:[%s9702_s23 + $0x220] sm:$0xff] }
 0x4e6   : > { %v4081_v47 = vsel %vm14002_vm12, %v4078_v53, %v4075_v40  ;;  %v1495_v14 = vmin.f32 %v14031_v43, 20.0  ;;  %v5232_v4 = vmul.f32 %v4944_v13, %v4944_v13  ;;  %v1500_v26 = vmin.f32 %v14035_v54, 20.0 }
 0x4e7   : > { %v4945_v20 = vsel %vm1201_vm15, %v13914_v3, %v4081_v47  ;;  %v1501_v62 = vmin.f32 %v14037_v16, 20.0  ;;  %v2002_v30 = vmul.f32 1.442695, %v1494_v27  ;;  %v14061_v25 = vunpack.c.l.bf16 %v622_v24 }
 0x4e8   : > { %v5233_v28 = vmul.f32 %v4945_v20, %v4945_v20  ;;  %v2004_v42 = vmul.f32 1.442695, %v1495_v14  ;;  %v5412_v58 = vpack.c.bf16 %v5232_v4, %v5226_v37  ;;  %v2014_v45 = vmul.f32 1.442695, %v1500_v26 }
 0x4e9   : > { %v2016_v57 = vmul.f32 1.442695, %v1501_v62  ;;  %8992 = vpow2.f32 %v2002_v30  ;;  %v14064_v34 = vunpack.c.h.bf16 %v622_v24  ;;  %vm1110_vm0 = vcmp.gt.f32.partialorder %v13961_v6, 20.0 }
 0x4ea   : > { %v5413_v60 = vpack.c.bf16 %v5233_v28, %v5227_v63  ;;  %8994 = vpow2.f32 %v2004_v42  ;;  %vm1111_vm1 = vcmp.gt.f32.partialorder %v13973_v12, 20.0  ;;  %v14076_v2 = vunpack.c.l.bf16 %v625_v29 }
 0x4eb   : > { %v8985_v19 = vpop.eup %8984  ;;  %8996 = vpow2.f32 %v2014_v45  ;;  %vm1116_vm4 = vcmp.gt.f32.partialorder %v13975_v49, 20.0  ;;  %v14079_v18 = vunpack.c.h.bf16 %v625_v29  ;;  %v1410_v36 = vmin.f32 %v14061_v25, 20.0 }
 0x4ec   : > { %v8987_v8 = vpop.eup %8986  ;;  %7037 = vmatprep.subr.bf16.mxu0 %v5413_v60  ;;  %v3254_v3 = vadd.f32 1.0, %v8985_v19  ;;  %v3257_v21 = vmul.f32 -0.5, %v8985_v19  ;;  %8998 = vpow2.f32 %v2016_v57  ;;  %v3260_v38 = vand.u32 2147483647, %v8985_v19 }
 0x4ed   : > { %v8989_v53 = vpop.eup %8988  ;;  %7038 = vmatpush1.bf16.xpose.msra.mxu0 %v5412_v58  ;;  %v3263_v61 = vadd.f32 1.0, %v8987_v8  ;;  %v3266_v46 = vmul.f32 -0.5, %v8987_v8  ;;  %v3269_v11 = vand.u32 2147483647, %v8987_v8  ;;  %vm1117_vm5 = vcmp.gt.f32.partialorder %v13981_v39, 20.0 }
 0x4ee   : > { %v8991_v1 = vpop.eup %8990  ;;  %9000 = vlog2.f32 %v3254_v3  ;;  %v3308_v59 = vadd.f32 1.0, %v8989_v53  ;;  %v3258_v22 = vadd.f32 1.0, %v3257_v21  ;;  %v3311_v52 = vmul.f32 -0.5, %v8989_v53 }
 0x4ef   : > { %9002 = vlog2.f32 %v3263_v61  ;;  %v3317_v50 = vadd.f32 1.0, %v8991_v1  ;;  %v3267_v5 = vadd.f32 1.0, %v3266_v46  ;;  %v3320_v51 = vmul.f32 -0.5, %v8991_v1 }
 0x4f0   : > { %v3323_v23 = vand.u32 2147483647, %v8991_v1  ;;  %9004 = vlog2.f32 %v3308_v59  ;;  %v3314_v0 = vand.u32 2147483647, %v8989_v53  ;;  %vm14068_vm2 = vcmp.lt.f32.partialorder %v3269_v11, 0.0004427343 }
 0x4f1   : > { %9006 = vlog2.f32 %v3317_v50  ;;  %v3321_v35 = vadd.f32 1.0, %v3320_v51  ;;  %vm14072_vm3 = vcmp.lt.f32.partialorder %v3260_v38, 0.0004427343  ;;  %v3259_v31 = vmul.f32 %v8985_v19, %v3258_v22 }
 0x4f2   : > { %v3312_v17 = vadd.f32 1.0, %v3311_v52  ;;  %v3268_v33 = vmul.f32 %v8987_v8, %v3267_v5  ;;  %vm14083_vm6 = vcmp.lt.f32.partialorder %v3323_v23, 0.0004427343  ;;  %vm14087_vm7 = vcmp.lt.f32.partialorder %v3314_v0, 0.0004427343 }
 0x4f3   : > { %v8993_v41 = vpop.eup %8992  ;;  %v1411_v40 = vmin.f32 %v14064_v34, 20.0  ;;  %v3322_v63 = vmul.f32 %v8991_v1, %v3321_v35  ;;  %v1416_v4 = vmin.f32 %v14076_v2, 20.0  ;;  %v1417_v28 = vmin.f32 %v14079_v18, 20.0 }
 0x4f4   : > { %v8995_v9 = vpop.eup %8994  ;;  %v4118_v15 = vadd.f32 1.0, %v8993_v41  ;;  %v4121_v37 = vmul.f32 -0.5, %v8993_v41  ;;  %v4124_v47 = vand.u32 2147483647, %v8993_v41  ;;  %v3313_v62 = vmul.f32 %v8989_v53, %v3312_v17 }
 0x4f5   : > { %v14092_v13 = vpop.eup %8996  ;;  %v4127_v27 = vadd.f32 1.0, %v8995_v9  ;;  %v4130_v14 = vmul.f32 -0.5, %v8995_v9  ;;  %v4133_v20 = vand.u32 2147483647, %v8995_v9  ;;  %v1834_v30 = vmul.f32 1.442695, %v1410_v36 }
 0x4f6   : > { %v14095_v26 = vpop.eup %8998  ;;  %9008 = vlog2.f32 %v4118_v15  ;;  %v4122_v45 = vadd.f32 1.0, %v4121_v37  ;;  %v4172_v57 = vadd.f32 1.0, %v14092_v13  ;;  %vm14101_vm8 = vcmp.lt.f32.partialorder %v4124_v47, 0.0004427343 }
 0x4f7   : > { %9010 = vlog2.f32 %v4127_v27  ;;  %v4181_v58 = vadd.f32 1.0, %v14095_v26  ;;  %v4131_v24 = vadd.f32 1.0, %v4130_v14  ;;  %v4184_v19 = vmul.f32 -0.5, %v14095_v26 }
 0x4f8   : > { %v9001_v42 = vpop.eup %9000  ;;  %vm14105_vm9 = vcmp.lt.f32.partialorder %v4133_v20, 0.0004427343  ;;  %v4187_v46 = vand.u32 2147483647, %v14095_v26  ;;  %vm1207_vm10 = vcmp.gt.f32.partialorder %v14031_v43, 20.0  ;;  %vm1206_vm11 = vcmp.gt.f32.partialorder %v13985_v32, 20.0 }
 0x4f9   : > { %v9003_v60 = vpop.eup %9002  ;;  %v3256_v8 = vmul.f32 0.6931472, %v9001_v42  ;;  %9012 = vlog2.f32 %v4181_v58  ;;  %v4185_v11 = vadd.f32 1.0, %v4184_v19  ;;  %v4175_v50 = vmul.f32 -0.5, %v14092_v13 }
 0x4fa   : > { %v9005_v21 = vpop.eup %9004  ;;  %v3265_v53 = vmul.f32 0.6931472, %v9003_v60  ;;  %9014 = vlog2.f32 %v4172_v57  ;;  %vm1213_vm12 = vcmp.gt.f32.partialorder %v14037_v16, 20.0  ;;  %v4123_v0 = vmul.f32 %v8993_v41, %v4122_v45 }
 0x4fb   : > { %v9007_v1 = vpop.eup %9006  ;;  %v3262_v38 = vsel %vm14072_vm3, %v3259_v31, %v3256_v8  ;;  %v3310_v59 = vmul.f32 0.6931472, %v9005_v21  ;;  %v4132_v44 = vmul.f32 %v8995_v9, %v4131_v24  ;;  %v670_v31 = vld [vmem:[%s9702_s23 + $0x3a0] sm:$0xff]  ;;  %v4186_v17 = vmul.f32 %v14095_v26, %v4185_v11  ;;  %v673_v9 = vld [vmem:[%s9702_s23 + $0x3b8] sm:$0xff] }
 0x4fc   : > { %v3271_v22 = vsel %vm14068_vm2, %v3268_v33, %v3265_v53  ;;  %v3319_v29 = vmul.f32 0.6931472, %v9007_v1  ;;  %v4854_v5 = vsel %vm1110_vm0, %v13961_v6, %v3262_v38  ;;  %vm1212_vm13 = vcmp.gt.f32.partialorder %v14035_v54, 20.0 }
 0x4fd   : > { %v4855_v51 = vsel %vm1111_vm1, %v13973_v12, %v3271_v22  ;;  %v3316_v23 = vsel %vm14087_vm7, %v3313_v62, %v3310_v59  ;;  %v5142_v52 = vmul.f32 %v4854_v5, %v4854_v5  ;;  %9016 = vpow2.f32 %v1834_v30 }
 0x4fe   : > { %v3325_v55 = vsel %vm14083_vm6, %v3322_v63, %v3319_v29  ;;  %v5143_v35 = vmul.f32 %v4855_v51, %v4855_v51  ;;  %v4860_v6 = vsel %vm1116_vm4, %v13975_v49, %v3316_v23  ;;  %v4176_v33 = vadd.f32 1.0, %v4175_v50 }
 0x4ff   : > { %v4861_v12 = vsel %vm1117_vm5, %v13981_v39, %v3325_v55  ;;  %v5148_v36 = vmul.f32 %v4860_v6, %v4860_v6  ;;  %v1836_v48 = vmul.f32 1.442695, %v1411_v40  ;;  %v1846_v10 = vmul.f32 1.442695, %v1416_v4 }
 0x500   : > { %v5149_v41 = vmul.f32 %v4861_v12, %v4861_v12  ;;  %v9009_v63 = vpop.eup %9008  ;;  %v4178_v49 = vand.u32 2147483647, %v14092_v13  ;;  %v1848_v37 = vmul.f32 1.442695, %v1417_v28  ;;  %v14139_v47 = vunpack.c.l.bf16 %v670_v31 }
 0x501   : > { %v5370_v15 = vpack.c.bf16 %v5148_v36, %v5142_v52  ;;  %v9011_v27 = vpop.eup %9010  ;;  %v4120_v14 = vmul.f32 0.6931472, %v9009_v63  ;;  %9018 = vpow2.f32 %v1836_v48  ;;  %v14141_v20 = vunpack.c.h.bf16 %v670_v31  ;;  %v628_v48 = vld [vmem:[%s9702_s23 + $0x250] sm:$0xff] }
 0x502   : > { %v5371_v39 = vpack.c.bf16 %v5149_v41, %v5143_v35  ;;  %v4129_v26 = vmul.f32 0.6931472, %v9011_v27  ;;  %9020 = vpow2.f32 %v1846_v10  ;;  %v14143_v62 = vunpack.c.l.bf16 %v673_v9 }
 0x503   : > { %v14145_v40 = vunpack.c.h.bf16 %v673_v9  ;;  %v9013_v4 = vpop.eup %9012  ;;  %vm14147_vm14 = vcmp.lt.f32.partialorder %v4187_v46, 0.0004427343  ;;  %v4126_v28 = vsel %vm14101_vm8, %v4123_v0, %v4120_v14  ;;  %9022 = vpow2.f32 %v1848_v37 }
 0x504   : > { %6882 = vmatprep.subr.bf16.mxu1 %v5371_v39  ;;  %v1506_v42 = vmin.f32 %v14139_v47, 20.0  ;;  %v4135_v58 = vsel %vm14105_vm9, %v4132_v44, %v4129_v26  ;;  %v4183_v45 = vmul.f32 0.6931472, %v9013_v4  ;;  %v4177_v57 = vmul.f32 %v14092_v13, %v4176_v33  ;;  %v9015_v24 = vpop.eup %9014 }
 0x505   : > { %6883 = vmatpush1.bf16.xpose.msra.mxu1 %v5370_v15  ;;  %vm14157_vm15 = vcmp.lt.f32.partialorder %v4178_v49, 0.0004427343  ;;  %v4951_v19 = vsel %vm1207_vm10, %v14031_v43, %v4135_v58  ;;  %v4950_v8 = vsel %vm1206_vm11, %v13985_v32, %v4126_v28  ;;  %v1507_v3 = vmin.f32 %v14141_v20, 20.0  ;;  %v631_v49 = vld [vmem:[%s9702_s23 + $0x268] sm:$0xff] }
 0x506   : > { %v1512_v21 = vmin.f32 %v14143_v62, 20.0  ;;  %v4189_v13 = vsel %vm14147_vm14, %v4186_v17, %v4183_v45  ;;  %v5239_v53 = vmul.f32 %v4951_v19, %v4951_v19  ;;  %v4174_v61 = vmul.f32 0.6931472, %v9015_v24  ;;  %v14208_v24 = vld [vmem:[%s9702_s23 + $0x3d0] sm:$0xff] }
 0x507   : > { %v1513_v46 = vmin.f32 %v14145_v40, 20.0  ;;  %v4957_v1 = vsel %vm1213_vm12, %v14037_v16, %v4189_v13  ;;  %v2026_v43 = vmul.f32 1.442695, %v1506_v42  ;;  %v2028_v11 = vmul.f32 1.442695, %v1507_v3  ;;  %v9017_v59 = vpop.eup %9016 }
 0x508   : > { %v2038_v38 = vmul.f32 1.442695, %v1512_v21  ;;  %v5245_v32 = vmul.f32 %v4957_v1, %v4957_v1  ;;  %v4180_v50 = vsel %vm14157_vm15, %v4177_v57, %v4174_v61  ;;  %v5238_v22 = vmul.f32 %v4950_v8, %v4950_v8 }
 0x509   : > { %v4956_v29 = vsel %vm1212_vm13, %v14035_v54, %v4180_v50  ;;  %9024 = vpow2.f32 %v2026_v43  ;;  %v2040_v5 = vmul.f32 1.442695, %v1513_v46  ;;  %v3365_v52 = vmul.f32 -0.5, %v9017_v59 }
 0x50a   : > { %v5419_v51 = vpack.c.bf16 %v5245_v32, %v5239_v53  ;;  %v5244_v23 = vmul.f32 %v4956_v29, %v4956_v29  ;;  %9026 = vpow2.f32 %v2028_v11  ;;  %v3362_v0 = vadd.f32 1.0, %v9017_v59 }
 0x50b   : > { %v9019_v16 = vpop.eup %9018  ;;  %9028 = vpow2.f32 %v2038_v38  ;;  %v3368_v54 = vand.u32 2147483647, %v9017_v59  ;;  %v3366_v33 = vadd.f32 1.0, %v3365_v52  ;;  %vm1123_vm0 = vcmp.gt.f32.partialorder %v14064_v34, 20.0 }
 0x50c   : > { %v9021_v55 = vpop.eup %9020  ;;  %7039 = vmatprep.subr.bf16.mxu0 %v5419_v51  ;;  %v5418_v35 = vpack.c.bf16 %v5244_v23, %v5238_v22  ;;  %v3371_v44 = vadd.f32 1.0, %v9019_v16  ;;  %v3374_v6 = vmul.f32 -0.5, %v9019_v16  ;;  %v3377_v12 = vand.u32 2147483647, %v9019_v16 }
 0x50d   : > { %v9023_v31 = vpop.eup %9022  ;;  %9030 = vpow2.f32 %v2040_v5  ;;  %v3416_v17 = vadd.f32 1.0, %v9021_v55  ;;  %v3419_v63 = vmul.f32 -0.5, %v9021_v55  ;;  %v3422_v15 = vand.u32 2147483647, %v9021_v55 }
 0x50e   : > { %7040 = vmatpush1.bf16.xpose.msra.mxu0 %v5418_v35  ;;  %9032 = vlog2.f32 %v3371_v44  ;;  %v3375_v36 = vadd.f32 1.0, %v3374_v6  ;;  %v3425_v41 = vadd.f32 1.0, %v9023_v31  ;;  %v3428_v10 = vmul.f32 -0.5, %v9023_v31 }
 0x50f   : > { %v3431_v9 = vand.u32 2147483647, %v9023_v31  ;;  %9034 = vlog2.f32 %v3362_v0  ;;  %vm14183_vm1 = vcmp.lt.f32.partialorder %v3377_v12, 0.0004427343  ;;  %vm14187_vm2 = vcmp.lt.f32.partialorder %v3368_v54, 0.0004427343 }
 0x510   : > { %9036 = vlog2.f32 %v3425_v41  ;;  %v3429_v27 = vadd.f32 1.0, %v3428_v10  ;;  %v14191_v14 = vunpack.c.l.bf16 %v628_v48  ;;  %v3376_v26 = vmul.f32 %v9019_v16, %v3375_v36 }
 0x511   : > { %9038 = vlog2.f32 %v3416_v17  ;;  %vm14193_vm3 = vcmp.lt.f32.partialorder %v3431_v9, 0.0004427343  ;;  %vm1122_vm4 = vcmp.gt.f32.partialorder %v14061_v25, 20.0  ;;  %v3367_v30 = vmul.f32 %v9017_v59, %v3366_v33 }
 0x512   : > { %v3420_v28 = vadd.f32 1.0, %v3419_v63  ;;  %vm1129_vm5 = vcmp.gt.f32.partialorder %v14079_v18, 20.0  ;;  %v3430_v58 = vmul.f32 %v9023_v31, %v3429_v27  ;;  %vm14199_vm6 = vcmp.lt.f32.partialorder %v3422_v15, 0.0004427343 }
 0x513   : > { %v9025_v42 = vpop.eup %9024  ;;  %v14203_v57 = vunpack.c.h.bf16 %v628_v48  ;;  %v14205_v60 = vunpack.c.l.bf16 %v631_v49  ;;  %vm1128_vm7 = vcmp.gt.f32.partialorder %v14076_v2, 20.0  ;;  %v14211_v13 = vunpack.c.h.bf16 %v631_v49 }
 0x514   : > { %v9027_v19 = vpop.eup %9026  ;;  %v4226_v8 = vadd.f32 1.0, %v9025_v42  ;;  %v4229_v3 = vmul.f32 -0.5, %v9025_v42  ;;  %v4232_v21 = vand.u32 2147483647, %v9025_v42  ;;  %v1422_v43 = vmin.f32 %v14191_v14, 20.0 }
 0x515   : > { %v9029_v53 = vpop.eup %9028  ;;  %v4235_v61 = vadd.f32 1.0, %v9027_v19  ;;  %v4238_v46 = vmul.f32 -0.5, %v9027_v19  ;;  %v4241_v1 = vand.u32 2147483647, %v9027_v19  ;;  %v14215_v59 = vunpack.c.l.bf16 %v14208_v24 }
 0x516   : > { %9040 = vlog2.f32 %v4226_v8  ;;  %v4230_v11 = vadd.f32 1.0, %v4229_v3  ;;  %v4280_v38 = vadd.f32 1.0, %v9029_v53  ;;  %v3421_v22 = vmul.f32 %v9021_v55, %v3420_v28 }
 0x517   : > { %v9031_v32 = vpop.eup %9030  ;;  %9042 = vlog2.f32 %v4235_v61  ;;  %v4239_v50 = vadd.f32 1.0, %v4238_v46  ;;  %v4283_v29 = vmul.f32 -0.5, %v9029_v53  ;;  %vm14217_vm8 = vcmp.lt.f32.partialorder %v4232_v21, 0.0004427343  ;;  %v679_v21 = vld [vmem:[%s9702_s23 + $0x3e8] sm:$0xff] }
 0x518   : > { %v9033_v5 = vpop.eup %9032  ;;  %v4289_v51 = vadd.f32 1.0, %v9031_v32  ;;  %v4292_v23 = vmul.f32 -0.5, %v9031_v32  ;;  %v4295_v52 = vand.u32 2147483647, %v9031_v32  ;;  %vm14221_vm9 = vcmp.lt.f32.partialorder %v4241_v1, 0.0004427343 }
 0x519   : > { %v9035_v0 = vpop.eup %9034  ;;  %v3373_v35 = vmul.f32 0.6931472, %v9033_v5  ;;  %vm1218_vm10 = vcmp.gt.f32.partialorder %v14139_v47, 20.0  ;;  %9044 = vlog2.f32 %v4280_v38  ;;  %v4284_v6 = vadd.f32 1.0, %v4283_v29 }
 0x51a   : > { %v9037_v55 = vpop.eup %9036  ;;  %vm1219_vm11 = vcmp.gt.f32.partialorder %v14141_v20, 20.0  ;;  %9046 = vlog2.f32 %v4289_v51  ;;  %v4293_v31 = vadd.f32 1.0, %v4292_v23  ;;  %v3364_v12 = vmul.f32 0.6931472, %v9035_v0 }
 0x51b   : > { %v4231_v54 = vmul.f32 %v9025_v42, %v4230_v11  ;;  %v9039_v17 = vpop.eup %9038  ;;  %v3379_v36 = vsel %vm14183_vm1, %v3376_v26, %v3373_v35  ;;  %v3427_v41 = vmul.f32 0.6931472, %v9037_v55  ;;  %v4240_v33 = vmul.f32 %v9027_v19, %v4239_v50 }
 0x51c   : > { %v4286_v48 = vand.u32 2147483647, %v9029_v53  ;;  %v4867_v10 = vsel %vm1123_vm0, %v14064_v34, %v3379_v36  ;;  %vm14232_vm12 = vcmp.lt.f32.partialorder %v4295_v52, 0.0004427343  ;;  %v3370_v63 = vsel %vm14187_vm2, %v3367_v30, %v3364_v12 }
 0x51d   : > { %v3418_v15 = vmul.f32 0.6931472, %v9039_v17  ;;  %vm1224_vm13 = vcmp.gt.f32.partialorder %v14143_v62, 20.0  ;;  %v4285_v49 = vmul.f32 %v9029_v53, %v4284_v6  ;;  %v3433_v37 = vsel %vm14193_vm3, %v3430_v58, %v3427_v41 }
 0x51e   : > { %v5155_v27 = vmul.f32 %v4867_v10, %v4867_v10  ;;  %v4294_v26 = vmul.f32 %v9031_v32, %v4293_v31  ;;  %v4866_v34 = vsel %vm1122_vm4, %v14061_v25, %v3370_v63  ;;  %v4873_v28 = vsel %vm1129_vm5, %v14079_v18, %v3433_v37 }
 0x51f   : > { %v3424_v39 = vsel %vm14199_vm6, %v3421_v22, %v3418_v15  ;;  %v5154_v30 = vmul.f32 %v4866_v34, %v4866_v34  ;;  %vm14249_vm14 = vcmp.lt.f32.partialorder %v4286_v48, 0.0004427343  ;;  %v5161_v4 = vmul.f32 %v4873_v28, %v4873_v28 }
 0x520   : > { %v4872_v58 = vsel %vm1128_vm7, %v14076_v2, %v3424_v39  ;;  %v1423_v19 = vmin.f32 %v14203_v57, 20.0  ;;  %v1428_v25 = vmin.f32 %v14205_v60, 20.0  ;;  %v9041_v8 = vpop.eup %9040  ;;  %v1429_v18 = vmin.f32 %v14211_v13, 20.0 }
 0x521   : > { %v5160_v3 = vmul.f32 %v4872_v58, %v4872_v58  ;;  %v1858_v45 = vmul.f32 1.442695, %v1422_v43  ;;  %v14261_v53 = vunpack.c.h.bf16 %v14208_v24  ;;  %v9043_v61 = vpop.eup %9042  ;;  %v5377_v46 = vpack.c.bf16 %v5161_v4, %v5155_v27 }
 0x522   : > { %v4228_v1 = vmul.f32 0.6931472, %v9041_v8  ;;  %v1860_v11 = vmul.f32 1.442695, %v1423_v19  ;;  %v1870_v38 = vmul.f32 1.442695, %v1428_v25  ;;  %v14265_v43 = vunpack.c.l.bf16 %v679_v21 }
 0x523   : > { %v4237_v32 = vmul.f32 0.6931472, %v9043_v61  ;;  %v5376_v2 = vpack.c.bf16 %v5160_v3, %v5154_v30  ;;  %9048 = vpow2.f32 %v1858_v45  ;;  %v1872_v50 = vmul.f32 1.442695, %v1429_v18  ;;  %v9045_v22 = vpop.eup %9044  ;;  %6884 = vmatprep.subr.bf16.mxu1 %v5377_v46  ;;  %v637_v8 = vld [vmem:[%s9702_s23 + $0x298] sm:$0xff] }
 0x524   : > { %v4234_v29 = vsel %vm14217_vm8, %v4231_v54, %v4228_v1  ;;  %9050 = vpow2.f32 %v1860_v11  ;;  %v14267_v5 = vunpack.c.h.bf16 %v679_v21  ;;  %v9047_v24 = vpop.eup %9046  ;;  %v4282_v23 = vmul.f32 0.6931472, %v9045_v22 }
 0x525   : > { %v4243_v51 = vsel %vm14221_vm9, %v4240_v33, %v4237_v32  ;;  %6885 = vmatpush1.bf16.xpose.msra.mxu1 %v5376_v2  ;;  %v4962_v52 = vsel %vm1218_vm10, %v14139_v47, %v4234_v29  ;;  %9052 = vpow2.f32 %v1870_v38  ;;  %vm1225_vm15 = vcmp.gt.f32.partialorder %v14145_v40, 20.0 }
 0x526   : > { %v4291_v16 = vmul.f32 0.6931472, %v9047_v24  ;;  %v4963_v0 = vsel %vm1219_vm11, %v14141_v20, %v4243_v51  ;;  %9054 = vpow2.f32 %v1872_v50  ;;  %v4288_v44 = vsel %vm14249_vm14, %v4285_v49, %v4282_v23 }
 0x527   : > { %v5251_v35 = vmul.f32 %v4963_v0, %v4963_v0  ;;  %v5250_v6 = vmul.f32 %v4962_v52, %v4962_v52  ;;  %v4968_v47 = vsel %vm1224_vm13, %v14143_v62, %v4288_v44  ;;  %v1518_v31 = vmin.f32 %v14215_v59, 20.0  ;;  %v634_v62 = vld [vmem:[%s9702_s23 + $0x280] sm:$0xff] }
 0x528   : > { %v4297_v55 = vsel %vm14232_vm12, %v4294_v26, %v4291_v16  ;;  %v1519_v12 = vmin.f32 %v14261_v53, 20.0  ;;  %v5256_v54 = vmul.f32 %v4968_v47, %v4968_v47  ;;  %v1524_v17 = vmin.f32 %v14265_v43, 20.0 }
 0x529   : > { %v4969_v20 = vsel %vm1225_vm15, %v14145_v40, %v4297_v55  ;;  %v1525_v36 = vmin.f32 %v14267_v5, 20.0  ;;  %v2050_v33 = vmul.f32 1.442695, %v1518_v31  ;;  %v14291_v39 = vunpack.c.l.bf16 %v634_v62 }
 0x52a   : > { %v5257_v41 = vmul.f32 %v4969_v20, %v4969_v20  ;;  %v2052_v48 = vmul.f32 1.442695, %v1519_v12  ;;  %v5424_v10 = vpack.c.bf16 %v5256_v54, %v5250_v6  ;;  %v2062_v9 = vmul.f32 1.442695, %v1524_v17 }
 0x52b   : > { %v2064_v63 = vmul.f32 1.442695, %v1525_v36  ;;  %9056 = vpow2.f32 %v2050_v33  ;;  %v14294_v3 = vunpack.c.h.bf16 %v634_v62  ;;  %vm1134_vm0 = vcmp.gt.f32.partialorder %v14191_v14, 20.0 }
 0x52c   : > { %v5425_v15 = vpack.c.bf16 %v5257_v41, %v5251_v35  ;;  %9058 = vpow2.f32 %v2052_v48  ;;  %vm1135_vm1 = vcmp.gt.f32.partialorder %v14203_v57, 20.0  ;;  %v14306_v32 = vunpack.c.l.bf16 %v637_v8 }
 0x52d   : > { %v9049_v49 = vpop.eup %9048  ;;  %9060 = vpow2.f32 %v2062_v9  ;;  %vm1140_vm4 = vcmp.gt.f32.partialorder %v14205_v60, 20.0  ;;  %v14309_v22 = vunpack.c.h.bf16 %v637_v8  ;;  %v1434_v29 = vmin.f32 %v14291_v39, 20.0 }
 0x52e   : > { %v9051_v37 = vpop.eup %9050  ;;  %7041 = vmatprep.subr.bf16.mxu0 %v5425_v15  ;;  %v3470_v40 = vadd.f32 1.0, %v9049_v49  ;;  %v3473_v27 = vmul.f32 -0.5, %v9049_v49  ;;  %9062 = vpow2.f32 %v2064_v63  ;;  %v3476_v4 = vand.u32 2147483647, %v9049_v49 }
 0x52f   : > { %v9053_v26 = vpop.eup %9052  ;;  %7042 = vmatpush1.bf16.xpose.msra.mxu0 %v5424_v10  ;;  %v3479_v34 = vadd.f32 1.0, %v9051_v37  ;;  %v3482_v28 = vmul.f32 -0.5, %v9051_v37  ;;  %v3485_v42 = vand.u32 2147483647, %v9051_v37  ;;  %vm1141_vm5 = vcmp.gt.f32.partialorder %v14211_v13, 20.0 }
 0x530   : > { %v9055_v30 = vpop.eup %9054  ;;  %9064 = vlog2.f32 %v3470_v40  ;;  %v3524_v58 = vadd.f32 1.0, %v9053_v26  ;;  %v3474_v25 = vadd.f32 1.0, %v3473_v27  ;;  %v3527_v61 = vmul.f32 -0.5, %v9053_v26 }
 0x531   : > { %9066 = vlog2.f32 %v3479_v34  ;;  %v3533_v19 = vadd.f32 1.0, %v9055_v30  ;;  %v3483_v18 = vadd.f32 1.0, %v3482_v28  ;;  %v3536_v45 = vmul.f32 -0.5, %v9055_v30 }
 0x532   : > { %v3539_v21 = vand.u32 2147483647, %v9055_v30  ;;  %9068 = vlog2.f32 %v3524_v58  ;;  %v3530_v46 = vand.u32 2147483647, %v9053_v26  ;;  %vm14298_vm2 = vcmp.lt.f32.partialorder %v3485_v42, 0.0004427343 }
 0x533   : > { %9070 = vlog2.f32 %v3533_v19  ;;  %v3537_v11 = vadd.f32 1.0, %v3536_v45  ;;  %vm14302_vm3 = vcmp.lt.f32.partialorder %v3476_v4, 0.0004427343  ;;  %v3475_v2 = vmul.f32 %v9049_v49, %v3474_v25 }
 0x534   : > { %v3528_v50 = vadd.f32 1.0, %v3527_v61  ;;  %v3484_v51 = vmul.f32 %v9051_v37, %v3483_v18  ;;  %vm14313_vm6 = vcmp.lt.f32.partialorder %v3539_v21, 0.0004427343  ;;  %vm14317_vm7 = vcmp.lt.f32.partialorder %v3530_v46, 0.0004427343 }
 0x535   : > { %v9057_v24 = vpop.eup %9056  ;;  %v1435_v16 = vmin.f32 %v14294_v3, 20.0  ;;  %v3538_v35 = vmul.f32 %v9055_v30, %v3537_v11  ;;  %v1440_v54 = vmin.f32 %v14306_v32, 20.0  ;;  %v1441_v41 = vmin.f32 %v14309_v22, 20.0 }
 0x536   : > { %v9059_v0 = vpop.eup %9058  ;;  %v4334_v44 = vadd.f32 1.0, %v9057_v24  ;;  %v4337_v6 = vmul.f32 -0.5, %v9057_v24  ;;  %v4340_v55 = vand.u32 2147483647, %v9057_v24  ;;  %v3529_v36 = vmul.f32 %v9053_v26, %v3528_v50 }
 0x537   : > { %v14322_v47 = vpop.eup %9060  ;;  %v4343_v31 = vadd.f32 1.0, %v9059_v0  ;;  %v4346_v12 = vmul.f32 -0.5, %v9059_v0  ;;  %v4349_v20 = vand.u32 2147483647, %v9059_v0  ;;  %v1882_v33 = vmul.f32 1.442695, %v1434_v29 }
 0x538   : > { %v14325_v17 = vpop.eup %9062  ;;  %9072 = vlog2.f32 %v4334_v44  ;;  %v4338_v9 = vadd.f32 1.0, %v4337_v6  ;;  %v4388_v63 = vadd.f32 1.0, %v14322_v47  ;;  %vm14331_vm8 = vcmp.lt.f32.partialorder %v4340_v55, 0.0004427343 }
 0x539   : > { %9074 = vlog2.f32 %v4343_v31  ;;  %v4397_v10 = vadd.f32 1.0, %v14325_v17  ;;  %v4347_v62 = vadd.f32 1.0, %v4346_v12  ;;  %v4400_v49 = vmul.f32 -0.5, %v14325_v17 }
 0x53a   : > { %v9065_v48 = vpop.eup %9064  ;;  %vm14335_vm9 = vcmp.lt.f32.partialorder %v4349_v20, 0.0004427343  ;;  %v4403_v28 = vand.u32 2147483647, %v14325_v17  ;;  %vm1231_vm10 = vcmp.gt.f32.partialorder %v14261_v53, 20.0  ;;  %vm1230_vm11 = vcmp.gt.f32.partialorder %v14215_v59, 20.0 }
 0x53b   : > { %v9067_v15 = vpop.eup %9066  ;;  %v3472_v37 = vmul.f32 0.6931472, %v9065_v48  ;;  %9076 = vlog2.f32 %v4397_v10  ;;  %v4401_v42 = vadd.f32 1.0, %v4400_v49  ;;  %v4391_v19 = vmul.f32 -0.5, %v14322_v47 }
 0x53c   : > { %v9069_v27 = vpop.eup %9068  ;;  %v3481_v26 = vmul.f32 0.6931472, %v9067_v15  ;;  %9078 = vlog2.f32 %v4388_v63  ;;  %vm1237_vm12 = vcmp.gt.f32.partialorder %v14267_v5, 20.0  ;;  %v4339_v46 = vmul.f32 %v9057_v24, %v4338_v9 }
 0x53d   : > { %v9071_v30 = vpop.eup %9070  ;;  %v3478_v4 = vsel %vm14302_vm3, %v3475_v2, %v3472_v37  ;;  %v3526_v58 = vmul.f32 0.6931472, %v9069_v27  ;;  %v4348_v38 = vmul.f32 %v9059_v0, %v4347_v62  ;;  %v682_v2 = vld [vmem:[%s9702_s23 + $0x400] sm:$0xff]  ;;  %v4402_v50 = vmul.f32 %v14325_v17, %v4401_v42  ;;  %v685_v0 = vld [vmem:[%s9702_s23 + $0x418] sm:$0xff] }
 0x53e   : > { %v3487_v25 = vsel %vm14298_vm2, %v3484_v51, %v3481_v26  ;;  %v3535_v8 = vmul.f32 0.6931472, %v9071_v30  ;;  %v4878_v18 = vsel %vm1134_vm0, %v14191_v14, %v3478_v4  ;;  %vm1236_vm13 = vcmp.gt.f32.partialorder %v14265_v43, 20.0 }
 0x53f   : > { %v4879_v45 = vsel %vm1135_vm1, %v14203_v57, %v3487_v25  ;;  %v3532_v21 = vsel %vm14317_vm7, %v3529_v36, %v3526_v58  ;;  %v5166_v61 = vmul.f32 %v4878_v18, %v4878_v18  ;;  %9080 = vpow2.f32 %v1882_v33  ;;  %v640_v33 = vld [vmem:[%s9702_s23 + $0x2b0] sm:$0xff] }
 0x540   : > { %v3541_v1 = vsel %vm14313_vm6, %v3538_v35, %v3535_v8  ;;  %v5167_v11 = vmul.f32 %v4879_v45, %v4879_v45  ;;  %v4884_v14 = vsel %vm1140_vm4, %v14205_v60, %v3532_v21  ;;  %v4392_v51 = vadd.f32 1.0, %v4391_v19  ;;  %v14407_v8 = vpop.f32.mrb[0].mxu0 }
 0x541   : > { %v4885_v57 = vsel %vm1141_vm5, %v14211_v13, %v3541_v1  ;;  %v5172_v29 = vmul.f32 %v4884_v14, %v4884_v14  ;;  %v1884_v23 = vmul.f32 1.442695, %v1435_v16  ;;  %v1894_v52 = vmul.f32 1.442695, %v1440_v54  ;;  %v14412_v21 = vpop.f32.mrb[1].mxu0 }
 0x542   : > { %v5173_v24 = vmul.f32 %v4885_v57, %v4885_v57  ;;  %v9073_v35 = vpop.eup %9072  ;;  %v4394_v60 = vand.u32 2147483647, %v14322_v47  ;;  %v1896_v6 = vmul.f32 1.442695, %v1441_v41  ;;  %v14369_v55 = vunpack.c.l.bf16 %v682_v2  ;;  %v14414_v1 = vpop.f32.mrb[2].mxu0 }
 0x543   : > { %v5382_v44 = vpack.c.bf16 %v5172_v29, %v5166_v61  ;;  %v9075_v31 = vpop.eup %9074  ;;  %v4336_v12 = vmul.f32 0.6931472, %v9073_v35  ;;  %9082 = vpow2.f32 %v1884_v23  ;;  %v14371_v20 = vunpack.c.h.bf16 %v682_v2  ;;  %v14418_v2 = vpop.f32.mrb[3].mxu0 }
 0x544   : > { %v5383_v13 = vpack.c.bf16 %v5173_v24, %v5167_v11  ;;  %v4345_v17 = vmul.f32 0.6931472, %v9075_v31  ;;  %9084 = vpow2.f32 %v1894_v52  ;;  %v14373_v36 = vunpack.c.l.bf16 %v685_v0  ;;  %v14416_v11 = vpop.f32.mrb[44].mxu1 }
 0x545   : > { %v14375_v16 = vunpack.c.h.bf16 %v685_v0  ;;  %v9077_v54 = vpop.eup %9076  ;;  %vm14377_vm14 = vcmp.lt.f32.partialorder %v4403_v28, 0.0004427343  ;;  %v4342_v41 = vsel %vm14331_vm8, %v4339_v46, %v4336_v12  ;;  %9086 = vpow2.f32 %v1896_v6 }
 0x546   : > { %6886 = vmatprep.subr.bf16.mxu1 %v5383_v13  ;;  %v1530_v48 = vmin.f32 %v14369_v55, 20.0  ;;  %v4351_v10 = vsel %vm14335_vm9, %v4348_v38, %v4345_v17  ;;  %v4399_v9 = vmul.f32 0.6931472, %v9077_v54  ;;  %v4393_v63 = vmul.f32 %v14322_v47, %v4392_v51  ;;  %v9079_v62 = vpop.eup %9078  ;;  %v14422_v51 = vpop.f32.mrb[4].mxu0 }
 0x547   : > { %6887 = vmatpush1.bf16.xpose.msra.mxu1 %v5382_v44  ;;  %vm14387_vm15 = vcmp.lt.f32.partialorder %v4394_v60, 0.0004427343  ;;  %v4975_v49 = vsel %vm1231_vm10, %v14261_v53, %v4351_v10  ;;  %v4974_v37 = vsel %vm1230_vm11, %v14215_v59, %v4342_v41  ;;  %v1531_v40 = vmin.f32 %v14371_v20, 20.0  ;;  %v14425_v35 = vpop.f32.mrb[5].mxu0  ;;  %v14427_v44 = vpop.f32.mrb[45].mxu1 }
 0x548   : > { %v1536_v27 = vmin.f32 %v14373_v36, 20.0  ;;  %v4405_v47 = vsel %vm14377_vm14, %v4402_v50, %v4399_v9  ;;  %v5263_v26 = vmul.f32 %v4975_v49, %v4975_v49  ;;  %v4390_v34 = vmul.f32 0.6931472, %v9079_v62  ;;  %15698 = vst [vmem:[#allocation19_spill] sm:$0xff] %v14427_v44  ;;  %v14429_v13 = vpop.f32.mrb[6].mxu0  ;;  %v6798_v12 = vpop.f32.mrb[46].mxu1 }
 0x549   : > { %v1537_v28 = vmin.f32 %v14375_v16, 20.0  ;;  %v4981_v30 = vsel %vm1237_vm12, %v14267_v5, %v4405_v47  ;;  %v2074_v53 = vmul.f32 1.442695, %v1530_v48  ;;  %v2076_v42 = vmul.f32 1.442695, %v1531_v40  ;;  %v9081_v58 = vpop.eup %9080  ;;  %v14432_v41 = vpop.f32.mrb[7].mxu0 }
 0x54a   : > { %v2086_v4 = vmul.f32 1.442695, %v1536_v27  ;;  %v5269_v59 = vmul.f32 %v4981_v30, %v4981_v30  ;;  %v4396_v19 = vsel %vm14387_vm15, %v4393_v63, %v4390_v34  ;;  %v5262_v25 = vmul.f32 %v4974_v37, %v4974_v37  ;;  %v6799_v48 = vpop.f32.mrb[47].mxu1  ;;  %v643_v63 = vld [vmem:[%s9702_s23 + $0x2c8] sm:$0xff]  ;;  %v14437_v15 = vpop.f32.mrb[16].mxu0 }
 0x54b   : > { %v4980_v18 = vsel %vm1236_vm13, %v14265_v43, %v4396_v19  ;;  %9088 = vpow2.f32 %v2074_v53  ;;  %v2088_v45 = vmul.f32 1.442695, %v1537_v28  ;;  %v3581_v46 = vmul.f32 -0.5, %v9081_v58  ;;  %v14439_v62 = vpop.f32.mrb[48].mxu1  ;;  %v14450_v27 = vpop.f32.mrb[17].mxu0 }
 0x54c   : > { %v5431_v5 = vpack.c.bf16 %v5269_v59, %v5263_v26  ;;  %v5268_v61 = vmul.f32 %v4980_v18, %v4980_v18  ;;  %9090 = vpow2.f32 %v2076_v42  ;;  %v3578_v14 = vadd.f32 1.0, %v9081_v58  ;;  %v14452_v47 = vpop.f32.mrb[49].mxu1  ;;  %v6524_v53 = vpop.f32.mrb[18].mxu0 }
 0x54d   : > { %v9083_v38 = vpop.eup %9082  ;;  %9092 = vpow2.f32 %v2086_v4  ;;  %v3584_v24 = vand.u32 2147483647, %v9081_v58  ;;  %v3582_v31 = vadd.f32 1.0, %v3581_v46  ;;  %vm1147_vm0 = vcmp.gt.f32.partialorder %v14294_v3, 20.0  ;;  %15703 = vst [vmem:[#allocation20_spill] sm:$0xff] %v14452_v47  ;;  %v6859_v42 = vpop.f32.mrb[50].mxu1 }
 0x54e   : > { %v14420_v57 = vpop.eup %9084  ;;  %7043 = vmatprep.subr.bf16.mxu0 %v5431_v5  ;;  %v5430_v43 = vpack.c.bf16 %v5268_v61, %v5262_v25  ;;  %v3587_v50 = vadd.f32 1.0, %v9083_v38  ;;  %v3590_v29 = vmul.f32 -0.5, %v9083_v38  ;;  %v3593_v52 = vand.u32 2147483647, %v9083_v38 }
 0x54f   : > { %v9087_v23 = vpop.eup %9086  ;;  %9094 = vpow2.f32 %v2088_v45  ;;  %v3632_v0 = vadd.f32 1.0, %v14420_v57  ;;  %v3635_v10 = vmul.f32 -0.5, %v14420_v57  ;;  %v3638_v9 = vand.u32 2147483647, %v14420_v57  ;;  %v6525_v45 = vpop.f32.mrb[19].mxu0 }
 0x550   : > { %7044 = vmatpush1.bf16.xpose.msra.mxu0 %v5430_v43  ;;  %9096 = vlog2.f32 %v3587_v50  ;;  %v3591_v60 = vadd.f32 1.0, %v3590_v29  ;;  %v3641_v6 = vadd.f32 1.0, %v9087_v23  ;;  %v3644_v17 = vmul.f32 -0.5, %v9087_v23  ;;  %v14478_v43 = vld [vmem:[%s9702_s23 + $0x430] sm:$0xff]  ;;  %v14480_v50 = vpop.f32.mrb[20].mxu0 }
 0x551   : > { %v3647_v54 = vand.u32 2147483647, %v9087_v23  ;;  %9098 = vlog2.f32 %v3578_v14  ;;  %vm14442_vm1 = vcmp.lt.f32.partialorder %v3593_v52, 0.0004427343  ;;  %vm14446_vm2 = vcmp.lt.f32.partialorder %v3584_v24, 0.0004427343 }
 0x552   : > { %9100 = vlog2.f32 %v3641_v6  ;;  %v3645_v37 = vadd.f32 1.0, %v3644_v17  ;;  %v14454_v26 = vmul.f32 %v9083_v38, %v3591_v60  ;;  %vm1146_vm4 = vcmp.gt.f32.partialorder %v14291_v39, 20.0  ;;  %15708 = vst [vmem:[#allocation29_spill] sm:$0xff] %v14480_v50  ;;  %v6959_v6 = vpop.f32.mrb[21].mxu0 }
 0x553   : > { %9102 = vlog2.f32 %v3632_v0  ;;  %vm14456_vm3 = vcmp.lt.f32.partialorder %v3647_v54, 0.0004427343  ;;  %v14461_v28 = vmul.f32 %v9081_v58, %v3582_v31  ;;  %v14463_v30 = vunpack.c.l.bf16 %v640_v33  ;;  %v6860_v58 = vpop.f32.mrb[51].mxu1  ;;  %v14485_v17 = vpop.f32.mrb[22].mxu0 }
 0x554   : > { %vm1153_vm5 = vcmp.gt.f32.partialorder %v14309_v22, 20.0  ;;  %v3636_v59 = vadd.f32 1.0, %v3635_v10  ;;  %vm14466_vm6 = vcmp.lt.f32.partialorder %v3638_v9, 0.0004427343  ;;  %v14470_v25 = vunpack.c.h.bf16 %v640_v33  ;;  %15709 = vst [vmem:[#allocation27_spill] sm:$0xff] %v14485_v17  ;;  %v6962_v9 = vpop.f32.mrb[23].mxu0 }
 0x555   : > { %v9089_v4 = vpop.eup %9088  ;;  %v14472_v18 = vunpack.c.l.bf16 %v643_v63  ;;  %v14474_v61 = vmul.f32 %v9087_v23, %v3645_v37  ;;  %vm1152_vm7 = vcmp.gt.f32.partialorder %v14306_v32, 20.0  ;;  %v14482_v60 = vunpack.c.h.bf16 %v643_v63 }
 0x556   : > { %v9091_v5 = vpop.eup %9090  ;;  %v4442_v46 = vadd.f32 1.0, %v9089_v4  ;;  %v4445_v38 = vmul.f32 -0.5, %v9089_v4  ;;  %v4448_v14 = vand.u32 2147483647, %v9089_v4  ;;  %v1446_v12 = vmin.f32 %v14463_v30, 20.0 }
 0x557   : > { %v9093_v29 = vpop.eup %9092  ;;  %v4451_v24 = vadd.f32 1.0, %v9091_v5  ;;  %v4454_v52 = vmul.f32 -0.5, %v9091_v5  ;;  %v4457_v0 = vand.u32 2147483647, %v9091_v5  ;;  %v14488_v10 = vunpack.c.l.bf16 %v14478_v43 }
 0x558   : > { %9104 = vlog2.f32 %v4442_v46  ;;  %v4446_v31 = vadd.f32 1.0, %v4445_v38  ;;  %v4496_v23 = vadd.f32 1.0, %v9093_v29  ;;  %v4499_v48 = vmul.f32 -0.5, %v9093_v29  ;;  %v14495_v46 = vpop.f32.mrb[24].mxu0 }
 0x559   : > { %v9095_v54 = vpop.eup %9094  ;;  %9106 = vlog2.f32 %v4451_v24  ;;  %v4455_v33 = vadd.f32 1.0, %v4454_v52  ;;  %v3637_v45 = vmul.f32 %v14420_v57, %v3636_v59  ;;  %vm14491_vm8 = vcmp.lt.f32.partialorder %v4448_v14, 0.0004427343  ;;  %15712 = vst [vmem:[#allocation28_spill] sm:$0xff] %v14495_v46  ;;  %v6967_v9 = vpop.f32.mrb[25].mxu0 }
 0x55a   : > { %v9097_v37 = vpop.eup %9096  ;;  %v4505_v53 = vadd.f32 1.0, %v9095_v54  ;;  %v4508_v63 = vmul.f32 -0.5, %v9095_v54  ;;  %v4511_v42 = vand.u32 2147483647, %v9095_v54  ;;  %vm14497_vm9 = vcmp.lt.f32.partialorder %v4457_v0, 0.0004427343 }
 0x55b   : > { %v9099_v38 = vpop.eup %9098  ;;  %v3589_v24 = vmul.f32 0.6931472, %v9097_v37  ;;  %vm1242_vm10 = vcmp.gt.f32.partialorder %v14369_v55, 20.0  ;;  %9108 = vlog2.f32 %v4496_v23  ;;  %v4500_v6 = vadd.f32 1.0, %v4499_v48  ;;  %v14503_v50 = vpop.f32.mrb[26].mxu0 }
 0x55c   : > { %v9101_v17 = vpop.eup %9100  ;;  %vm1243_vm11 = vcmp.gt.f32.partialorder %v14371_v20, 20.0  ;;  %9110 = vlog2.f32 %v4505_v53  ;;  %v4509_v57 = vadd.f32 1.0, %v4508_v63  ;;  %v3580_v59 = vmul.f32 0.6931472, %v9099_v38  ;;  %15715 = vst [vmem:[#allocation31_spill] sm:$0xff] %v14503_v50  ;;  %v6970_v23 = vpop.f32.mrb[27].mxu0 }
 0x55d   : > { %v4447_v14 = vmul.f32 %v9089_v4, %v4446_v31  ;;  %v9103_v46 = vpop.eup %9102  ;;  %v3595_v0 = vsel %vm14442_vm1, %v14454_v26, %v3589_v24  ;;  %v3643_v37 = vmul.f32 0.6931472, %v9101_v17  ;;  %v4456_v47 = vmul.f32 %v9091_v5, %v4455_v33  ;;  %v14519_v26 = vpop.f32.mrb[28].mxu0 }
 0x55e   : > { %v4502_v44 = vand.u32 2147483647, %v9093_v29  ;;  %v4891_v48 = vsel %vm1147_vm0, %v14294_v3, %v3595_v0  ;;  %vm14511_vm12 = vcmp.lt.f32.partialorder %v4511_v42, 0.0004427343  ;;  %v3586_v4 = vsel %vm14446_vm2, %v14461_v28, %v3580_v59  ;;  %15718 = vst [vmem:[#allocation30_spill] sm:$0xff] %v14519_v26  ;;  %v6975_v63 = vpop.f32.mrb[29].mxu0 }
 0x55f   : > { %v3634_v31 = vmul.f32 0.6931472, %v9103_v46  ;;  %vm1248_vm13 = vcmp.gt.f32.partialorder %v14373_v36, 20.0  ;;  %v4501_v49 = vmul.f32 %v9093_v29, %v4500_v6  ;;  %v3649_v5 = vsel %vm14456_vm3, %v14474_v61, %v3643_v37  ;;  %v6976_v34 = vpop.f32.mrb[30].mxu0  ;;  %v5535_v26 = vld [vmem:[#allocation11 + $0x38] sm:$0xff] }
 0x560   : > { %v5179_v17 = vmul.f32 %v4891_v48, %v4891_v48  ;;  %v4510_v3 = vmul.f32 %v9095_v54, %v4509_v57  ;;  %v4890_v33 = vsel %vm1146_vm4, %v14291_v39, %v3586_v4  ;;  %v4897_v40 = vsel %vm1153_vm5, %v14309_v22, %v3649_v5  ;;  %v6977_v38 = vpop.f32.mrb[31].mxu0 }
 0x561   : > { %v3640_v28 = vsel %vm14466_vm6, %v3637_v45, %v3634_v31  ;;  %v5178_v29 = vmul.f32 %v4890_v33, %v4890_v33  ;;  %vm14532_vm14 = vcmp.lt.f32.partialorder %v4502_v44, 0.0004427343  ;;  %v5185_v61 = vmul.f32 %v4897_v40, %v4897_v40  ;;  %v691_v44 = vld [vmem:[%s9702_s23 + $0x448] sm:$0xff] }
 0x562   : > { %v4896_v39 = vsel %vm1152_vm7, %v14306_v32, %v3640_v28  ;;  %v1447_v54 = vmin.f32 %v14470_v25, 20.0  ;;  %v1452_v46 = vmin.f32 %v14472_v18, 20.0  ;;  %v9105_v22 = vpop.eup %9104  ;;  %v1453_v19 = vmin.f32 %v14482_v60, 20.0 }
 0x563   : > { %v5184_v24 = vmul.f32 %v4896_v39, %v4896_v39  ;;  %v1906_v45 = vmul.f32 1.442695, %v1446_v12  ;;  %v14544_v6 = vunpack.c.h.bf16 %v14478_v43  ;;  %v9107_v9 = vpop.eup %9106  ;;  %v5389_v57 = vpack.c.bf16 %v5185_v61, %v5179_v17 }
 0x564   : > { %v4444_v59 = vmul.f32 0.6931472, %v9105_v22  ;;  %v1908_v0 = vmul.f32 1.442695, %v1447_v54  ;;  %v1918_v37 = vmul.f32 1.442695, %v1452_v46  ;;  %v14548_v12 = vunpack.c.l.bf16 %v691_v44 }
 0x565   : > { %v4453_v32 = vmul.f32 0.6931472, %v9107_v9  ;;  %v5388_v23 = vpack.c.bf16 %v5184_v24, %v5178_v29  ;;  %9112 = vpow2.f32 %v1906_v45  ;;  %v1920_v48 = vmul.f32 1.442695, %v1453_v19  ;;  %v9109_v4 = vpop.eup %9108  ;;  %6888 = vmatprep.subr.bf16.mxu1 %v5389_v57 }
 0x566   : > { %v4450_v31 = vsel %vm14491_vm8, %v4447_v14, %v4444_v59  ;;  %9114 = vpow2.f32 %v1908_v0  ;;  %v14550_v5 = vunpack.c.h.bf16 %v691_v44  ;;  %v9111_v43 = vpop.eup %9110  ;;  %v4498_v33 = vmul.f32 0.6931472, %v9109_v4 }
 0x567   : > { %v4459_v17 = vsel %vm14497_vm9, %v4456_v47, %v4453_v32  ;;  %6889 = vmatpush1.bf16.xpose.msra.mxu1 %v5388_v23  ;;  %v4986_v63 = vsel %vm1242_vm10, %v14369_v55, %v4450_v31  ;;  %9116 = vpow2.f32 %v1918_v37  ;;  %vm1249_vm15 = vcmp.gt.f32.partialorder %v14375_v16, 20.0  ;;  %v649_v31 = vld [vmem:[%s9702_s23 + $0x2f8] sm:$0xff] }
 0x568   : > { %v4507_v58 = vmul.f32 0.6931472, %v9111_v43  ;;  %v4987_v14 = vsel %vm1243_vm11, %v14371_v20, %v4459_v17  ;;  %9118 = vpow2.f32 %v1920_v48  ;;  %v4504_v52 = vsel %vm14532_vm14, %v4501_v49, %v4498_v33 }
 0x569   : > { %v5275_v40 = vmul.f32 %v4987_v14, %v4987_v14  ;;  %v5274_v47 = vmul.f32 %v4986_v63, %v4986_v63  ;;  %v4992_v55 = vsel %vm1248_vm13, %v14373_v36, %v4504_v52  ;;  %v1542_v29 = vmin.f32 %v14488_v10, 20.0  ;;  %v646_v36 = vld [vmem:[%s9702_s23 + $0x2e0] sm:$0xff] }
 0x56a   : > { %v4513_v28 = vsel %vm14511_vm12, %v4510_v3, %v4507_v58  ;;  %v1543_v34 = vmin.f32 %v14544_v6, 20.0  ;;  %v5280_v61 = vmul.f32 %v4992_v55, %v4992_v55  ;;  %v1548_v39 = vmin.f32 %v14548_v12, 20.0 }
 0x56b   : > { %v4993_v20 = vsel %vm1249_vm15, %v14375_v16, %v4513_v28  ;;  %v1549_v49 = vmin.f32 %v14550_v5, 20.0  ;;  %v2098_v54 = vmul.f32 1.442695, %v1542_v29  ;;  %v14574_v59 = vunpack.c.l.bf16 %v646_v36 }
 0x56c   : > { %v5281_v42 = vmul.f32 %v4993_v20, %v4993_v20  ;;  %v2100_v53 = vmul.f32 1.442695, %v1543_v34  ;;  %v5436_v3 = vpack.c.bf16 %v5280_v61, %v5274_v47  ;;  %v2110_v46 = vmul.f32 1.442695, %v1548_v39 }
 0x56d   : > { %v2112_v38 = vmul.f32 1.442695, %v1549_v49  ;;  %9120 = vpow2.f32 %v2098_v54  ;;  %v14577_v43 = vunpack.c.h.bf16 %v646_v36  ;;  %vm1158_vm0 = vcmp.gt.f32.partialorder %v14463_v30, 20.0 }
 0x56e   : > { %v5437_v22 = vpack.c.bf16 %v5281_v42, %v5275_v40  ;;  %9122 = vpow2.f32 %v2100_v53  ;;  %vm1159_vm1 = vcmp.gt.f32.partialorder %v14470_v25, 20.0  ;;  %v14589_v28 = vunpack.c.l.bf16 %v649_v31 }
 0x56f   : > { %v9113_v24 = vpop.eup %9112  ;;  %9124 = vpow2.f32 %v2110_v46  ;;  %vm1164_vm4 = vcmp.gt.f32.partialorder %v14472_v18, 20.0  ;;  %v14592_v34 = vunpack.c.h.bf16 %v649_v31  ;;  %v1458_v20 = vmin.f32 %v14574_v59, 20.0 }
 0x570   : > { %v9115_v19 = vpop.eup %9114  ;;  %7045 = vmatprep.subr.bf16.mxu0 %v5437_v22  ;;  %v3686_v16 = vadd.f32 1.0, %v9113_v24  ;;  %v3689_v45 = vmul.f32 -0.5, %v9113_v24  ;;  %9126 = vpow2.f32 %v2112_v38  ;;  %v3692_v32 = vand.u32 2147483647, %v9113_v24 }
 0x571   : > { %v9117_v44 = vpop.eup %9116  ;;  %7046 = vmatpush1.bf16.xpose.msra.mxu0 %v5436_v3  ;;  %v3695_v9 = vadd.f32 1.0, %v9115_v19  ;;  %v3698_v57 = vmul.f32 -0.5, %v9115_v19  ;;  %v3701_v37 = vand.u32 2147483647, %v9115_v19  ;;  %vm1165_vm5 = vcmp.gt.f32.partialorder %v14482_v60, 20.0 }
 0x572   : > { %v9119_v0 = vpop.eup %9118  ;;  %9128 = vlog2.f32 %v3686_v16  ;;  %v3740_v23 = vadd.f32 1.0, %v9117_v44  ;;  %v3690_v4 = vadd.f32 1.0, %v3689_v45  ;;  %v3743_v58 = vmul.f32 -0.5, %v9117_v44 }
 0x573   : > { %9130 = vlog2.f32 %v3695_v9  ;;  %v3749_v48 = vadd.f32 1.0, %v9119_v0  ;;  %v3699_v17 = vadd.f32 1.0, %v3698_v57  ;;  %v3752_v33 = vmul.f32 -0.5, %v9119_v0 }
 0x574   : > { %v3755_v63 = vand.u32 2147483647, %v9119_v0  ;;  %9132 = vlog2.f32 %v3740_v23  ;;  %v3746_v14 = vand.u32 2147483647, %v9117_v44  ;;  %vm14581_vm2 = vcmp.lt.f32.partialorder %v3701_v37, 0.0004427343 }
 0x575   : > { %9134 = vlog2.f32 %v3749_v48  ;;  %v3753_v52 = vadd.f32 1.0, %v3752_v33  ;;  %vm14585_vm3 = vcmp.lt.f32.partialorder %v3692_v32, 0.0004427343  ;;  %v3691_v55 = vmul.f32 %v9113_v24, %v3690_v4 }
 0x576   : > { %v3744_v29 = vadd.f32 1.0, %v3743_v58  ;;  %v3700_v39 = vmul.f32 %v9115_v19, %v3699_v17  ;;  %vm14596_vm6 = vcmp.lt.f32.partialorder %v3755_v63, 0.0004427343  ;;  %vm14600_vm7 = vcmp.lt.f32.partialorder %v3746_v14, 0.0004427343 }
 0x577   : > { %v9121_v61 = vpop.eup %9120  ;;  %v1459_v54 = vmin.f32 %v14577_v43, 20.0  ;;  %v3754_v3 = vmul.f32 %v9119_v0, %v3753_v52  ;;  %v1464_v45 = vmin.f32 %v14589_v28, 20.0  ;;  %v1465_v37 = vmin.f32 %v14592_v34, 20.0 }
 0x578   : > { %v9123_v53 = vpop.eup %9122  ;;  %v4550_v46 = vadd.f32 1.0, %v9121_v61  ;;  %v4553_v38 = vmul.f32 -0.5, %v9121_v61  ;;  %v4556_v22 = vand.u32 2147483647, %v9121_v61  ;;  %v3745_v57 = vmul.f32 %v9117_v44, %v3744_v29 }
 0x579   : > { %v14605_v36 = vpop.eup %9124  ;;  %v4559_v24 = vadd.f32 1.0, %v9123_v53  ;;  %v4562_v16 = vmul.f32 -0.5, %v9123_v53  ;;  %v4565_v19 = vand.u32 2147483647, %v9123_v53  ;;  %v1930_v32 = vmul.f32 1.442695, %v1458_v20 }
 0x57a   : > { %v14608_v9 = vpop.eup %9126  ;;  %9136 = vlog2.f32 %v4550_v46  ;;  %v4554_v48 = vadd.f32 1.0, %v4553_v38  ;;  %v4604_v4 = vadd.f32 1.0, %v14605_v36  ;;  %vm14614_vm8 = vcmp.lt.f32.partialorder %v4556_v22, 0.0004427343 }
 0x57b   : > { %9138 = vlog2.f32 %v4559_v24  ;;  %v4613_v0 = vadd.f32 1.0, %v14608_v9  ;;  %v4563_v17 = vadd.f32 1.0, %v4562_v16  ;;  %v4616_v33 = vmul.f32 -0.5, %v14608_v9 }
 0x57c   : > { %v9129_v23 = vpop.eup %9128  ;;  %vm14618_vm9 = vcmp.lt.f32.partialorder %v4565_v19, 0.0004427343  ;;  %v4619_v29 = vand.u32 2147483647, %v14608_v9  ;;  %vm1255_vm10 = vcmp.gt.f32.partialorder %v14544_v6, 20.0  ;;  %vm1254_vm11 = vcmp.gt.f32.partialorder %v14488_v10, 20.0 }
 0x57d   : > { %v9131_v31 = vpop.eup %9130  ;;  %v3688_v63 = vmul.f32 0.6931472, %v9129_v23  ;;  %9140 = vlog2.f32 %v4613_v0  ;;  %v4617_v46 = vadd.f32 1.0, %v4616_v33  ;;  %v4607_v24 = vmul.f32 -0.5, %v14605_v36 }
 0x57e   : > { %v9133_v44 = vpop.eup %9132  ;;  %v3697_v14 = vmul.f32 0.6931472, %v9131_v31  ;;  %9142 = vlog2.f32 %v4604_v4  ;;  %vm1261_vm12 = vcmp.gt.f32.partialorder %v14550_v5, 20.0  ;;  %v4555_v31 = vmul.f32 %v9121_v61, %v4554_v48  ;;  %v694_v4 = vld [vmem:[%s9702_s23 + $0x460] sm:$0xff] }
 0x57f   : > { %v9135_v20 = vpop.eup %9134  ;;  %v3694_v38 = vsel %vm14585_vm3, %v3691_v55, %v3688_v63  ;;  %v3742_v22 = vmul.f32 0.6931472, %v9133_v44  ;;  %v4564_v33 = vmul.f32 %v9123_v53, %v4563_v17  ;;  %v4618_v42 = vmul.f32 %v14608_v9, %v4617_v46  ;;  %v697_v53 = vld [vmem:[%s9702_s23 + $0x478] sm:$0xff] }
 0x580   : > { %v3703_v16 = vsel %vm14581_vm2, %v3700_v39, %v3697_v14  ;;  %v3751_v19 = vmul.f32 0.6931472, %v9135_v20  ;;  %v4902_v23 = vsel %vm1158_vm0, %v14463_v30, %v3694_v38  ;;  %vm1260_vm13 = vcmp.gt.f32.partialorder %v14548_v12, 20.0 }
 0x581   : > { %v4903_v47 = vsel %vm1159_vm1, %v14470_v25, %v3703_v16  ;;  %v3748_v55 = vsel %vm14600_vm7, %v3745_v57, %v3742_v22  ;;  %v5190_v0 = vmul.f32 %v4902_v23, %v4902_v23  ;;  %9144 = vpow2.f32 %v1930_v32 }
 0x582   : > { %v3757_v40 = vsel %vm14596_vm6, %v3754_v3, %v3751_v19  ;;  %v5191_v39 = vmul.f32 %v4903_v47, %v4903_v47  ;;  %v4908_v30 = vsel %vm1164_vm4, %v14472_v18, %v3748_v55  ;;  %v4608_v49 = vadd.f32 1.0, %v4607_v24 }
 0x583   : > { %v4909_v25 = vsel %vm1165_vm5, %v14482_v60, %v3757_v40  ;;  %v5196_v57 = vmul.f32 %v4908_v30, %v4908_v30  ;;  %v1932_v3 = vmul.f32 1.442695, %v1459_v54  ;;  %v1942_v48 = vmul.f32 1.442695, %v1464_v45 }
 0x584   : > { %v5197_v61 = vmul.f32 %v4909_v25, %v4909_v25  ;;  %v9137_v17 = vpop.eup %9136  ;;  %v4610_v18 = vand.u32 2147483647, %v14605_v36  ;;  %v1944_v44 = vmul.f32 1.442695, %v1465_v37  ;;  %v14652_v14 = vunpack.c.l.bf16 %v694_v4 }
 0x585   : > { %v5394_v63 = vpack.c.bf16 %v5196_v57, %v5190_v0  ;;  %v14654_v20 = vpop.f32.mrb[32].mxu0  ;;  %v9139_v60 = vpop.eup %9138  ;;  %v4552_v46 = vmul.f32 0.6931472, %v9137_v17  ;;  %9146 = vpow2.f32 %v1932_v3  ;;  %v14656_v38 = vunpack.c.h.bf16 %v694_v4 }
 0x586   : > { %v5395_v9 = vpack.c.bf16 %v5197_v61, %v5191_v39  ;;  %v7015_v32 = vpop.f32.mrb[33].mxu0  ;;  %v4561_v22 = vmul.f32 0.6931472, %v9139_v60  ;;  %9148 = vpow2.f32 %v1942_v48  ;;  %v14658_v54 = vunpack.c.l.bf16 %v697_v53 }
 0x587   : > { %v14660_v45 = vunpack.c.h.bf16 %v697_v53  ;;  %v14662_v24 = vpop.f32.mrb[34].mxu0  ;;  %v9141_v37 = vpop.eup %9140  ;;  %vm14664_vm14 = vcmp.lt.f32.partialorder %v4619_v29, 0.0004427343  ;;  %v4558_v19 = vsel %vm14614_vm8, %v4555_v31, %v4552_v46  ;;  %9150 = vpow2.f32 %v1944_v44  ;;  %v9186_v32 = vld [vmem:[%s9689_s29 + $0x10] sm:$0xff] }
 0x588   : > { %6890 = vmatprep.subr.bf16.mxu1 %v5395_v9  ;;  %v1554_v23 = vmin.f32 %v14652_v14, 20.0  ;;  %v7018_v47 = vpop.f32.mrb[35].mxu0  ;;  %v4567_v55 = vsel %vm14618_vm9, %v4564_v33, %v4561_v22  ;;  %v4615_v0 = vmul.f32 0.6931472, %v9141_v37  ;;  %v4609_v40 = vmul.f32 %v14605_v36, %v4608_v49  ;;  %v9143_v29 = vpop.eup %9142 }
 0x589   : > { %6891 = vmatpush1.bf16.xpose.msra.mxu1 %v5394_v63  ;;  %vm14674_vm15 = vcmp.lt.f32.partialorder %v4610_v18, 0.0004427343  ;;  %v4999_v58 = vsel %vm1255_vm10, %v14544_v6, %v4567_v55  ;;  %v4998_v31 = vsel %vm1254_vm11, %v14488_v10, %v4558_v19  ;;  %v1555_v52 = vmin.f32 %v14656_v38, 20.0 }
 0x58a   : > { %v1560_v33 = vmin.f32 %v14658_v54, 20.0  ;;  %v4621_v36 = vsel %vm14664_vm14, %v4618_v42, %v4615_v0  ;;  %v5287_v30 = vmul.f32 %v4999_v58, %v4999_v58  ;;  %v4606_v4 = vmul.f32 0.6931472, %v9143_v29 }
 0x58b   : > { %v1561_v25 = vmin.f32 %v14660_v45, 20.0  ;;  %v5005_v57 = vsel %vm1261_vm12, %v14550_v5, %v4621_v36  ;;  %v2122_v6 = vmul.f32 1.442695, %v1554_v23  ;;  %v2124_v61 = vmul.f32 1.442695, %v1555_v52  ;;  %v9145_v10 = vpop.eup %9144  ;;  %v14705_v23 = vld [vmem:[%s9689_s29 + $0x28] sm:$0xff] }
 0x58c   : > { %v2134_v49 = vmul.f32 1.442695, %v1560_v33  ;;  %v5293_v3 = vmul.f32 %v5005_v57, %v5005_v57  ;;  %v4612_v48 = vsel %vm14674_vm15, %v4609_v40, %v4606_v4  ;;  %v5286_v53 = vmul.f32 %v4998_v31, %v4998_v31 }
 0x58d   : > { %v14694_v17 = vpop.f32.mrb[36].mxu0  ;;  %v5004_v42 = vsel %vm1260_vm13, %v14548_v12, %v4612_v48  ;;  %9152 = vpow2.f32 %v2122_v6  ;;  %v2136_v63 = vmul.f32 1.442695, %v1561_v25  ;;  %v3797_v60 = vmul.f32 -0.5, %v9145_v10 }
 0x58e   : > { %15737 = vst [vmem:[#allocation18_spill] sm:$0xff] %v14694_v17  ;;  %v7023_v5 = vpop.f32.mrb[37].mxu0  ;;  %v5443_v18 = vpack.c.bf16 %v5293_v3, %v5287_v30  ;;  %v5292_v44 = vmul.f32 %v5004_v42, %v5004_v42  ;;  %9154 = vpow2.f32 %v2124_v61  ;;  %v5454_v22 = vunpack.c.l.bf16 %v9186_v32 }
 0x58f   : > { %v14699_v9 = vpop.f32.mrb[38].mxu0  ;;  %v9147_v46 = vpop.eup %9146  ;;  %9156 = vpow2.f32 %v2134_v49  ;;  %v3794_v37 = vadd.f32 1.0, %v9145_v10  ;;  %v5460_v12 = vunpack.c.l.bf16 %v14705_v23  ;;  %v3800_v29 = vand.u32 2147483647, %v9145_v10 }
 0x590   : > { %15738 = vst [vmem:[#allocation21_spill] sm:$0xff] %v14699_v9  ;;  %v7026_v16 = vpop.f32.mrb[39].mxu0  ;;  %v14702_v19 = vpop.eup %9148  ;;  %7047 = vmatprep.subr.bf16.mxu0 %v5443_v18  ;;  %v5442_v47 = vpack.c.bf16 %v5292_v44, %v5286_v53  ;;  %v3803_v55 = vadd.f32 1.0, %v9147_v46  ;;  %v3806_v0 = vmul.f32 -0.5, %v9147_v46  ;;  %v3809_v39 = vand.u32 2147483647, %v9147_v46 }
 0x591   : > { %v9151_v40 = vpop.eup %9150  ;;  %9158 = vpow2.f32 %v2136_v63  ;;  %v3848_v58 = vadd.f32 1.0, %v14702_v19  ;;  %v3798_v33 = vadd.f32 1.0, %v3797_v60  ;;  %v5484_v36 = vmul.f32 %v5454_v22, %v5454_v22 }
 0x592   : > { %7048 = vmatpush1.bf16.xpose.msra.mxu0 %v5442_v47  ;;  %9160 = vlog2.f32 %v3803_v55  ;;  %v3807_v31 = vadd.f32 1.0, %v3806_v0  ;;  %v3857_v52 = vadd.f32 1.0, %v9151_v40  ;;  %v3860_v30 = vmul.f32 -0.5, %v9151_v40 }
 0x593   : > { %v3863_v4 = vand.u32 2147483647, %v9151_v40  ;;  %9162 = vlog2.f32 %v3794_v37  ;;  %v5490_v25 = vmul.f32 %v5460_v12, %v5460_v12  ;;  %v3851_v57 = vmul.f32 -0.5, %v14702_v19 }
 0x594   : > { %9164 = vlog2.f32 %v3857_v52  ;;  %v3854_v6 = vand.u32 2147483647, %v14702_v19  ;;  %vm1171_vm0 = vcmp.gt.f32.partialorder %v14577_v43, 20.0  ;;  %v3861_v49 = vadd.f32 1.0, %v3860_v30  ;;  %v14747_v52 = vld [vmem:[%s9689_s29 + $0x40] sm:$0xff] }
 0x595   : > { %v14711_v61 = vpop.f32.mrb[40].mxu0  ;;  %9166 = vlog2.f32 %v3848_v58  ;;  %v5455_v3 = vunpack.c.h.bf16 %v9186_v32  ;;  %v3808_v53 = vmul.f32 %v9147_v46, %v3807_v31  ;;  %vm14714_vm1 = vcmp.lt.f32.partialorder %v3809_v39, 0.0004427343  ;;  %v5528_v32 = vld [vmem:[#allocation11] sm:$0xff] }
 0x596   : > { %15739 = vst [vmem:[#allocation22_spill] sm:$0xff] %v14711_v61  ;;  %v7031_v48 = vpop.f32.mrb[41].mxu0  ;;  %vm1170_vm2 = vcmp.gt.f32.partialorder %v14574_v59, 20.0  ;;  %v14719_v63 = vmul.f32 %v9145_v10, %v3798_v33  ;;  %vm14721_vm3 = vcmp.lt.f32.partialorder %v3800_v29, 0.0004427343  ;;  %vm1177_vm4 = vcmp.gt.f32.partialorder %v14592_v34, 20.0 }
 0x597   : > { %v7032_v18 = vpop.f32.mrb[42].mxu0  ;;  %v9153_v44 = vpop.eup %9152  ;;  %vm14726_vm5 = vcmp.lt.f32.partialorder %v3863_v4, 0.0004427343  ;;  %v3852_v46 = vadd.f32 1.0, %v3851_v57  ;;  %vm14730_vm6 = vcmp.lt.f32.partialorder %v3854_v6, 0.0004427343  ;;  %v5461_v10 = vunpack.c.h.bf16 %v14705_v23 }
 0x598   : > { %v7033_v22 = vpop.f32.mrb[43].mxu0  ;;  %v14735_v37 = vpop.eup %9154  ;;  %v3862_v16 = vmul.f32 %v9151_v40, %v3861_v49  ;;  %vm1176_vm7 = vcmp.gt.f32.partialorder %v14589_v28, 20.0  ;;  %v4658_v12 = vadd.f32 1.0, %v9153_v44  ;;  %v4661_v47 = vmul.f32 -0.5, %v9153_v44 }
 0x599   : > { %v14738_v55 = vpack.c.bf16 %v5490_v25, %v5484_v36  ;;  %v14740_v0 = vpop.eup %9156  ;;  %v4667_v39 = vadd.f32 1.0, %v14735_v37  ;;  %v4670_v29 = vmul.f32 -0.5, %v14735_v37  ;;  %v4664_v58 = vand.u32 2147483647, %v9153_v44  ;;  %v14752_v25 = vld [vmem:[%s9689_s29 + $0x58] sm:$0xff] }
 0x59a   : > { %v5485_v23 = vmul.f32 %v5455_v3, %v5455_v3  ;;  %v4673_v31 = vand.u32 2147483647, %v14735_v37  ;;  %9168 = vlog2.f32 %v4658_v12  ;;  %v4712_v40 = vadd.f32 1.0, %v14740_v0 }
 0x59b   : > { %v5467_v33 = vunpack.c.h.bf16 %v14747_v52  ;;  %v9159_v30 = vpop.eup %9158  ;;  %9170 = vlog2.f32 %v4667_v39  ;;  %v4662_v36 = vadd.f32 1.0, %v4661_v47  ;;  %v4715_v4 = vmul.f32 -0.5, %v14740_v0  ;;  %v5531_v39 = vld [vmem:[#allocation11 + $0x18] sm:$0xff] }
 0x59c   : > { %v5473_v57 = vunpack.c.h.bf16 %v14752_v25  ;;  %v9161_v6 = vpop.eup %9160  ;;  %v4721_v49 = vadd.f32 1.0, %v9159_v30  ;;  %v4724_v3 = vmul.f32 -0.5, %v9159_v30  ;;  %v3853_v48 = vmul.f32 %v14702_v19, %v3852_v46 }
 0x59d   : > { %v5491_v18 = vmul.f32 %v5461_v10, %v5461_v10  ;;  %v9163_v22 = vpop.eup %9162  ;;  %v3805_v12 = vmul.f32 0.6931472, %v9161_v6  ;;  %v4671_v61 = vadd.f32 1.0, %v4670_v29  ;;  %vm1266_vm8 = vcmp.gt.f32.partialorder %v14652_v14, 20.0 }
 0x59e   : > { %vm14757_vm9 = vcmp.lt.f32.partialorder %v4664_v58, 0.0004427343  ;;  %9172 = vlog2.f32 %v4712_v40  ;;  %v9165_v47 = vpop.eup %9164  ;;  %vm1267_vm10 = vcmp.gt.f32.partialorder %v14656_v38, 20.0  ;;  %vm14762_vm11 = vcmp.lt.f32.partialorder %v4673_v31, 0.0004427343 }
 0x59f   : > { %9174 = vlog2.f32 %v4721_v49  ;;  %v4727_v19 = vand.u32 2147483647, %v9159_v30  ;;  %v3796_v46 = vmul.f32 0.6931472, %v9163_v22  ;;  %v9167_v10 = vpop.eup %9166  ;;  %v3811_v29 = vsel %vm14714_vm1, %v3808_v53, %v3805_v12  ;;  %v5540_v12 = vld [vmem:[#allocation11 + $0x60] sm:$0xff] }
 0x5a0   : > { %v3859_v6 = vmul.f32 0.6931472, %v9165_v47  ;;  %v4663_v58 = vmul.f32 %v9153_v44, %v4662_v36  ;;  %v4716_v9 = vadd.f32 1.0, %v4715_v4  ;;  %v4915_v40 = vsel %vm1171_vm0, %v14577_v43, %v3811_v29 }
 0x5a1   : > { %v4725_v50 = vadd.f32 1.0, %v4724_v3  ;;  %v3802_v31 = vsel %vm14721_vm3, %v14719_v63, %v3796_v46  ;;  %v3850_v17 = vmul.f32 0.6931472, %v9167_v10  ;;  %vm1272_vm12 = vcmp.gt.f32.partialorder %v14658_v54, 20.0 }
 0x5a2   : > { %v3865_v49 = vsel %vm14726_vm5, %v3862_v16, %v3859_v6  ;;  %v5203_v42 = vmul.f32 %v4915_v40, %v4915_v40  ;;  %vm1273_vm13 = vcmp.gt.f32.partialorder %v14660_v45, 20.0  ;;  %v4914_v53 = vsel %vm1170_vm2, %v14574_v59, %v3802_v31  ;;  %v5529_v6 = vld [vmem:[#allocation11 + $0x8] sm:$0xff] }
 0x5a3   : > { %v4718_v43 = vand.u32 2147483647, %v14740_v0  ;;  %v4921_v5 = vsel %vm1177_vm4, %v14592_v34, %v3865_v49  ;;  %v3856_v63 = vsel %vm14730_vm6, %v3853_v48, %v3850_v17  ;;  %v5202_v44 = vmul.f32 %v4914_v53, %v4914_v53  ;;  %v5534_v53 = vld [vmem:[#allocation11 + $0x30] sm:$0xff] }
 0x5a4   : > { %v5515_v36 = vpack.c.bf16 %v5491_v18, %v5485_v23  ;;  %v5209_v60 = vmul.f32 %v4921_v5, %v4921_v5  ;;  %v4920_v16 = vsel %vm1176_vm7, %v14589_v28, %v3856_v63  ;;  %v5497_v4 = vmul.f32 %v5467_v33, %v5467_v33  ;;  %v9169_v59 = vpop.eup %9168  ;;  %v14798_v33 = vld [vmem:[%s9689_s29 + $0x70] sm:$0xff] }
 0x5a5   : > { %v5503_v3 = vmul.f32 %v5473_v57, %v5473_v57  ;;  %v4672_v22 = vmul.f32 %v14735_v37, %v4671_v61  ;;  %vm14791_vm14 = vcmp.lt.f32.partialorder %v4727_v19, 0.0004427343  ;;  %v5208_v34 = vmul.f32 %v4920_v16, %v4920_v16  ;;  %v9171_v23 = vpop.eup %9170 }
 0x5a6   : > { %6894 = vmatprep.mubr.bf16.mxu1 %v5515_v36  ;;  %7067 = vmatprep.mubr.bf16.mxu0 %v5515_v36  ;;  %v5466_v17 = vunpack.c.l.bf16 %v14747_v52  ;;  %v5401_v48 = vpack.c.bf16 %v5209_v60, %v5203_v42  ;;  %v4660_v18 = vmul.f32 0.6931472, %v9169_v59  ;;  %v5472_v28 = vunpack.c.l.bf16 %v14752_v25  ;;  %v5538_v36 = vld [vmem:[#allocation11 + $0x50] sm:$0xff] }
 0x5a7   : > { %v5479_v57 = vunpack.c.h.bf16 %v14798_v33  ;;  %v4669_v61 = vmul.f32 0.6931472, %v9171_v23  ;;  %v4726_v37 = vmul.f32 %v9159_v30, %v4725_v50  ;;  %v5400_v47 = vpack.c.bf16 %v5208_v34, %v5202_v44  ;;  %v5537_v44 = vld [vmem:[#allocation11 + $0x48] sm:$0xff] }
 0x5a8   : > { %v4717_v19 = vmul.f32 %v14740_v0, %v4716_v9  ;;  %v9173_v46 = vpop.eup %9172  ;;  %6892 = vmatprep.subr.bf16.mxu1 %v5401_v48  ;;  %v4666_v52 = vsel %vm14757_vm9, %v4663_v58, %v4660_v18  ;;  %vm14804_vm15 = vcmp.lt.f32.partialorder %v4718_v43, 0.0004427343  ;;  %v14808_v29 = vpack.c.bf16 %v5503_v3, %v5497_v4  ;;  %v5532_v58 = vld [vmem:[#allocation11 + $0x20] sm:$0xff]  ;;  %v15757_v23 = vld [vmem:[#allocation20_spill] sm:$0xff] }
 0x5a9   : > { %v6695_v25 = vadd.f32 %v14407_v8, %v5528_v32  ;;  %v9175_v40 = vpop.eup %9174  ;;  %v4675_v50 = vsel %vm14762_vm11, %v4672_v22, %v4669_v61  ;;  %6893 = vmatpush1.bf16.xpose.msra.mxu1 %v5400_v47  ;;  %v4714_v9 = vmul.f32 0.6931472, %v9173_v46  ;;  %v5010_v0 = vsel %vm1266_vm8, %v14652_v14, %v4666_v52  ;;  %v15759_v18 = vld [vmem:[#allocation27_spill] sm:$0xff]  ;;  %v15763_v61 = vld [vmem:[#allocation21_spill] sm:$0xff]  ;;  %v15764_v47 = vld [vmem:[#allocation30_spill] sm:$0xff] }
 0x5aa   : > { %v5496_v30 = vmul.f32 %v5466_v17, %v5466_v17  ;;  %v4723_v31 = vmul.f32 0.6931472, %v9175_v40  ;;  %v5011_v49 = vsel %vm1267_vm10, %v14656_v38, %v4675_v50  ;;  %v5502_v8 = vmul.f32 %v5472_v28, %v5472_v28  ;;  %v5541_v17 = vld [vmem:[#allocation11 + $0x68] sm:$0xff] }
 0x5ab   : > { %v5509_v42 = vmul.f32 %v5479_v57, %v5479_v57  ;;  %6710 = vst [vmem:[#allocation11] sm:$0xff] %v6695_v25  ;;  %v5299_v43 = vmul.f32 %v5011_v49, %v5011_v49  ;;  %v4720_v5 = vsel %vm14804_vm15, %v4717_v19, %v4714_v9  ;;  %v5298_v63 = vmul.f32 %v5010_v0, %v5010_v0  ;;  %v15762_v57 = vld [vmem:[#allocation31_spill] sm:$0xff]  ;;  %v15765_v19 = vld [vmem:[#allocation22_spill] sm:$0xff]  ;;  %v6726_v40 = vld [vmem:[#allocation2 + $0x8] sm:$0xff] }
 0x5ac   : > { %v6696_v14 = vadd.f32 %v14412_v21, %v5529_v6  ;;  %v4729_v60 = vsel %vm14791_vm14, %v4726_v37, %v4723_v31  ;;  %v5016_v38 = vsel %vm1272_vm12, %v14658_v54, %v4720_v5  ;;  %v6698_v16 = vadd.f32 %v14414_v1, %v5531_v39  ;;  %v6725_v6 = vld [vmem:[#allocation2] sm:$0xff]  ;;  %v6728_v9 = vld [vmem:[#allocation2 + $0x18] sm:$0xff]  ;;  %v6735_v5 = vld [vmem:[#allocation2 + $0x50] sm:$0xff] }
 0x5ad   : > { %v6699_v4 = vadd.f32 %v14418_v2, %v5532_v58  ;;  %v5017_v3 = vsel %vm1273_vm13, %v14660_v45, %v4729_v60  ;;  %v5304_v59 = vmul.f32 %v5016_v38, %v5016_v38  ;;  %v6701_v21 = vadd.f32 %v14422_v51, %v5534_v53  ;;  %v15756_v45 = vld [vmem:[#allocation19_spill] sm:$0xff]  ;;  %v6734_v53 = vld [vmem:[#allocation2 + $0x48] sm:$0xff] }
 0x5ae   : > { %6711 = vst [vmem:[#allocation11 + $0x8] sm:$0xff] %v6696_v14  ;;  %v6702_v22 = vadd.f32 %v14425_v35, %v5535_v26  ;;  %v5305_v34 = vmul.f32 %v5017_v3, %v5017_v3  ;;  %6713 = vst [vmem:[#allocation11 + $0x18] sm:$0xff] %v6698_v16  ;;  %v6704_v54 = vadd.f32 %v14429_v13, %v5537_v44  ;;  %v6730_v3 = vld [vmem:[#allocation2 + $0x28] sm:$0xff] }
 0x5af   : > { %6714 = vst [vmem:[#allocation11 + $0x20] sm:$0xff] %v6699_v4  ;;  %v6705_v1 = vadd.f32 %v14432_v41, %v5538_v36  ;;  %v6521_v2 = vadd.f32 %v14437_v15, %v13355_v56  ;;  %v5448_v32 = vpack.c.bf16 %v5304_v59, %v5298_v63  ;;  %6716 = vst [vmem:[#allocation11 + $0x30] sm:$0xff] %v6701_v21  ;;  %v15758_v41 = vld [vmem:[#allocation29_spill] sm:$0xff] }
 0x5b0   : > { %6717 = vst [vmem:[#allocation11 + $0x38] sm:$0xff] %v6702_v22  ;;  %v6523_v51 = vadd.f32 %v14450_v27, %v13359_v7  ;;  %v14842_v35 = vadd.f32 %v14439_v62, %v14416_v11  ;;  %v14846_v48 = vadd.f32 %v15757_v23, %v15756_v45  ;;  %v5449_v13 = vpack.c.bf16 %v5305_v34, %v5299_v43  ;;  %v15760_v62 = vld [vmem:[#allocation28_spill] sm:$0xff]  ;;  %v15761_v27 = vld [vmem:[#allocation18_spill] sm:$0xff]  ;;  %v6727_v63 = vld [vmem:[#allocation2 + $0x10] sm:$0xff] }
 0x5b1   : > { %6895 = vmatmul.mubr.bf16.vlgmr.msra.gmra.mrb[36].mxu1 %v14738_v55  ;;  %6719 = vst [vmem:[#allocation11 + $0x48] sm:$0xff] %v6704_v54  ;;  %6720 = vst [vmem:[#allocation11 + $0x50] sm:$0xff] %v6705_v1  ;;  %v6707_v56 = vadd.f32 %v6521_v2, %v5540_v12  ;;  %v7014_v15 = vadd.f32 %v14654_v20, %v15758_v41  ;;  %v7017_v7 = vadd.f32 %v14662_v24, %v15759_v18  ;;  %v6737_v1 = vld [vmem:[#allocation2 + $0x60] sm:$0xff] }
 0x5b2   : > { %6904 = vmatprep.mubr.bf16.mxu1 %v14808_v29  ;;  %v6708_v11 = vadd.f32 %v6523_v51, %v5541_v17  ;;  %v14856_v28 = vadd.f32 %v15761_v27, %v15760_v62  ;;  %v14860_v37 = vadd.f32 %v15763_v61, %v15762_v57  ;;  %v14864_v46 = vadd.f32 %v15765_v19, %v15764_v47  ;;  %v6733_v45 = vld [vmem:[#allocation2 + $0x40] sm:$0xff]  ;;  %v6739_v19 = vld [vmem:[#allocation2 + $0x70] sm:$0xff] }
 0x5b3   : > { %7049 = vmatprep.subr.bf16.mxu0 %v5449_v13  ;;  %6722 = vst [vmem:[#allocation11 + $0x60] sm:$0xff] %v6707_v56  ;;  %v5520_v20 = vpack.c.bf16 %v5502_v8, %v5496_v30  ;;  %v5478_v24 = vunpack.c.l.bf16 %v14798_v33  ;;  %v5527_v52 = vpack.c.bf16 %v5509_v42, %v5509_v42  ;;  %v6729_v33 = vld [vmem:[#allocation2 + $0x20] sm:$0xff]  ;;  %v6732_v8 = vld [vmem:[#allocation2 + $0x38] sm:$0xff] }
 0x5b4   : > { %7050 = vmatpush1.bf16.xpose.msra.mxu0 %v5448_v32  ;;  %6723 = vst [vmem:[#allocation11 + $0x68] sm:$0xff] %v6708_v11  ;;  %v6738_v32 = vld [vmem:[#allocation2 + $0x68] sm:$0xff]  ;;  %v6736_v11 = vld [vmem:[#allocation2 + $0x58] sm:$0xff] }
 0x5b5   : > { %v5508_v10 = vmul.f32 %v5478_v24, %v5478_v24 }
 0x5b7   : > { %v5526_v25 = vpack.c.bf16 %v5508_v10, %v5508_v10 }
 0x5b9   : > { %6905 = vmatmul.mubr.bf16.gmra.mrb[40].mxu1 %v5520_v20 }
 0x5ba   : > { %6914 = vmatprep.mubr.bf16.mxu1 %v5527_v52 }
 0x5bb   : > { %7068 = vmatmul.mubr.bf16.vlgmr.msra.gmra.mrb[44].mxu0 %v14738_v55 }
 0x5bc   : > { %7075 = vmatprep.mubr.bf16.mxu0 %v14808_v29  ;;  %v6731_v29 = vld [vmem:[#allocation2 + $0x30] sm:$0xff] }
 0x5c1   : > { %6915 = vmatmul.mubr.bf16.gmra.mrb[52].mxu1 %v5526_v25 }
 0x5c3   : > { %7076 = vmatmul.mubr.bf16.gmra.mrb[48].mxu0 %v5520_v20 }
 0x5c4   : > { %7083 = vmatprep.mubr.bf16.mxu0 %v5527_v52 }
 0x5cb   : > { %7084 = vmatmul.mubr.bf16.gmra.mrb[52].mxu0 %v5526_v25 }
 0x684   : > { %v6896_v50 = vpop.f32.mrb[36].mxu1 }
 0x685   : > { %v7091_v0 = vadd.f32 %v6896_v50, %v6725_v6  ;;  %v6898_v30 = vpop.f32.mrb[37].mxu1 }
 0x686   : > { %v7092_v39 = vadd.f32 %v6898_v30, %v6726_v40  ;;  %v6900_v58 = vpop.f32.mrb[38].mxu1 }
 0x687   : > { %7106 = vst [vmem:[#allocation2] sm:$0xff] %v7091_v0  ;;  %v7094_v31 = vadd.f32 %v6900_v58, %v6728_v9  ;;  %v6902_v49 = vpop.f32.mrb[39].mxu1 }
 0x688   : > { %7107 = vst [vmem:[#allocation2 + $0x8] sm:$0xff] %v7092_v39  ;;  %v7095_v55 = vadd.f32 %v6902_v49, %v6729_v33 }
 0x689   : > { %7109 = vst [vmem:[#allocation2 + $0x18] sm:$0xff] %v7094_v31 }
 0x68a   : > { %7110 = vst [vmem:[#allocation2 + $0x20] sm:$0xff] %v7095_v55 }
 0x68c   : > { %v6906_v42 = vpop.f32.mrb[40].mxu1 }
 0x68d   : > { %v7097_v26 = vadd.f32 %v6906_v42, %v6731_v29  ;;  %v6908_v43 = vpop.f32.mrb[41].mxu1 }
 0x68e   : > { %v7069_v14 = vpop.f32.mrb[44].mxu0  ;;  %v7098_v44 = vadd.f32 %v6908_v43, %v6732_v8  ;;  %v6910_v36 = vpop.f32.mrb[42].mxu1  ;;  %v7125_v25 = vld [vmem:[#allocation2] sm:$0xff] (!%p7656_p1) }
 0x68f   : > { %v7070_v60 = vadd.f32 %v7069_v14, %v7014_v15  ;;  %v7071_v38 = vpop.f32.mrb[45].mxu0  ;;  %7112 = vst [vmem:[#allocation2 + $0x30] sm:$0xff] %v7097_v26  ;;  %v7100_v16 = vadd.f32 %v6910_v36, %v6734_v53  ;;  %v6912_v4 = vpop.f32.mrb[43].mxu1  ;;  %v7126_v6 = vld [vmem:[#allocation2 + $0x8] sm:$0xff] (!%p7656_p1) }
 0x690   : > { %v7072_v59 = vpop.f32.mrb[46].mxu0  ;;  %7113 = vst [vmem:[#allocation2 + $0x38] sm:$0xff] %v7098_v44  ;;  %v7101_v21 = vadd.f32 %v6912_v4, %v6735_v5  ;;  %v14877_v40 = vmax.f32 (!%p7656_p1), %v7126_v6, 0.0  ;;  %v7128_v9 = vld [vmem:[#allocation2 + $0x18] sm:$0xff] (!%p7656_p1) }
 0x691   : > { %v7093_v22 = vadd.f32 %v7070_v60, %v6727_v63  ;;  %v7073_v12 = vadd.f32 %v7072_v59, %v7017_v7  ;;  %v7074_v34 = vpop.f32.mrb[47].mxu0  ;;  %7115 = vst [vmem:[#allocation2 + $0x48] sm:$0xff] %v7100_v16  ;;  %v14883_v30 = vmax.f32 (!%p7656_p1), %v7128_v9, 0.0 }
 0x692   : > { %7116 = vst [vmem:[#allocation2 + $0x50] sm:$0xff] %v7101_v21  ;;  %vm7179_vm2 = vcmp.eq.f32.partialorder (!%p7656_p1), %v14877_v40, inf  ;;  %vm7181_vm3 = vcmp.eq.f32.partialorder (!%p7656_p1), %v14877_v40, 0.0  ;;  %v7182_v8 = vand.u32 (!%p7656_p1), 2147483648, %v14877_v40  ;;  %v7275_v21 = vld [vmem:[#allocation9] sm:$0xff] (!%p7656_p1) }
 0x693   : > { %7108 = vst [vmem:[#allocation2 + $0x10] sm:$0xff] %v7093_v22  ;;  %v7096_v54 = vadd.f32 %v7073_v12, %v6730_v3  ;;  %vm7193_vm6 = vcmp.eq.f32.partialorder (!%p7656_p1), %v14883_v30, inf  ;;  %vm7195_vm7 = vcmp.eq.f32.partialorder (!%p7656_p1), %v14883_v30, 0.0  ;;  %v7196_v14 = vand.u32 (!%p7656_p1), 2147483648, %v14883_v30 }
 0x694   : > { %v6916_v2 = vpop.f32.mrb[52].mxu1 }
 0x695   : > { %7111 = vst [vmem:[#allocation2 + $0x28] sm:$0xff] %v7096_v54  ;;  %v6917_v17 = vadd.f32 %v6916_v2, %v14842_v35  ;;  %v6918_v51 = vpop.f32.mrb[53].mxu1  ;;  %v7276_v54 = vld [vmem:[#allocation9 + $0x8] sm:$0xff] (!%p7656_p1) }
 0x696   : > { %v7077_v23 = vpop.f32.mrb[48].mxu0  ;;  %v6919_v13 = vadd.f32 %v6918_v51, %v14846_v48  ;;  %v6920_v56 = vpop.f32.mrb[54].mxu1  ;;  %v7131_v49 = vld [vmem:[#allocation2 + $0x30] sm:$0xff] (!%p7656_p1) }
 0x697   : > { %v7078_v41 = vadd.f32 %v7077_v23, %v14856_v28  ;;  %v7079_v15 = vpop.f32.mrb[49].mxu0  ;;  %v7103_v18 = vadd.f32 %v6917_v17, %v6737_v1  ;;  %v6921_v7 = vpop.f32.mrb[55].mxu1  ;;  %v7132_v55 = vld [vmem:[#allocation2 + $0x38] sm:$0xff] (!%p7656_p1)  ;;  %v14904_v26 = vmax.f32 (!%p7656_p1), %v7131_v49, 0.0  ;;  %v7155_v17 = vld [vmem:[#allocation11] sm:$0xff] (!%p7656_p1)  ;;  %v7156_v56 = vld [vmem:[#allocation11 + $0x8] sm:$0xff] (!%p7656_p1) }
 0x698   : > { %v7080_v62 = vpop.f32.mrb[50].mxu0  ;;  %v7104_v27 = vadd.f32 %v6919_v13, %v6738_v32  ;;  %v7134_v42 = vld [vmem:[#allocation2 + $0x48] sm:$0xff] (!%p7656_p1)  ;;  %v14906_v43 = vmax.f32 (!%p7656_p1), %v7132_v55, 0.0 }
 0x699   : > { %v7099_v57 = vadd.f32 %v7078_v41, %v6733_v45  ;;  %v7081_v61 = vadd.f32 %v7080_v62, %v14860_v37  ;;  %v7082_v47 = vpop.f32.mrb[51].mxu0  ;;  %7118 = vst [vmem:[#allocation2 + $0x60] sm:$0xff] %v7103_v18  ;;  %v14875_v37 = vmax.f32 (!%p7656_p1), %v7125_v25, 0.0  ;;  %v7135_v63 = vld [vmem:[#allocation2 + $0x50] sm:$0xff] (!%p7656_p1)  ;;  %v14913_v44 = vmax.f32 (!%p7656_p1), %v7134_v42, 0.0  ;;  %v7277_v62 = vld [vmem:[#allocation9 + $0x10] sm:$0xff] (!%p7656_p1) }
 0x69a   : > { %7119 = vst [vmem:[#allocation2 + $0x68] sm:$0xff] %v7104_v27  ;;  %v7127_v50 = vld [vmem:[#allocation2 + $0x10] sm:$0xff] (!%p7656_p1)  ;;  %v14922_v59 = vmax.f32 (!%p7656_p1), %v7135_v63, 0.0  ;;  %vm7214_vm12 = vcmp.eq.f32.partialorder (!%p7656_p1), %v14904_v26, inf  ;;  %vm7216_vm13 = vcmp.eq.f32.partialorder (!%p7656_p1), %v14904_v26, 0.0  ;;  %v7217_v1 = vand.u32 (!%p7656_p1), 2147483648, %v14904_v26 }
 0x69b   : > { %7114 = vst [vmem:[#allocation2 + $0x40] sm:$0xff] %v7099_v57  ;;  %v7102_v35 = vadd.f32 %v7081_v61, %v6736_v11  ;;  %9191 = vrsqrt.f32 (!%p7656_p1), %v14875_v37  ;;  %v14881_v0 = vmax.f32 (!%p7656_p1), %v7127_v50, 0.0  ;;  %vm7172_vm0 = vcmp.eq.f32.partialorder (!%p7656_p1), %v14875_v37, inf  ;;  %v7280_v50 = vld [vmem:[#allocation9 + $0x28] sm:$0xff] (!%p7656_p1) }
 0x69c   : > { %9193 = vrsqrt.f32 (!%p7656_p1), %v14877_v40  ;;  %v7130_v39 = vld [vmem:[#allocation2 + $0x28] sm:$0xff] (!%p7656_p1)  ;;  %vm7174_vm1 = vcmp.eq.f32.partialorder (!%p7656_p1), %v14875_v37, 0.0  ;;  %v7175_v31 = vand.u32 (!%p7656_p1), 2147483648, %v14875_v37  ;;  %vm7221_vm14 = vcmp.eq.f32.partialorder (!%p7656_p1), %v14906_v43, inf }
 0x69d   : > { %7117 = vst [vmem:[#allocation2 + $0x58] sm:$0xff] %v7102_v35  ;;  %7124 = sbr.rel (%p7656_p1) target bundleno = 1741 (0x6cd), region = 60  ;;  %v14887_v58 = vmax.f32 (!%p7656_p1), %v7130_v39, 0.0  ;;  %9195 = vrsqrt.f32 (!%p7656_p1), %v14881_v0  ;;  %vm7186_vm4 = vcmp.eq.f32.partialorder (!%p7656_p1), %v14881_v0, inf  ;;  %vm7188_vm5 = vcmp.eq.f32.partialorder (!%p7656_p1), %v14881_v0, 0.0  ;;  %v7278_v35 = vld [vmem:[#allocation9 + $0x18] sm:$0xff] (!%p7656_p1) }
 0x69e   : > { %v7085_v48 = vpop.f32.mrb[52].mxu0  ;;  %9197 = vrsqrt.f32 (!%p7656_p1), %v14883_v30  ;;  %v7189_v53 = vand.u32 (!%p7656_p1), 2147483648, %v14881_v0  ;;  %vm7223_vm15 = vcmp.eq.f32.partialorder (!%p7656_p1), %v14906_v43, 0.0  ;;  %v7224_v45 = vand.u32 (!%p7656_p1), 2147483648, %v14906_v43  ;;  %v7159_v39 = vld [vmem:[#allocation11 + $0x20] sm:$0xff] (!%p7656_p1) }
 0x69f   : > { %v7086_v20 = vadd.f32 %v7085_v48, %v14864_v46  ;;  %v7087_v28 = vpop.f32.mrb[53].mxu0  ;;  %v7129_v46 = vld [vmem:[#allocation2 + $0x20] sm:$0xff] (!%p7656_p1)  ;;  %vm7207_vm10 = vcmp.eq.f32.partialorder (!%p7656_p1), %v14887_v58, inf  ;;  %vm7209_vm11 = vcmp.eq.f32.partialorder (!%p7656_p1), %v14887_v58, 0.0  ;;  %v7210_v3 = vand.u32 (!%p7656_p1), 2147483648, %v14887_v58 }
 0x6a0   : > { %v7088_v24 = vpop.f32.mrb[54].mxu0  ;;  %v14885_v33 = vmax.f32 (!%p7656_p1), %v7129_v46, 0.0  ;;  %v7238_v9 = vand.u32 (!%p7656_p1), 2147483648, %v14913_v44 }
 0x6a1   : > { %v7105_v52 = vadd.f32 %v7086_v20, %v6739_v19  ;;  %v7089_v10 = vpop.f32.mrb[55].mxu0  ;;  %v7157_v20 = vld [vmem:[#allocation11 + $0x10] sm:$0xff] (!%p7656_p1) }
 0x6a2   : > { %v7133_v29 = vld [vmem:[#allocation2 + $0x40] sm:$0xff] (!%p7656_p1)  ;;  %9199 = vrsqrt.f32 (!%p7656_p1), %v14885_v33  ;;  %vm7200_vm8 = vcmp.eq.f32.partialorder (!%p7656_p1), %v14885_v33, inf  ;;  %vm7202_vm9 = vcmp.eq.f32.partialorder (!%p7656_p1), %v14885_v33, 0.0  ;;  %v7203_v38 = vand.u32 (!%p7656_p1), 2147483648, %v14885_v33 }
 0x6a3   : > { %7120 = vst [vmem:[#allocation2 + $0x70] sm:$0xff] %v7105_v52  ;;  %9201 = vrsqrt.f32 (!%p7656_p1), %v14887_v58  ;;  %v14908_v5 = vmax.f32 (!%p7656_p1), %v7133_v29, 0.0  ;;  %v7279_v52 = vld [vmem:[#allocation9 + $0x20] sm:$0xff] (!%p7656_p1) }
 0x6a4   : > { %v7136_v36 = vld [vmem:[#allocation2 + $0x58] sm:$0xff]  ;;  %9203 = vrsqrt.f32 %v14904_v26 }
 0x6a5   : > { %v9192_v60 = vpop.eup %9191  ;;  %9205 = vrsqrt.f32 %v14906_v43  ;;  %v14927_v12 = vmax.f32 %v7136_v36, 0.0  ;;  %v7231_v18 = vand.u32 2147483648, %v14908_v5  ;;  %v7281_v36 = vld [vmem:[#allocation9 + $0x30] sm:$0xff] }
 0x6a6   : > { %v9194_v16 = vpop.eup %9193  ;;  %v7171_v4 = vmul.f32 %v9192_v60, %v14875_v37  ;;  %9207 = vrsqrt.f32 %v14908_v5 }
 0x6a7   : > { %v7178_v22 = vmul.f32 %v9194_v16, %v14877_v40  ;;  %9209 = vrsqrt.f32 %v14913_v44  ;;  %v9196_v2 = vpop.eup %9195 }
 0x6a8   : > { %v7173_v34 = vsel %vm7172_vm0, %v14875_v37, %v7171_v4  ;;  %vm7228_vm0 = vcmp.eq.f32.partialorder %v14908_v5, inf  ;;  %v9198_v23 = vpop.eup %9197  ;;  %v7185_v15 = vmul.f32 %v9196_v2, %v14881_v0  ;;  %9211 = vrsqrt.f32 %v14922_v59  ;;  %v7158_v37 = vld [vmem:[#allocation11 + $0x18] sm:$0xff] }
 0x6a9   : > { %v7176_v32 = vsel %vm7174_vm1, %v7175_v31, %v7173_v34  ;;  %v7180_v51 = vsel %vm7179_vm2, %v14877_v40, %v7178_v22  ;;  %vm7230_vm1 = vcmp.eq.f32.partialorder %v14908_v5, 0.0  ;;  %v7192_v27 = vmul.f32 %v9198_v23, %v14883_v30  ;;  %v7161_v34 = vld [vmem:[#allocation11 + $0x30] sm:$0xff]  ;;  %v7162_v23 = vld [vmem:[#allocation11 + $0x38] sm:$0xff] }
 0x6aa   : > { %v7290_v13 = vmul.f32 %v7275_v21, %v7176_v32  ;;  %v7183_v41 = vsel %vm7181_vm3, %v7182_v8, %v7180_v51  ;;  %vm7235_vm2 = vcmp.eq.f32.partialorder %v14913_v44, inf  ;;  %v7187_v47 = vsel %vm7186_vm4, %v14881_v0, %v7185_v15  ;;  %v7160_v8 = vld [vmem:[#allocation11 + $0x28] sm:$0xff]  ;;  %v7282_v21 = vld [vmem:[#allocation9 + $0x38] sm:$0xff] }
 0x6ab   : > { %v7291_v11 = vmul.f32 %v7276_v54, %v7183_v41  ;;  %vm7237_vm3 = vcmp.eq.f32.partialorder %v14913_v44, 0.0  ;;  %v7190_v28 = vsel %vm7188_vm5, %v7189_v53, %v7187_v47  ;;  %v7194_v24 = vsel %vm7193_vm6, %v14883_v30, %v7192_v27 }
 0x6ac   : > { %v9200_v7 = vpop.eup %9199  ;;  %v7305_v61 = vadd.f32 %v7290_v13, %v7155_v17  ;;  %v7292_v25 = vmul.f32 %v7277_v62, %v7190_v28  ;;  %v7197_v6 = vsel %vm7195_vm7, %v7196_v14, %v7194_v24  ;;  %9213 = vrsqrt.f32 %v14927_v12  ;;  %v7283_v17 = vld [vmem:[#allocation9 + $0x40] sm:$0xff]  ;;  %v7285_v28 = vld [vmem:[#allocation9 + $0x50] sm:$0xff] }
 0x6ad   : > { %v9202_v57 = vpop.eup %9201  ;;  %v7199_v19 = vmul.f32 %v9200_v7, %v14885_v33  ;;  %v7306_v48 = vadd.f32 %v7291_v11, %v7156_v56  ;;  %v7293_v0 = vmul.f32 %v7278_v35, %v7197_v6  ;;  %vm7242_vm4 = vcmp.eq.f32.partialorder %v14922_v59, inf  ;;  %v7163_v7 = vld [vmem:[#allocation11 + $0x40] sm:$0xff]  ;;  %v7138_v35 = vld [vmem:[#allocation2 + $0x68] sm:$0xff] }
 0x6ae   : > { %v7206_v10 = vmul.f32 %v9202_v57, %v14887_v58  ;;  %7320 = vst [vmem:[#allocation11] sm:$0xff] %v7305_v61  ;;  %v9204_v46 = vpop.eup %9203  ;;  %v7307_v55 = vadd.f32 %v7292_v25, %v7157_v20  ;;  %vm7244_vm5 = vcmp.eq.f32.partialorder %v14922_v59, 0.0  ;;  %v7245_v56 = vand.u32 2147483648, %v14922_v59  ;;  %v7164_v57 = vld [vmem:[#allocation11 + $0x48] sm:$0xff] }
 0x6af   : > { %v7201_v40 = vsel %vm7200_vm8, %v14885_v33, %v7199_v19  ;;  %7321 = vst [vmem:[#allocation11 + $0x8] sm:$0xff] %v7306_v48  ;;  %v9206_v49 = vpop.eup %9205  ;;  %v7213_v53 = vmul.f32 %v9204_v46, %v14904_v26  ;;  %v7308_v33 = vadd.f32 %v7293_v0, %v7158_v37  ;;  %v7139_v19 = vld [vmem:[#allocation2 + $0x70] sm:$0xff]  ;;  %vm7249_vm6 = vcmp.eq.f32.partialorder %v14927_v12, inf }
 0x6b0   : > { %v7204_v31 = vsel %vm7202_vm9, %v7203_v38, %v7201_v40  ;;  %v7208_v30 = vsel %vm7207_vm10, %v14887_v58, %v7206_v10  ;;  %v9208_v63 = vpop.eup %9207  ;;  %v7220_v60 = vmul.f32 %v9206_v49, %v14906_v43  ;;  %7322 = vst [vmem:[#allocation11 + $0x10] sm:$0xff] %v7307_v55  ;;  %v7252_v24 = vand.u32 2147483648, %v14927_v12  ;;  %v7165_v10 = vld [vmem:[#allocation11 + $0x50] sm:$0xff] }
 0x6b1   : > { %v7294_v29 = vmul.f32 %v7279_v52, %v7204_v31  ;;  %v7211_v42 = vsel %vm7209_vm11, %v7210_v3, %v7208_v30  ;;  %v9210_v38 = vpop.eup %9209  ;;  %v7215_v4 = vsel %vm7214_vm12, %v14904_v26, %v7213_v53  ;;  %v7227_v58 = vmul.f32 %v9208_v63, %v14908_v5  ;;  %v7137_v3 = vld [vmem:[#allocation2 + $0x60] sm:$0xff]  ;;  %7323 = vst [vmem:[#allocation11 + $0x18] sm:$0xff] %v7308_v33 }
 0x6b2   : > { %v7295_v14 = vmul.f32 %v7280_v50, %v7211_v42  ;;  %v7218_v54 = vsel %vm7216_vm13, %v7217_v1, %v7215_v4  ;;  %v7222_v2 = vsel %vm7221_vm14, %v14906_v43, %v7220_v60  ;;  %v7234_v32 = vmul.f32 %v9210_v38, %v14913_v44  ;;  %v7284_v1 = vld [vmem:[#allocation9 + $0x48] sm:$0xff]  ;;  %v9212_v41 = vpop.eup %9211  ;;  %v7167_v63 = vld [vmem:[#allocation11 + $0x60] sm:$0xff] }
 0x6b3   : > { %v7309_v16 = vadd.f32 %v7294_v29, %v7159_v39  ;;  %v7296_v51 = vmul.f32 %v7281_v36, %v7218_v54  ;;  %v7225_v13 = vsel %vm7223_vm15, %v7224_v45, %v7222_v2  ;;  %v7229_v26 = vsel %vm7228_vm0, %v14908_v5, %v7227_v58  ;;  %v7166_v39 = vld [vmem:[#allocation11 + $0x58] sm:$0xff] }
 0x6b4   : > { %v7310_v22 = vadd.f32 %v7295_v14, %v7160_v8  ;;  %v7297_v15 = vmul.f32 %v7282_v21, %v7225_v13  ;;  %v7232_v11 = vsel %vm7230_vm1, %v7231_v18, %v7229_v26  ;;  %v7236_v43 = vsel %vm7235_vm2, %v14913_v44, %v7234_v32  ;;  %v7287_v8 = vld [vmem:[#allocation9 + $0x60] sm:$0xff] }
 0x6b5   : > { %7324 = vst [vmem:[#allocation11 + $0x20] sm:$0xff] %v7309_v16  ;;  %v7152_v45 = vmax.f32 %v7137_v3, 0.0  ;;  %v7311_v62 = vadd.f32 %v7296_v51, %v7161_v34  ;;  %v7298_v27 = vmul.f32 %v7283_v17, %v7232_v11  ;;  %v7239_v61 = vsel %vm7237_vm3, %v7238_v9, %v7236_v43  ;;  %v7286_v9 = vld [vmem:[#allocation9 + $0x58] sm:$0xff]  ;;  %v7288_v16 = vld [vmem:[#allocation9 + $0x68] sm:$0xff]  ;;  %v7289_v3 = vld [vmem:[#allocation9 + $0x70] sm:$0xff] }
 0x6b6   : > { %7325 = vst [vmem:[#allocation11 + $0x28] sm:$0xff] %v7310_v22  ;;  %v7241_v47 = vmul.f32 %v9212_v41, %v14922_v59  ;;  %v7312_v48 = vadd.f32 %v7297_v15, %v7162_v23  ;;  %v7299_v20 = vmul.f32 %v7284_v1, %v7239_v61  ;;  %v9214_v44 = vpop.eup %9213  ;;  %v7153_v37 = vmax.f32 %v7138_v35, 0.0  ;;  %v7168_v22 = vld [vmem:[#allocation11 + $0x68] sm:$0xff]  ;;  %v7169_v17 = vld [vmem:[#allocation11 + $0x70] sm:$0xff] }
 0x6b7   : > { %9215 = vrsqrt.f32 %v7152_v45  ;;  %7326 = vst [vmem:[#allocation11 + $0x30] sm:$0xff] %v7311_v62  ;;  %v7313_v5 = vadd.f32 %v7298_v27, %v7163_v7  ;;  %v7154_v6 = vmax.f32 %v7139_v19, 0.0  ;;  %v7248_v50 = vmul.f32 %v9214_v44, %v14927_v12 }
 0x6b8   : > { %v7243_v18 = vsel %vm7242_vm4, %v14922_v59, %v7241_v47  ;;  %7327 = vst [vmem:[#allocation11 + $0x38] sm:$0xff] %v7312_v48  ;;  %v7314_v52 = vadd.f32 %v7299_v20, %v7164_v57  ;;  %vm7251_vm7 = vcmp.eq.f32.partialorder %v14927_v12, 0.0  ;;  %9217 = vrsqrt.f32 %v7153_v37 }
 0x6b9   : > { %v7246_v25 = vsel %vm7244_vm5, %v7245_v56, %v7243_v18  ;;  %7328 = vst [vmem:[#allocation11 + $0x40] sm:$0xff] %v7313_v5  ;;  %v7250_v0 = vsel %vm7249_vm6, %v14927_v12, %v7248_v50  ;;  %9219 = vrsqrt.f32 %v7154_v6  ;;  %vm7256_vm8 = vcmp.eq.f32.partialorder %v7152_v45, inf }
 0x6ba   : > { %v7300_v40 = vmul.f32 %v7285_v28, %v7246_v25  ;;  %7329 = vst [vmem:[#allocation11 + $0x48] sm:$0xff] %v7314_v52  ;;  %v7253_v59 = vsel %vm7251_vm7, %v7252_v24, %v7250_v0  ;;  %v7259_v55 = vand.u32 2147483648, %v7152_v45  ;;  %vm7258_vm9 = vcmp.eq.f32.partialorder %v7152_v45, 0.0 }
 0x6bb   : > { %v7301_v31 = vmul.f32 %v7286_v9, %v7253_v59  ;;  %vm7263_vm10 = vcmp.eq.f32.partialorder %v7153_v37, inf  ;;  %vm7265_vm11 = vcmp.eq.f32.partialorder %v7153_v37, 0.0  ;;  %v7266_v12 = vand.u32 2147483648, %v7153_v37 }
 0x6bc   : > { %v7315_v46 = vadd.f32 %v7300_v40, %v7165_v10  ;;  %vm7270_vm12 = vcmp.eq.f32.partialorder %v7154_v6, inf  ;;  %v7273_v38 = vand.u32 2147483648, %v7154_v6  ;;  %vm7272_vm13 = vcmp.eq.f32.partialorder %v7154_v6, 0.0 }
 0x6bd   : > { %v7316_v30 = vadd.f32 %v7301_v31, %v7166_v39 }
 0x6be   : > { %7330 = vst [vmem:[#allocation11 + $0x50] sm:$0xff] %v7315_v46 }
 0x6bf   : > { %7331 = vst [vmem:[#allocation11 + $0x58] sm:$0xff] %v7316_v30 }
 0x6c1   : > { %v9216_v49 = vpop.eup %9215 }
 0x6c2   : > { %v7255_v29 = vmul.f32 %v9216_v49, %v7152_v45  ;;  %v9218_v53 = vpop.eup %9217 }
 0x6c3   : > { %v9220_v14 = vpop.eup %9219  ;;  %v7262_v60 = vmul.f32 %v9218_v53, %v7153_v37 }
 0x6c4   : > { %v7257_v42 = vsel %vm7256_vm8, %v7152_v45, %v7255_v29  ;;  %v7269_v4 = vmul.f32 %v9220_v14, %v7154_v6 }
 0x6c5   : > { %v7260_v33 = vsel %vm7258_vm9, %v7259_v55, %v7257_v42  ;;  %v7264_v58 = vsel %vm7263_vm10, %v7153_v37, %v7262_v60 }
 0x6c6   : > { %v7302_v36 = vmul.f32 %v7287_v8, %v7260_v33  ;;  %v7267_v34 = vsel %vm7265_vm11, %v7266_v12, %v7264_v58  ;;  %v7271_v54 = vsel %vm7270_vm12, %v7154_v6, %v7269_v4 }
 0x6c7   : > { %v7303_v2 = vmul.f32 %v7288_v16, %v7267_v34  ;;  %v7274_v32 = vsel %vm7272_vm13, %v7273_v38, %v7271_v54 }
 0x6c8   : > { %v7317_v21 = vadd.f32 %v7302_v36, %v7167_v63  ;;  %v7304_v51 = vmul.f32 %v7289_v3, %v7274_v32 }
 0x6c9   : > { %v7318_v23 = vadd.f32 %v7303_v2, %v7168_v22 }
 0x6ca   : > { %7332 = vst [vmem:[#allocation11 + $0x60] sm:$0xff] %v7317_v21  ;;  %v7319_v13 = vadd.f32 %v7304_v51, %v7169_v17 }
 0x6cb   : > { %7333 = vst [vmem:[#allocation11 + $0x68] sm:$0xff] %v7318_v23 }
 0x6cc   : > { %7334 = vst [vmem:[#allocation11 + $0x70] sm:$0xff] %v7319_v13 }
 0x6cd PF: > { %p7732_p4 = scmp.eq.s32.totalorder %s9564_s14, 1  ;;  %s9437_s18 = smov [#allocation11]  }
 0x6ce   : > { %s7347_s22 = sshll.u32 %s9437_s18, 4  ;;  %s7348_s22 = int_to_ptr.vmem [resolvable:$true] %s7347_s22 }
 0x6cf   : > { %s9339_s1 = scalar_lea.vmem %s7348_s22, 1920  ;;  %p9346_p7 = scmp.lt.s32.totalorder %s7348_s22, %s7348_s22 }
 0x6d0   : > { %p9340_p6 = scmp.ne.s32.totalorder %s7348_s22, %s9339_s1  ;;  %p9347_p9 = scmp.lt.s32.totalorder %s9339_s1, %s9339_s1 }
 0x6d2   : > { %p9341_p13 = pnand %p9340_p6, %p7732_p4  ;;  %p9348_p12 = por %p9347_p9, %p9346_p7 }
 0x6d4   : > { %p9342_p3 = pneg %p9341_p13 }
 0x6d6   : > { %p9349_p10 = pnand %p9348_p12, %p9342_p3 }
 0x6d8   : > { %9352 = shalt.err (!%p9349_p10)
}
 0x6d9   : > { %s9353_s15 = scalar_lea.hbm %s15074_s4, 1920 }
 0x6da   : > { %p9354_p8 = scmp.ne.s32.totalorder %s15074_s4, %s9353_s15  ;;  %p9359_p5 = scmp.lt.u32.totalorder %s9353_s15, %s15074_s4 }
 0x6dc   : > { %p9355_p11 = pnand %p9354_p8, %p7732_p4 }
 0x6de   : > { %p9356_p2 = pneg %p9355_p11 }
 0x6e0   : > { %p9361_p0 = pnand %p9359_p5, %p9356_p2 }
 0x6e2   : > { %9364 = shalt.err (!%p9361_p0)
}
 0x6e3   : > { %s9438_s24 = smov 384   ;;  %s9439_s10 = smov 24  }
 0x6e4   : > { %7712 = dma.vmem_to_hbm [thread:$0]  (%p7732_p4), %s7348_s22, 1920, %s15074_s4, [#allocation5], %s9438_s24, %s9438_s24, %s9439_s10  }
 0x6e5   : > { %9402 = dma.done.wait (%p7732_p4), [#allocation5], 1920  }
 0x6e6   : > { %9404 = vsyncadd (%p7732_p4), [#allocation5], 4294965376 }
 0x6e7 PF: > { %s22_s20 = sadd.s32 1, %s9427_s20   ;;  %s15766_s18 = sld [smem:[#allocation16_spill]] }
 0x6e8   : > { %p19_p1 = scmp.ge.s32.totalorder %s22_s20, 4   ;;  %s15767_s19 = sld [smem:[#allocation17_spill]] }
 0x6e9   : > { %s15768_s15 = smov %s9411_s16  ;;  %s15769_s16 = smov %s9415_s17 }
 0x6ea   : > { %s15770_s17 = smov %s9512_s26  ;;  %21 = sbr.rel (!%p19_p1) target bundleno = 11 (0xb), region = 111 }
 0x6f1   :  { %7363 = vsyncpa [#allocation4], 1 }
 0x6f2   :  { %7365 = vsyncpa [#allocation4 + $0x1], 1 }
 0x6f3   :  { %7366 = vsyncpa [#allocation7], 1 }
 0x6f4   :  { %7368 = vsyncpa [#allocation7 + $0x1], 1 }
 0x6f5   :  { %7369 = vsyncpa [#allocation10], 1 }
 0x6f6   :  { %7370 = vsyncpa [#allocation5], 1 }
 0x6f7   :  { %7372 = vsyncpa [#allocation5 + $0x1], 1 }

</bundles_post_ra>
